<compile_context>
chip_gen: v5e
topology: v5e:2x2
jax: 0.10.0
libtpu: 0.0.40
codegen_flags: <defaults>
</compile_context>

<pallas_src>
import numpy as np
import jax
import jax.numpy as jnp
from jax.experimental import pallas as pl
from jax.experimental.pallas import tpu as pltpu


def _full_spec(a):
    """BlockSpec covering the whole (grid-invariant) array."""
    r = a.ndim
    return pl.BlockSpec(a.shape, lambda g, _r=r: (0,) * _r)


def _round_up(n, m):
    return ((n + m - 1) // m) * m


def simple_cnn_forward(x_nchw, params, *, images_per_step=8):
    """Eval-mode SimpleCNN forward. x_nchw: (B, 3, H, W) float32 -> (B, 2)."""
    (w9_1, cb1), (w9_2, cb2), (w9_3, cb3) = params["conv_layers"]
    wf1, bh1 = params["w1"], params["b1"]
    wf2, bh2 = params["w2"], params["b2"]

    x = jnp.transpose(x_nchw, (0, 2, 3, 1)).astype(jnp.float32)      # NHWC
    B, H1, W1, C0 = x.shape
    C1, C2, C3 = w9_1.shape[-1], w9_2.shape[-1], w9_3.shape[-1]
    HD, NC = wf1.shape[1], wf2.shape[1]

    # ---- images per grid step: multiple of 8 whenever the grid has >1 step
    # (keeps every block shape (8,128)-friendly); sized for v7x's VMEM.
    if B <= images_per_step:
        Bblk = B
    else:
        Bblk = max(8, (images_per_step // 8) * 8)
    Bp = _round_up(B, Bblk)
    nsteps = Bp // Bblk
    if Bp != B:
        x = jnp.concatenate([x, jnp.zeros((Bp - B, H1, W1, C0), x.dtype)], 0)

    # ---------------- static geometry (all Python ints) ----------------
    H2, W2 = H1 // 2, W1 // 2            # after pool1 (8x8)
    H3, W3 = H2 // 2, W2 // 2            # after pool2 (4x4)
    H4, W4 = H3 // 2, W3 // 2            # after pool3 (2x2)
    Hp2, Wp2 = H2 + 2, W2 + 2            # zero-padded map feeding conv2
    Hp3, Wp3 = H3 + 2, W3 + 2            # zero-padded map feeding conv3
    S1 = H1 * W1                         # per-image stride: conv1 output slab
    S2 = _round_up(Hp2 * Wp2, 8)         # per-image stride: conv2 input slab
    S3 = _round_up(Hp3 * Wp3, 8)         # per-image stride: conv3 input slab
    L1 = 2 * (H2 - 1) * W1 + 2 * (W2 - 1) + 1   # maxpool window-scan lengths
    L2 = 2 * (H3 - 1) * Wp2 + 2 * (W3 - 1) + 1
    L3 = 2 * (H4 - 1) * Wp3 + 2 * (W4 - 1) + 1
    M2 = Bblk * S2 - (2 * Wp2 + 2)       # conv2 output rows computed per step
    M3 = Bblk * S3 - (2 * Wp3 + 2)       # conv3 output rows computed per step

    # ---- layer-1 im2col in the wrapper (tiny, K = 9*C0 = 27), batch-flat ----
    xp = jnp.pad(x, ((0, 0), (1, 1), (1, 1), (0, 0)))
    x1 = jnp.concatenate(
        [xp[:, dy:dy + H1, dx:dx + W1, :] for dy in range(3) for dx in range(3)],
        axis=-1).reshape(Bp * S1, 9 * C0).astype(jnp.bfloat16)
    w1c = w9_1.reshape(9 * C0, C1)                                   # (27, C1) bf16

    # ---- pool-select / zero-pad scatter matrices (host constants) ----------
    # Row j of sel is one-hot at the flat conv-output index of the top-left
    # corner of the 2x2 maxpool window whose result lands at padded-flat row j
    # of the next layer's input slab (all-zero rows give the zero padding and
    # the stride padding for free).  sel3 instead averages the pooled pixels
    # (= AdaptiveAvgPool2d(1)).
    def _sel(h_out, w_out, src_stride, n_cols, n_rows, dst_fn, val, dtype):
        s = np.zeros((n_rows, n_cols), np.float32)
        for yo in range(h_out):
            for xo in range(w_out):
                s[dst_fn(yo, xo), 2 * yo * src_stride + 2 * xo] = val
        return jnp.asarray(s, dtype=dtype)

    sel1 = _sel(H2, W2, W1, L1, S2, lambda yo, xo: (yo + 1) * Wp2 + xo + 1,
                1.0, jnp.bfloat16)
    sel2 = _sel(H3, W3, Wp2, L2, S3, lambda yo, xo: (yo + 1) * Wp3 + xo + 1,
                1.0, jnp.bfloat16)
    sel3 = _sel(H4, W4, Wp3, L3, 1, lambda yo, xo: 0,
                1.0 / (H4 * W4), jnp.float32)

    # --------------------------- fused kernel -------------------------------
    def kernel(x1_ref, w1_ref, cb1_ref, w2_ref, cb2_ref, w3_ref, cb3_ref,
               sel1_ref, sel2_ref, sel3_ref,
               wf1_ref, bh1_ref, wf2_ref, bh2_ref,
               o_ref,
               ys1, xpf2, ys2, xpf3, ys3, gap):

        def pool_scatter(ys_ref, base, length, rs, sel_ref, mm_dtype):
            # 2x2 max (ReLU folded in) over one image's conv-output rows,
            # then a one-hot matmul that picks the stride-2 window corners and
            # scatters them (with zero padding) into the next layer's layout.
            m = jnp.maximum(
                jnp.maximum(ys_ref[pl.ds(base, length), :],
                            ys_ref[pl.ds(base + 1, length), :]),
                jnp.maximum(ys_ref[pl.ds(base + rs, length), :],
                            ys_ref[pl.ds(base + rs + 1, length), :]))
            m = jnp.maximum(m, 0.0)                         # ReLU
            return jnp.dot(sel_ref[...], m.astype(mm_dtype),
                           preferred_element_type=jnp.float32)

        # -- layer 1: one im2col matmul for the whole image block + bias
        ys1[...] = (jnp.dot(x1_ref[...], w1_ref[...],
                            preferred_element_type=jnp.float32) + cb1_ref[...])
        for b in range(Bblk):                               # pool1 -> padded map
            xpf2[pl.ds(b * S2, S2), :] = pool_scatter(
                ys1, b * S1, L1, W1, sel1_ref, jnp.bfloat16).astype(jnp.bfloat16)

        # -- layer 2: 9 accumulating tap matmuls over the whole block
        ys2[pl.ds(0, M2), :] = (jnp.dot(xpf2[pl.ds(0, M2), :], w2_ref[0],
                                        preferred_element_type=jnp.float32)
                                + cb2_ref[...])
        for t in range(1, 9):
            off = (t // 3) * Wp2 + (t % 3)
            ys2[pl.ds(0, M2), :] += jnp.dot(xpf2[pl.ds(off, M2), :], w2_ref[t],
                                            preferred_element_type=jnp.float32)
        for b in range(Bblk):                               # pool2 -> padded map
            xpf3[pl.ds(b * S3, S3), :] = pool_scatter(
                ys2, b * S2, L2, Wp2, sel2_ref, jnp.bfloat16).astype(jnp.bfloat16)

        # -- layer 3
        ys3[pl.ds(0, M3), :] = (jnp.dot(xpf3[pl.ds(0, M3), :], w3_ref[0],
                                        preferred_element_type=jnp.float32)
                                + cb3_ref[...])
        for t in range(1, 9):
            off = (t // 3) * Wp3 + (t % 3)
            ys3[pl.ds(0, M3), :] += jnp.dot(xpf3[pl.ds(off, M3), :], w3_ref[t],
                                            preferred_element_type=jnp.float32)
        for b in range(Bblk):                               # maxpool + GAP fused
            gap[pl.ds(b, 1), :] = pool_scatter(ys3, b * S3, L3, Wp3,
                                               sel3_ref, jnp.float32)

        # -- classifier head: Linear(256,128) + ReLU + Linear(128,2), batched
        h = jnp.maximum(
            jnp.dot(gap[...], wf1_ref[...], preferred_element_type=jnp.float32)
            + bh1_ref[...], 0.0)
        o_ref[...] = (jnp.dot(h, wf2_ref[...], preferred_element_type=jnp.float32)
                      + bh2_ref[...])

    # advisory cost estimate (matmul flops actually issued per step)
    flops_step = (2 * (Bblk * S1) * (9 * C0) * C1
                  + Bblk * 2 * S2 * L1 * C1
                  + 9 * 2 * M2 * C1 * C2
                  + Bblk * 2 * S3 * L2 * C2
                  + 9 * 2 * M3 * C2 * C3
                  + Bblk * 2 * L3 * C3
                  + Bblk * 2 * (C3 * HD + HD * NC))
    const_bytes = sum(int(np.prod(a.shape)) * a.dtype.itemsize
                      for a in (w1c, cb1, w9_2, cb2, w9_3, cb3,
                                sel1, sel2, sel3, wf1, bh1, wf2, bh2))
    bytes_accessed = int(x1.size * x1.dtype.itemsize + const_bytes + Bp * NC * 4)

    out = pl.pallas_call(
        kernel,
        out_shape=jax.ShapeDtypeStruct((Bp, NC), jnp.float32),
        grid=(nsteps,),
        in_specs=[
            pl.BlockSpec((Bblk * S1, 9 * C0), lambda g: (g, 0)),   # im2col block
            _full_spec(w1c), _full_spec(cb1),
            _full_spec(w9_2), _full_spec(cb2),
            _full_spec(w9_3), _full_spec(cb3),
            _full_spec(sel1), _full_spec(sel2), _full_spec(sel3),
            _full_spec(wf1), _full_spec(bh1), _full_spec(wf2), _full_spec(bh2),
        ],
        out_specs=pl.BlockSpec((Bblk, NC), lambda g: (g, 0)),
        scratch_shapes=[
            pltpu.VMEM((Bblk * S1, C1), jnp.float32),    # ys1: conv1 out (pre-ReLU)
            pltpu.VMEM((Bblk * S2, C1), jnp.bfloat16),   # xpf2: padded conv2 input
            pltpu.VMEM((Bblk * S2, C2), jnp.float32),    # ys2
            pltpu.VMEM((Bblk * S3, C2), jnp.bfloat16),   # xpf3: padded conv3 input
            pltpu.VMEM((Bblk * S3, C3), jnp.float32),    # ys3
            pltpu.VMEM((Bblk, C3), jnp.float32),         # gap: pooled features
        ],
        compiler_params=pltpu.CompilerParams(dimension_semantics=("parallel",)),
        cost_estimate=pl.CostEstimate(flops=int(flops_step) * nsteps,
                                      transcendentals=0,
                                      bytes_accessed=bytes_accessed),
    )(x1, w1c, cb1, w9_2, cb2, w9_3, cb3, sel1, sel2, sel3, wf1, bh1, wf2, bh2)
    return out[:B]


# ----------------------------------------------------------------------------
# Deterministic parameter construction (synthetic, PyTorch-shaped).
# ----------------------------------------------------------------------------
def _make_conv_layer(key, cin, cout):
    kw, kb, kg, kbeta, km, kv = jax.random.split(key, 6)
    # torch Conv2d weight layout: (cout, cin, kh, kw)
    w = jax.random.normal(kw, (cout, cin, 3, 3), jnp.float32) * (2.0 / (cin * 9)) ** 0.5
    cbias = 0.05 * jax.random.normal(kb, (cout,), jnp.float32)
    # BatchNorm2d (eval-mode) parameters / running stats.
    gamma = 1.0 + 0.1 * jax.random.normal(kg, (cout,), jnp.float32)
    beta = 0.1 * jax.random.normal(kbeta, (cout,), jnp.float32)
    rmean = 0.1 * jax.random.normal(km, (cout,), jnp.float32)
    rvar = 1.0 + 0.1 * jnp.abs(jax.random.normal(kv, (cout,), jnp.float32))
    eps = 1e-5
    scale = gamma / jnp.sqrt(rvar + eps)
    bias = scale * (cbias - rmean) + beta          # folded conv-bias + BN shift
    # Fold the BN scale straight into the conv weights (per output channel),
    # then lay out as (tap, cin, cout) bf16 for the MXU.
    w9 = jnp.transpose(w * scale[:, None, None, None], (2, 3, 1, 0))
    w9 = w9.reshape(9, cin, cout).astype(jnp.bfloat16)
    return w9, bias.reshape(1, cout)


def init_params(key):
    k1, k2, k3, k4, k5 = jax.random.split(key, 5)
    conv_layers = [
        _make_conv_layer(k1, 3, 64),
        _make_conv_layer(k2, 64, 128),
        _make_conv_layer(k3, 128, 256),
    ]
    # torch Linear weight layout: (out, in); kernel uses (in, out).
    kw1, kb1 = jax.random.split(k4)
    kw2, kb2 = jax.random.split(k5)
    w1 = jax.random.normal(kw1, (128, 256), jnp.float32) * (1.0 / 256.0) ** 0.5
    b1 = 0.05 * jax.random.normal(kb1, (128,), jnp.float32)
    w2 = jax.random.normal(kw2, (2, 128), jnp.float32) * (1.0 / 128.0) ** 0.5
    b2 = 0.05 * jax.random.normal(kb2, (2,), jnp.float32)
    return {
        "conv_layers": conv_layers,
        "w1": w1.T, "b1": b1.reshape(1, 128),
        "w2": w2.T, "b2": b2.reshape(1, 2),
    }


if __name__ == "__main__":
    key = jax.random.PRNGKey(0)
    kp, kx = jax.random.split(key)
    params = init_params(kp)
    # Input matches nn.Conv2d(3, ...) expectation: NCHW, 3 channels, 16x16.
    x = jax.random.normal(kx, (2, 3, 16, 16), jnp.float32)
    fwd = jax.jit(simple_cnn_forward)
    out = jax.block_until_ready(fwd(x, params))
    assert out.shape == (2, 2) and out.dtype == jnp.float32
    assert bool(jnp.all(jnp.isfinite(out)))
    print("KERNEL_OK")
</pallas_src>

<mosaic_0001>
module attributes {stable_mosaic.version = 11 : i64} {
  func.func @kernel(%arg0: i32, %arg1: memref<512x27xbf16, #tpu.memory_space<vmem>>, %arg2: memref<27x64xbf16, #tpu.memory_space<vmem>>, %arg3: memref<1x64xf32, #tpu.memory_space<vmem>>, %arg4: memref<9x64x128xbf16, #tpu.memory_space<vmem>>, %arg5: memref<1x128xf32, #tpu.memory_space<vmem>>, %arg6: memref<9x128x256xbf16, #tpu.memory_space<vmem>>, %arg7: memref<1x256xf32, #tpu.memory_space<vmem>>, %arg8: memref<104x239xbf16, #tpu.memory_space<vmem>>, %arg9: memref<40x67xbf16, #tpu.memory_space<vmem>>, %arg10: memref<1x15xf32, #tpu.memory_space<vmem>>, %arg11: memref<256x128xf32, #tpu.memory_space<vmem>>, %arg12: memref<1x128xf32, #tpu.memory_space<vmem>>, %arg13: memref<128x2xf32, #tpu.memory_space<vmem>>, %arg14: memref<1x2xf32, #tpu.memory_space<vmem>>, %arg15: memref<2x2xf32, #tpu.memory_space<vmem>>, %arg16: memref<512x64xf32, #tpu.memory_space<vmem>>, %arg17: memref<208x64xbf16, #tpu.memory_space<vmem>>, %arg18: memref<208x128xf32, #tpu.memory_space<vmem>>, %arg19: memref<80x128xbf16, #tpu.memory_space<vmem>>, %arg20: memref<80x256xf32, #tpu.memory_space<vmem>>, %arg21: memref<2x256xf32, #tpu.memory_space<vmem>>) attributes {dimension_semantics = [#tpu.dimension_semantics<parallel>], iteration_bounds = array<i64: 1>, scalar_prefetch = 0 : i64, scratch_operands = 6 : i64, tpu.core_type = #tpu.core_type<tc>, window_params = [{transform_indices = @transform_0, window_bounds = array<i64: 512, 27>}, {pipeline_mode = #tpu.pipeline_mode<synchronous>, transform_indices = @transform_1, window_bounds = array<i64: 27, 64>}, {pipeline_mode = #tpu.pipeline_mode<synchronous>, transform_indices = @transform_2, window_bounds = array<i64: 1, 64>}, {pipeline_mode = #tpu.pipeline_mode<synchronous>, transform_indices = @transform_3, window_bounds = array<i64: 9, 64, 128>}, {pipeline_mode = #tpu.pipeline_mode<synchronous>, transform_indices = @transform_4, window_bounds = array<i64: 1, 128>}, {pipeline_mode = #tpu.pipeline_mode<synchronous>, transform_indices = @transform_5, window_bounds = array<i64: 9, 128, 256>}, {pipeline_mode = #tpu.pipeline_mode<synchronous>, transform_indices = @transform_6, window_bounds = array<i64: 1, 256>}, {pipeline_mode = #tpu.pipeline_mode<synchronous>, transform_indices = @transform_7, window_bounds = array<i64: 104, 239>}, {pipeline_mode = #tpu.pipeline_mode<synchronous>, transform_indices = @transform_8, window_bounds = array<i64: 40, 67>}, {pipeline_mode = #tpu.pipeline_mode<synchronous>, transform_indices = @transform_9, window_bounds = array<i64: 1, 15>}, {pipeline_mode = #tpu.pipeline_mode<synchronous>, transform_indices = @transform_10, window_bounds = array<i64: 256, 128>}, {pipeline_mode = #tpu.pipeline_mode<synchronous>, transform_indices = @transform_11, window_bounds = array<i64: 1, 128>}, {pipeline_mode = #tpu.pipeline_mode<synchronous>, transform_indices = @transform_12, window_bounds = array<i64: 128, 2>}, {pipeline_mode = #tpu.pipeline_mode<synchronous>, transform_indices = @transform_13, window_bounds = array<i64: 1, 2>}, {transform_indices = @transform_14, window_bounds = array<i64: 2, 2>}]} {
    %c0 = arith.constant 0 : index
    %c0_0 = arith.constant 0 : index
    %0 = vector.load %arg1[%c0, %c0_0] : memref<512x27xbf16, #tpu.memory_space<vmem>>, vector<512x27xbf16>
    %c0_1 = arith.constant 0 : index
    %c0_2 = arith.constant 0 : index
    %1 = vector.load %arg2[%c0_1, %c0_2] : memref<27x64xbf16, #tpu.memory_space<vmem>>, vector<27x64xbf16>
    %cst = arith.constant dense<0.000000e+00> : vector<512x64xf32>
    %2 = tpu.matmul %0, %1, %cst {dimension_numbers = #tpu.dot_dimension_numbers<[1], [0], [0], [1], [0, 0, 1, 1], [], []>} : vector<512x27xbf16>, vector<27x64xbf16>, vector<512x64xf32> -> vector<512x64xf32>
    %c0_3 = arith.constant 0 : index
    %c0_4 = arith.constant 0 : index
    %3 = vector.load %arg3[%c0_3, %c0_4] : memref<1x64xf32, #tpu.memory_space<vmem>>, vector<1x64xf32>
    %4 = vector.broadcast %3 : vector<1x64xf32> to vector<512x64xf32>
    %5 = arith.addf %2, %4 : vector<512x64xf32>
    %c0_5 = arith.constant 0 : index
    %c0_6 = arith.constant 0 : index
    %6 = vector.load %arg16[%c0_5, %c0_6] : memref<512x64xf32, #tpu.memory_space<vmem>>, vector<512x64xf32>
    tpu.vector_store %arg16[%c0_5, %c0_6], %5 {strides = array<i32>} : memref<512x64xf32, #tpu.memory_space<vmem>>, vector<512x64xf32>,
    %c0_7 = arith.constant 0 : index
    %c0_8 = arith.constant 0 : index
    %7 = vector.load %arg16[%c0_7, %c0_8] : memref<512x64xf32, #tpu.memory_space<vmem>>, vector<239x64xf32>
    %c1 = arith.constant 1 : index
    %c0_9 = arith.constant 0 : index
    %8 = vector.load %arg16[%c1, %c0_9] : memref<512x64xf32, #tpu.memory_space<vmem>>, vector<239x64xf32>
    %9 = arith.maximumf %7, %8 : vector<239x64xf32>
    %c16 = arith.constant 16 : index
    %c0_10 = arith.constant 0 : index
    %10 = vector.load %arg16[%c16, %c0_10] : memref<512x64xf32, #tpu.memory_space<vmem>>, vector<239x64xf32>
    %c17 = arith.constant 17 : index
    %c0_11 = arith.constant 0 : index
    %11 = vector.load %arg16[%c17, %c0_11] : memref<512x64xf32, #tpu.memory_space<vmem>>, vector<239x64xf32>
    %12 = arith.maximumf %10, %11 : vector<239x64xf32>
    %13 = arith.maximumf %9, %12 : vector<239x64xf32>
    %cst_12 = arith.constant 0.000000e+00 : f32
    %14 = vector.broadcast %cst_12 : f32 to vector<239x64xf32>
    %15 = arith.maximumf %13, %14 : vector<239x64xf32>
    %c0_13 = arith.constant 0 : index
    %c0_14 = arith.constant 0 : index
    %16 = vector.load %arg8[%c0_13, %c0_14] : memref<104x239xbf16, #tpu.memory_space<vmem>>, vector<104x239xbf16>
    %17 = arith.truncf %15 : vector<239x64xf32> to vector<239x64xbf16>
    %cst_15 = arith.constant dense<0.000000e+00> : vector<104x64xf32>
    %18 = tpu.matmul %16, %17, %cst_15 {dimension_numbers = #tpu.dot_dimension_numbers<[1], [0], [0], [1], [0, 0, 1, 1], [], []>} : vector<104x239xbf16>, vector<239x64xbf16>, vector<104x64xf32> -> vector<104x64xf32>
    %19 = arith.truncf %18 : vector<104x64xf32> to vector<104x64xbf16>
    %c0_16 = arith.constant 0 : index
    %c0_17 = arith.constant 0 : index
    %20 = vector.load %arg17[%c0_16, %c0_17] : memref<208x64xbf16, #tpu.memory_space<vmem>>, vector<104x64xbf16>
    tpu.vector_store %arg17[%c0_16, %c0_17], %19 {strides = array<i32>} : memref<208x64xbf16, #tpu.memory_space<vmem>>, vector<104x64xbf16>,
    %c256 = arith.constant 256 : index
    %c0_18 = arith.constant 0 : index
    %21 = vector.load %arg16[%c256, %c0_18] : memref<512x64xf32, #tpu.memory_space<vmem>>, vector<239x64xf32>
    %c257 = arith.constant 257 : index
    %c0_19 = arith.constant 0 : index
    %22 = vector.load %arg16[%c257, %c0_19] : memref<512x64xf32, #tpu.memory_space<vmem>>, vector<239x64xf32>
    %23 = arith.maximumf %21, %22 : vector<239x64xf32>
    %c272 = arith.constant 272 : index
    %c0_20 = arith.constant 0 : index
    %24 = vector.load %arg16[%c272, %c0_20] : memref<512x64xf32, #tpu.memory_space<vmem>>, vector<239x64xf32>
    %c273 = arith.constant 273 : index
    %c0_21 = arith.constant 0 : index
    %25 = vector.load %arg16[%c273, %c0_21] : memref<512x64xf32, #tpu.memory_space<vmem>>, vector<239x64xf32>
    %26 = arith.maximumf %24, %25 : vector<239x64xf32>
    %27 = arith.maximumf %23, %26 : vector<239x64xf32>
    %cst_22 = arith.constant 0.000000e+00 : f32
    %28 = vector.broadcast %cst_22 : f32 to vector<239x64xf32>
    %29 = arith.maximumf %27, %28 : vector<239x64xf32>
    %c0_23 = arith.constant 0 : index
    %c0_24 = arith.constant 0 : index
    %30 = vector.load %arg8[%c0_23, %c0_24] : memref<104x239xbf16, #tpu.memory_space<vmem>>, vector<104x239xbf16>
    %31 = arith.truncf %29 : vector<239x64xf32> to vector<239x64xbf16>
    %cst_25 = arith.constant dense<0.000000e+00> : vector<104x64xf32>
    %32 = tpu.matmul %30, %31, %cst_25 {dimension_numbers = #tpu.dot_dimension_numbers<[1], [0], [0], [1], [0, 0, 1, 1], [], []>} : vector<104x239xbf16>, vector<239x64xbf16>, vector<104x64xf32> -> vector<104x64xf32>
    %33 = arith.truncf %32 : vector<104x64xf32> to vector<104x64xbf16>
    %c104 = arith.constant 104 : index
    %c0_26 = arith.constant 0 : index
    %34 = vector.load %arg17[%c104, %c0_26] : memref<208x64xbf16, #tpu.memory_space<vmem>>, vector<104x64xbf16>
    tpu.vector_store %arg17[%c104, %c0_26], %33 {strides = array<i32>} : memref<208x64xbf16, #tpu.memory_space<vmem>>, vector<104x64xbf16>,
    %c0_27 = arith.constant 0 : index
    %c0_28 = arith.constant 0 : index
    %35 = vector.load %arg17[%c0_27, %c0_28] : memref<208x64xbf16, #tpu.memory_space<vmem>>, vector<186x64xbf16>
    %c0_29 = arith.constant 0 : index
    %c0_30 = arith.constant 0 : index
    %c0_31 = arith.constant 0 : index
    %36 = vector.load %arg4[%c0_29, %c0_30, %c0_31] : memref<9x64x128xbf16, #tpu.memory_space<vmem>>, vector<1x64x128xbf16>
    %37 = vector.shape_cast %36 : vector<1x64x128xbf16> to vector<64x128xbf16>
    %cst_32 = arith.constant dense<0.000000e+00> : vector<186x128xf32>
    %38 = tpu.matmul %35, %37, %cst_32 {dimension_numbers = #tpu.dot_dimension_numbers<[1], [0], [0], [1], [0, 0, 1, 1], [], []>} : vector<186x64xbf16>, vector<64x128xbf16>, vector<186x128xf32> -> vector<186x128xf32>
    %c0_33 = arith.constant 0 : index
    %c0_34 = arith.constant 0 : index
    %39 = vector.load %arg5[%c0_33, %c0_34] : memref<1x128xf32, #tpu.memory_space<vmem>>, vector<1x128xf32>
    %40 = vector.broadcast %39 : vector<1x128xf32> to vector<186x128xf32>
    %41 = arith.addf %38, %40 : vector<186x128xf32>
    %c0_35 = arith.constant 0 : index
    %c0_36 = arith.constant 0 : index
    %42 = vector.load %arg18[%c0_35, %c0_36] : memref<208x128xf32, #tpu.memory_space<vmem>>, vector<186x128xf32>
    tpu.vector_store %arg18[%c0_35, %c0_36], %41 {strides = array<i32>} : memref<208x128xf32, #tpu.memory_space<vmem>>, vector<186x128xf32>,
    %c0_37 = arith.constant 0 : index
    %c0_38 = arith.constant 0 : index
    %43 = vector.load %arg18[%c0_37, %c0_38] : memref<208x128xf32, #tpu.memory_space<vmem>>, vector<186x128xf32>
    %c1_39 = arith.constant 1 : index
    %c0_40 = arith.constant 0 : index
    %44 = vector.load %arg17[%c1_39, %c0_40] : memref<208x64xbf16, #tpu.memory_space<vmem>>, vector<186x64xbf16>
    %c1_41 = arith.constant 1 : index
    %c0_42 = arith.constant 0 : index
    %c0_43 = arith.constant 0 : index
    %45 = vector.load %arg4[%c1_41, %c0_42, %c0_43] : memref<9x64x128xbf16, #tpu.memory_space<vmem>>, vector<1x64x128xbf16>
    %46 = vector.shape_cast %45 : vector<1x64x128xbf16> to vector<64x128xbf16>
    %cst_44 = arith.constant dense<0.000000e+00> : vector<186x128xf32>
    %47 = tpu.matmul %44, %46, %cst_44 {dimension_numbers = #tpu.dot_dimension_numbers<[1], [0], [0], [1], [0, 0, 1, 1], [], []>} : vector<186x64xbf16>, vector<64x128xbf16>, vector<186x128xf32> -> vector<186x128xf32>
    %48 = arith.addf %43, %47 : vector<186x128xf32>
    %c0_45 = arith.constant 0 : index
    %c0_46 = arith.constant 0 : index
    %49 = vector.load %arg18[%c0_45, %c0_46] : memref<208x128xf32, #tpu.memory_space<vmem>>, vector<186x128xf32>
    tpu.vector_store %arg18[%c0_45, %c0_46], %48 {strides = array<i32>} : memref<208x128xf32, #tpu.memory_space<vmem>>, vector<186x128xf32>,
    %c0_47 = arith.constant 0 : index
    %c0_48 = arith.constant 0 : index
    %50 = vector.load %arg18[%c0_47, %c0_48] : memref<208x128xf32, #tpu.memory_space<vmem>>, vector<186x128xf32>
    %c2 = arith.constant 2 : index
    %c0_49 = arith.constant 0 : index
    %51 = vector.load %arg17[%c2, %c0_49] : memref<208x64xbf16, #tpu.memory_space<vmem>>, vector<186x64xbf16>
    %c2_50 = arith.constant 2 : index
    %c0_51 = arith.constant 0 : index
    %c0_52 = arith.constant 0 : index
    %52 = vector.load %arg4[%c2_50, %c0_51, %c0_52] : memref<9x64x128xbf16, #tpu.memory_space<vmem>>, vector<1x64x128xbf16>
    %53 = vector.shape_cast %52 : vector<1x64x128xbf16> to vector<64x128xbf16>
    %cst_53 = arith.constant dense<0.000000e+00> : vector<186x128xf32>
    %54 = tpu.matmul %51, %53, %cst_53 {dimension_numbers = #tpu.dot_dimension_numbers<[1], [0], [0], [1], [0, 0, 1, 1], [], []>} : vector<186x64xbf16>, vector<64x128xbf16>, vector<186x128xf32> -> vector<186x128xf32>
    %55 = arith.addf %50, %54 : vector<186x128xf32>
    %c0_54 = arith.constant 0 : index
    %c0_55 = arith.constant 0 : index
    %56 = vector.load %arg18[%c0_54, %c0_55] : memref<208x128xf32, #tpu.memory_space<vmem>>, vector<186x128xf32>
    tpu.vector_store %arg18[%c0_54, %c0_55], %55 {strides = array<i32>} : memref<208x128xf32, #tpu.memory_space<vmem>>, vector<186x128xf32>,
    %c0_56 = arith.constant 0 : index
    %c0_57 = arith.constant 0 : index
    %57 = vector.load %arg18[%c0_56, %c0_57] : memref<208x128xf32, #tpu.memory_space<vmem>>, vector<186x128xf32>
    %c10 = arith.constant 10 : index
    %c0_58 = arith.constant 0 : index
    %58 = vector.load %arg17[%c10, %c0_58] : memref<208x64xbf16, #tpu.memory_space<vmem>>, vector<186x64xbf16>
    %c3 = arith.constant 3 : index
    %c0_59 = arith.constant 0 : index
    %c0_60 = arith.constant 0 : index
    %59 = vector.load %arg4[%c3, %c0_59, %c0_60] : memref<9x64x128xbf16, #tpu.memory_space<vmem>>, vector<1x64x128xbf16>
    %60 = vector.shape_cast %59 : vector<1x64x128xbf16> to vector<64x128xbf16>
    %cst_61 = arith.constant dense<0.000000e+00> : vector<186x128xf32>
    %61 = tpu.matmul %58, %60, %cst_61 {dimension_numbers = #tpu.dot_dimension_numbers<[1], [0], [0], [1], [0, 0, 1, 1], [], []>} : vector<186x64xbf16>, vector<64x128xbf16>, vector<186x128xf32> -> vector<186x128xf32>
    %62 = arith.addf %57, %61 : vector<186x128xf32>
    %c0_62 = arith.constant 0 : index
    %c0_63 = arith.constant 0 : index
    %63 = vector.load %arg18[%c0_62, %c0_63] : memref<208x128xf32, #tpu.memory_space<vmem>>, vector<186x128xf32>
    tpu.vector_store %arg18[%c0_62, %c0_63], %62 {strides = array<i32>} : memref<208x128xf32, #tpu.memory_space<vmem>>, vector<186x128xf32>,
    %c0_64 = arith.constant 0 : index
    %c0_65 = arith.constant 0 : index
    %64 = vector.load %arg18[%c0_64, %c0_65] : memref<208x128xf32, #tpu.memory_space<vmem>>, vector<186x128xf32>
    %c11 = arith.constant 11 : index
    %c0_66 = arith.constant 0 : index
    %65 = vector.load %arg17[%c11, %c0_66] : memref<208x64xbf16, #tpu.memory_space<vmem>>, vector<186x64xbf16>
    %c4 = arith.constant 4 : index
    %c0_67 = arith.constant 0 : index
    %c0_68 = arith.constant 0 : index
    %66 = vector.load %arg4[%c4, %c0_67, %c0_68] : memref<9x64x128xbf16, #tpu.memory_space<vmem>>, vector<1x64x128xbf16>
    %67 = vector.shape_cast %66 : vector<1x64x128xbf16> to vector<64x128xbf16>
    %cst_69 = arith.constant dense<0.000000e+00> : vector<186x128xf32>
    %68 = tpu.matmul %65, %67, %cst_69 {dimension_numbers = #tpu.dot_dimension_numbers<[1], [0], [0], [1], [0, 0, 1, 1], [], []>} : vector<186x64xbf16>, vector<64x128xbf16>, vector<186x128xf32> -> vector<186x128xf32>
    %69 = arith.addf %64, %68 : vector<186x128xf32>
    %c0_70 = arith.constant 0 : index
    %c0_71 = arith.constant 0 : index
    %70 = vector.load %arg18[%c0_70, %c0_71] : memref<208x128xf32, #tpu.memory_space<vmem>>, vector<186x128xf32>
    tpu.vector_store %arg18[%c0_70, %c0_71], %69 {strides = array<i32>} : memref<208x128xf32, #tpu.memory_space<vmem>>, vector<186x128xf32>,
    %c0_72 = arith.constant 0 : index
    %c0_73 = arith.constant 0 : index
    %71 = vector.load %arg18[%c0_72, %c0_73] : memref<208x128xf32, #tpu.memory_space<vmem>>, vector<186x128xf32>
    %c12 = arith.constant 12 : index
    %c0_74 = arith.constant 0 : index
    %72 = vector.load %arg17[%c12, %c0_74] : memref<208x64xbf16, #tpu.memory_space<vmem>>, vector<186x64xbf16>
    %c5 = arith.constant 5 : index
    %c0_75 = arith.constant 0 : index
    %c0_76 = arith.constant 0 : index
    %73 = vector.load %arg4[%c5, %c0_75, %c0_76] : memref<9x64x128xbf16, #tpu.memory_space<vmem>>, vector<1x64x128xbf16>
    %74 = vector.shape_cast %73 : vector<1x64x128xbf16> to vector<64x128xbf16>
    %cst_77 = arith.constant dense<0.000000e+00> : vector<186x128xf32>
    %75 = tpu.matmul %72, %74, %cst_77 {dimension_numbers = #tpu.dot_dimension_numbers<[1], [0], [0], [1], [0, 0, 1, 1], [], []>} : vector<186x64xbf16>, vector<64x128xbf16>, vector<186x128xf32> -> vector<186x128xf32>
    %76 = arith.addf %71, %75 : vector<186x128xf32>
    %c0_78 = arith.constant 0 : index
    %c0_79 = arith.constant 0 : index
    %77 = vector.load %arg18[%c0_78, %c0_79] : memref<208x128xf32, #tpu.memory_space<vmem>>, vector<186x128xf32>
    tpu.vector_store %arg18[%c0_78, %c0_79], %76 {strides = array<i32>} : memref<208x128xf32, #tpu.memory_space<vmem>>, vector<186x128xf32>,
    %c0_80 = arith.constant 0 : index
    %c0_81 = arith.constant 0 : index
    %78 = vector.load %arg18[%c0_80, %c0_81] : memref<208x128xf32, #tpu.memory_space<vmem>>, vector<186x128xf32>
    %c20 = arith.constant 20 : index
    %c0_82 = arith.constant 0 : index
    %79 = vector.load %arg17[%c20, %c0_82] : memref<208x64xbf16, #tpu.memory_space<vmem>>, vector<186x64xbf16>
    %c6 = arith.constant 6 : index
    %c0_83 = arith.constant 0 : index
    %c0_84 = arith.constant 0 : index
    %80 = vector.load %arg4[%c6, %c0_83, %c0_84] : memref<9x64x128xbf16, #tpu.memory_space<vmem>>, vector<1x64x128xbf16>
    %81 = vector.shape_cast %80 : vector<1x64x128xbf16> to vector<64x128xbf16>
    %cst_85 = arith.constant dense<0.000000e+00> : vector<186x128xf32>
    %82 = tpu.matmul %79, %81, %cst_85 {dimension_numbers = #tpu.dot_dimension_numbers<[1], [0], [0], [1], [0, 0, 1, 1], [], []>} : vector<186x64xbf16>, vector<64x128xbf16>, vector<186x128xf32> -> vector<186x128xf32>
    %83 = arith.addf %78, %82 : vector<186x128xf32>
    %c0_86 = arith.constant 0 : index
    %c0_87 = arith.constant 0 : index
    %84 = vector.load %arg18[%c0_86, %c0_87] : memref<208x128xf32, #tpu.memory_space<vmem>>, vector<186x128xf32>
    tpu.vector_store %arg18[%c0_86, %c0_87], %83 {strides = array<i32>} : memref<208x128xf32, #tpu.memory_space<vmem>>, vector<186x128xf32>,
    %c0_88 = arith.constant 0 : index
    %c0_89 = arith.constant 0 : index
    %85 = vector.load %arg18[%c0_88, %c0_89] : memref<208x128xf32, #tpu.memory_space<vmem>>, vector<186x128xf32>
    %c21 = arith.constant 21 : index
    %c0_90 = arith.constant 0 : index
    %86 = vector.load %arg17[%c21, %c0_90] : memref<208x64xbf16, #tpu.memory_space<vmem>>, vector<186x64xbf16>
    %c7 = arith.constant 7 : index
    %c0_91 = arith.constant 0 : index
    %c0_92 = arith.constant 0 : index
    %87 = vector.load %arg4[%c7, %c0_91, %c0_92] : memref<9x64x128xbf16, #tpu.memory_space<vmem>>, vector<1x64x128xbf16>
    %88 = vector.shape_cast %87 : vector<1x64x128xbf16> to vector<64x128xbf16>
    %cst_93 = arith.constant dense<0.000000e+00> : vector<186x128xf32>
    %89 = tpu.matmul %86, %88, %cst_93 {dimension_numbers = #tpu.dot_dimension_numbers<[1], [0], [0], [1], [0, 0, 1, 1], [], []>} : vector<186x64xbf16>, vector<64x128xbf16>, vector<186x128xf32> -> vector<186x128xf32>
    %90 = arith.addf %85, %89 : vector<186x128xf32>
    %c0_94 = arith.constant 0 : index
    %c0_95 = arith.constant 0 : index
    %91 = vector.load %arg18[%c0_94, %c0_95] : memref<208x128xf32, #tpu.memory_space<vmem>>, vector<186x128xf32>
    tpu.vector_store %arg18[%c0_94, %c0_95], %90 {strides = array<i32>} : memref<208x128xf32, #tpu.memory_space<vmem>>, vector<186x128xf32>,
    %c0_96 = arith.constant 0 : index
    %c0_97 = arith.constant 0 : index
    %92 = vector.load %arg18[%c0_96, %c0_97] : memref<208x128xf32, #tpu.memory_space<vmem>>, vector<186x128xf32>
    %c22 = arith.constant 22 : index
    %c0_98 = arith.constant 0 : index
    %93 = vector.load %arg17[%c22, %c0_98] : memref<208x64xbf16, #tpu.memory_space<vmem>>, vector<186x64xbf16>
    %c8 = arith.constant 8 : index
    %c0_99 = arith.constant 0 : index
    %c0_100 = arith.constant 0 : index
    %94 = vector.load %arg4[%c8, %c0_99, %c0_100] : memref<9x64x128xbf16, #tpu.memory_space<vmem>>, vector<1x64x128xbf16>
    %95 = vector.shape_cast %94 : vector<1x64x128xbf16> to vector<64x128xbf16>
    %cst_101 = arith.constant dense<0.000000e+00> : vector<186x128xf32>
    %96 = tpu.matmul %93, %95, %cst_101 {dimension_numbers = #tpu.dot_dimension_numbers<[1], [0], [0], [1], [0, 0, 1, 1], [], []>} : vector<186x64xbf16>, vector<64x128xbf16>, vector<186x128xf32> -> vector<186x128xf32>
    %97 = arith.addf %92, %96 : vector<186x128xf32>
    %c0_102 = arith.constant 0 : index
    %c0_103 = arith.constant 0 : index
    %98 = vector.load %arg18[%c0_102, %c0_103] : memref<208x128xf32, #tpu.memory_space<vmem>>, vector<186x128xf32>
    tpu.vector_store %arg18[%c0_102, %c0_103], %97 {strides = array<i32>} : memref<208x128xf32, #tpu.memory_space<vmem>>, vector<186x128xf32>,
    %c0_104 = arith.constant 0 : index
    %c0_105 = arith.constant 0 : index
    %99 = vector.load %arg18[%c0_104, %c0_105] : memref<208x128xf32, #tpu.memory_space<vmem>>, vector<67x128xf32>
    %c1_106 = arith.constant 1 : index
    %c0_107 = arith.constant 0 : index
    %100 = vector.load %arg18[%c1_106, %c0_107] : memref<208x128xf32, #tpu.memory_space<vmem>>, vector<67x128xf32>
    %101 = arith.maximumf %99, %100 : vector<67x128xf32>
    %c10_108 = arith.constant 10 : index
    %c0_109 = arith.constant 0 : index
    %102 = vector.load %arg18[%c10_108, %c0_109] : memref<208x128xf32, #tpu.memory_space<vmem>>, vector<67x128xf32>
    %c11_110 = arith.constant 11 : index
    %c0_111 = arith.constant 0 : index
    %103 = vector.load %arg18[%c11_110, %c0_111] : memref<208x128xf32, #tpu.memory_space<vmem>>, vector<67x128xf32>
    %104 = arith.maximumf %102, %103 : vector<67x128xf32>
    %105 = arith.maximumf %101, %104 : vector<67x128xf32>
    %cst_112 = arith.constant 0.000000e+00 : f32
    %106 = vector.broadcast %cst_112 : f32 to vector<67x128xf32>
    %107 = arith.maximumf %105, %106 : vector<67x128xf32>
    %c0_113 = arith.constant 0 : index
    %c0_114 = arith.constant 0 : index
    %108 = vector.load %arg9[%c0_113, %c0_114] : memref<40x67xbf16, #tpu.memory_space<vmem>>, vector<40x67xbf16>
    %109 = arith.truncf %107 : vector<67x128xf32> to vector<67x128xbf16>
    %cst_115 = arith.constant dense<0.000000e+00> : vector<40x128xf32>
    %110 = tpu.matmul %108, %109, %cst_115 {dimension_numbers = #tpu.dot_dimension_numbers<[1], [0], [0], [1], [0, 0, 1, 1], [], []>} : vector<40x67xbf16>, vector<67x128xbf16>, vector<40x128xf32> -> vector<40x128xf32>
    %111 = arith.truncf %110 : vector<40x128xf32> to vector<40x128xbf16>
    %c0_116 = arith.constant 0 : index
    %c0_117 = arith.constant 0 : index
    %112 = vector.load %arg19[%c0_116, %c0_117] : memref<80x128xbf16, #tpu.memory_space<vmem>>, vector<40x128xbf16>
    tpu.vector_store %arg19[%c0_116, %c0_117], %111 {strides = array<i32>} : memref<80x128xbf16, #tpu.memory_space<vmem>>, vector<40x128xbf16>,
    %c104_118 = arith.constant 104 : index
    %c0_119 = arith.constant 0 : index
    %113 = vector.load %arg18[%c104_118, %c0_119] : memref<208x128xf32, #tpu.memory_space<vmem>>, vector<67x128xf32>
    %c105 = arith.constant 105 : index
    %c0_120 = arith.constant 0 : index
    %114 = vector.load %arg18[%c105, %c0_120] : memref<208x128xf32, #tpu.memory_space<vmem>>, vector<67x128xf32>
    %115 = arith.maximumf %113, %114 : vector<67x128xf32>
    %c114 = arith.constant 114 : index
    %c0_121 = arith.constant 0 : index
    %116 = vector.load %arg18[%c114, %c0_121] : memref<208x128xf32, #tpu.memory_space<vmem>>, vector<67x128xf32>
    %c115 = arith.constant 115 : index
    %c0_122 = arith.constant 0 : index
    %117 = vector.load %arg18[%c115, %c0_122] : memref<208x128xf32, #tpu.memory_space<vmem>>, vector<67x128xf32>
    %118 = arith.maximumf %116, %117 : vector<67x128xf32>
    %119 = arith.maximumf %115, %118 : vector<67x128xf32>
    %cst_123 = arith.constant 0.000000e+00 : f32
    %120 = vector.broadcast %cst_123 : f32 to vector<67x128xf32>
    %121 = arith.maximumf %119, %120 : vector<67x128xf32>
    %c0_124 = arith.constant 0 : index
    %c0_125 = arith.constant 0 : index
    %122 = vector.load %arg9[%c0_124, %c0_125] : memref<40x67xbf16, #tpu.memory_space<vmem>>, vector<40x67xbf16>
    %123 = arith.truncf %121 : vector<67x128xf32> to vector<67x128xbf16>
    %cst_126 = arith.constant dense<0.000000e+00> : vector<40x128xf32>
    %124 = tpu.matmul %122, %123, %cst_126 {dimension_numbers = #tpu.dot_dimension_numbers<[1], [0], [0], [1], [0, 0, 1, 1], [], []>} : vector<40x67xbf16>, vector<67x128xbf16>, vector<40x128xf32> -> vector<40x128xf32>
    %125 = arith.truncf %124 : vector<40x128xf32> to vector<40x128xbf16>
    %c40 = arith.constant 40 : index
    %c0_127 = arith.constant 0 : index
    %126 = vector.load %arg19[%c40, %c0_127] : memref<80x128xbf16, #tpu.memory_space<vmem>>, vector<40x128xbf16>
    tpu.vector_store %arg19[%c40, %c0_127], %125 {strides = array<i32>} : memref<80x128xbf16, #tpu.memory_space<vmem>>, vector<40x128xbf16>,
    %c0_128 = arith.constant 0 : index
    %c0_129 = arith.constant 0 : index
    %127 = vector.load %arg19[%c0_128, %c0_129] : memref<80x128xbf16, #tpu.memory_space<vmem>>, vector<66x128xbf16>
    %c0_130 = arith.constant 0 : index
    %c0_131 = arith.constant 0 : index
    %c0_132 = arith.constant 0 : index
    %128 = vector.load %arg6[%c0_130, %c0_131, %c0_132] : memref<9x128x256xbf16, #tpu.memory_space<vmem>>, vector<1x128x256xbf16>
    %129 = vector.shape_cast %128 : vector<1x128x256xbf16> to vector<128x256xbf16>
    %cst_133 = arith.constant dense<0.000000e+00> : vector<66x256xf32>
    %130 = tpu.matmul %127, %129, %cst_133 {dimension_numbers = #tpu.dot_dimension_numbers<[1], [0], [0], [1], [0, 0, 1, 1], [], []>} : vector<66x128xbf16>, vector<128x256xbf16>, vector<66x256xf32> -> vector<66x256xf32>
    %c0_134 = arith.constant 0 : index
    %c0_135 = arith.constant 0 : index
    %131 = vector.load %arg7[%c0_134, %c0_135] : memref<1x256xf32, #tpu.memory_space<vmem>>, vector<1x256xf32>
    %132 = vector.broadcast %131 : vector<1x256xf32> to vector<66x256xf32>
    %133 = arith.addf %130, %132 : vector<66x256xf32>
    %c0_136 = arith.constant 0 : index
    %c0_137 = arith.constant 0 : index
    %134 = vector.load %arg20[%c0_136, %c0_137] : memref<80x256xf32, #tpu.memory_space<vmem>>, vector<66x256xf32>
    tpu.vector_store %arg20[%c0_136, %c0_137], %133 {strides = array<i32>} : memref<80x256xf32, #tpu.memory_space<vmem>>, vector<66x256xf32>,
    %c0_138 = arith.constant 0 : index
    %c0_139 = arith.constant 0 : index
    %135 = vector.load %arg20[%c0_138, %c0_139] : memref<80x256xf32, #tpu.memory_space<vmem>>, vector<66x256xf32>
    %c1_140 = arith.constant 1 : index
    %c0_141 = arith.constant 0 : index
    %136 = vector.load %arg19[%c1_140, %c0_141] : memref<80x128xbf16, #tpu.memory_space<vmem>>, vector<66x128xbf16>
    %c1_142 = arith.constant 1 : index
    %c0_143 = arith.constant 0 : index
    %c0_144 = arith.constant 0 : index
    %137 = vector.load %arg6[%c1_142, %c0_143, %c0_144] : memref<9x128x256xbf16, #tpu.memory_space<vmem>>, vector<1x128x256xbf16>
    %138 = vector.shape_cast %137 : vector<1x128x256xbf16> to vector<128x256xbf16>
    %cst_145 = arith.constant dense<0.000000e+00> : vector<66x256xf32>
    %139 = tpu.matmul %136, %138, %cst_145 {dimension_numbers = #tpu.dot_dimension_numbers<[1], [0], [0], [1], [0, 0, 1, 1], [], []>} : vector<66x128xbf16>, vector<128x256xbf16>, vector<66x256xf32> -> vector<66x256xf32>
    %140 = arith.addf %135, %139 : vector<66x256xf32>
    %c0_146 = arith.constant 0 : index
    %c0_147 = arith.constant 0 : index
    %141 = vector.load %arg20[%c0_146, %c0_147] : memref<80x256xf32, #tpu.memory_space<vmem>>, vector<66x256xf32>
    tpu.vector_store %arg20[%c0_146, %c0_147], %140 {strides = array<i32>} : memref<80x256xf32, #tpu.memory_space<vmem>>, vector<66x256xf32>,
    %c0_148 = arith.constant 0 : index
    %c0_149 = arith.constant 0 : index
    %142 = vector.load %arg20[%c0_148, %c0_149] : memref<80x256xf32, #tpu.memory_space<vmem>>, vector<66x256xf32>
    %c2_150 = arith.constant 2 : index
    %c0_151 = arith.constant 0 : index
    %143 = vector.load %arg19[%c2_150, %c0_151] : memref<80x128xbf16, #tpu.memory_space<vmem>>, vector<66x128xbf16>
    %c2_152 = arith.constant 2 : index
    %c0_153 = arith.constant 0 : index
    %c0_154 = arith.constant 0 : index
    %144 = vector.load %arg6[%c2_152, %c0_153, %c0_154] : memref<9x128x256xbf16, #tpu.memory_space<vmem>>, vector<1x128x256xbf16>
    %145 = vector.shape_cast %144 : vector<1x128x256xbf16> to vector<128x256xbf16>
    %cst_155 = arith.constant dense<0.000000e+00> : vector<66x256xf32>
    %146 = tpu.matmul %143, %145, %cst_155 {dimension_numbers = #tpu.dot_dimension_numbers<[1], [0], [0], [1], [0, 0, 1, 1], [], []>} : vector<66x128xbf16>, vector<128x256xbf16>, vector<66x256xf32> -> vector<66x256xf32>
    %147 = arith.addf %142, %146 : vector<66x256xf32>
    %c0_156 = arith.constant 0 : index
    %c0_157 = arith.constant 0 : index
    %148 = vector.load %arg20[%c0_156, %c0_157] : memref<80x256xf32, #tpu.memory_space<vmem>>, vector<66x256xf32>
    tpu.vector_store %arg20[%c0_156, %c0_157], %147 {strides = array<i32>} : memref<80x256xf32, #tpu.memory_space<vmem>>, vector<66x256xf32>,
    %c0_158 = arith.constant 0 : index
    %c0_159 = arith.constant 0 : index
    %149 = vector.load %arg20[%c0_158, %c0_159] : memref<80x256xf32, #tpu.memory_space<vmem>>, vector<66x256xf32>
    %c6_160 = arith.constant 6 : index
    %c0_161 = arith.constant 0 : index
    %150 = vector.load %arg19[%c6_160, %c0_161] : memref<80x128xbf16, #tpu.memory_space<vmem>>, vector<66x128xbf16>
    %c3_162 = arith.constant 3 : index
    %c0_163 = arith.constant 0 : index
    %c0_164 = arith.constant 0 : index
    %151 = vector.load %arg6[%c3_162, %c0_163, %c0_164] : memref<9x128x256xbf16, #tpu.memory_space<vmem>>, vector<1x128x256xbf16>
    %152 = vector.shape_cast %151 : vector<1x128x256xbf16> to vector<128x256xbf16>
    %cst_165 = arith.constant dense<0.000000e+00> : vector<66x256xf32>
    %153 = tpu.matmul %150, %152, %cst_165 {dimension_numbers = #tpu.dot_dimension_numbers<[1], [0], [0], [1], [0, 0, 1, 1], [], []>} : vector<66x128xbf16>, vector<128x256xbf16>, vector<66x256xf32> -> vector<66x256xf32>
    %154 = arith.addf %149, %153 : vector<66x256xf32>
    %c0_166 = arith.constant 0 : index
    %c0_167 = arith.constant 0 : index
    %155 = vector.load %arg20[%c0_166, %c0_167] : memref<80x256xf32, #tpu.memory_space<vmem>>, vector<66x256xf32>
    tpu.vector_store %arg20[%c0_166, %c0_167], %154 {strides = array<i32>} : memref<80x256xf32, #tpu.memory_space<vmem>>, vector<66x256xf32>,
    %c0_168 = arith.constant 0 : index
    %c0_169 = arith.constant 0 : index
    %156 = vector.load %arg20[%c0_168, %c0_169] : memref<80x256xf32, #tpu.memory_space<vmem>>, vector<66x256xf32>
    %c7_170 = arith.constant 7 : index
    %c0_171 = arith.constant 0 : index
    %157 = vector.load %arg19[%c7_170, %c0_171] : memref<80x128xbf16, #tpu.memory_space<vmem>>, vector<66x128xbf16>
    %c4_172 = arith.constant 4 : index
    %c0_173 = arith.constant 0 : index
    %c0_174 = arith.constant 0 : index
    %158 = vector.load %arg6[%c4_172, %c0_173, %c0_174] : memref<9x128x256xbf16, #tpu.memory_space<vmem>>, vector<1x128x256xbf16>
    %159 = vector.shape_cast %158 : vector<1x128x256xbf16> to vector<128x256xbf16>
    %cst_175 = arith.constant dense<0.000000e+00> : vector<66x256xf32>
    %160 = tpu.matmul %157, %159, %cst_175 {dimension_numbers = #tpu.dot_dimension_numbers<[1], [0], [0], [1], [0, 0, 1, 1], [], []>} : vector<66x128xbf16>, vector<128x256xbf16>, vector<66x256xf32> -> vector<66x256xf32>
    %161 = arith.addf %156, %160 : vector<66x256xf32>
    %c0_176 = arith.constant 0 : index
    %c0_177 = arith.constant 0 : index
    %162 = vector.load %arg20[%c0_176, %c0_177] : memref<80x256xf32, #tpu.memory_space<vmem>>, vector<66x256xf32>
    tpu.vector_store %arg20[%c0_176, %c0_177], %161 {strides = array<i32>} : memref<80x256xf32, #tpu.memory_space<vmem>>, vector<66x256xf32>,
    %c0_178 = arith.constant 0 : index
    %c0_179 = arith.constant 0 : index
    %163 = vector.load %arg20[%c0_178, %c0_179] : memref<80x256xf32, #tpu.memory_space<vmem>>, vector<66x256xf32>
    %c8_180 = arith.constant 8 : index
    %c0_181 = arith.constant 0 : index
    %164 = vector.load %arg19[%c8_180, %c0_181] : memref<80x128xbf16, #tpu.memory_space<vmem>>, vector<66x128xbf16>
    %c5_182 = arith.constant 5 : index
    %c0_183 = arith.constant 0 : index
    %c0_184 = arith.constant 0 : index
    %165 = vector.load %arg6[%c5_182, %c0_183, %c0_184] : memref<9x128x256xbf16, #tpu.memory_space<vmem>>, vector<1x128x256xbf16>
    %166 = vector.shape_cast %165 : vector<1x128x256xbf16> to vector<128x256xbf16>
    %cst_185 = arith.constant dense<0.000000e+00> : vector<66x256xf32>
    %167 = tpu.matmul %164, %166, %cst_185 {dimension_numbers = #tpu.dot_dimension_numbers<[1], [0], [0], [1], [0, 0, 1, 1], [], []>} : vector<66x128xbf16>, vector<128x256xbf16>, vector<66x256xf32> -> vector<66x256xf32>
    %168 = arith.addf %163, %167 : vector<66x256xf32>
    %c0_186 = arith.constant 0 : index
    %c0_187 = arith.constant 0 : index
    %169 = vector.load %arg20[%c0_186, %c0_187] : memref<80x256xf32, #tpu.memory_space<vmem>>, vector<66x256xf32>
    tpu.vector_store %arg20[%c0_186, %c0_187], %168 {strides = array<i32>} : memref<80x256xf32, #tpu.memory_space<vmem>>, vector<66x256xf32>,
    %c0_188 = arith.constant 0 : index
    %c0_189 = arith.constant 0 : index
    %170 = vector.load %arg20[%c0_188, %c0_189] : memref<80x256xf32, #tpu.memory_space<vmem>>, vector<66x256xf32>
    %c12_190 = arith.constant 12 : index
    %c0_191 = arith.constant 0 : index
    %171 = vector.load %arg19[%c12_190, %c0_191] : memref<80x128xbf16, #tpu.memory_space<vmem>>, vector<66x128xbf16>
    %c6_192 = arith.constant 6 : index
    %c0_193 = arith.constant 0 : index
    %c0_194 = arith.constant 0 : index
    %172 = vector.load %arg6[%c6_192, %c0_193, %c0_194] : memref<9x128x256xbf16, #tpu.memory_space<vmem>>, vector<1x128x256xbf16>
    %173 = vector.shape_cast %172 : vector<1x128x256xbf16> to vector<128x256xbf16>
    %cst_195 = arith.constant dense<0.000000e+00> : vector<66x256xf32>
    %174 = tpu.matmul %171, %173, %cst_195 {dimension_numbers = #tpu.dot_dimension_numbers<[1], [0], [0], [1], [0, 0, 1, 1], [], []>} : vector<66x128xbf16>, vector<128x256xbf16>, vector<66x256xf32> -> vector<66x256xf32>
    %175 = arith.addf %170, %174 : vector<66x256xf32>
    %c0_196 = arith.constant 0 : index
    %c0_197 = arith.constant 0 : index
    %176 = vector.load %arg20[%c0_196, %c0_197] : memref<80x256xf32, #tpu.memory_space<vmem>>, vector<66x256xf32>
    tpu.vector_store %arg20[%c0_196, %c0_197], %175 {strides = array<i32>} : memref<80x256xf32, #tpu.memory_space<vmem>>, vector<66x256xf32>,
    %c0_198 = arith.constant 0 : index
    %c0_199 = arith.constant 0 : index
    %177 = vector.load %arg20[%c0_198, %c0_199] : memref<80x256xf32, #tpu.memory_space<vmem>>, vector<66x256xf32>
    %c13 = arith.constant 13 : index
    %c0_200 = arith.constant 0 : index
    %178 = vector.load %arg19[%c13, %c0_200] : memref<80x128xbf16, #tpu.memory_space<vmem>>, vector<66x128xbf16>
    %c7_201 = arith.constant 7 : index
    %c0_202 = arith.constant 0 : index
    %c0_203 = arith.constant 0 : index
    %179 = vector.load %arg6[%c7_201, %c0_202, %c0_203] : memref<9x128x256xbf16, #tpu.memory_space<vmem>>, vector<1x128x256xbf16>
    %180 = vector.shape_cast %179 : vector<1x128x256xbf16> to vector<128x256xbf16>
    %cst_204 = arith.constant dense<0.000000e+00> : vector<66x256xf32>
    %181 = tpu.matmul %178, %180, %cst_204 {dimension_numbers = #tpu.dot_dimension_numbers<[1], [0], [0], [1], [0, 0, 1, 1], [], []>} : vector<66x128xbf16>, vector<128x256xbf16>, vector<66x256xf32> -> vector<66x256xf32>
    %182 = arith.addf %177, %181 : vector<66x256xf32>
    %c0_205 = arith.constant 0 : index
    %c0_206 = arith.constant 0 : index
    %183 = vector.load %arg20[%c0_205, %c0_206] : memref<80x256xf32, #tpu.memory_space<vmem>>, vector<66x256xf32>
    tpu.vector_store %arg20[%c0_205, %c0_206], %182 {strides = array<i32>} : memref<80x256xf32, #tpu.memory_space<vmem>>, vector<66x256xf32>,
    %c0_207 = arith.constant 0 : index
    %c0_208 = arith.constant 0 : index
    %184 = vector.load %arg20[%c0_207, %c0_208] : memref<80x256xf32, #tpu.memory_space<vmem>>, vector<66x256xf32>
    %c14 = arith.constant 14 : index
    %c0_209 = arith.constant 0 : index
    %185 = vector.load %arg19[%c14, %c0_209] : memref<80x128xbf16, #tpu.memory_space<vmem>>, vector<66x128xbf16>
    %c8_210 = arith.constant 8 : index
    %c0_211 = arith.constant 0 : index
    %c0_212 = arith.constant 0 : index
    %186 = vector.load %arg6[%c8_210, %c0_211, %c0_212] : memref<9x128x256xbf16, #tpu.memory_space<vmem>>, vector<1x128x256xbf16>
    %187 = vector.shape_cast %186 : vector<1x128x256xbf16> to vector<128x256xbf16>
    %cst_213 = arith.constant dense<0.000000e+00> : vector<66x256xf32>
    %188 = tpu.matmul %185, %187, %cst_213 {dimension_numbers = #tpu.dot_dimension_numbers<[1], [0], [0], [1], [0, 0, 1, 1], [], []>} : vector<66x128xbf16>, vector<128x256xbf16>, vector<66x256xf32> -> vector<66x256xf32>
    %189 = arith.addf %184, %188 : vector<66x256xf32>
    %c0_214 = arith.constant 0 : index
    %c0_215 = arith.constant 0 : index
    %190 = vector.load %arg20[%c0_214, %c0_215] : memref<80x256xf32, #tpu.memory_space<vmem>>, vector<66x256xf32>
    tpu.vector_store %arg20[%c0_214, %c0_215], %189 {strides = array<i32>} : memref<80x256xf32, #tpu.memory_space<vmem>>, vector<66x256xf32>,
    %c0_216 = arith.constant 0 : index
    %c0_217 = arith.constant 0 : index
    %191 = vector.load %arg20[%c0_216, %c0_217] : memref<80x256xf32, #tpu.memory_space<vmem>>, vector<15x256xf32>
    %c1_218 = arith.constant 1 : index
    %c0_219 = arith.constant 0 : index
    %192 = vector.load %arg20[%c1_218, %c0_219] : memref<80x256xf32, #tpu.memory_space<vmem>>, vector<15x256xf32>
    %193 = arith.maximumf %191, %192 : vector<15x256xf32>
    %c6_220 = arith.constant 6 : index
    %c0_221 = arith.constant 0 : index
    %194 = vector.load %arg20[%c6_220, %c0_221] : memref<80x256xf32, #tpu.memory_space<vmem>>, vector<15x256xf32>
    %c7_222 = arith.constant 7 : index
    %c0_223 = arith.constant 0 : index
    %195 = vector.load %arg20[%c7_222, %c0_223] : memref<80x256xf32, #tpu.memory_space<vmem>>, vector<15x256xf32>
    %196 = arith.maximumf %194, %195 : vector<15x256xf32>
    %197 = arith.maximumf %193, %196 : vector<15x256xf32>
    %cst_224 = arith.constant 0.000000e+00 : f32
    %198 = vector.broadcast %cst_224 : f32 to vector<15x256xf32>
    %199 = arith.maximumf %197, %198 : vector<15x256xf32>
    %c0_225 = arith.constant 0 : index
    %c0_226 = arith.constant 0 : index
    %200 = vector.load %arg10[%c0_225, %c0_226] : memref<1x15xf32, #tpu.memory_space<vmem>>, vector<1x15xf32>
    %cst_227 = arith.constant dense<0.000000e+00> : vector<1x256xf32>
    %201 = tpu.matmul %200, %199, %cst_227 {dimension_numbers = #tpu.dot_dimension_numbers<[1], [0], [0], [1], [0, 0, 1, 1], [], []>} : vector<1x15xf32>, vector<15x256xf32>, vector<1x256xf32> -> vector<1x256xf32>
    %c0_228 = arith.constant 0 : index
    %c0_229 = arith.constant 0 : index
    %202 = vector.load %arg21[%c0_228, %c0_229] : memref<2x256xf32, #tpu.memory_space<vmem>>, vector<1x256xf32>
    tpu.vector_store %arg21[%c0_228, %c0_229], %201 {strides = array<i32>} : memref<2x256xf32, #tpu.memory_space<vmem>>, vector<1x256xf32>,
    %c40_230 = arith.constant 40 : index
    %c0_231 = arith.constant 0 : index
    %203 = vector.load %arg20[%c40_230, %c0_231] : memref<80x256xf32, #tpu.memory_space<vmem>>, vector<15x256xf32>
    %c41 = arith.constant 41 : index
    %c0_232 = arith.constant 0 : index
    %204 = vector.load %arg20[%c41, %c0_232] : memref<80x256xf32, #tpu.memory_space<vmem>>, vector<15x256xf32>
    %205 = arith.maximumf %203, %204 : vector<15x256xf32>
    %c46 = arith.constant 46 : index
    %c0_233 = arith.constant 0 : index
    %206 = vector.load %arg20[%c46, %c0_233] : memref<80x256xf32, #tpu.memory_space<vmem>>, vector<15x256xf32>
    %c47 = arith.constant 47 : index
    %c0_234 = arith.constant 0 : index
    %207 = vector.load %arg20[%c47, %c0_234] : memref<80x256xf32, #tpu.memory_space<vmem>>, vector<15x256xf32>
    %208 = arith.maximumf %206, %207 : vector<15x256xf32>
    %209 = arith.maximumf %205, %208 : vector<15x256xf32>
    %cst_235 = arith.constant 0.000000e+00 : f32
    %210 = vector.broadcast %cst_235 : f32 to vector<15x256xf32>
    %211 = arith.maximumf %209, %210 : vector<15x256xf32>
    %c0_236 = arith.constant 0 : index
    %c0_237 = arith.constant 0 : index
    %212 = vector.load %arg10[%c0_236, %c0_237] : memref<1x15xf32, #tpu.memory_space<vmem>>, vector<1x15xf32>
    %cst_238 = arith.constant dense<0.000000e+00> : vector<1x256xf32>
    %213 = tpu.matmul %212, %211, %cst_238 {dimension_numbers = #tpu.dot_dimension_numbers<[1], [0], [0], [1], [0, 0, 1, 1], [], []>} : vector<1x15xf32>, vector<15x256xf32>, vector<1x256xf32> -> vector<1x256xf32>
    %c1_239 = arith.constant 1 : index
    %c0_240 = arith.constant 0 : index
    %214 = vector.load %arg21[%c1_239, %c0_240] : memref<2x256xf32, #tpu.memory_space<vmem>>, vector<1x256xf32>
    tpu.vector_store %arg21[%c1_239, %c0_240], %213 {strides = array<i32>} : memref<2x256xf32, #tpu.memory_space<vmem>>, vector<1x256xf32>,
    %c0_241 = arith.constant 0 : index
    %c0_242 = arith.constant 0 : index
    %215 = vector.load %arg21[%c0_241, %c0_242] : memref<2x256xf32, #tpu.memory_space<vmem>>, vector<2x256xf32>
    %c0_243 = arith.constant 0 : index
    %c0_244 = arith.constant 0 : index
    %216 = vector.load %arg11[%c0_243, %c0_244] : memref<256x128xf32, #tpu.memory_space<vmem>>, vector<256x128xf32>
    %cst_245 = arith.constant dense<0.000000e+00> : vector<2x128xf32>
    %217 = tpu.matmul %215, %216, %cst_245 {dimension_numbers = #tpu.dot_dimension_numbers<[1], [0], [0], [1], [0, 0, 1, 1], [], []>} : vector<2x256xf32>, vector<256x128xf32>, vector<2x128xf32> -> vector<2x128xf32>
    %c0_246 = arith.constant 0 : index
    %c0_247 = arith.constant 0 : index
    %218 = vector.load %arg12[%c0_246, %c0_247] : memref<1x128xf32, #tpu.memory_space<vmem>>, vector<1x128xf32>
    %219 = vector.broadcast %218 : vector<1x128xf32> to vector<2x128xf32>
    %220 = arith.addf %217, %219 : vector<2x128xf32>
    %cst_248 = arith.constant 0.000000e+00 : f32
    %221 = vector.broadcast %cst_248 : f32 to vector<2x128xf32>
    %222 = arith.maximumf %220, %221 : vector<2x128xf32>
    %c0_249 = arith.constant 0 : index
    %c0_250 = arith.constant 0 : index
    %223 = vector.load %arg13[%c0_249, %c0_250] : memref<128x2xf32, #tpu.memory_space<vmem>>, vector<128x2xf32>
    %cst_251 = arith.constant dense<0.000000e+00> : vector<2x2xf32>
    %224 = tpu.matmul %222, %223, %cst_251 {dimension_numbers = #tpu.dot_dimension_numbers<[1], [0], [0], [1], [0, 0, 1, 1], [], []>} : vector<2x128xf32>, vector<128x2xf32>, vector<2x2xf32> -> vector<2x2xf32>
    %c0_252 = arith.constant 0 : index
    %c0_253 = arith.constant 0 : index
    %225 = vector.load %arg14[%c0_252, %c0_253] : memref<1x2xf32, #tpu.memory_space<vmem>>, vector<1x2xf32>
    %226 = vector.broadcast %225 : vector<1x2xf32> to vector<2x2xf32>
    %227 = arith.addf %224, %226 : vector<2x2xf32>
    %c0_254 = arith.constant 0 : index
    %c0_255 = arith.constant 0 : index
    %228 = vector.load %arg15[%c0_254, %c0_255] : memref<2x2xf32, #tpu.memory_space<vmem>>, vector<2x2xf32>
    tpu.vector_store %arg15[%c0_254, %c0_255], %227 {strides = array<i32>} : memref<2x2xf32, #tpu.memory_space<vmem>>, vector<2x2xf32>,
    return
  }
  func.func @transform_0(%arg0: i32) -> (i32, i32) {
    %c0_i32 = arith.constant 0 : i32
    %c0_i32_0 = arith.constant 0 : i32
    return %arg0, %c0_i32 : i32, i32
  }
  func.func @transform_1(%arg0: i32) -> (i32, i32) {
    %c0_i32 = arith.constant 0 : i32
    %c0_i32_0 = arith.constant 0 : i32
    %c0_i32_1 = arith.constant 0 : i32
    return %c0_i32, %c0_i32_0 : i32, i32
  }
  func.func @transform_2(%arg0: i32) -> (i32, i32) {
    %c0_i32 = arith.constant 0 : i32
    %c0_i32_0 = arith.constant 0 : i32
    %c0_i32_1 = arith.constant 0 : i32
    return %c0_i32, %c0_i32_0 : i32, i32
  }
  func.func @transform_3(%arg0: i32) -> (i32, i32, i32) {
    %c0_i32 = arith.constant 0 : i32
    %c0_i32_0 = arith.constant 0 : i32
    %c0_i32_1 = arith.constant 0 : i32
    %c0_i32_2 = arith.constant 0 : i32
    return %c0_i32, %c0_i32_0, %c0_i32_1 : i32, i32, i32
  }
  func.func @transform_4(%arg0: i32) -> (i32, i32) {
    %c0_i32 = arith.constant 0 : i32
    %c0_i32_0 = arith.constant 0 : i32
    %c0_i32_1 = arith.constant 0 : i32
    return %c0_i32, %c0_i32_0 : i32, i32
  }
  func.func @transform_5(%arg0: i32) -> (i32, i32, i32) {
    %c0_i32 = arith.constant 0 : i32
    %c0_i32_0 = arith.constant 0 : i32
    %c0_i32_1 = arith.constant 0 : i32
    %c0_i32_2 = arith.constant 0 : i32
    return %c0_i32, %c0_i32_0, %c0_i32_1 : i32, i32, i32
  }
  func.func @transform_6(%arg0: i32) -> (i32, i32) {
    %c0_i32 = arith.constant 0 : i32
    %c0_i32_0 = arith.constant 0 : i32
    %c0_i32_1 = arith.constant 0 : i32
    return %c0_i32, %c0_i32_0 : i32, i32
  }
  func.func @transform_7(%arg0: i32) -> (i32, i32) {
    %c0_i32 = arith.constant 0 : i32
    %c0_i32_0 = arith.constant 0 : i32
    %c0_i32_1 = arith.constant 0 : i32
    return %c0_i32, %c0_i32_0 : i32, i32
  }
  func.func @transform_8(%arg0: i32) -> (i32, i32) {
    %c0_i32 = arith.constant 0 : i32
    %c0_i32_0 = arith.constant 0 : i32
    %c0_i32_1 = arith.constant 0 : i32
    return %c0_i32, %c0_i32_0 : i32, i32
  }
  func.func @transform_9(%arg0: i32) -> (i32, i32) {
    %c0_i32 = arith.constant 0 : i32
    %c0_i32_0 = arith.constant 0 : i32
    %c0_i32_1 = arith.constant 0 : i32
    return %c0_i32, %c0_i32_0 : i32, i32
  }
  func.func @transform_10(%arg0: i32) -> (i32, i32) {
    %c0_i32 = arith.constant 0 : i32
    %c0_i32_0 = arith.constant 0 : i32
    %c0_i32_1 = arith.constant 0 : i32
    return %c0_i32, %c0_i32_0 : i32, i32
  }
  func.func @transform_11(%arg0: i32) -> (i32, i32) {
    %c0_i32 = arith.constant 0 : i32
    %c0_i32_0 = arith.constant 0 : i32
    %c0_i32_1 = arith.constant 0 : i32
    return %c0_i32, %c0_i32_0 : i32, i32
  }
  func.func @transform_12(%arg0: i32) -> (i32, i32) {
    %c0_i32 = arith.constant 0 : i32
    %c0_i32_0 = arith.constant 0 : i32
    %c0_i32_1 = arith.constant 0 : i32
    return %c0_i32, %c0_i32_0 : i32, i32
  }
  func.func @transform_13(%arg0: i32) -> (i32, i32) {
    %c0_i32 = arith.constant 0 : i32
    %c0_i32_0 = arith.constant 0 : i32
    %c0_i32_1 = arith.constant 0 : i32
    return %c0_i32, %c0_i32_0 : i32, i32
  }
  func.func @transform_14(%arg0: i32) -> (i32, i32) {
    %c0_i32 = arith.constant 0 : i32
    %c0_i32_0 = arith.constant 0 : i32
    return %arg0, %c0_i32 : i32, i32
  }
}

</mosaic_0001>

<bundles_post_ra>
// kernel: simple_cnn_forward.1
= control target key start
LH: loop header
LB: loop body
LE: loop exit
PB: predicated region body
PF: predicated region fallthrough
CT: control target
= control target key end

     0   :  { %19 = vsyncpa [#allocation9], 0  ;;  %s12934_s0 = inlined_call_operand.vmem [shape: bf16[512,27], index: 0, kind: input, shape index: {}]   ;;  %s12935_s1 = inlined_call_operand.vmem [shape: bf16[27,64], index: 1, kind: input, shape index: {}]   ;;  %s12936_s2 = inlined_call_operand.hbm [shape: f32[1,64], index: 2, kind: input, shape index: {}]   ;;  %s12937_s3 = inlined_call_operand.vmem [shape: bf16[9,64,128], index: 3, kind: input, shape index: {}]   ;;  %s12938_s4 = inlined_call_operand.hbm [shape: f32[1,128], index: 4, kind: input, shape index: {}]   ;;  %s12939_s5 = inlined_call_operand.vmem [shape: bf16[9,128,256], index: 5, kind: input, shape index: {}]   ;;  %s12940_s6 = inlined_call_operand.vmem [shape: f32[1,256], index: 6, kind: input, shape index: {}]   ;;  %s12941_s7 = inlined_call_operand.vmem [shape: bf16[104,239], index: 7, kind: input, shape index: {}]   ;;  %s12942_s8 = inlined_call_operand.vmem [shape: bf16[40,67], index: 8, kind: input, shape index: {}]   ;;  %s12943_s9 = inlined_call_operand.hbm [shape: f32[1,15], index: 9, kind: input, shape index: {}]   ;;  %s12944_s10 = inlined_call_operand.vmem [shape: f32[256,128], index: 10, kind: input, shape index: {}]   ;;  %s12945_s11 = inlined_call_operand.hbm [shape: f32[1,128], index: 11, kind: input, shape index: {}]   ;;  %s12946_s12 = inlined_call_operand.vmem [shape: f32[128,2], index: 12, kind: input, shape index: {}]   ;;  %s12947_s13 = inlined_call_operand.hbm [shape: f32[1,2], index: 13, kind: input, shape index: {}]   ;;  %s12948_s14 = inlined_call_operand.hbm [shape: f32[2,2], index: 14, kind: output, shape index: {}]  }
   0x1   :  { %20 = vsyncpa [#allocation12], 0 }
   0x2   :  { %21 = vsyncpa [#allocation15], 0  ;;  %s45_s15 = sshll.u32 %s12938_s4, 4  ;;  %s46_s15 = int_to_ptr.hbm [resolvable:$true] %s45_s15 }
   0x3   :  { %22 = vsyncpa [#allocation10], 0  ;;  %s10126_s16 = smov [#allocation11]   ;;  %s77_s20 = sshll.u32 %s12945_s11, 4  ;;  %s78_s20 = int_to_ptr.hbm [resolvable:$true] %s77_s20 }
   0x4   :  { %s47_s17 = sshll.u32 %s10126_s16, 4  ;;  %s10127_s21 = smov [#allocation14]   ;;  %s48_s17 = int_to_ptr.vmem [resolvable:$true] %s47_s17 }
   0x5   :  { %50 = dma.hbm_to_vmem [thread:$0]  %s46_s15, 16, %s48_s17, [#allocation12]  }
   0x6   :  { %s79_s22 = sshll.u32 %s10127_s21, 4  ;;  %s32_s25 = sshll.u32 %s12936_s2, 4  ;;  %s80_s22 = int_to_ptr.vmem [resolvable:$true] %s79_s22  ;;  %s33_s25 = int_to_ptr.hbm [resolvable:$true] %s32_s25 }
   0x7   :  { %82 = dma.hbm_to_vmem [thread:$0]  %s78_s20, 16, %s80_s22, [#allocation15]  }
   0x8   :  { %s64_s27 = sshll.u32 %s12943_s9, 4  ;;  %s10128_s28 = smov [#allocation8]   ;;  %s65_s27 = int_to_ptr.hbm [resolvable:$true] %s64_s27 }
   0x9   :  { %s34_s29 = sshll.u32 %s10128_s28, 4  ;;  %s10129_s11 = smov [#allocation13]   ;;  %s35_s29 = int_to_ptr.vmem [resolvable:$true] %s34_s29 }
   0xa   :  { %37 = dma.hbm_to_vmem [thread:$0]  %s33_s25, 16, %s35_s29, [#allocation9]  }
   0xb   :  { %s66_s30 = sshll.u32 %s10129_s11, 4  ;;  %s90_s17 = sshll.u32 %s12947_s13, 4  ;;  %s67_s30 = int_to_ptr.vmem [resolvable:$true] %s66_s30  ;;  %s91_s17 = int_to_ptr.hbm [resolvable:$true] %s90_s17 }
   0xc   :  { %69 = dma.hbm_to_vmem [thread:$0]  %s65_s27, 16, %s67_s30, [#allocation12]  }
   0xd   :  { %s10130_s2 = smov [#allocation16]  }
   0xe   :  { %s92_s18 = sshll.u32 %s10130_s2, 4  ;;  %s93_s18 = int_to_ptr.vmem [resolvable:$true] %s92_s18 }
   0xf   :  { %95 = dma.hbm_to_vmem [thread:$0]  %s91_s17, 16, %s93_s18, [#allocation15]  }
  0x10   :  { %10118 = dma.done.wait [#allocation9], 16  }
  0x11   :  { %10119 = vsyncadd [#allocation9], 4294967280 }
  0x12   :  { %10120 = dma.done.wait [#allocation12], 32  }
  0x13   :  { %10121 = vsyncadd [#allocation12], 4294967264 }
  0x14   :  { %10122 = dma.done.wait [#allocation15], 32  }
  0x15   :  { %10123 = vsyncadd [#allocation15], 4294967264  ;;  %vm457_vm0 = vcmask 1044480   ;;  %vm458_vm1 = vcmask 1045504   ;;  %v12949_v0 = vmov 65535   ;;  %v9583_v7 = vld [vmem:[%s12935_s1] sm:$0xff] }
  0x16   :  { %v459_v1 = vsel %vm457_vm0, 4294967295, %v12949_v0  ;;  %v7777_v2 = vld [vmem:[%s12935_s1 + $0x8] sm:$0xf]  ;;  %v9584_v3 = vld [vmem:[%s12935_s1 + $0x8] sm:$0x30]  ;;  %v9551_v8 = vld [vmem:[%s12934_s0] sm:$0xff] }
  0x17   :  { %v460_v4 = vsel %vm458_vm1, %v459_v1, 0  ;;  %v7778_v5 = vor.u32 %v9584_v3, %v7777_v2  ;;  %vm360_vm2 = vcmask 220160   ;;  %v9552_v9 = vld [vmem:[%s12934_s0 + $0x8] sm:$0xff]  ;;  %v9553_v10 = vld [vmem:[%s12934_s0 + $0x10] sm:$0xff]  ;;  %v9554_v11 = vld [vmem:[%s12934_s0 + $0x18] sm:$0xff]  ;;  %vm633_vm3 = vcmask 523264  }
  0x18   :  { %v9555_v12 = vld [vmem:[%s12934_s0 + $0x20] sm:$0xff]  ;;  %v9556_v13 = vld [vmem:[%s12934_s0 + $0x28] sm:$0xff]  ;;  %v9557_v14 = vld [vmem:[%s12934_s0 + $0x30] sm:$0xff]  ;;  %vm967_vm4 = vcmask 1046528   ;;  %vm968_vm5 = vcmask 1047552   ;;  %vm945_vm6 = vcmask 908288  }
  0x19   :  { %v462_v6 = vand.u32 %v7778_v5, %v460_v4  ;;  %v9558_v15 = vld [vmem:[%s12934_s0 + $0x38] sm:$0xff]  ;;  %v10267_v16 = vld [vmem:[#allocation8] ss:$0 sm:$0xff]  ;;  %v9559_v17 = vld [vmem:[%s12934_s0 + $0x40] sm:$0xff]  ;;  %vm1073_vm7 = vcmask 519168   ;;  %vm4606_vm11 = vcmask 1040384  }
  0x1a   :  { %v9560_v22 = vld [vmem:[%s12934_s0 + $0x48] sm:$0xff]  ;;  %v9561_v27 = vld [vmem:[%s12934_s0 + $0x50] sm:$0xff]  ;;  %v9562_v32 = vld [vmem:[%s12934_s0 + $0x58] sm:$0xff]  ;;  %vm1836_vm8 = vsmask.f32 7424  ;;  %vm4607_vm12 = vcmask 1041408  }
  0x1b   :  { %470 = vmatpush.bf16.msra.mxu0 %v462_v6  ;;  %v9563_v37 = vld [vmem:[%s12934_s0 + $0x60] sm:$0xff]  ;;  %v9564_v42 = vld [vmem:[%s12934_s0 + $0x68] sm:$0xff]  ;;  %v9565_v47 = vld [vmem:[%s12934_s0 + $0x70] sm:$0xff]  ;;  %vm2861_vm9 = vsmask.f32 6400  ;;  %vm4596_vm13 = vcmask 547840  }
  0x1c   :  { %v9566_v52 = vld [vmem:[%s12934_s0 + $0x78] sm:$0xff]  ;;  %v9567_v57 = vld [vmem:[%s12934_s0 + $0x80] sm:$0xff]  ;;  %v9568_v62 = vld [vmem:[%s12934_s0 + $0x88] sm:$0xff]  ;;  %vm3898_vm10 = vsmask.f32 5376  ;;  %vm7295_vm15 = vcmask 121856  }
  0x1d   :  { %vm5898_vm14 = vsmask.f32 4352  ;;  %s10132_s20 = smov [#allocation17]   ;;  %s7631_s24 = sshll.u32 %s12948_s14, 4  ;;  %s7632_s24 = int_to_ptr.hbm [resolvable:$true] %s7631_s24 }
  0x1e   :  { %s7629_s21 = sshll.u32 %s10132_s20, 4  ;;  %s7630_s21 = int_to_ptr.vmem [resolvable:$true] %s7629_s21 }
  0x1f   :  { %471 = vmatpush.bf16.msra.mxu0 %v9583_v7 }
  0x22   :  { %7779 = vmatmul.msk.bf16.vlgmr.msra.gmra.mxu0 %vm360_vm2, %v9551_v8 }
  0x32   :  { %7780 = vmatmul.msk.bf16.gmra.mxu0 %vm360_vm2, %v9552_v9 }
  0x42   :  { %7781 = vmatmul.msk.bf16.gmra.mxu0 %vm360_vm2, %v9553_v10 }
  0x52   :  { %7782 = vmatmul.msk.bf16.gmra.mxu0 %vm360_vm2, %v9554_v11 }
  0x62   :  { %7783 = vmatmul.msk.bf16.gmra.mxu0 %vm360_vm2, %v9555_v12 }
  0x72   :  { %7784 = vmatmul.msk.bf16.gmra.mxu0 %vm360_vm2, %v9556_v13 }
  0x82   :  { %7785 = vmatmul.msk.bf16.gmra.mxu0 %vm360_vm2, %v9557_v14 }
  0x92   :  { %7786 = vmatmul.msk.bf16.gmra.mxu0 %vm360_vm2, %v9558_v15 }
  0x9f   :  { %v473_v18 = vpop.f32.mrf.mxu0 }
  0xa0   :  { %v474_v19 = vadd.f32 %v10267_v16, %v473_v18 }
  0xa2   :  { %634 = vst.msk [vmem:[#allocation2] sm:$0xff] %vm633_vm3, %v474_v19  ;;  %7787 = vmatmul.msk.bf16.gmra.mxu0 %vm360_vm2, %v9559_v17 }
  0xa7   :  { %v475_v20 = vpop.f32.mrf.mxu0 }
  0xa8   :  { %v476_v21 = vadd.f32 %v10267_v16, %v475_v20 }
  0xaa   :  { %635 = vst.msk [vmem:[#allocation2 + $0x8] sm:$0xff] %vm633_vm3, %v476_v21 }
  0xaf   :  { %v478_v23 = vpop.f32.mrf.mxu0 }
  0xb0   :  { %v479_v24 = vadd.f32 %v10267_v16, %v478_v23 }
  0xb2   :  { %636 = vst.msk [vmem:[#allocation2 + $0x10] sm:$0xff] %vm633_vm3, %v479_v24  ;;  %7788 = vmatmul.msk.bf16.gmra.mxu0 %vm360_vm2, %v9560_v22 }
  0xb7   :  { %v480_v25 = vpop.f32.mrf.mxu0 }
  0xb8   :  { %v481_v26 = vadd.f32 %v10267_v16, %v480_v25 }
  0xba   :  { %637 = vst.msk [vmem:[#allocation2 + $0x18] sm:$0xff] %vm633_vm3, %v481_v26 }
  0xbf   :  { %v483_v28 = vpop.f32.mrf.mxu0 }
  0xc0   :  { %v484_v29 = vadd.f32 %v10267_v16, %v483_v28 }
  0xc2   :  { %638 = vst.msk [vmem:[#allocation2 + $0x20] sm:$0xff] %vm633_vm3, %v484_v29  ;;  %7789 = vmatmul.msk.bf16.gmra.mxu0 %vm360_vm2, %v9561_v27  ;;  %v9569_v29 = vld [vmem:[%s12934_s0 + $0x90] sm:$0xff] }
  0xc7   :  { %v485_v30 = vpop.f32.mrf.mxu0 }
  0xc8   :  { %v486_v31 = vadd.f32 %v10267_v16, %v485_v30 }
  0xca   :  { %639 = vst.msk [vmem:[#allocation2 + $0x28] sm:$0xff] %vm633_vm3, %v486_v31 }
  0xcf   :  { %v488_v33 = vpop.f32.mrf.mxu0 }
  0xd0   :  { %v489_v34 = vadd.f32 %v10267_v16, %v488_v33 }
  0xd2   :  { %640 = vst.msk [vmem:[#allocation2 + $0x30] sm:$0xff] %vm633_vm3, %v489_v34  ;;  %7790 = vmatmul.msk.bf16.gmra.mxu0 %vm360_vm2, %v9562_v32 }
  0xd7   :  { %v490_v35 = vpop.f32.mrf.mxu0 }
  0xd8   :  { %v491_v36 = vadd.f32 %v10267_v16, %v490_v35 }
  0xda   :  { %641 = vst.msk [vmem:[#allocation2 + $0x38] sm:$0xff] %vm633_vm3, %v491_v36 }
  0xdf   :  { %v493_v38 = vpop.f32.mrf.mxu0 }
  0xe0   :  { %v494_v39 = vadd.f32 %v10267_v16, %v493_v38 }
  0xe2   :  { %642 = vst.msk [vmem:[#allocation2 + $0x40] sm:$0xff] %vm633_vm3, %v494_v39  ;;  %7791 = vmatmul.msk.bf16.gmra.mxu0 %vm360_vm2, %v9563_v37 }
  0xe7   :  { %v495_v40 = vpop.f32.mrf.mxu0 }
  0xe8   :  { %v496_v41 = vadd.f32 %v10267_v16, %v495_v40 }
  0xea   :  { %643 = vst.msk [vmem:[#allocation2 + $0x48] sm:$0xff] %vm633_vm3, %v496_v41 }
  0xef   :  { %v498_v43 = vpop.f32.mrf.mxu0 }
  0xf0   :  { %v499_v44 = vadd.f32 %v10267_v16, %v498_v43 }
  0xf1   :  { %v736_v43 = vld [vmem:[#allocation2 + $0x41] sm:$0xff] }
  0xf2   :  { %644 = vst.msk [vmem:[#allocation2 + $0x50] sm:$0xff] %vm633_vm3, %v499_v44  ;;  %7792 = vmatmul.msk.bf16.gmra.mxu0 %vm360_vm2, %v9564_v42  ;;  %v707_v42 = vld [vmem:[#allocation2 + $0x48] sm:$0xff] }
  0xf7   :  { %v500_v45 = vpop.f32.mrf.mxu0 }
  0xf8   :  { %v501_v46 = vadd.f32 %v10267_v16, %v500_v45 }
  0xf9   :  { %v708_v33 = vld [vmem:[#allocation2 + $0x50] sm:$0xff] }
  0xfa   :  { %645 = vst.msk [vmem:[#allocation2 + $0x58] sm:$0xff] %vm633_vm3, %v501_v46  ;;  %v737_v37 = vld [vmem:[#allocation2 + $0x49] sm:$0xff] }
  0xfb   :  { %v767_v46 = vmax.f32 %v707_v42, %v737_v37 }
  0xff   :  { %v503_v48 = vpop.f32.mrf.mxu0 }
 0x100   :  { %v504_v49 = vadd.f32 %v10267_v16, %v503_v48  ;;  %v735_v48 = vld [vmem:[#allocation2 + $0x39] sm:$0xff] }
 0x101   :  { %v738_v27 = vld [vmem:[#allocation2 + $0x51] sm:$0xff] }
 0x102   :  { %646 = vst.msk [vmem:[#allocation2 + $0x60] sm:$0xff] %vm633_vm3, %v504_v49  ;;  %7793 = vmatmul.msk.bf16.gmra.mxu0 %vm360_vm2, %v9565_v47  ;;  %v709_v28 = vld [vmem:[#allocation2 + $0x58] sm:$0xff]  ;;  %v768_v36 = vmax.f32 %v708_v33, %v738_v27  ;;  %v706_v47 = vld [vmem:[#allocation2 + $0x40] sm:$0xff] }
 0x107   :  { %v505_v50 = vpop.f32.mrf.mxu0 }
 0x108   :  { %v506_v51 = vadd.f32 %v10267_v16, %v505_v50 }
 0x109   :  { %v710_v22 = vld [vmem:[#allocation2 + $0x60] sm:$0xff] }
 0x10a   :  { %647 = vst.msk [vmem:[#allocation2 + $0x68] sm:$0xff] %vm633_vm3, %v506_v51  ;;  %v739_v23 = vld [vmem:[#allocation2 + $0x59] sm:$0xff] }
 0x10b   :  { %v769_v34 = vmax.f32 %v709_v28, %v739_v23  ;;  %v9570_v28 = vld [vmem:[%s12934_s0 + $0x98] sm:$0xff] }
 0x10f   :  { %v508_v53 = vpop.f32.mrf.mxu0 }
 0x110   :  { %v509_v54 = vadd.f32 %v10267_v16, %v508_v53  ;;  %v806_v53 = vmax.f32 %v767_v46, %v769_v34 }
 0x111   :  { %v711_v14 = vld [vmem:[#allocation2 + $0x68] sm:$0xff] }
 0x112   :  { %648 = vst.msk [vmem:[#allocation2 + $0x70] sm:$0xff] %vm633_vm3, %v509_v54  ;;  %7794 = vmatmul.msk.bf16.gmra.mxu0 %vm360_vm2, %v9566_v52  ;;  %v740_v18 = vld [vmem:[#allocation2 + $0x61] sm:$0xff]  ;;  %v766_v52 = vmax.f32 %v706_v47, %v736_v43  ;;  %v734_v54 = vld [vmem:[#allocation2 + $0x31] sm:$0xff] }
 0x113   :  { %v770_v25 = vmax.f32 %v710_v22, %v740_v18 }
 0x115   :  { %v807_v45 = vmax.f32 %v768_v36, %v770_v25 }
 0x117   :  { %v510_v55 = vpop.f32.mrf.mxu0 }
 0x118   :  { %v511_v56 = vadd.f32 %v10267_v16, %v510_v55  ;;  %v705_v55 = vld [vmem:[#allocation2 + $0x38] sm:$0xff] }
 0x119   :  { %v712_v8 = vld [vmem:[#allocation2 + $0x70] sm:$0xff] }
 0x11a   :  { %649 = vst.msk [vmem:[#allocation2 + $0x78] sm:$0xff] %vm633_vm3, %v511_v56  ;;  %v741_v10 = vld [vmem:[#allocation2 + $0x69] sm:$0xff] }
 0x11b   :  { %v771_v21 = vmax.f32 %v711_v14, %v741_v10  ;;  %v702_v14 = vld [vmem:[#allocation2 + $0x20] sm:$0xff] }
 0x11d   :  { %v808_v41 = vmax.f32 %v769_v34, %v771_v21 }
 0x11f   :  { %v513_v58 = vpop.f32.mrf.mxu0  ;;  %v838_v51 = vmax.f32 %v808_v41, 0.0  ;;  %v728_v41 = vld [vmem:[#allocation2 + $0x1] sm:$0xff] }
 0x120   :  { %v514_v59 = vadd.f32 %v10267_v16, %v513_v58  ;;  %v805_v58 = vmax.f32 %v766_v52, %v768_v36  ;;  %v729_v36 = vld [vmem:[#allocation2 + $0x9] sm:$0xff] }
 0x121   :  { %v742_v4 = vld [vmem:[#allocation2 + $0x71] sm:$0xff] }
 0x122   :  { %650 = vst.msk [vmem:[#allocation2 + $0x80] sm:$0xff] %vm633_vm3, %v514_v59  ;;  %7795 = vmatmul.msk.bf16.gmra.mxu0 %vm360_vm2, %v9567_v57  ;;  %v713_v9 = vld [vmem:[#allocation2 + $0x78] sm:$0xff]  ;;  %v772_v12 = vmax.f32 %v712_v8, %v742_v4  ;;  %v837_v57 = vmax.f32 %v807_v45, 0.0  ;;  %v704_v59 = vld [vmem:[#allocation2 + $0x30] sm:$0xff]  ;;  %v836_v4 = vmax.f32 %v806_v53, 0.0  ;;  %v732_v8 = vld [vmem:[#allocation2 + $0x21] sm:$0xff] }
 0x123   :  { %v698_v45 = vld [vmem:[#allocation2] sm:$0xff] }
 0x124   :  { %v809_v32 = vmax.f32 %v770_v25, %v772_v12  ;;  %v730_v25 = vld [vmem:[#allocation2 + $0x11] sm:$0xff] }
 0x126   :  { %v839_v44 = vmax.f32 %v809_v32, 0.0 }
 0x127   :  { %v515_v60 = vpop.f32.mrf.mxu0 }
 0x128   :  { %v516_v61 = vadd.f32 %v10267_v16, %v515_v60  ;;  %v765_v60 = vmax.f32 %v705_v55, %v735_v48  ;;  %v758_v48 = vmax.f32 %v698_v45, %v728_v41 }
 0x129   :  { %v714_v3 = vld [vmem:[#allocation2 + $0x80] sm:$0xff] }
 0x12a   :  { %651 = vst.msk [vmem:[#allocation2 + $0x88] sm:$0xff] %vm633_vm3, %v516_v61  ;;  %v743_v5 = vld [vmem:[#allocation2 + $0x79] sm:$0xff]  ;;  %v733_v61 = vld [vmem:[#allocation2 + $0x29] sm:$0xff] }
 0x12b   :  { %v773_v13 = vmax.f32 %v713_v9, %v743_v5  ;;  %v804_v5 = vmax.f32 %v765_v60, %v767_v46 }
 0x12d   :  { %v810_v26 = vmax.f32 %v771_v21, %v773_v13  ;;  %v834_v22 = vmax.f32 %v804_v5, 0.0 }
 0x12f   :  { %v518_v63 = vpop.f32.mrf.mxu0  ;;  %v840_v40 = vmax.f32 %v810_v26, 0.0 }
 0x130   :  { %v519_v1 = vadd.f32 %v10267_v16, %v518_v63 }
 0x131   :  { %v744_v2 = vld [vmem:[#allocation2 + $0x81] sm:$0xff]  ;;  %v876_v50 = vpack.c.bf16 %v840_v40, %v839_v44 }
 0x132   :  { %652 = vst.msk [vmem:[#allocation2 + $0x90] sm:$0xff] %vm633_vm3, %v519_v1  ;;  %7796 = vmatmul.msk.bf16.gmra.mxu0 %vm360_vm2, %v9568_v62  ;;  %v10347_v6 = vmax.f32 %v714_v3, %v744_v2  ;;  %v715_v15 = vld [vmem:[#allocation2 + $0x88] sm:$0xff]  ;;  %v764_v1 = vmax.f32 %v704_v59, %v734_v54  ;;  %v875_v3 = vpack.c.bf16 %v838_v51, %v837_v57 }
 0x133   :  { %v699_v40 = vld [vmem:[#allocation2 + $0x8] sm:$0xff] }
 0x134   :  { %v811_v20 = vmax.f32 %v772_v12, %v10347_v6  ;;  %v835_v12 = vmax.f32 %v805_v58, 0.0  ;;  %v759_v44 = vmax.f32 %v699_v40, %v729_v36  ;;  %v9571_v58 = vld [vmem:[%s12934_s0 + $0xa0] sm:$0xff] }
 0x136   :  { %v841_v30 = vmax.f32 %v811_v20, 0.0  ;;  %v762_v20 = vmax.f32 %v702_v14, %v732_v8  ;;  %v874_v21 = vpack.c.bf16 %v836_v4, %v835_v12  ;;  %v9574_v12 = vld [vmem:[%s12934_s0 + $0xb8] sm:$0xff] }
 0x137   :  { %v520_v7 = vpop.f32.mrf.mxu0 }
 0x138   :  { %v521_v11 = vadd.f32 %v10267_v16, %v520_v7  ;;  %v703_v7 = vld [vmem:[#allocation2 + $0x28] sm:$0xff] }
 0x139   :  { %v745_v17 = vld [vmem:[#allocation2 + $0x89] sm:$0xff]  ;;  %v763_v9 = vmax.f32 %v703_v7, %v733_v61 }
 0x13a   :  { %653 = vst.msk [vmem:[#allocation2 + $0x98] sm:$0xff] %vm633_vm3, %v521_v11  ;;  %v10351_v19 = vmax.f32 %v715_v15, %v745_v17  ;;  %v716_v56 = vld [vmem:[#allocation2 + $0x90] sm:$0xff]  ;;  %v731_v15 = vld [vmem:[#allocation2 + $0x19] sm:$0xff]  ;;  %v9573_v7 = vld [vmem:[%s12934_s0 + $0xb0] sm:$0xff] }
 0x13b   :  { %v802_v23 = vmax.f32 %v763_v9, %v765_v60 }
 0x13c   :  { %v812_v24 = vmax.f32 %v773_v13, %v10351_v19  ;;  %v803_v13 = vmax.f32 %v764_v1, %v766_v52 }
 0x13e   :  { %v842_v31 = vmax.f32 %v812_v24, 0.0  ;;  %v701_v24 = vld [vmem:[#allocation2 + $0x18] sm:$0xff] }
 0x13f   :  { %v523_v35 = vpop.f32.mrf.mxu0  ;;  %v761_v27 = vmax.f32 %v701_v24, %v731_v15 }
 0x140   :  { %v524_v38 = vadd.f32 %v10267_v16, %v523_v35  ;;  %v877_v39 = vpack.c.bf16 %v842_v31, %v841_v30  ;;  %v801_v30 = vmax.f32 %v762_v20, %v764_v1  ;;  %v700_v31 = vld [vmem:[#allocation2 + $0x10] sm:$0xff]  ;;  %v9572_v1 = vld [vmem:[%s12934_s0 + $0xa8] sm:$0xff] }
 0x141   :  { %v746_v49 = vld [vmem:[#allocation2 + $0x91] sm:$0xff]  ;;  %v760_v34 = vmax.f32 %v700_v31, %v730_v25  ;;  %v800_v35 = vmax.f32 %v761_v27, %v763_v9 }
 0x142   :  { %654 = vst.msk [vmem:[#allocation2 + $0xa0] sm:$0xff] %vm633_vm3, %v524_v38  ;;  %7797 = vmatmul.msk.bf16.gmra.mxu0 %vm360_vm2, %v9569_v29  ;;  %974 = vmatpush.bf16.msra.mxu1 %v877_v39  ;;  %v10361_v62 = vmax.f32 %v716_v56, %v746_v49  ;;  %v717_v10 = vld [vmem:[#allocation2 + $0x98] sm:$0xff]  ;;  %v833_v29 = vmax.f32 %v803_v13, 0.0  ;;  %v832_v38 = vmax.f32 %v802_v23, 0.0  ;;  %v831_v42 = vmax.f32 %v801_v30, 0.0 }
 0x143   :  { %v799_v43 = vmax.f32 %v760_v34, %v762_v20  ;;  %v830_v47 = vmax.f32 %v800_v35, 0.0  ;;  %v798_v49 = vmax.f32 %v759_v44, %v761_v27  ;;  %v797_v51 = vmax.f32 %v758_v48, %v760_v34  ;;  %v9575_v20 = vld [vmem:[%s12934_s0 + $0xc0] sm:$0xff] }
 0x144   :  { %v813_v18 = vmax.f32 %v10347_v6, %v10361_v62  ;;  %v872_v46 = vpack.c.bf16 %v832_v38, %v831_v42  ;;  %v969_v44 = vsel %vm967_vm4, 4294967295, %v12949_v0 }
 0x145   :  { %v828_v55 = vmax.f32 %v798_v49, 0.0  ;;  %v827_v56 = vmax.f32 %v797_v51, 0.0 }
 0x146   :  { %975 = vmatpush.bf16.msra.mxu1 %v876_v50  ;;  %v10374_v32 = vmax.f32 %v813_v18, 0.0  ;;  %v829_v50 = vmax.f32 %v799_v43, 0.0 }
 0x147   :  { %v525_v63 = vpop.f32.mrf.mxu0  ;;  %v870_v57 = vpack.c.bf16 %v828_v55, %v827_v56 }
 0x148   :  { %v526_v2 = vadd.f32 %v10267_v16, %v525_v63  ;;  %v871_v54 = vpack.c.bf16 %v830_v47, %v829_v50 }
 0x149   :  { %v747_v11 = vld [vmem:[#allocation2 + $0x99] sm:$0xff] }
 0x14a   :  { %655 = vst.msk [vmem:[#allocation2 + $0xa8] sm:$0xff] %vm633_vm3, %v526_v2  ;;  %976 = vmatpush.bf16.msra.mxu1 %v875_v3  ;;  %v10365_v17 = vmax.f32 %v717_v10, %v747_v11 }
 0x14c   :  { %v814_v26 = vmax.f32 %v10351_v19, %v10365_v17  ;;  %v873_v19 = vpack.c.bf16 %v834_v22, %v833_v29 }
 0x14e   :  { %977 = vmatpush.bf16.msra.mxu1 %v874_v21  ;;  %v10376_v6 = vmax.f32 %v814_v26, 0.0 }
 0x14f   :  { %v528_v33 = vpop.f32.mrf.mxu0 }
 0x150   :  { %v529_v37 = vadd.f32 %v10267_v16, %v528_v33  ;;  %v878_v39 = vpack.c.bf16 %v10376_v6, %v10374_v32  ;;  %v9579_v6 = vld [vmem:[%s12934_s0 + $0xe0] sm:$0xff] }
 0x152   :  { %656 = vst.msk [vmem:[#allocation2 + $0xb0] sm:$0xff] %vm633_vm3, %v529_v37  ;;  %7798 = vmatmul.msk.bf16.gmra.mxu0 %vm360_vm2, %v9570_v28  ;;  %978 = vmatpush.bf16.msra.mxu1 %v873_v19 }
 0x156   :  { %979 = vmatpush.bf16.msra.mxu1 %v872_v46 }
 0x157   :  { %v530_v52 = vpop.f32.mrf.mxu0 }
 0x158   :  { %v531_v53 = vadd.f32 %v10267_v16, %v530_v52 }
 0x15a   :  { %657 = vst.msk [vmem:[#allocation2 + $0xb8] sm:$0xff] %vm633_vm3, %v531_v53  ;;  %980 = vmatpush.bf16.msra.mxu1 %v871_v54  ;;  %v10425_v53 = vsel %vm968_vm5, %v969_v44, 0 }
 0x15e   :  { %981 = vmatpush.bf16.msra.mxu1 %v870_v57 }
 0x15f   :  { %v533_v59 = vpop.f32.mrf.mxu0 }
 0x160   :  { %v534_v60 = vadd.f32 %v10267_v16, %v533_v59 }
 0x162   :  { %658 = vst.msk [vmem:[#allocation2 + $0xc0] sm:$0xff] %vm633_vm3, %v534_v60  ;;  %7799 = vmatmul.msk.bf16.gmra.mxu0 %vm360_vm2, %v9571_v58 }
 0x167   :  { %v535_v61 = vpop.f32.mrf.mxu0 }
 0x168   :  { %v536_v63 = vadd.f32 %v10267_v16, %v535_v61 }
 0x169   :  { %v722_v60 = vld [vmem:[#allocation2 + $0xc0] sm:$0xff] }
 0x16a   :  { %659 = vst.msk [vmem:[#allocation2 + $0xc8] sm:$0xff] %vm633_vm3, %v536_v63  ;;  %v751_v61 = vld [vmem:[#allocation2 + $0xb9] sm:$0xff] }
 0x16f   :  { %v538_v2 = vpop.f32.mrf.mxu0 }
 0x170   :  { %v539_v3 = vadd.f32 %v10267_v16, %v538_v2 }
 0x171   :  { %v723_v54 = vld [vmem:[#allocation2 + $0xc8] sm:$0xff] }
 0x172   :  { %660 = vst.msk [vmem:[#allocation2 + $0xd0] sm:$0xff] %vm633_vm3, %v539_v3  ;;  %7800 = vmatmul.msk.bf16.gmra.mxu0 %vm360_vm2, %v9572_v1  ;;  %v752_v55 = vld [vmem:[#allocation2 + $0xc1] sm:$0xff] }
 0x173   :  { %v782_v2 = vmax.f32 %v722_v60, %v752_v55 }
 0x177   :  { %v540_v4 = vpop.f32.mrf.mxu0 }
 0x178   :  { %v541_v5 = vadd.f32 %v10267_v16, %v540_v4  ;;  %v721_v4 = vld [vmem:[#allocation2 + $0xb8] sm:$0xff] }
 0x179   :  { %v724_v46 = vld [vmem:[#allocation2 + $0xd0] sm:$0xff] }
 0x17a   :  { %661 = vst.msk [vmem:[#allocation2 + $0xd8] sm:$0xff] %vm633_vm3, %v541_v5  ;;  %v753_v47 = vld [vmem:[#allocation2 + $0xc9] sm:$0xff]  ;;  %v750_v5 = vld [vmem:[#allocation2 + $0xb1] sm:$0xff] }
 0x17b   :  { %v783_v59 = vmax.f32 %v723_v54, %v753_v47 }
 0x17f   :  { %v543_v8 = vpop.f32.mrf.mxu0 }
 0x180   :  { %v544_v9 = vadd.f32 %v10267_v16, %v543_v8 }
 0x181   :  { %v725_v40 = vld [vmem:[#allocation2 + $0xd8] sm:$0xff] }
 0x182   :  { %662 = vst.msk [vmem:[#allocation2 + $0xe0] sm:$0xff] %vm633_vm3, %v544_v9  ;;  %7801 = vmatmul.msk.bf16.gmra.mxu0 %vm360_vm2, %v9573_v7  ;;  %v754_v41 = vld [vmem:[#allocation2 + $0xd1] sm:$0xff]  ;;  %v781_v9 = vmax.f32 %v721_v4, %v751_v61 }
 0x183   :  { %v784_v50 = vmax.f32 %v724_v46, %v754_v41  ;;  %v9577_v46 = vld [vmem:[%s12934_s0 + $0xd0] sm:$0xff] }
 0x185   :  { %v821_v8 = vmax.f32 %v782_v2, %v784_v50 }
 0x187   :  { %v545_v10 = vpop.f32.mrf.mxu0 }
 0x188   :  { %v546_v11 = vadd.f32 %v10267_v16, %v545_v10  ;;  %v720_v10 = vld [vmem:[#allocation2 + $0xb0] sm:$0xff] }
 0x189   :  { %v726_v25 = vld [vmem:[#allocation2 + $0xe0] sm:$0xff] }
 0x18a   :  { %663 = vst.msk [vmem:[#allocation2 + $0xe8] sm:$0xff] %vm633_vm3, %v546_v11  ;;  %v755_v29 = vld [vmem:[#allocation2 + $0xd9] sm:$0xff]  ;;  %v749_v11 = vld [vmem:[#allocation2 + $0xa9] sm:$0xff] }
 0x18b   :  { %v785_v45 = vmax.f32 %v725_v40, %v755_v29 }
 0x18d   :  { %v822_v3 = vmax.f32 %v783_v59, %v785_v45 }
 0x18f   :  { %v548_v13 = vpop.f32.mrf.mxu0 }
 0x190   :  { %v549_v14 = vadd.f32 %v10267_v16, %v548_v13  ;;  %v9576_v13 = vld [vmem:[%s12934_s0 + $0xc8] sm:$0xff] }
 0x191   :  { %v727_v21 = vld [vmem:[#allocation2 + $0xe8] sm:$0x7f] }
 0x192   :  { %664 = vst.msk [vmem:[#allocation2 + $0xf0] sm:$0xff] %vm633_vm3, %v549_v14  ;;  %7802 = vmatmul.msk.bf16.gmra.mxu0 %vm360_vm2, %v9574_v12  ;;  %v756_v22 = vld [vmem:[#allocation2 + $0xe1] sm:$0xff]  ;;  %v757_v23 = vld [vmem:[#allocation2 + $0xe9] sm:$0x7f]  ;;  %v852_v14 = vmax.f32 %v822_v3, 0.0 }
 0x193   :  { %v788_v30 = vld [vmem:[#allocation2 + $0xe8] sm:$0xff]  ;;  %v786_v31 = vmax.f32 %v726_v25, %v756_v22  ;;  %v787_v33 = vmax.f32 %v727_v21, %v757_v23 }
 0x194   :  { %v719_v21 = vld [vmem:[#allocation2 + $0xa8] sm:$0xff] }
 0x195   :  { %v823_v58 = vmax.f32 %v784_v50, %v786_v31  ;;  %v748_v22 = vld [vmem:[#allocation2 + $0xa1] sm:$0xff] }
 0x197   :  { %v550_v15 = vpop.f32.mrf.mxu0  ;;  %v853_v7 = vmax.f32 %v823_v58, 0.0 }
 0x198   :  { %v551_v18 = vadd.f32 %v10267_v16, %v550_v15  ;;  %v780_v15 = vmax.f32 %v720_v10, %v750_v5  ;;  %v9585_v5 = vld [vmem:[%s12941_s7 + $0x4] sm:$0xf] }
 0x199   :  { %v791_v26 = vld [vmem:[#allocation2 + $0xe9] sm:$0xff] }
 0x19a   :  { %665 = vst.msk [vmem:[#allocation2 + $0xf8] sm:$0xff] %vm633_vm3, %v551_v18  ;;  %v789_v28 = vld [vmem:[#allocation2 + $0xf0] sm:$0xff]  ;;  %v794_v38 = vmax.f32 %v788_v30, %v791_v26  ;;  %v820_v18 = vmax.f32 %v781_v9, %v783_v59  ;;  %v819_v25 = vmax.f32 %v780_v15, %v782_v2  ;;  %v779_v26 = vmax.f32 %v719_v21, %v749_v11 }
 0x19b   :  { %v7823_v21 = vld [vmem:[%s12941_s7 + $0x18] sm:$0xf0] }
 0x19c   :  { %v824_v51 = vmax.f32 %v785_v45, %v794_v38  ;;  %v850_v29 = vmax.f32 %v820_v18, 0.0 }
 0x19e   :  { %v854_v1 = vmax.f32 %v824_v51, 0.0 }
 0x19f   :  { %v553_v24 = vpop.f32.mrf.mxu0 }
 0x1a0   :  { %v554_v27 = vadd.f32 %v10267_v16, %v553_v24  ;;  %v883_v12 = vpack.c.bf16 %v854_v1, %v853_v7  ;;  %v851_v24 = vmax.f32 %v821_v8, 0.0  ;;  %v7815_v7 = vld [vmem:[%s12941_s7 + $0x8] sm:$0xf0] }
 0x1a1   :  { %v790_v34 = vld [vmem:[#allocation2 + $0xf8] sm:$0x7f]  ;;  %v7818_v8 = vor.u32 %v9585_v5, %v7815_v7 }
 0x1a2   :  { %v792_v35 = vld [vmem:[#allocation2 + $0xf1] sm:$0xff]  ;;  %v793_v36 = vld [vmem:[#allocation2 + $0xf9] sm:$0x7f]  ;;  %666 = vst.msk [vmem:[#allocation2 + $0x100] sm:$0xff] %vm633_vm3, %v554_v27  ;;  %7803 = vmatmul.msk.bf16.gmra.mxu0 %vm360_vm2, %v9575_v20  ;;  %v718_v27 = vld [vmem:[#allocation2 + $0xa0] sm:$0xff] }
 0x1a3   :  { %v795_v37 = vmax.f32 %v789_v28, %v792_v35  ;;  %v796_v19 = vmax.f32 %v790_v34, %v793_v36  ;;  %v882_v28 = vpack.c.bf16 %v852_v14, %v851_v24  ;;  %v778_v30 = vmax.f32 %v718_v27, %v748_v22 }
 0x1a5   :  { %v825_v42 = vmax.f32 %v786_v31, %v795_v37  ;;  %v826_v43 = vmax.f32 %v787_v33, %v796_v19  ;;  %v818_v31 = vmax.f32 %v779_v26, %v781_v9  ;;  %v849_v33 = vmax.f32 %v819_v25, 0.0  ;;  %v9582_v9 = vld [vmem:[%s12934_s0 + $0xf8] sm:$0xff]  ;;  %v7821_v25 = vld [vmem:[%s12941_s7 + $0x10] sm:$0xf] }
 0x1a6   :  { %v817_v34 = vmax.f32 %v778_v30, %v780_v15  ;;  %v816_v37 = vmax.f32 %v10365_v17, %v779_v26  ;;  %v815_v41 = vmax.f32 %v10361_v62, %v778_v30  ;;  %v9588_v26 = vld [vmem:[%s12941_s7 + $0x14] sm:$0xf0]  ;;  %v9589_v30 = vld [vmem:[%s12941_s7 + $0x24] sm:$0xf] }
 0x1a7   :  { %v855_v48 = vmax.f32 %v825_v42, 0.0  ;;  %v856_v49 = vmax.f32 %v826_v43, 0.0  ;;  %v555_v52 = vpop.f32.mrf.mxu0  ;;  %v881_v35 = vpack.c.bf16 %v850_v29, %v849_v33  ;;  %v848_v36 = vmax.f32 %v818_v31, 0.0  ;;  %v7831_v31 = vld [vmem:[%s12941_s7 + $0x28] sm:$0xf0] }
 0x1a8   :  { %v556_v56 = vadd.f32 %v10267_v16, %v555_v52  ;;  %v847_v40 = vmax.f32 %v817_v34, 0.0  ;;  %v846_v43 = vmax.f32 %v816_v37, 0.0  ;;  %v845_v44 = vmax.f32 %v815_v41, 0.0  ;;  %v9590_v37 = vld [vmem:[%s12941_s7 + $0x24] sm:$0xf0] }
 0x1a9   :  { %v884_v57 = vpack.c.bf16 %v856_v49, %v855_v48  ;;  %v9578_v49 = vld [vmem:[%s12934_s0 + $0xd8] sm:$0xff]  ;;  %v7822_v27 = vor.u32 %v9588_v26, %v7821_v25  ;;  %v7834_v33 = vor.u32 %v9589_v30, %v7831_v31 }
 0x1aa   :  { %667 = vst.msk [vmem:[#allocation2 + $0x108] sm:$0xff] %vm633_vm3, %v556_v56  ;;  %v880_v42 = vpack.c.bf16 %v848_v36, %v847_v40  ;;  %v879_v45 = vpack.c.bf16 %v846_v43, %v845_v44  ;;  %v7829_v36 = vld [vmem:[%s12941_s7 + $0x20] sm:$0xf] }
 0x1ab   :  { %v972_v63 = vand.u32 %v10425_v53, %v884_v57  ;;  %v9580_v57 = vld [vmem:[%s12934_s0 + $0xe8] sm:$0xff] }
 0x1ad   :  { %1018 = vmatpush.bf16.msra.mxu2 %v972_v63  ;;  %v9581_v63 = vld [vmem:[%s12934_s0 + $0xf0] sm:$0xff] }
 0x1af   :  { %v558_v20 = vpop.f32.mrf.mxu0 }
 0x1b0   :  { %v559_v23 = vadd.f32 %v10267_v16, %v558_v20  ;;  %v9587_v20 = vld [vmem:[%s12941_s7 + $0x14] sm:$0xf] }
 0x1b1   :  { %1019 = vmatpush.bf16.msra.mxu2 %v883_v12  ;;  %v7813_v12 = vld [vmem:[%s12941_s7] sm:$0xf]  ;;  %v7826_v22 = vor.u32 %v9587_v20, %v7823_v21 }
 0x1b2   :  { %668 = vst.msk [vmem:[#allocation2 + $0x110] sm:$0xff] %vm633_vm3, %v559_v23  ;;  %7804 = vmatmul.msk.bf16.gmra.mxu0 %vm360_vm2, %v9576_v13  ;;  %v9586_v13 = vld [vmem:[%s12941_s7 + $0x4] sm:$0xf0] }
 0x1b3   :  { %v7814_v14 = vor.u32 %v9586_v13, %v7813_v12 }
 0x1b5   :  { %1020 = vmatpush.bf16.msra.mxu2 %v882_v28  ;;  %982 = vmatmul.bf16.vlgmr.msra.gmra.mxu1 %v7814_v14 }
 0x1b7   :  { %v560_v19 = vpop.f32.mrf.mxu0 }
 0x1b8   :  { %v561_v38 = vadd.f32 %v10267_v16, %v560_v19 }
 0x1b9   :  { %1021 = vmatpush.bf16.msra.mxu2 %v881_v35 }
 0x1ba   :  { %669 = vst.msk [vmem:[#allocation2 + $0x118] sm:$0xff] %vm633_vm3, %v561_v38  ;;  %v7830_v38 = vor.u32 %v9590_v37, %v7829_v36 }
 0x1bd   :  { %1022 = vmatpush.bf16.msra.mxu2 %v880_v42 }
 0x1bf   :  { %v563_v47 = vpop.f32.mrf.mxu0 }
 0x1c0   :  { %v564_v17 = vadd.f32 %v10267_v16, %v563_v47 }
 0x1c1   :  { %1023 = vmatpush.bf16.msra.mxu2 %v879_v45 }
 0x1c2   :  { %670 = vst.msk [vmem:[#allocation2 + $0x120] sm:$0xff] %vm633_vm3, %v564_v17  ;;  %7805 = vmatmul.msk.bf16.gmra.mxu0 %vm360_vm2, %v9577_v46 }
 0x1c5   :  { %1024 = vmatpush.bf16.msra.mxu2 %v878_v39  ;;  %987 = vmatmul.bf16.gmra.mxu1 %v7822_v27 }
 0x1c7   :  { %v565_v62 = vpop.f32.mrf.mxu0 }
 0x1c8   :  { %v566_v48 = vadd.f32 %v10267_v16, %v565_v62  ;;  %7859 = vmatmul.msk.bf16.vlgmr.msra.gmra.mxu2 %vm945_vm6, %v7818_v8 }
 0x1ca   :  { %671 = vst.msk [vmem:[#allocation2 + $0x128] sm:$0xff] %vm633_vm3, %v566_v48 }
 0x1cf   :  { %v568_v50 = vpop.f32.mrf.mxu0 }
 0x1d0   :  { %v569_v51 = vadd.f32 %v10267_v16, %v568_v50 }
 0x1d2   :  { %672 = vst.msk [vmem:[#allocation2 + $0x130] sm:$0xff] %vm633_vm3, %v569_v51  ;;  %7806 = vmatmul.msk.bf16.gmra.mxu0 %vm360_vm2, %v9578_v49 }
 0x1d5   :  { %992 = vmatmul.bf16.gmra.mxu1 %v7830_v38 }
 0x1d7   :  { %v570_v52 = vpop.f32.mrf.mxu0 }
 0x1d8   :  { %v571_v32 = vadd.f32 %v10267_v16, %v570_v52  ;;  %7860 = vmatmul.msk.bf16.gmra.mxu2 %vm945_vm6, %v7826_v22 }
 0x1d9   :  { %v1093_v38 = vld [vmem:[#allocation2 + $0x130] sm:$0xff] }
 0x1da   :  { %673 = vst.msk [vmem:[#allocation2 + $0x138] sm:$0xff] %vm633_vm3, %v571_v32 }
 0x1df   :  { %v573_v39 = vpop.f32.mrf.mxu0 }
 0x1e0   :  { %v574_v54 = vadd.f32 %v10267_v16, %v573_v39 }
 0x1e2   :  { %674 = vst.msk [vmem:[#allocation2 + $0x140] sm:$0xff] %vm633_vm3, %v574_v54  ;;  %7807 = vmatmul.msk.bf16.gmra.mxu0 %vm360_vm2, %v9579_v6 }
 0x1e7   :  { %v575_v55 = vpop.f32.mrf.mxu0 }
 0x1e8   :  { %v576_v56 = vadd.f32 %v10267_v16, %v575_v55  ;;  %7861 = vmatmul.msk.bf16.gmra.mxu2 %vm945_vm6, %v7834_v33 }
 0x1e9   :  { %v1095_v25 = vld [vmem:[#allocation2 + $0x140] sm:$0xff] }
 0x1ea   :  { %675 = vst.msk [vmem:[#allocation2 + $0x148] sm:$0xff] %vm633_vm3, %v576_v56  ;;  %v1124_v26 = vld [vmem:[#allocation2 + $0x139] sm:$0xff] }
 0x1ef   :  { %v578_v58 = vpop.f32.mrf.mxu0 }
 0x1f0   :  { %v579_v59 = vadd.f32 %v10267_v16, %v578_v58 }
 0x1f2   :  { %676 = vst.msk [vmem:[#allocation2 + $0x150] sm:$0xff] %vm633_vm3, %v579_v59  ;;  %7808 = vmatmul.msk.bf16.gmra.mxu0 %vm360_vm2, %v9580_v57 }
 0x1f7   :  { %v580_v60 = vpop.f32.mrf.mxu0 }
 0x1f8   :  { %v581_v61 = vadd.f32 %v10267_v16, %v580_v60  ;;  %v9591_v60 = vld [vmem:[%s12941_s7 + $0x34] sm:$0xf] }
 0x1f9   :  { %v1097_v5 = vld [vmem:[#allocation2 + $0x150] sm:$0xff] }
 0x1fa   :  { %677 = vst.msk [vmem:[#allocation2 + $0x158] sm:$0xff] %vm633_vm3, %v581_v61  ;;  %v7839_v61 = vld [vmem:[%s12941_s7 + $0x38] sm:$0xf0] }
 0x1ff   :  { %v583_v1 = vpop.f32.mrf.mxu0 }
 0x200   :  { %v584_v2 = vadd.f32 %v10267_v16, %v583_v1  ;;  %v7842_v1 = vor.u32 %v9591_v60, %v7839_v61 }
 0x201   :  { %v1127_v59 = vld [vmem:[#allocation2 + $0x151] sm:$0xff] }
 0x202   :  { %678 = vst.msk [vmem:[#allocation2 + $0x160] sm:$0xff] %vm633_vm3, %v584_v2  ;;  %7809 = vmatmul.msk.bf16.gmra.mxu0 %vm360_vm2, %v9581_v63  ;;  %v1098_v63 = vld [vmem:[#allocation2 + $0x158] sm:$0xff]  ;;  %7862 = vmatmul.msk.bf16.gmra.mxu2 %vm945_vm6, %v7842_v1 }
 0x203   :  { %v9593_v1 = vld [vmem:[%s12941_s7 + $0x44] sm:$0xf] }
 0x207   :  { %v585_v3 = vpop.f32.mrf.mxu0 }
 0x208   :  { %v586_v4 = vadd.f32 %v10267_v16, %v585_v3 }
 0x209   :  { %v1099_v54 = vld [vmem:[#allocation2 + $0x160] sm:$0xff] }
 0x20a   :  { %679 = vst.msk [vmem:[#allocation2 + $0x168] sm:$0xff] %vm633_vm3, %v586_v4  ;;  %v1128_v55 = vld [vmem:[#allocation2 + $0x159] sm:$0xff] }
 0x20b   :  { %v1158_v7 = vmax.f32 %v1098_v63, %v1128_v55  ;;  %v1120_v55 = vld [vmem:[#allocation2 + $0x119] sm:$0xff]  ;;  %v1119_v63 = vld [vmem:[#allocation2 + $0x111] sm:$0xff] }
 0x20f   :  { %v588_v10 = vpop.f32.mrf.mxu0 }
 0x210   :  { %v589_v11 = vadd.f32 %v10267_v16, %v588_v10  ;;  %v1126_v10 = vld [vmem:[#allocation2 + $0x149] sm:$0xff] }
 0x211   :  { %v1100_v49 = vld [vmem:[#allocation2 + $0x168] sm:$0xff] }
 0x212   :  { %680 = vst.msk [vmem:[#allocation2 + $0x170] sm:$0xff] %vm633_vm3, %v589_v11  ;;  %7810 = vmatmul.msk.bf16.gmra.mxu0 %vm360_vm2, %v9582_v9  ;;  %v1129_v52 = vld [vmem:[#allocation2 + $0x161] sm:$0xff]  ;;  %v1157_v9 = vmax.f32 %v1097_v5, %v1127_v59 }
 0x213   :  { %v1159_v57 = vmax.f32 %v1099_v54, %v1129_v52  ;;  %v1091_v54 = vld [vmem:[#allocation2 + $0x120] sm:$0xff] }
 0x215   :  { %v1196_v21 = vmax.f32 %v1157_v9, %v1159_v57 }
 0x217   :  { %v590_v15 = vpop.f32.mrf.mxu0  ;;  %v1226_v37 = vmax.f32 %v1196_v21, 0.0 }
 0x218   :  { %v591_v18 = vadd.f32 %v10267_v16, %v590_v15  ;;  %v1096_v15 = vld [vmem:[#allocation2 + $0x148] sm:$0xff] }
 0x219   :  { %v1101_v45 = vld [vmem:[#allocation2 + $0x170] sm:$0xff]  ;;  %v1156_v22 = vmax.f32 %v1096_v15, %v1126_v10  ;;  %v10580_v15 = vld [vmem:[#allocation8] ss:$0 sm:$0xff] }
 0x21a   :  { %681 = vst.msk [vmem:[#allocation2 + $0x178] sm:$0xff] %vm633_vm3, %v591_v18  ;;  %v1130_v47 = vld [vmem:[#allocation2 + $0x169] sm:$0xff]  ;;  %v1125_v18 = vld [vmem:[#allocation2 + $0x141] sm:$0xff] }
 0x21b   :  { %v1160_v39 = vmax.f32 %v1100_v49, %v1130_v47  ;;  %v1155_v31 = vmax.f32 %v1095_v25, %v1125_v18  ;;  %v1195_v33 = vmax.f32 %v1156_v22, %v1158_v7  ;;  %v1121_v49 = vld [vmem:[#allocation2 + $0x121] sm:$0xff] }
 0x21d   :  { %v1197_v14 = vmax.f32 %v1158_v7, %v1160_v39 }
 0x21f   :  { %v593_v23 = vpop.f32.mrf.mxu0  ;;  %v1227_v30 = vmax.f32 %v1197_v14, 0.0  ;;  %v1118_v14 = vld [vmem:[#allocation2 + $0x109] sm:$0xff] }
 0x220   :  { %v594_v24 = vadd.f32 %v10267_v16, %v593_v23  ;;  %v7837_v23 = vld [vmem:[%s12941_s7 + $0x30] sm:$0xf] }
 0x221   :  { %v1131_v41 = vld [vmem:[#allocation2 + $0x171] sm:$0xff]  ;;  %v1264_v47 = vpack.c.bf16 %v1227_v30, %v1226_v37 }
 0x222   :  { %682 = vst.msk [vmem:[#allocation2 + $0x180] sm:$0xff] %vm633_vm3, %v594_v24  ;;  %v1102_v46 = vld [vmem:[#allocation2 + $0x178] sm:$0xff]  ;;  %v1161_v62 = vmax.f32 %v1101_v45, %v1131_v41  ;;  %v9592_v24 = vld [vmem:[%s12941_s7 + $0x34] sm:$0xf0] }
 0x223   :  { %v7838_v27 = vor.u32 %v9592_v24, %v7837_v23  ;;  %v1122_v41 = vld [vmem:[#allocation2 + $0x129] sm:$0xff]  ;;  %v1117_v23 = vld [vmem:[#allocation2 + $0x101] sm:$0xff] }
 0x224   :  { %v1198_v4 = vmax.f32 %v1159_v57, %v1161_v62  ;;  %v1151_v57 = vmax.f32 %v1091_v54, %v1121_v49 }
 0x225   :  { %997 = vmatmul.bf16.gmra.mxu1 %v7838_v27  ;;  %v7845_v27 = vld [vmem:[%s12941_s7 + $0x40] sm:$0xf] }
 0x226   :  { %v1228_v20 = vmax.f32 %v1198_v4, 0.0 }
 0x227   :  { %v595_v28 = vpop.f32.mrf.mxu0 }
 0x228   :  { %v596_v29 = vadd.f32 %v10267_v16, %v595_v28 }
 0x229   :  { %v1103_v40 = vld [vmem:[#allocation2 + $0x180] sm:$0xff] }
 0x22a   :  { %683 = vst.msk [vmem:[#allocation2 + $0x188] sm:$0xff] %vm633_vm3, %v596_v29  ;;  %v1132_v42 = vld [vmem:[#allocation2 + $0x179] sm:$0xff] }
 0x22b   :  { %v1162_v48 = vmax.f32 %v1102_v46, %v1132_v42 }
 0x22d   :  { %v1199_v58 = vmax.f32 %v1160_v39, %v1162_v48 }
 0x22f   :  { %v598_v34 = vpop.f32.mrf.mxu0  ;;  %v1229_v13 = vmax.f32 %v1199_v58, 0.0  ;;  %v1090_v58 = vld [vmem:[#allocation2 + $0x118] sm:$0xff] }
 0x230   :  { %v599_v35 = vadd.f32 %v10267_v16, %v598_v34  ;;  %v1123_v34 = vld [vmem:[#allocation2 + $0x131] sm:$0xff]  ;;  %v1150_v4 = vmax.f32 %v1090_v58, %v1120_v55 }
 0x231   :  { %v1133_v19 = vld [vmem:[#allocation2 + $0x181] sm:$0xff]  ;;  %v1265_v29 = vpack.c.bf16 %v1229_v13, %v1228_v20  ;;  %v1153_v45 = vmax.f32 %v1093_v38, %v1123_v34 }
 0x232   :  { %684 = vst.msk [vmem:[#allocation2 + $0x190] sm:$0xff] %vm633_vm3, %v599_v35  ;;  %v10536_v43 = vmax.f32 %v1103_v40, %v1133_v19  ;;  %v1104_v50 = vld [vmem:[#allocation2 + $0x188] sm:$0xff]  ;;  %v1094_v35 = vld [vmem:[#allocation2 + $0x138] sm:$0xff]  ;;  %v1194_v19 = vmax.f32 %v1155_v31, %v1157_v9 }
 0x233   :  { %v1154_v40 = vmax.f32 %v1094_v35, %v1124_v26  ;;  %v1192_v39 = vmax.f32 %v1153_v45, %v1155_v31  ;;  %v1190_v7 = vmax.f32 %v1151_v57, %v1153_v45  ;;  %v7868_v45 = vld [vmem:[%s12941_s7] sm:$0xf] }
 0x234   :  { %v1200_v6 = vmax.f32 %v1161_v62, %v10536_v43 }
 0x235   :  { %v1193_v62 = vmax.f32 %v1154_v40, %v1156_v22  ;;  %v1088_v22 = vld [vmem:[#allocation2 + $0x108] sm:$0xff]  ;;  %v1220_v24 = vmax.f32 %v1190_v7, 0.0 }
 0x236   :  { %v1230_v2 = vmax.f32 %v1200_v6, 0.0  ;;  %v1224_v6 = vmax.f32 %v1194_v19, 0.0  ;;  %v1148_v26 = vmax.f32 %v1088_v22, %v1118_v14 }
 0x237   :  { %v600_v44 = vpop.f32.mrf.mxu0  ;;  %v1223_v60 = vmax.f32 %v1193_v62, 0.0  ;;  %v7855_v62 = vld [vmem:[%s12941_s7 + $0x58] sm:$0xf0] }
 0x238   :  { %v601_v17 = vadd.f32 %v10267_v16, %v600_v44  ;;  %v1187_v35 = vmax.f32 %v1148_v26, %v1150_v4 }
 0x239   :  { %v1134_v51 = vld [vmem:[#allocation2 + $0x189] sm:$0xff] }
 0x23a   :  { %685 = vst.msk [vmem:[#allocation2 + $0x198] sm:$0xff] %vm633_vm3, %v601_v17  ;;  %v10540_v32 = vmax.f32 %v1104_v50, %v1134_v51  ;;  %v1105_v36 = vld [vmem:[#allocation2 + $0x190] sm:$0xff]  ;;  %v1225_v17 = vmax.f32 %v1195_v33, 0.0 }
 0x23c   :  { %v1201_v56 = vmax.f32 %v1162_v48, %v10540_v32  ;;  %v1092_v48 = vld [vmem:[#allocation2 + $0x128] sm:$0xff]  ;;  %v1263_v59 = vpack.c.bf16 %v1225_v17, %v1224_v6  ;;  %v9596_v6 = vld [vmem:[%s12941_s7 + $0x54] sm:$0xf0] }
 0x23d   :  { %v1152_v50 = vmax.f32 %v1092_v48, %v1122_v41  ;;  %v1217_v41 = vmax.f32 %v1187_v35, 0.0  ;;  %v9595_v17 = vld [vmem:[%s12941_s7 + $0x54] sm:$0xf] }
 0x23e   :  { %v1231_v3 = vmax.f32 %v1201_v56, 0.0  ;;  %v7858_v49 = vor.u32 %v9595_v17, %v7855_v62 }
 0x23f   :  { %v603_v8 = vpop.f32.mrf.mxu0  ;;  %v1191_v61 = vmax.f32 %v1152_v50, %v1154_v40  ;;  %v1189_v13 = vmax.f32 %v1150_v4, %v1152_v50  ;;  %v7884_v4 = vld [vmem:[%s12941_s7 + $0x20] sm:$0xf] }
 0x240   :  { %v604_v11 = vadd.f32 %v10267_v16, %v603_v8  ;;  %v1266_v12 = vpack.c.bf16 %v1231_v3, %v1230_v2  ;;  %v7847_v2 = vld [vmem:[%s12941_s7 + $0x48] sm:$0xf0]  ;;  %v1089_v8 = vld [vmem:[#allocation2 + $0x110] sm:$0xff] }
 0x241   :  { %v1135_v28 = vld [vmem:[#allocation2 + $0x191] sm:$0xff]  ;;  %v7850_v5 = vor.u32 %v9593_v1, %v7847_v2  ;;  %v1221_v20 = vmax.f32 %v1191_v61, 0.0  ;;  %v1219_v33 = vmax.f32 %v1189_v13, 0.0 }
 0x242   :  { %686 = vst.msk [vmem:[#allocation2 + $0x1a0] sm:$0xff] %vm633_vm3, %v604_v11  ;;  %1358 = vmatpush.bf16.msra.mxu3 %v1266_v12  ;;  %v10559_v42 = vmax.f32 %v1105_v36, %v1135_v28  ;;  %v1106_v51 = vld [vmem:[#allocation2 + $0x198] sm:$0xff]  ;;  %v1149_v12 = vmax.f32 %v1089_v8, %v1119_v63  ;;  %v9594_v28 = vld [vmem:[%s12941_s7 + $0x44] sm:$0xf0] }
 0x243   :  { %7863 = vmatmul.msk.bf16.gmra.mxu2 %vm945_vm6, %v7850_v5  ;;  %v7846_v30 = vor.u32 %v9594_v28, %v7845_v27  ;;  %v1261_v31 = vpack.c.bf16 %v1221_v20, %v1220_v24  ;;  %v869_v61 = vld [vmem:[%s12941_s7 + $0x60] sm:$0xff]  ;;  %v9602_v5 = vld [vmem:[%s12941_s7 + $0x24] sm:$0xf0]  ;;  %v983_v24 = vpop.f32.mrf.mxu1 }
 0x244   :  { %v1188_v25 = vmax.f32 %v1149_v12, %v1151_v57  ;;  %v9600_v57 = vld [vmem:[%s12941_s7 + $0x14] sm:$0xf0]  ;;  %v923_v63 = vunpack.c.h.b16 %v869_v61  ;;  %v7885_v8 = vor.u32 %v9602_v5, %v7884_v4 }
 0x245   :  { %1002 = vmatmul.bf16.gmra.mxu1 %v7846_v30  ;;  %v9606_v30 = vld [vmem:[%s12941_s7 + $0x44] sm:$0xf0] }
 0x246   :  { %1359 = vmatpush.bf16.msra.mxu3 %v1265_v29  ;;  %v1087_v29 = vld [vmem:[#allocation2 + $0x100] sm:$0xff]  ;;  %v1218_v36 = vmax.f32 %v1188_v25, 0.0  ;;  %v10628_v1 = vpack.c.b16 %v923_v63, %v923_v63 }
 0x247   :  { %v605_v44 = vpop.f32.mrf.mxu0  ;;  %v1147_v34 = vmax.f32 %v1087_v29, %v1117_v23  ;;  %v7900_v29 = vld [vmem:[%s12941_s7 + $0x40] sm:$0xf] }
 0x248   :  { %v606_v46 = vadd.f32 %v10267_v16, %v605_v44  ;;  %v1202_v16 = vmax.f32 %v10536_v43, %v10559_v42  ;;  %v1222_v43 = vmax.f32 %v1192_v39, 0.0  ;;  %v1260_v40 = vpack.c.bf16 %v1219_v33, %v1218_v36 }
 0x249   :  { %v1136_v52 = vld [vmem:[#allocation2 + $0x199] sm:$0xff]  ;;  %v1186_v37 = vmax.f32 %v1147_v34, %v1149_v12  ;;  %v7901_v35 = vor.u32 %v9606_v30, %v7900_v29 }
 0x24a   :  { %687 = vst.msk [vmem:[#allocation2 + $0x1a8] sm:$0xff] %vm633_vm3, %v606_v46  ;;  %1360 = vmatpush.bf16.msra.mxu3 %v1264_v47  ;;  %v10563_v56 = vmax.f32 %v1106_v51, %v1136_v52  ;;  %v10575_v9 = vmax.f32 %v1202_v16, 0.0  ;;  %v1262_v18 = vpack.c.bf16 %v1223_v60, %v1222_v43  ;;  %v9598_v46 = vld [vmem:[%s12941_s7 + $0x4] sm:$0xf0]  ;;  %v7853_v52 = vld [vmem:[%s12941_s7 + $0x50] sm:$0xf]  ;;  %v922_v43 = vunpack.c.l.b16 %v869_v61 }
 0x24b   :  { %v1216_v44 = vmax.f32 %v1186_v37, 0.0  ;;  %v7869_v48 = vor.u32 %v9598_v46, %v7868_v45  ;;  %v7854_v39 = vor.u32 %v9596_v6, %v7853_v52  ;;  %v7876_v16 = vld [vmem:[%s12941_s7 + $0x10] sm:$0xf]  ;;  %v1026_v25 = vpop.f32.mrf.mxu2  ;;  %v985_v33 = vpop.f32.mrf.mxu1 }
 0x24c   :  { %v1203_v3 = vmax.f32 %v10540_v32, %v10563_v56  ;;  %v7877_v58 = vor.u32 %v9600_v57, %v7876_v16  ;;  %v10640_v7 = vpack.c.b16 %v922_v43, %v922_v43  ;;  %v1027_v28 = vadd.f32 %v1026_v25, %v983_v24 }
 0x24d   :  { %v1259_v47 = vpack.c.bf16 %v1217_v41, %v1216_v44 }
 0x24e   :  { %1361 = vmatpush.bf16.msra.mxu3 %v1263_v59  ;;  %v10577_v10 = vmax.f32 %v1203_v3, 0.0 }
 0x24f   :  { %v608_v11 = vpop.f32.mrf.mxu0 }
 0x250   :  { %v609_v32 = vadd.f32 %v10580_v15, %v608_v11  ;;  %v1267_v21 = vpack.c.bf16 %v10577_v10, %v10575_v9 }
 0x252   :  { %688 = vst.msk [vmem:[#allocation2 + $0x1b0] sm:$0xff] %vm633_vm3, %v609_v32  ;;  %1362 = vmatpush.bf16.msra.mxu3 %v1262_v18  ;;  %v7892_v32 = vld [vmem:[%s12941_s7 + $0x30] sm:$0xf]  ;;  %v9604_v18 = vld [vmem:[%s12941_s7 + $0x34] sm:$0xf0] }
 0x253   :  { %7864 = vmatmul.msk.bf16.gmra.mxu2 %vm945_vm6, %v7858_v49  ;;  %v7893_v20 = vor.u32 %v9604_v18, %v7892_v32  ;;  %v1028_v34 = vpop.f32.mrf.mxu2  ;;  %v988_v6 = vpop.f32.mrf.mxu1 }
 0x254   :  { %v1029_v45 = vadd.f32 %v1028_v34, %v985_v33 }
 0x255   :  { %1007 = vmatmul.bf16.gmra.mxu1 %v7854_v39 }
 0x256   :  { %1363 = vmatpush.bf16.msra.mxu3 %v1261_v31  ;;  %v1060_v31 = vpack.c.bf16 %v1027_v28, %v1027_v28  ;;  %v1061_v52 = vpack.c.bf16 %v1029_v45, %v1029_v45  ;;  %v9608_v28 = vld [vmem:[%s12941_s7 + $0x54] sm:$0xf0] }
 0x257   :  { %v610_v19 = vpop.f32.mrf.mxu0 }
 0x258   :  { %v611_v38 = vadd.f32 %v10580_v15, %v610_v19  ;;  %1074 = vst.msk [vmem:[#allocation3] sm:$0xf] %vm1073_vm7, %v1060_v31 }
 0x259   :  { %1075 = vst.msk [vmem:[#allocation3 + $0x4] sm:$0xf] %vm1073_vm7, %v1061_v52 }
 0x25a   :  { %689 = vst.msk [vmem:[#allocation2 + $0x1b8] sm:$0xff] %vm633_vm3, %v611_v38  ;;  %1364 = vmatpush.bf16.msra.mxu3 %v1260_v40 }
 0x25b   :  { %v1031_v39 = vpop.f32.mrf.mxu2  ;;  %v990_v29 = vpop.f32.mrf.mxu1 }
 0x25c   :  { %v1032_v43 = vadd.f32 %v1031_v39, %v988_v6 }
 0x25e   :  { %1365 = vmatpush.bf16.msra.mxu3 %v1259_v47 }
 0x25f   :  { %v613_v50 = vpop.f32.mrf.mxu0 }
 0x260   :  { %v614_v51 = vadd.f32 %v10580_v15, %v613_v50 }
 0x261   :  { %1366 = vmatmul.bf16.vlgmr.msra.gmra.mxu3 %v7869_v48  ;;  %v1110_v31 = vld [vmem:[#allocation2 + $0x1b8] sm:$0xff] }
 0x262   :  { %690 = vst.msk [vmem:[#allocation2 + $0x1c0] sm:$0xff] %vm633_vm3, %v614_v51  ;;  %v1139_v33 = vld [vmem:[#allocation2 + $0x1b1] sm:$0xff] }
 0x263   :  { %7865 = vmatmul.msk.bf16.gmra.mxu2 %vm945_vm6, %v10628_v1  ;;  %v1033_v30 = vpop.f32.mrf.mxu2 }
 0x264   :  { %v1034_v34 = vadd.f32 %v1033_v30, %v990_v29 }
 0x265   :  { %1012 = vmatmul.bf16.gmra.mxu1 %v10640_v7 }
 0x267   :  { %v615_v54 = vpop.f32.mrf.mxu0 }
 0x268   :  { %v616_v55 = vadd.f32 %v10580_v15, %v615_v54 }
 0x269   :  { %v1111_v32 = vld [vmem:[#allocation2 + $0x1c0] sm:$0xff] }
 0x26a   :  { %691 = vst.msk [vmem:[#allocation2 + $0x1c8] sm:$0xff] %vm633_vm3, %v616_v55  ;;  %v1140_v18 = vld [vmem:[#allocation2 + $0x1b9] sm:$0xff] }
 0x26f   :  { %v618_v59 = vpop.f32.mrf.mxu0 }
 0x270   :  { %v619_v60 = vadd.f32 %v10580_v15, %v618_v59 }
 0x271   :  { %1371 = vmatmul.bf16.gmra.mxu3 %v7877_v58  ;;  %v1112_v4 = vld [vmem:[#allocation2 + $0x1c8] sm:$0xff] }
 0x272   :  { %692 = vst.msk [vmem:[#allocation2 + $0x1d0] sm:$0xff] %vm633_vm3, %v619_v60  ;;  %v1141_v5 = vld [vmem:[#allocation2 + $0x1c1] sm:$0xff] }
 0x273   :  { %v1171_v25 = vmax.f32 %v1111_v32, %v1141_v5  ;;  %v9637_v5 = vld [vmem:[%s12937_s3 + $0x20] sm:$0xff] }
 0x277   :  { %v620_v2 = vpop.f32.mrf.mxu0 }
 0x278   :  { %v621_v3 = vadd.f32 %v10580_v15, %v620_v2 }
 0x279   :  { %v1113_v59 = vld [vmem:[#allocation2 + $0x1d0] sm:$0xff] }
 0x27a   :  { %693 = vst.msk [vmem:[#allocation2 + $0x1d8] sm:$0xff] %vm633_vm3, %v621_v3  ;;  %v1142_v60 = vld [vmem:[#allocation2 + $0x1c9] sm:$0xff] }
 0x27f   :  { %v623_v11 = vpop.f32.mrf.mxu0 }
 0x280   :  { %v624_v12 = vadd.f32 %v10580_v15, %v623_v11  ;;  %v9640_v11 = vld [vmem:[%s12937_s3 + $0x38] sm:$0xff] }
 0x281   :  { %1376 = vmatmul.bf16.gmra.mxu3 %v7885_v8  ;;  %v1114_v54 = vld [vmem:[#allocation2 + $0x1d8] sm:$0xff]  ;;  %v9624_v8 = vld [vmem:[%s12937_s3 + $0x18] sm:$0xff] }
 0x282   :  { %694 = vst.msk [vmem:[#allocation2 + $0x1e0] sm:$0xff] %vm633_vm3, %v624_v12  ;;  %v1143_v55 = vld [vmem:[#allocation2 + $0x1d1] sm:$0xff]  ;;  %1630 = vmatpush.bf16.msrb.mxu1 %v9624_v8  ;;  %1996 = vmatpush.bf16.msrb.mxu3 %v9640_v11 }
 0x283   :  { %v1173_v2 = vmax.f32 %v1113_v59, %v1143_v55  ;;  %v1036_v55 = vpop.f32.mrf.mxu2 }
 0x287   :  { %v625_v13 = vpop.f32.mrf.mxu0 }
 0x288   :  { %v626_v14 = vadd.f32 %v10580_v15, %v625_v13 }
 0x289   :  { %v1115_v19 = vld [vmem:[#allocation2 + $0x1e0] sm:$0xff] }
 0x28a   :  { %695 = vst.msk [vmem:[#allocation2 + $0x1e8] sm:$0xff] %vm633_vm3, %v626_v14  ;;  %v1144_v41 = vld [vmem:[#allocation2 + $0x1d9] sm:$0xff]  ;;  %v1172_v14 = vmax.f32 %v1112_v4, %v1142_v60 }
 0x28b   :  { %v1174_v58 = vmax.f32 %v1114_v54, %v1144_v41  ;;  %v993_v54 = vpop.f32.mrf.mxu1 }
 0x28f   :  { %v628_v22 = vpop.f32.mrf.mxu0 }
 0x290   :  { %v629_v23 = vadd.f32 %v10580_v15, %v628_v22  ;;  %v9623_v22 = vld [vmem:[%s12937_s3 + $0x10] sm:$0xff] }
 0x291   :  { %1381 = vmatmul.bf16.gmra.mxu3 %v7893_v20  ;;  %v1116_v36 = vld [vmem:[#allocation2 + $0x1e8] sm:$0x7f]  ;;  %v1062_v20 = vpack.c.bf16 %v1032_v43, %v1032_v43  ;;  %1631 = vmatpush.bf16.msrb.mxu1 %v9623_v22  ;;  %v9720_v43 = vld [vmem:[%s12937_s3 + $0xd8] sm:$0xff] }
 0x292   :  { %696 = vst.msk [vmem:[#allocation2 + $0x1f0] sm:$0xff] %vm633_vm3, %v629_v23  ;;  %v1146_v37 = vld [vmem:[#allocation2 + $0x1e9] sm:$0x7f]  ;;  %3668 = vmatpush.bf16.msrb.mxu0 %v9720_v43 }
 0x293   :  { %v1177_v44 = vld [vmem:[#allocation2 + $0x1e8] sm:$0xff]  ;;  %v1176_v47 = vmax.f32 %v1116_v36, %v1146_v37  ;;  %1076 = vst.msk [vmem:[#allocation3 + $0x8] sm:$0xf] %vm1073_vm7, %v1062_v20  ;;  %v1170_v36 = vmax.f32 %v1110_v31, %v1140_v18  ;;  %v9609_v18 = vld [vmem:[#allocation3] sm:$0xff] }
 0x294   :  { %v1138_v37 = vld [vmem:[#allocation2 + $0x1a9] sm:$0xff] }
 0x295   :  { %v1209_v45 = vmax.f32 %v1170_v36, %v1172_v14 }
 0x297   :  { %v630_v26 = vpop.f32.mrf.mxu0  ;;  %v1239_v52 = vmax.f32 %v1209_v45, 0.0 }
 0x298   :  { %v631_v27 = vadd.f32 %v10580_v15, %v630_v26  ;;  %v1145_v15 = vld [vmem:[#allocation2 + $0x1e1] sm:$0xff]  ;;  %v1211_v26 = vmax.f32 %v1172_v14, %v1174_v58  ;;  %v1038_v14 = vpop.f32.mrf.mxu2 }
 0x299   :  { %v1180_v38 = vld [vmem:[#allocation2 + $0x1e9] sm:$0xff]  ;;  %v1175_v46 = vmax.f32 %v1115_v19, %v1145_v15 }
 0x29a   :  { %697 = vst.msk [vmem:[#allocation2 + $0x1f8] sm:$0xff] %vm633_vm3, %v631_v27  ;;  %v1178_v40 = vld [vmem:[#allocation2 + $0x1f0] sm:$0xff]  ;;  %v1183_v51 = vmax.f32 %v1177_v44, %v1180_v38  ;;  %v7908_v27 = vld [vmem:[%s12941_s7 + $0x50] sm:$0xf]  ;;  %v1063_v38 = vpack.c.bf16 %v1034_v34, %v1034_v34  ;;  %v1241_v41 = vmax.f32 %v1211_v26, 0.0 }
 0x29b   :  { %v1212_v13 = vmax.f32 %v1173_v2, %v1175_v46  ;;  %v1109_v15 = vld [vmem:[#allocation2 + $0x1b0] sm:$0xff]  ;;  %v7909_v19 = vor.u32 %v9608_v28, %v7908_v27 }
 0x29c   :  { %v1213_v3 = vmax.f32 %v1174_v58, %v1183_v51  ;;  %v1169_v44 = vmax.f32 %v1109_v15, %v1139_v33  ;;  %1077 = vst.msk [vmem:[#allocation3 + $0xc] sm:$0xf] %vm1073_vm7, %v1063_v38  ;;  %v9638_v58 = vld [vmem:[%s12937_s3 + $0x28] sm:$0xff] }
 0x29e   :  { %v1243_v24 = vmax.f32 %v1213_v3, 0.0 }
 0x2a0   :  { %v1041_v29 = vpop.f32.mrf.mxu2 }
 0x2a1   :  { %v1179_v17 = vld [vmem:[#allocation2 + $0x1f8] sm:$0x7f]  ;;  %1386 = vmatmul.bf16.gmra.mxu3 %v7901_v35  ;;  %v1210_v35 = vmax.f32 %v1171_v25, %v1173_v2  ;;  %v9622_v2 = vld [vmem:[%s12937_s3 + $0x8] sm:$0xff] }
 0x2a2   :  { %v1181_v62 = vld [vmem:[#allocation2 + $0x1f1] sm:$0xff]  ;;  %v1182_v48 = vld [vmem:[#allocation2 + $0x1f9] sm:$0x7f]  ;;  %1632 = vmatpush.bf16.msrb.mxu1 %v9622_v2 }
 0x2a3   :  { %v1184_v49 = vmax.f32 %v1178_v40, %v1181_v62  ;;  %v1185_v50 = vmax.f32 %v1179_v17, %v1182_v48  ;;  %v1240_v17 = vmax.f32 %v1210_v35, 0.0  ;;  %v1208_v62 = vmax.f32 %v1169_v44, %v1171_v25  ;;  %v7870_v25 = vld [vmem:[%s12941_s7 + $0x8] sm:$0xf0]  ;;  %v9626_v26 = vld [vmem:[#allocation3 + $0x8] sm:$0xff] }
 0x2a4   :  { %v1845_v34 = vshll.u32 %v9626_v26, 16  ;;  %v9719_v35 = vld [vmem:[%s12937_s3 + $0xd0] sm:$0xff] }
 0x2a5   :  { %v1214_v16 = vmax.f32 %v1175_v46, %v1184_v49  ;;  %v1215_v57 = vmax.f32 %v1176_v47, %v1185_v50  ;;  %v1108_v46 = vld [vmem:[#allocation2 + $0x1a8] sm:$0xff]  ;;  %v1107_v50 = vld [vmem:[#allocation2 + $0x1a0] sm:$0xff]  ;;  %v1271_v51 = vpack.c.bf16 %v1241_v41, %v1240_v17  ;;  %3669 = vmatpush.bf16.msrb.mxu0 %v9719_v35 }
 0x2a6   :  { %v1137_v47 = vld [vmem:[#allocation2 + $0x1a1] sm:$0xff]  ;;  %v1168_v48 = vmax.f32 %v1108_v46, %v1138_v37  ;;  %v9717_v46 = vld [vmem:[%s12937_s3 + $0xc0] sm:$0xff]  ;;  %v9603_v35 = vld [vmem:[%s12941_s7 + $0x34] sm:$0xf] }
 0x2a7   :  { %v1244_v61 = vmax.f32 %v1214_v16, 0.0  ;;  %v1245_v63 = vmax.f32 %v1215_v57, 0.0  ;;  %v9639_v49 = vld [vmem:[%s12937_s3 + $0x30] sm:$0xff]  ;;  %v1167_v6 = vmax.f32 %v1107_v50, %v1137_v47  ;;  %v1238_v16 = vmax.f32 %v1208_v62, 0.0  ;;  %v9718_v37 = vld [vmem:[%s12937_s3 + $0xc8] sm:$0xff] }
 0x2a8   :  { %v1207_v39 = vmax.f32 %v1168_v48, %v1170_v36  ;;  %1997 = vmatpush.bf16.msrb.mxu3 %v9639_v49  ;;  %v9705_v36 = vld [vmem:[#allocation3 + $0x8] sm:$0xf0]  ;;  %v7878_v49 = vld [vmem:[%s12941_s7 + $0x18] sm:$0xf0] }
 0x2a9   :  { %v1273_v12 = vpack.c.bf16 %v1245_v63, %v1244_v61  ;;  %v1206_v57 = vmax.f32 %v1167_v6, %v1169_v44  ;;  %v1270_v59 = vpack.c.bf16 %v1239_v52, %v1238_v16  ;;  %v1205_v61 = vmax.f32 %v10563_v56, %v1168_v48  ;;  %v9621_v56 = vld [vmem:[%s12937_s3] sm:$0xff]  ;;  %v9610_v44 = vld [vmem:[#allocation3 + $0x8] sm:$0xff]  ;;  %3670 = vmatpush.bf16.msrb.mxu0 %v9718_v37 }
 0x2aa   :  { %v1237_v60 = vmax.f32 %v1207_v39, 0.0  ;;  %v1037_v63 = vadd.f32 %v1036_v55, %v993_v54  ;;  %v1204_v4 = vmax.f32 %v10559_v42, %v1167_v6  ;;  %1633 = vmatpush.bf16.msrb.mxu1 %v9621_v56  ;;  %v9599_v48 = vld [vmem:[%s12941_s7 + $0x14] sm:$0xf]  ;;  %v1849_v54 = vshrl.u32 %v9626_v26, 16  ;;  %v7886_v56 = vld [vmem:[%s12941_s7 + $0x28] sm:$0xf0] }
 0x2ab   :  { %v1356_v23 = vand.u32 %v1273_v12, %v10425_v53  ;;  %v1242_v53 = vmax.f32 %v1212_v13, 0.0  ;;  %v1236_v3 = vmax.f32 %v1206_v57, 0.0  ;;  %v1235_v12 = vmax.f32 %v1205_v61, 0.0  ;;  %v995_v13 = vpop.f32.mrf.mxu1 }
 0x2ac   :  { %1998 = vmatpush.bf16.msrb.mxu3 %v9638_v58  ;;  %v1064_v8 = vpack.c.bf16 %v1037_v63, %v1037_v63  ;;  %v1039_v42 = vadd.f32 %v1038_v14, %v995_v13  ;;  %v1234_v32 = vmax.f32 %v1204_v4, 0.0  ;;  %v7881_v39 = vor.u32 %v9599_v48, %v7878_v49  ;;  %v9605_v49 = vld [vmem:[%s12941_s7 + $0x44] sm:$0xf] }
 0x2ad   :  { %1402 = vmatpush.bf16.msrb.mxu2 %v1356_v23  ;;  %v1272_v40 = vpack.c.bf16 %v1243_v24, %v1242_v53  ;;  %v1269_v11 = vpack.c.bf16 %v1237_v60, %v1236_v3  ;;  %v9625_v23 = vld [vmem:[#allocation3] sm:$0xff]  ;;  %v9597_v24 = vld [vmem:[%s12941_s7 + $0x4] sm:$0xf]  ;;  %7985 = vmatmul.msk.bf16.vlgmr.msrb.gmra.mxu1 %vm633_vm3, %v9609_v18 }
 0x2ae   :  { %1078 = vst.msk [vmem:[#allocation3 + $0x10] sm:$0xf] %vm1073_vm7, %v1064_v8  ;;  %v1065_v20 = vpack.c.bf16 %v1039_v42, %v1039_v42  ;;  %v1268_v22 = vpack.c.bf16 %v1235_v12, %v1234_v32  ;;  %v1840_v27 = vshll.u32 %v9625_v23, 16  ;;  %v7873_v30 = vor.u32 %v9597_v24, %v7870_v25  ;;  %3671 = vmatpush.bf16.msrb.mxu0 %v9717_v46  ;;  %v9601_v8 = vld [vmem:[%s12941_s7 + $0x24] sm:$0xf] }
 0x2af   :  { %v1838_v31 = vshrl.u32 %v9625_v23, 16  ;;  %v7889_v42 = vor.u32 %v9601_v8, %v7886_v56  ;;  %v9653_v8 = vld [vmem:[%s12937_s3 + $0x40] sm:$0xff] }
 0x2b0   :  { %1999 = vmatpush.bf16.msrb.mxu3 %v9637_v5  ;;  %1079 = vst.msk [vmem:[#allocation3 + $0x14] sm:$0xf] %vm1073_vm7, %v1065_v20  ;;  %v1842_v33 = vrot.slane %v1840_v27, 1 }
 0x2b1   :  { %1403 = vmatpush.bf16.msrb.mxu2 %v1272_v40  ;;  %1391 = vmatmul.bf16.gmra.mxu3 %v7909_v19  ;;  %v1847_v19 = vrot.slane %v1845_v34, 1  ;;  %v1043_v40 = vpop.f32.mrf.mxu2 }
 0x2b3   :  { %v998_v28 = vpop.f32.mrf.mxu1 }
 0x2b4   :  { %v1042_v53 = vadd.f32 %v1041_v29, %v998_v28 }
 0x2b5   :  { %1404 = vmatpush.bf16.msrb.mxu2 %v1271_v51 }
 0x2b6   :  { %v1066_v15 = vpack.c.bf16 %v1042_v53, %v1042_v53 }
 0x2b7   :  { %v9706_v9 = vld [vmem:[#allocation3 + $0x10] sm:$0xff] }
 0x2b8   :  { %1080 = vst.msk [vmem:[#allocation3 + $0x18] sm:$0xf] %vm1073_vm7, %v1066_v15  ;;  %v3582_v17 = vrot.slane %v9706_v9, 2  ;;  %v9627_v51 = vld [vmem:[#allocation3 + $0x10] sm:$0xff] }
 0x2b9   :  { %1405 = vmatpush.bf16.msrb.mxu2 %v1270_v59  ;;  %v1853_v55 = vshll.u32 %v9627_v51, 16  ;;  %v1851_v59 = vor.u32 %v1849_v54, %v1847_v19  ;;  %v9611_v3 = vld [vmem:[#allocation3 + $0x10] sm:$0xff]  ;;  %v1857_v18 = vshrl.u32 %v9627_v51, 16 }
 0x2bb   :  { %v1000_v38 = vpop.f32.mrf.mxu1  ;;  %v1855_v60 = vrot.slane %v1853_v55, 1 }
 0x2bc   :  { %v1044_v41 = vadd.f32 %v1043_v40, %v1000_v38 }
 0x2bd   :  { %1406 = vmatpush.bf16.msrb.mxu2 %v1269_v11  ;;  %7986 = vmatmul.msk.bf16.gmra.mxu1 %vm633_vm3, %v9610_v44  ;;  %v1856_v43 = vsel %vm1836_vm8, %v1851_v59, %v1855_v60  ;;  %v1859_v25 = vor.u32 %v1857_v18, %v1855_v60  ;;  %v9655_v59 = vld [vmem:[%s12937_s3 + $0x50] sm:$0xff]  ;;  %v8091_v18 = vld [vmem:[#allocation3] sm:$0xe] }
 0x2be   :  { %v1067_v45 = vpack.c.bf16 %v1044_v41, %v1044_v41 }
 0x2c0   :  { %1081 = vst.msk [vmem:[#allocation3 + $0x1c] sm:$0xf] %vm1073_vm7, %v1067_v45 }
 0x2c1   :  { %1407 = vmatpush.bf16.msrb.mxu2 %v1268_v22  ;;  %1396 = vmatmul.bf16.gmra.mxu3 %v10640_v7  ;;  %v8427_v7 = vld [vmem:[#allocation3 + $0x8] sm:$0xc] }
 0x2c2   :  { %v8428_v10 = vor.u32 %v9705_v36, %v8427_v7  ;;  %v7894_v7 = vld [vmem:[%s12941_s7 + $0x38] sm:$0xf0] }
 0x2c3   :  { %v1003_v52 = vpop.f32.mrf.mxu1  ;;  %v7897_v37 = vor.u32 %v9603_v35, %v7894_v7 }
 0x2c4   :  { %v3581_v47 = vrot.slane %v8428_v10, 2 }
 0x2c5   :  { %1408 = vmatpush.bf16.msrb.mxu2 %v1267_v21  ;;  %v1843_v21 = vor.u32 %v1842_v33, %v1838_v31 }
 0x2c6   :  { %v3583_v50 = vsel %vm458_vm1, %v3581_v47, %v3582_v17  ;;  %v1046_v6 = vpop.f32.mrf.mxu2 }
 0x2c7   :  { %v1848_v62 = vsel %vm1836_vm8, %v1843_v21, %v1847_v19  ;;  %8489 = vmatmul.msk.bf16.vlgmr.msrb.gmra.mxu0 %vm633_vm3, %v3583_v50  ;;  %v1047_v16 = vadd.f32 %v1046_v6, %v1003_v52  ;;  %v9707_v58 = vld [vmem:[#allocation3 + $0x18] sm:$0xff]  ;;  %v7902_v50 = vld [vmem:[%s12941_s7 + $0x48] sm:$0xf0] }
 0x2c8   :  { %7914 = vmatmul.msk.bf16.vlgmr.msrb.gmra.mxu2 %vm945_vm6, %v7873_v30  ;;  %v3584_v5 = vrot.slane %v9707_v58, 2  ;;  %v9628_v12 = vld [vmem:[#allocation3 + $0x18] sm:$0xff]  ;;  %v7905_v6 = vor.u32 %v9605_v49, %v7902_v50  ;;  %v9656_v58 = vld [vmem:[%s12937_s3 + $0x58] sm:$0xff] }
 0x2c9   :  { %v1068_v57 = vpack.c.bf16 %v1047_v16, %v1047_v16  ;;  %v1861_v20 = vshll.u32 %v9628_v12, 16  ;;  %v9612_v31 = vld [vmem:[#allocation3 + $0x18] sm:$0xff]  ;;  %v1865_v10 = vshrl.u32 %v9628_v12, 16  ;;  %2314 = vmatpush.bf16.msra.mxu2 %v9656_v58 }
 0x2ca   :  { %v3585_v11 = vsel %vm458_vm1, %v3582_v17, %v3584_v5 }
 0x2cb   :  { %v1005_v61 = vpop.f32.mrf.mxu1  ;;  %1082 = vst.msk [vmem:[#allocation3 + $0x20] sm:$0xf] %vm1073_vm7, %v1068_v57  ;;  %v1863_v26 = vrot.slane %v1861_v20, 1  ;;  %v9641_v20 = vld [vmem:[#allocation3] sm:$0xf0] }
 0x2cd   :  { %7987 = vmatmul.msk.bf16.gmra.mxu1 %vm633_vm3, %v9611_v3  ;;  %v1864_v53 = vsel %vm1836_vm8, %v1859_v25, %v1863_v26  ;;  %v1867_v38 = vor.u32 %v1865_v10, %v1863_v26  ;;  %2315 = vmatpush.bf16.msra.mxu2 %v9655_v59  ;;  %v9654_v3 = vld [vmem:[%s12937_s3 + $0x48] sm:$0xff] }
 0x2ce   :  { %v1048_v63 = vpop.f32.mrf.mxu2  ;;  %v10843_v10 = vld [vmem:[#allocation11] ss:$0 sm:$0xff] }
 0x2cf   :  { %v1049_v2 = vadd.f32 %v1048_v63, %v1005_v61 }
 0x2d1   :  { %8069 = vmatmul.msk.bf16.vlgmr.msrb.gmra.mxu3 %vm633_vm3, %v1848_v62  ;;  %v1069_v4 = vpack.c.bf16 %v1049_v2, %v1049_v2  ;;  %2316 = vmatpush.bf16.msra.mxu2 %v9654_v3 }
 0x2d3   :  { %1083 = vst.msk [vmem:[#allocation3 + $0x24] sm:$0xf] %vm1073_vm7, %v1069_v4  ;;  %v1008_v13 = vpop.f32.mrf.mxu1 }
 0x2d5   :  { %2317 = vmatpush.bf16.msra.mxu2 %v9653_v8 }
 0x2d6   :  { %v1051_v14 = vpop.f32.mrf.mxu2 }
 0x2d7   :  { %8490 = vmatmul.msk.bf16.gmra.mxu0 %vm633_vm3, %v3585_v11  ;;  %v1052_v22 = vadd.f32 %v1051_v14, %v1008_v13 }
 0x2d8   :  { %7915 = vmatmul.msk.bf16.gmra.mxu2 %vm945_vm6, %v7881_v39 }
 0x2d9   :  { %v1070_v23 = vpack.c.bf16 %v1052_v22, %v1052_v22 }
 0x2da   :  { %v9708_v24 = vld [vmem:[#allocation3 + $0x20] sm:$0xff] }
 0x2db   :  { %v1010_v27 = vpop.f32.mrf.mxu1  ;;  %1084 = vst.msk [vmem:[#allocation3 + $0x28] sm:$0xf] %vm1073_vm7, %v1070_v23  ;;  %v3586_v34 = vrot.slane %v9708_v24, 2  ;;  %v9629_v15 = vld [vmem:[#allocation3 + $0x20] sm:$0xff]  ;;  %v9642_v23 = vld [vmem:[#allocation3 + $0x8] sm:$0xff]  ;;  %v8092_v24 = vor.u32 %v9641_v20, %v8091_v18  ;;  %v9688_v18 = vld [vmem:[%s12937_s3 + $0x98] sm:$0xff] }
 0x2dc   :  { %v1869_v21 = vshll.u32 %v9629_v15, 16  ;;  %v9613_v47 = vld [vmem:[#allocation3 + $0x20] sm:$0xff]  ;;  %v1873_v16 = vshrl.u32 %v9629_v15, 16  ;;  %v2228_v26 = vrot.slane %v9642_v23, 1  ;;  %3033 = vmatpush.bf16.msra.mxu3 %v9688_v18 }
 0x2dd   :  { %7988 = vmatmul.msk.bf16.gmra.mxu1 %vm633_vm3, %v9612_v31  ;;  %v3587_v36 = vsel %vm458_vm1, %v3584_v5, %v3586_v34  ;;  %v9607_v5 = vld [vmem:[%s12941_s7 + $0x54] sm:$0xf]  ;;  %v2227_v25 = vrot.slane %v8092_v24, 1  ;;  %v9643_v31 = vld [vmem:[#allocation3 + $0x10] sm:$0xff] }
 0x2de   :  { %v1053_v28 = vpop.f32.mrf.mxu2  ;;  %v1871_v40 = vrot.slane %v1869_v21, 1  ;;  %v9644_v21 = vld [vmem:[#allocation3 + $0x18] sm:$0xff] }
 0x2df   :  { %v1054_v29 = vadd.f32 %v1053_v28, %v1010_v27  ;;  %v2229_v28 = vsel %vm967_vm4, %v2227_v25, %v2228_v26 }
 0x2e0   :  { %v1872_v62 = vsel %vm1836_vm8, %v1867_v38, %v1871_v40  ;;  %v1875_v60 = vor.u32 %v1873_v16, %v1871_v40 }
 0x2e1   :  { %8070 = vmatmul.msk.bf16.gmra.mxu3 %vm633_vm3, %v1856_v43  ;;  %v1071_v33 = vpack.c.bf16 %v1054_v29, %v1054_v29  ;;  %v7910_v43 = vld [vmem:[%s12941_s7 + $0x58] sm:$0xf0] }
 0x2e2   :  { %v7913_v56 = vor.u32 %v9607_v5, %v7910_v43 }
 0x2e3   :  { %1085 = vst.msk [vmem:[#allocation3 + $0x2c] sm:$0xf] %vm1073_vm7, %v1071_v33  ;;  %v1013_v41 = vpop.f32.mrf.mxu1 }
 0x2e4   :  { %v10752_v32 = vpop.f32.mrf.mxu3 }
 0x2e6   :  { %v1056_v44 = vpop.f32.mrf.mxu2 }
 0x2e7   :  { %8491 = vmatmul.msk.bf16.gmra.mxu0 %vm633_vm3, %v3587_v36  ;;  %v1057_v46 = vadd.f32 %v1056_v44, %v1013_v41  ;;  %v2232_v41 = vrot.slane %v9644_v21, 1 }
 0x2e8   :  { %7916 = vmatmul.msk.bf16.gmra.mxu2 %vm945_vm6, %v7889_v42 }
 0x2e9   :  { %v1072_v48 = vpack.c.bf16 %v1057_v46, %v1057_v46 }
 0x2ea   :  { %v10774_v19 = vld [vmem:[#allocation3 + $0x28] sm:$0xff] }
 0x2eb   :  { %v3588_v17 = vrot.slane %v10774_v19, 2  ;;  %1086 = vst.msk [vmem:[#allocation3 + $0x30] sm:$0xf] %vm1073_vm7, %v1072_v48  ;;  %v9630_v52 = vld [vmem:[#allocation3 + $0x28] sm:$0xff]  ;;  %v1015_v54 = vpop.f32.mrf.mxu1  ;;  %v9672_v19 = vld [vmem:[%s12937_s3 + $0x78] sm:$0xff] }
 0x2ec   :  { %v10757_v30 = vpop.f32.mrf.mxu3  ;;  %v1877_v57 = vshll.u32 %v9630_v52, 16  ;;  %v9614_v2 = vld [vmem:[#allocation3 + $0x28] sm:$0xff]  ;;  %v1881_v12 = vshrl.u32 %v9630_v52, 16  ;;  %2631 = vmatpush.bf16.msra.mxu1 %v9672_v19 }
 0x2ed   :  { %7989 = vmatmul.msk.bf16.gmra.mxu1 %vm633_vm3, %v9613_v47  ;;  %v3589_v51 = vsel %vm458_vm1, %v3586_v34, %v3588_v17  ;;  %v2230_v34 = vrot.slane %v9643_v31, 1 }
 0x2ee   :  { %v1058_v39 = vpop.f32.mrf.mxu2  ;;  %v1879_v61 = vrot.slane %v1877_v57, 1 }
 0x2f0   :  { %v1880_v4 = vsel %vm1836_vm8, %v1875_v60, %v1879_v61  ;;  %v1883_v13 = vor.u32 %v1881_v12, %v1879_v61  ;;  %v9645_v60 = vld [vmem:[#allocation3 + $0x20] sm:$0xff] }
 0x2f1   :  { %8071 = vmatmul.msk.bf16.gmra.mxu3 %vm633_vm3, %v1864_v53  ;;  %v2231_v53 = vsel %vm967_vm4, %v2228_v26, %v2230_v34 }
 0x2f4   :  { %v10770_v9 = vpop.f32.mrf.mxu3 }
 0x2f7   :  { %8492 = vmatmul.msk.bf16.gmra.mxu0 %vm633_vm3, %v3589_v51 }
 0x2f8   :  { %7917 = vmatmul.msk.bf16.gmra.mxu2 %vm945_vm6, %v7897_v37 }
 0x2fc   :  { %v10776_v45 = vpop.f32.mrf.mxu3 }
 0x2fd   :  { %7990 = vmatmul.msk.bf16.gmra.mxu1 %vm633_vm3, %v9614_v2  ;;  %v2234_v2 = vrot.slane %v9645_v60, 1 }
 0x2ff   :  { %v2235_v8 = vsel %vm967_vm4, %v2232_v41, %v2234_v2 }
 0x301   :  { %8072 = vmatmul.msk.bf16.gmra.mxu3 %vm633_vm3, %v1872_v62 }
 0x304   :  { %v10792_v55 = vpop.f32.mrf.mxu3 }
 0x308   :  { %7918 = vmatmul.msk.bf16.gmra.mxu2 %vm945_vm6, %v7905_v6 }
 0x30c   :  { %v10802_v63 = vpop.f32.mrf.mxu3 }
 0x311   :  { %8073 = vmatmul.msk.bf16.gmra.mxu3 %vm633_vm3, %v1880_v4 }
 0x314   :  { %v10819_v11 = vpop.f32.mrf.mxu3 }
 0x318   :  { %7919 = vmatmul.msk.bf16.gmra.mxu2 %vm945_vm6, %v7913_v56 }
 0x31c   :  { %v10822_v14 = vpop.f32.mrf.mxu3 }
 0x324   :  { %v10824_v42 = vpop.f32.mrf.mxu3 }
 0x328   :  { %7920 = vmatmul.msk.bf16.gmra.mxu2 %vm945_vm6, %v10628_v1 }
 0x32a   :  { %v1635_v33 = vpop.f32.mrf.mxu1 }
 0x32b   :  { %v1636_v38 = vadd.f32 %v10843_v10, %v1635_v33 }
 0x32c   :  { %v10828_v22 = vpop.f32.mrf.mxu3 }
 0x332   :  { %v10840_v7 = vpop.f32.mrf.mxu1 }
 0x334   :  { %v10830_v27 = vpop.f32.mrf.mxu3 }
 0x338   :  { %8153 = vmatmul.msk.bf16.vlgmr.msra.gmra.mxu2 %vm633_vm3, %v2229_v28 }
 0x33a   :  { %v1640_v47 = vpop.f32.mrf.mxu1 }
 0x33c   :  { %v10834_v29 = vpop.f32.mrf.mxu3 }
 0x342   :  { %v10863_v61 = vpop.f32.mrf.mxu1 }
 0x344   :  { %v10836_v1 = vpop.f32.mrf.mxu3 }
 0x348   :  { %8154 = vmatmul.msk.bf16.gmra.mxu2 %vm633_vm3, %v2231_v53 }
 0x34a   :  { %v1645_v24 = vpop.f32.mrf.mxu1 }
 0x34b   :  { %v1410_v35 = vpop.f32.mrf.mxu2 }
 0x34c   :  { %v1411_v36 = vadd.f32 %v1410_v35, %v10752_v32  ;;  %v1399_v15 = vpop.f32.mrf.mxu3  ;;  %v2233_v32 = vsel %vm967_vm4, %v2230_v34, %v2232_v41 }
 0x34d   :  { %v1646_v15 = vadd.f32 %v10843_v10, %v1645_v24 }
 0x34e   :  { %v1444_v37 = vpack.c.bf16 %v1411_v36, %v1411_v36  ;;  %v9646_v36 = vld [vmem:[#allocation3 + $0x28] sm:$0xff] }
 0x34f   :  { %v2236_v21 = vrot.slane %v9646_v36, 1 }
 0x350   :  { %1457 = vst.msk [vmem:[#allocation3 + $0x34] sm:$0xf] %vm1073_vm7, %v1444_v37 }
 0x353   :  { %v1412_v40 = vpop.f32.mrf.mxu2 }
 0x354   :  { %v1413_v44 = vadd.f32 %v1412_v40, %v10757_v30  ;;  %v2001_v46 = vpop.f32.mrf.mxu3 }
 0x355   :  { %v10848_v48 = vadd.f32 %v2001_v46, %v1636_v38  ;;  %v10889_v38 = vpop.f32.mrf.mxu1  ;;  %v2237_v46 = vsel %vm967_vm4, %v2234_v2, %v2236_v21 }
 0x356   :  { %v1445_v62 = vpack.c.bf16 %v1413_v44, %v1413_v44 }
 0x357   :  { %v9615_v49 = vld [vmem:[#allocation3 + $0x30] sm:$0xff] }
 0x358   :  { %v9710_v50 = vld [vmem:[#allocation3 + $0x30] sm:$0xff]  ;;  %1458 = vst.msk [vmem:[#allocation3 + $0x38] sm:$0xf] %vm1073_vm7, %v1445_v62  ;;  %8155 = vmatmul.msk.bf16.gmra.mxu2 %vm633_vm3, %v2233_v32  ;;  %7991 = vmatmul.msk.bf16.gmra.mxu1 %vm633_vm3, %v9615_v49 }
 0x359   :  { %v9631_v51 = vld [vmem:[#allocation3 + $0x30] sm:$0xff]  ;;  %v3590_v52 = vrot.slane %v9710_v50, 2 }
 0x35a   :  { %v1885_v6 = vshll.u32 %v9631_v51, 16  ;;  %v1889_v20 = vshrl.u32 %v9631_v51, 16  ;;  %v9647_v60 = vld [vmem:[#allocation3 + $0x30] sm:$0xff] }
 0x35b   :  { %v1415_v39 = vpop.f32.mrf.mxu2  ;;  %v3591_v30 = vsel %vm458_vm1, %v3588_v17, %v3590_v52 }
 0x35c   :  { %v1887_v54 = vrot.slane %v1885_v6, 1  ;;  %v1416_v16 = vadd.f32 %v1415_v39, %v10770_v9  ;;  %8493 = vmatmul.msk.bf16.gmra.mxu0 %vm633_vm3, %v3591_v30  ;;  %v10860_v58 = vpop.f32.mrf.mxu3  ;;  %v1641_v9 = vadd.f32 %v10843_v10, %v1640_v47 }
 0x35e   :  { %v1888_v57 = vsel %vm1836_vm8, %v1883_v13, %v1887_v54  ;;  %v1446_v59 = vpack.c.bf16 %v1416_v16, %v1416_v16  ;;  %v1891_v28 = vor.u32 %v1889_v20, %v1887_v54  ;;  %v1650_v16 = vpop.f32.mrf.mxu1 }
 0x35f   :  { %8074 = vmatmul.msk.bf16.gmra.mxu3 %vm633_vm3, %v1888_v57  ;;  %v1651_v19 = vadd.f32 %v10843_v10, %v1650_v16 }
 0x360   :  { %1459 = vst.msk [vmem:[#allocation3 + $0x3c] sm:$0xf] %vm1073_vm7, %v1446_v59 }
 0x363   :  { %v1417_v17 = vpop.f32.mrf.mxu2 }
 0x364   :  { %v1418_v3 = vadd.f32 %v1417_v17, %v10776_v45  ;;  %v2006_v4 = vpop.f32.mrf.mxu3  ;;  %v2238_v17 = vrot.slane %v9647_v60, 1 }
 0x365   :  { %v10871_v43 = vadd.f32 %v2006_v4, %v1641_v9 }
 0x366   :  { %v1447_v5 = vpack.c.bf16 %v1418_v3, %v1418_v3 }
 0x367   :  { %v9616_v56 = vld [vmem:[#allocation3 + $0x38] sm:$0xff] }
 0x368   :  { %v9711_v12 = vld [vmem:[#allocation3 + $0x38] sm:$0xff]  ;;  %1460 = vst.msk [vmem:[#allocation3 + $0x40] sm:$0xf] %vm1073_vm7, %v1447_v5  ;;  %8156 = vmatmul.msk.bf16.gmra.mxu2 %vm633_vm3, %v2235_v8  ;;  %7992 = vmatmul.msk.bf16.gmra.mxu1 %vm633_vm3, %v9616_v56  ;;  %v2239_v5 = vsel %vm967_vm4, %v2236_v21, %v2238_v17 }
 0x369   :  { %v9632_v13 = vld [vmem:[#allocation3 + $0x38] sm:$0xff]  ;;  %v3592_v45 = vrot.slane %v9711_v12, 2 }
 0x36a   :  { %v1893_v23 = vshll.u32 %v9632_v13, 16  ;;  %v1897_v50 = vshrl.u32 %v9632_v13, 16  ;;  %v10911_v13 = vpop.f32.mrf.mxu1 }
 0x36b   :  { %v1420_v25 = vpop.f32.mrf.mxu2  ;;  %v3593_v26 = vsel %vm458_vm1, %v3590_v52, %v3592_v45 }
 0x36c   :  { %v1895_v31 = vrot.slane %v1893_v23, 1  ;;  %v1421_v33 = vadd.f32 %v1420_v25, %v10792_v55  ;;  %8494 = vmatmul.msk.bf16.gmra.mxu0 %vm633_vm3, %v3593_v26  ;;  %v10884_v53 = vpop.f32.mrf.mxu3 }
 0x36e   :  { %v1896_v34 = vsel %vm1836_vm8, %v1891_v28, %v1895_v31  ;;  %v1448_v35 = vpack.c.bf16 %v1421_v33, %v1421_v33  ;;  %v1899_v6 = vor.u32 %v1897_v50, %v1895_v31 }
 0x36f   :  { %8075 = vmatmul.msk.bf16.gmra.mxu3 %vm633_vm3, %v1896_v34  ;;  %v9671_v34 = vld [vmem:[%s12937_s3 + $0x70] sm:$0xff] }
 0x370   :  { %1461 = vst.msk [vmem:[#allocation3 + $0x44] sm:$0xf] %vm1073_vm7, %v1448_v35  ;;  %v9648_v35 = vld [vmem:[#allocation3 + $0x38] sm:$0xff]  ;;  %2632 = vmatpush.bf16.msra.mxu1 %v9671_v34 }
 0x371   :  { %v2240_v21 = vrot.slane %v9648_v35, 1 }
 0x372   :  { %v1655_v36 = vpop.f32.mrf.mxu1 }
 0x373   :  { %v1422_v37 = vpop.f32.mrf.mxu2 }
 0x374   :  { %v1423_v55 = vadd.f32 %v1422_v37, %v10802_v63  ;;  %v2011_v40 = vpop.f32.mrf.mxu3 }
 0x375   :  { %v10892_v44 = vadd.f32 %v2011_v40, %v1646_v15  ;;  %v9670_v15 = vld [vmem:[%s12937_s3 + $0x68] sm:$0xff] }
 0x376   :  { %v1449_v41 = vpack.c.bf16 %v1423_v55, %v1423_v55  ;;  %v9687_v55 = vld [vmem:[%s12937_s3 + $0x90] sm:$0xff]  ;;  %2633 = vmatpush.bf16.msra.mxu1 %v9670_v15 }
 0x377   :  { %v9617_v47 = vld [vmem:[#allocation3 + $0x40] sm:$0xff]  ;;  %3034 = vmatpush.bf16.msra.mxu3 %v9687_v55  ;;  %v9657_v15 = vld [vmem:[#allocation3 + $0x4] sm:$0xf0] }
 0x378   :  { %v9712_v62 = vld [vmem:[#allocation3 + $0x40] sm:$0xff]  ;;  %1462 = vst.msk [vmem:[#allocation3 + $0x48] sm:$0xf] %vm1073_vm7, %v1449_v41  ;;  %8157 = vmatmul.msk.bf16.gmra.mxu2 %vm633_vm3, %v2237_v46  ;;  %7993 = vmatmul.msk.bf16.gmra.mxu1 %vm633_vm3, %v9617_v47  ;;  %v9669_v41 = vld [vmem:[%s12937_s3 + $0x60] sm:$0xff] }
 0x379   :  { %v9633_v32 = vld [vmem:[#allocation3 + $0x40] sm:$0xff]  ;;  %v3594_v49 = vrot.slane %v9712_v62, 2 }
 0x37a   :  { %v1901_v51 = vshll.u32 %v9633_v32, 16  ;;  %2634 = vmatpush.bf16.msra.mxu1 %v9669_v41 }
 0x37b   :  { %v1425_v52 = vpop.f32.mrf.mxu2  ;;  %v3595_v63 = vsel %vm458_vm1, %v3592_v45, %v3594_v49  ;;  %v1905_v45 = vshrl.u32 %v9633_v32, 16  ;;  %v2241_v32 = vsel %vm967_vm4, %v2238_v17, %v2240_v21 }
 0x37c   :  { %v1903_v39 = vrot.slane %v1901_v51, 1  ;;  %v1426_v30 = vadd.f32 %v1425_v52, %v10819_v11  ;;  %8495 = vmatmul.msk.bf16.gmra.mxu0 %vm633_vm3, %v3595_v63  ;;  %v10902_v57 = vpop.f32.mrf.mxu3 }
 0x37e   :  { %v1904_v54 = vsel %vm1836_vm8, %v1899_v6, %v1903_v39  ;;  %v1450_v59 = vpack.c.bf16 %v1426_v30, %v1426_v30  ;;  %v1907_v24 = vor.u32 %v1905_v45, %v1903_v39 }
 0x37f   :  { %8076 = vmatmul.msk.bf16.gmra.mxu3 %vm633_vm3, %v1904_v54 }
 0x380   :  { %1463 = vst.msk [vmem:[#allocation3 + $0x4c] sm:$0xf] %vm1073_vm7, %v1450_v59 }
 0x383   :  { %v1427_v9 = vpop.f32.mrf.mxu2 }
 0x384   :  { %v1428_v2 = vadd.f32 %v1427_v9, %v10822_v14  ;;  %v2016_v11 = vpop.f32.mrf.mxu3 }
 0x385   :  { %v10908_v4 = vadd.f32 %v2016_v11, %v1651_v19  ;;  %v9649_v19 = vld [vmem:[#allocation3 + $0x40] sm:$0xff] }
 0x386   :  { %v1451_v3 = vpack.c.bf16 %v1428_v2, %v1428_v2  ;;  %v2242_v17 = vrot.slane %v9649_v19, 1 }
 0x387   :  { %v9618_v8 = vld [vmem:[#allocation3 + $0x48] sm:$0xff] }
 0x388   :  { %v9713_v56 = vld [vmem:[#allocation3 + $0x48] sm:$0xff]  ;;  %1464 = vst.msk [vmem:[#allocation3 + $0x50] sm:$0xf] %vm1073_vm7, %v1451_v3  ;;  %8158 = vmatmul.msk.bf16.gmra.mxu2 %vm633_vm3, %v2239_v5  ;;  %7994 = vmatmul.msk.bf16.gmra.mxu1 %vm633_vm3, %v9618_v8  ;;  %v2243_v8 = vsel %vm967_vm4, %v2240_v21, %v2242_v17 }
 0x389   :  { %v9634_v12 = vld [vmem:[#allocation3 + $0x48] sm:$0xff]  ;;  %v3596_v18 = vrot.slane %v9713_v56, 2 }
 0x38a   :  { %v1909_v14 = vshll.u32 %v9634_v12, 16  ;;  %v1913_v52 = vshrl.u32 %v9634_v12, 16  ;;  %v9658_v21 = vld [vmem:[#allocation3 + $0xc] sm:$0xff] }
 0x38b   :  { %v1430_v20 = vpop.f32.mrf.mxu2  ;;  %v3597_v23 = vsel %vm458_vm1, %v3594_v49, %v3596_v18 }
 0x38c   :  { %v1911_v25 = vrot.slane %v1909_v14, 1  ;;  %v1431_v26 = vadd.f32 %v1430_v20, %v10824_v42  ;;  %8496 = vmatmul.msk.bf16.gmra.mxu0 %vm633_vm3, %v3597_v23  ;;  %v10920_v31 = vpop.f32.mrf.mxu3  ;;  %v1656_v42 = vadd.f32 %v10843_v10, %v1655_v36  ;;  %v9686_v14 = vld [vmem:[%s12937_s3 + $0x88] sm:$0xff] }
 0x38d   :  { %3035 = vmatpush.bf16.msra.mxu3 %v9686_v14 }
 0x38e   :  { %v1912_v28 = vsel %vm1836_vm8, %v1907_v24, %v1911_v25  ;;  %v1452_v33 = vpack.c.bf16 %v1431_v26, %v1431_v26  ;;  %v1915_v30 = vor.u32 %v1913_v52, %v1911_v25  ;;  %v9685_v26 = vld [vmem:[%s12937_s3 + $0x80] sm:$0xff] }
 0x38f   :  { %8077 = vmatmul.msk.bf16.gmra.mxu3 %vm633_vm3, %v1912_v28 }
 0x390   :  { %1465 = vst.msk [vmem:[#allocation3 + $0x54] sm:$0xf] %vm1073_vm7, %v1452_v33 }
 0x391   :  { %3036 = vmatpush.bf16.msra.mxu3 %v9685_v26 }
 0x393   :  { %v1432_v37 = vpop.f32.mrf.mxu2 }
 0x394   :  { %v1433_v40 = vadd.f32 %v1432_v37, %v10828_v22  ;;  %v2021_v46 = vpop.f32.mrf.mxu3  ;;  %v9650_v37 = vld [vmem:[#allocation3 + $0x48] sm:$0xff] }
 0x395   :  { %v10938_v62 = vadd.f32 %v2021_v46, %v1656_v42  ;;  %v8175_v42 = vld [vmem:[#allocation3 + $0x4] sm:$0xe]  ;;  %v2244_v41 = vrot.slane %v9650_v37, 1  ;;  %v2545_v46 = vrot.slane %v9658_v21, 1  ;;  %v9660_v21 = vld [vmem:[#allocation3 + $0x1c] sm:$0xff] }
 0x396   :  { %v1453_v47 = vpack.c.bf16 %v1433_v40, %v1433_v40  ;;  %v8176_v55 = vor.u32 %v9657_v15, %v8175_v42  ;;  %v9675_v15 = vld [vmem:[#allocation3 + $0x14] sm:$0xff] }
 0x397   :  { %v9619_v49 = vld [vmem:[#allocation3 + $0x50] sm:$0xff] }
 0x398   :  { %v9714_v50 = vld [vmem:[#allocation3 + $0x50] sm:$0xff]  ;;  %1466 = vst.msk [vmem:[#allocation3 + $0x58] sm:$0xf] %vm1073_vm7, %v1453_v47  ;;  %8159 = vmatmul.msk.bf16.gmra.mxu2 %vm633_vm3, %v2241_v32  ;;  %7995 = vmatmul.msk.bf16.gmra.mxu1 %vm633_vm3, %v9619_v49  ;;  %v2245_v47 = vsel %vm967_vm4, %v2242_v17, %v2244_v41 }
 0x399   :  { %v9635_v51 = vld [vmem:[#allocation3 + $0x50] sm:$0xff]  ;;  %v3598_v22 = vrot.slane %v9714_v50, 2 }
 0x39a   :  { %v1917_v63 = vshll.u32 %v9635_v51, 16  ;;  %v9659_v17 = vld [vmem:[#allocation3 + $0x14] sm:$0xff] }
 0x39b   :  { %v1435_v6 = vpop.f32.mrf.mxu2  ;;  %v3599_v39 = vsel %vm458_vm1, %v3596_v18, %v3598_v22 }
 0x39c   :  { %v1919_v54 = vrot.slane %v1917_v63, 1  ;;  %v1436_v16 = vadd.f32 %v1435_v6, %v10830_v27  ;;  %8497 = vmatmul.msk.bf16.gmra.mxu0 %vm633_vm3, %v3599_v39  ;;  %v8259_v39 = vld [vmem:[#allocation3 + $0x4] sm:$0xe] }
 0x39e   :  { %v1920_v59 = vsel %vm1836_vm8, %v1915_v30, %v1919_v54  ;;  %v1454_v60 = vpack.c.bf16 %v1436_v16, %v1436_v16  ;;  %v9673_v30 = vld [vmem:[#allocation3 + $0x4] sm:$0xf0] }
 0x39f   :  { %8078 = vmatmul.msk.bf16.gmra.mxu3 %vm633_vm3, %v1920_v59  ;;  %v7967_v3 = vld [vmem:[#allocation3 + $0x58] sm:$0xf]  ;;  %v8260_v19 = vor.u32 %v9673_v30, %v8259_v39 }
 0x3a0   :  { %1467 = vst.msk [vmem:[#allocation3 + $0x5c] sm:$0xf] %vm1073_vm7, %v1454_v60  ;;  %v8051_v5 = vld [vmem:[#allocation3 + $0x58] sm:$0xf]  ;;  %v9674_v60 = vld [vmem:[#allocation3 + $0xc] sm:$0xff] }
 0x3a1   :  { %v8135_v42 = vld [vmem:[#allocation3 + $0x58] sm:$0xf] }
 0x3a3   :  { %v1437_v9 = vpop.f32.mrf.mxu2 }
 0x3a4   :  { %v1438_v2 = vadd.f32 %v1437_v9, %v10834_v29  ;;  %v1921_v29 = vshrl.u32 %v9635_v51, 16  ;;  %v9651_v9 = vld [vmem:[#allocation3 + $0x50] sm:$0xff] }
 0x3a6   :  { %v1455_v11 = vpack.c.bf16 %v1438_v2, %v1438_v2  ;;  %v1923_v33 = vor.u32 %v1921_v29, %v1919_v54  ;;  %v2863_v2 = vshrl.u32 %v8260_v19, 16  ;;  %v9704_v29 = vld [vmem:[%s12937_s3 + $0xb8] sm:$0xff] }
 0x3a7   :  { %v9620_v27 = vld [vmem:[#allocation3 + $0x58] sm:$0x10]  ;;  %3351 = vmatpush.bf16.msrb.mxu2 %v9704_v29 }
 0x3a8   :  { %v9715_v56 = vld [vmem:[#allocation3 + $0x58] sm:$0xff]  ;;  %1468 = vst.msk [vmem:[#allocation3 + $0x60] sm:$0xf] %vm1073_vm7, %v1455_v11  ;;  %8160 = vmatmul.msk.bf16.gmra.mxu2 %vm633_vm3, %v2243_v8  ;;  %v7968_v18 = vor.u32 %v9620_v27, %v7967_v3  ;;  %v2866_v11 = vshll.u32 %v8260_v19, 16  ;;  %v2871_v3 = vshrl.u32 %v9674_v60, 16  ;;  %v2246_v27 = vrot.slane %v9651_v9, 1 }
 0x3a9   :  { %v9636_v12 = vld [vmem:[#allocation3 + $0x58] sm:$0x30]  ;;  %v3600_v20 = vrot.slane %v9715_v56, 2  ;;  %v2547_v56 = vrot.slane %v9659_v17, 1  ;;  %v9661_v9 = vld [vmem:[#allocation3 + $0x24] sm:$0xff] }
 0x3aa   :  { %v8052_v45 = vor.u32 %v9636_v12, %v8051_v5  ;;  %7996 = vmatmul.msk.bf16.gmra.mxu1 %vm633_vm3, %v7968_v18  ;;  %v2874_v5 = vshll.u32 %v9674_v60, 16  ;;  %v2865_v12 = vrot.slane %v2863_v2, 1  ;;  %v2868_v18 = vrot.slane %v2866_v11, 2  ;;  %v9676_v60 = vld [vmem:[#allocation3 + $0x1c] sm:$0xff] }
 0x3ab   :  { %v1440_v24 = vpop.f32.mrf.mxu2  ;;  %v3601_v25 = vsel %vm458_vm1, %v3598_v22, %v3600_v20  ;;  %v10970_v22 = vpop.f32.mrf.mxu1  ;;  %v2889_v17 = vshrl.u32 %v9676_v60, 16  ;;  %v2892_v2 = vshll.u32 %v9676_v60, 16 }
 0x3ac   :  { %v1925_v23 = vshll.u32 %v8052_v45, 16  ;;  %v1441_v28 = vadd.f32 %v1440_v24, %v10836_v1  ;;  %8498 = vmatmul.msk.bf16.gmra.mxu0 %vm633_vm3, %v3601_v25  ;;  %v2544_v1 = vrot.slane %v8176_v55, 1  ;;  %v1929_v6 = vshrl.u32 %v8052_v45, 16 }
 0x3ad   :  { %v2873_v45 = vrot.slane %v2871_v3, 1  ;;  %v2876_v14 = vrot.slane %v2874_v5, 2  ;;  %v2869_v24 = vor.u32 %v2868_v18, %v2865_v12  ;;  %v2880_v55 = vshrl.u32 %v9675_v15, 16 }
 0x3ae   :  { %v1927_v34 = vrot.slane %v1925_v23, 1  ;;  %v1456_v35 = vpack.c.bf16 %v1441_v28, %v1441_v28  ;;  %v2546_v51 = vsel %vm967_vm4, %v2544_v1, %v2545_v46  ;;  %v2548_v23 = vsel %vm967_vm4, %v2545_v46, %v2547_v56  ;;  %v9701_v46 = vld [vmem:[%s12937_s3 + $0xa0] sm:$0xff] }
 0x3af   :  { %v8471_v32 = vld [vmem:[#allocation3 + $0x60] sm:$0xf]  ;;  %v2877_v25 = vor.u32 %v2876_v14, %v2873_v45  ;;  %v2551_v3 = vrot.slane %v9661_v9, 1  ;;  %v8343_v14 = vld [vmem:[#allocation3 + $0x4] sm:$0xc] }
 0x3b0   :  { %v1928_v36 = vsel %vm1836_vm8, %v1923_v33, %v1927_v34  ;;  %1469 = vst.msk [vmem:[#allocation3 + $0x64] sm:$0xf] %vm1073_vm7, %v1456_v35  ;;  %v1931_v59 = vor.u32 %v1929_v6, %v1927_v34  ;;  %v9652_v33 = vld [vmem:[#allocation3 + $0x58] sm:$0x30]  ;;  %v9703_v34 = vld [vmem:[%s12937_s3 + $0xb0] sm:$0xff] }
 0x3b1   :  { %8079 = vmatmul.msk.bf16.gmra.mxu3 %vm633_vm3, %v1928_v36  ;;  %v2878_v36 = vsel %vm2861_vm9, %v2869_v24, %v2877_v25  ;;  %3352 = vmatpush.bf16.msrb.mxu2 %v9703_v34  ;;  %v8136_v37 = vor.u32 %v9652_v33, %v8135_v42  ;;  %v9677_v24 = vld [vmem:[#allocation3 + $0x24] sm:$0xff]  ;;  %v9662_v34 = vld [vmem:[#allocation3 + $0x2c] sm:$0xff] }
 0x3b3   :  { %v1442_v40 = vpop.f32.mrf.mxu2  ;;  %v2248_v1 = vrot.slane %v8136_v37, 1 }
 0x3b4   :  { %v2883_v40 = vshll.u32 %v9675_v15, 16 }
 0x3b7   :  { %v9716_v49 = vld [vmem:[#allocation3 + $0x60] sm:$0x70] }
 0x3b8   :  { %8161 = vmatmul.msk.bf16.gmra.mxu2 %vm633_vm3, %v2245_v47  ;;  %v8472_v50 = vor.u32 %v9716_v49, %v8471_v32  ;;  %v2549_v47 = vrot.slane %v9660_v21, 1  ;;  %v2882_v49 = vrot.slane %v2880_v55, 1 }
 0x3ba   :  { %8237 = vmatmul.msk.bf16.vlgmr.msra.gmra.mxu1 %vm633_vm3, %v2546_v51  ;;  %v3602_v52 = vrot.slane %v8472_v50, 2  ;;  %v2885_v50 = vrot.slane %v2883_v40, 2  ;;  %v2249_v51 = vsel %vm967_vm4, %v2246_v27, %v2248_v1 }
 0x3bb   :  { %v2319_v63 = vpop.f32.mrf.mxu2 }
 0x3bc   :  { %v10974_v54 = vadd.f32 %v2319_v63, %v10848_v48  ;;  %v3603_v16 = vsel %vm458_vm1, %v3600_v20, %v3602_v52  ;;  %v1660_v48 = vpop.f32.mrf.mxu1  ;;  %v2247_v20 = vsel %vm967_vm4, %v2244_v41, %v2246_v27  ;;  %v2550_v63 = vsel %vm967_vm4, %v2547_v56, %v2549_v47 }
 0x3bd   :  { %8499 = vmatmul.msk.bf16.gmra.mxu0 %vm633_vm3, %v3603_v16  ;;  %v2886_v6 = vor.u32 %v2885_v50, %v2882_v49  ;;  %v2891_v27 = vrot.slane %v2889_v17, 1  ;;  %v2894_v48 = vrot.slane %v2892_v2, 2  ;;  %v2552_v56 = vsel %vm967_vm4, %v2549_v47, %v2551_v3 }
 0x3bf   :  { %v2895_v12 = vor.u32 %v2894_v48, %v2891_v27 }
 0x3c1   :  { %8080 = vmatmul.msk.bf16.gmra.mxu3 %vm633_vm3, %v1931_v59  ;;  %v2887_v59 = vsel %vm2861_vm9, %v2877_v25, %v2886_v6  ;;  %v9690_v25 = vld [vmem:[#allocation3 + $0xc] sm:$0xff] }
 0x3c2   :  { %v3265_v37 = vrot.slane %v9690_v25, 2 }
 0x3c3   :  { %v10979_v8 = vpop.f32.mrf.mxu2 }
 0x3c4   :  { %v1662_v35 = vpop.f32.mrf.mxu1 }
 0x3c5   :  { %v2898_v35 = vshrl.u32 %v9677_v24, 16 }
 0x3c7   :  { %v2900_v21 = vrot.slane %v2898_v35, 1 }
 0x3c8   :  { %8162 = vmatmul.msk.bf16.gmra.mxu2 %vm633_vm3, %v2247_v20  ;;  %v9689_v20 = vld [vmem:[#allocation3 + $0x4] sm:$0xf0] }
 0x3ca   :  { %8238 = vmatmul.msk.bf16.gmra.mxu1 %vm633_vm3, %v2548_v23  ;;  %v2896_v23 = vsel %vm2861_vm9, %v2886_v6, %v2895_v12 }
 0x3cb   :  { %v2324_v26 = vpop.f32.mrf.mxu2 }
 0x3cc   :  { %v10989_v28 = vadd.f32 %v2324_v26, %v10871_v43  ;;  %v9702_v43 = vld [vmem:[%s12937_s3 + $0xa8] sm:$0xff]  ;;  %v8344_v26 = vor.u32 %v9689_v20, %v8343_v14 }
 0x3cd   :  { %8500 = vmatmul.msk.bf16.gmra.mxu0 %vm633_vm3, %v3602_v52  ;;  %3353 = vmatpush.bf16.msrb.mxu2 %v9702_v43  ;;  %v11007_v52 = vpop.f32.mrf.mxu3 }
 0x3ce   :  { %v3264_v15 = vrot.slane %v8344_v26, 2 }
 0x3d0   :  { %v3266_v40 = vsel %vm458_vm1, %v3264_v15, %v3265_v37 }
 0x3d1   :  { %8321 = vmatmul.msk.bf16.vlgmr.msra.gmra.mxu3 %vm633_vm3, %v2878_v36  ;;  %3354 = vmatpush.bf16.msrb.mxu2 %v9701_v46  ;;  %v2901_v36 = vshll.u32 %v9677_v24, 16 }
 0x3d3   :  { %v11000_v41 = vpop.f32.mrf.mxu2  ;;  %v2903_v55 = vrot.slane %v2901_v36, 2  ;;  %v9664_v36 = vld [vmem:[#allocation3 + $0x3c] sm:$0xff] }
 0x3d5   :  { %v1665_v32 = vpop.f32.mrf.mxu1  ;;  %v2904_v49 = vor.u32 %v2903_v55, %v2900_v21 }
 0x3d7   :  { %v2905_v6 = vsel %vm2861_vm9, %v2895_v12, %v2904_v49 }
 0x3d8   :  { %8163 = vmatmul.msk.bf16.gmra.mxu2 %vm633_vm3, %v2249_v51 }
 0x3da   :  { %8239 = vmatmul.msk.bf16.gmra.mxu1 %vm633_vm3, %v2550_v63 }
 0x3db   :  { %v2329_v39 = vpop.f32.mrf.mxu2 }
 0x3dc   :  { %v11012_v30 = vadd.f32 %v2329_v39, %v10892_v44  ;;  %v9678_v39 = vld [vmem:[#allocation3 + $0x2c] sm:$0xff] }
 0x3dd   :  { %v1667_v16 = vpop.f32.mrf.mxu1  ;;  %v2907_v17 = vshrl.u32 %v9678_v39, 16  ;;  %v2910_v2 = vshll.u32 %v9678_v39, 16 }
 0x3e1   :  { %8322 = vmatmul.msk.bf16.gmra.mxu3 %vm633_vm3, %v2887_v59 }
 0x3e2   :  { %v2026_v19 = vpop.f32.mrf.mxu3 }
 0x3e3   :  { %v11016_v11 = vpop.f32.mrf.mxu2  ;;  %v9663_v19 = vld [vmem:[#allocation3 + $0x34] sm:$0xff] }
 0x3e5   :  { %v1670_v5 = vpop.f32.mrf.mxu1 }
 0x3e6   :  { %v1671_v59 = vadd.f32 %v10843_v10, %v1670_v5 }
 0x3e8   :  { %8164 = vmatmul.msk.bf16.gmra.mxu2 %vm633_vm3, %v2248_v1  ;;  %v1668_v1 = vadd.f32 %v10843_v10, %v1667_v16  ;;  %v9691_v16 = vld [vmem:[#allocation3 + $0x14] sm:$0xff] }
 0x3e9   :  { %v3267_v27 = vrot.slane %v9691_v16, 2 }
 0x3ea   :  { %v2028_v44 = vpop.f32.mrf.mxu3  ;;  %8240 = vmatmul.msk.bf16.gmra.mxu1 %vm633_vm3, %v2552_v56  ;;  %v2912_v56 = vrot.slane %v2910_v2, 2  ;;  %v9693_v2 = vld [vmem:[#allocation3 + $0x24] sm:$0xff] }
 0x3eb   :  { %v2334_v18 = vpop.f32.mrf.mxu2  ;;  %v2909_v44 = vrot.slane %v2907_v17, 1  ;;  %v3268_v12 = vsel %vm458_vm1, %v3265_v37, %v3267_v27  ;;  %v9680_v17 = vld [vmem:[#allocation3 + $0x3c] sm:$0xff] }
 0x3ec   :  { %v11022_v45 = vadd.f32 %v2334_v18, %v10908_v4  ;;  %v2553_v4 = vrot.slane %v9662_v34, 1  ;;  %v9692_v34 = vld [vmem:[#allocation3 + $0x1c] sm:$0xff] }
 0x3ed   :  { %v1672_v29 = vpop.f32.mrf.mxu1  ;;  %v3269_v55 = vrot.slane %v9692_v34, 2 }
 0x3ee   :  { %v2554_v47 = vsel %vm967_vm4, %v2551_v3, %v2553_v4  ;;  %v1673_v18 = vadd.f32 %v10843_v10, %v1672_v29 }
 0x3f1   :  { %8323 = vmatmul.msk.bf16.gmra.mxu3 %vm633_vm3, %v2896_v23  ;;  %v2913_v23 = vor.u32 %v2912_v56, %v2909_v44  ;;  %v9665_v44 = vld [vmem:[#allocation3 + $0x44] sm:$0xff] }
 0x3f2   :  { %v2031_v33 = vpop.f32.mrf.mxu3 }
 0x3f3   :  { %v11026_v42 = vpop.f32.mrf.mxu2  ;;  %v2914_v26 = vsel %vm2861_vm9, %v2904_v49, %v2913_v23  ;;  %v9679_v33 = vld [vmem:[#allocation3 + $0x34] sm:$0xff]  ;;  %v3270_v49 = vsel %vm458_vm1, %v3267_v27, %v3269_v55 }
 0x3f4   :  { %v2916_v37 = vshrl.u32 %v9679_v33, 16  ;;  %v9736_v27 = vld [vmem:[%s12937_s3 + $0xf8] sm:$0xff] }
 0x3f5   :  { %v1675_v43 = vpop.f32.mrf.mxu1  ;;  %4070 = vmatpush.bf16.msrb.mxu1 %v9736_v27 }
 0x3f6   :  { %v1676_v29 = vadd.f32 %v10843_v10, %v1675_v43 }
 0x3f8   :  { %8405 = vmatmul.msk.bf16.vlgmr.msrb.gmra.mxu2 %vm633_vm3, %v3266_v40  ;;  %v2557_v40 = vrot.slane %v9664_v36, 1 }
 0x3fa   :  { %v2033_v46 = vpop.f32.mrf.mxu3  ;;  %8241 = vmatmul.msk.bf16.gmra.mxu1 %vm633_vm3, %v2554_v47 }
 0x3fb   :  { %v11032_v32 = vadd.f32 %v2033_v46, %v1668_v1  ;;  %v2339_v50 = vpop.f32.mrf.mxu2  ;;  %v2918_v46 = vrot.slane %v2916_v37, 1 }
 0x3fc   :  { %v11036_v51 = vadd.f32 %v2339_v50, %v10938_v62  ;;  %v2555_v62 = vrot.slane %v9663_v19, 1 }
 0x3fd   :  { %v1677_v63 = vpop.f32.mrf.mxu1 }
 0x3fe   :  { %v2556_v14 = vsel %vm967_vm4, %v2553_v4, %v2555_v62  ;;  %v2919_v4 = vshll.u32 %v9679_v33, 16  ;;  %v1678_v50 = vadd.f32 %v10843_v10, %v1677_v63  ;;  %v2558_v43 = vsel %vm967_vm4, %v2555_v62, %v2557_v40 }
 0x400   :  { %v2921_v47 = vrot.slane %v2919_v4, 2 }
 0x401   :  { %8324 = vmatmul.msk.bf16.gmra.mxu3 %vm633_vm3, %v2905_v6 }
 0x402   :  { %v2036_v60 = vpop.f32.mrf.mxu3  ;;  %v2922_v16 = vor.u32 %v2921_v47, %v2918_v46 }
 0x403   :  { %v11041_v9 = vadd.f32 %v2036_v60, %v1671_v59  ;;  %v11043_v3 = vpop.f32.mrf.mxu2 }
 0x404   :  { %v2923_v19 = vsel %vm2861_vm9, %v2913_v23, %v2922_v16 }
 0x405   :  { %v1680_v48 = vpop.f32.mrf.mxu1 }
 0x406   :  { %v1681_v63 = vadd.f32 %v10843_v10, %v1680_v48  ;;  %v9752_v48 = vld [vmem:[%s12937_s3 + $0x118] sm:$0xff] }
 0x407   :  { %4388 = vmatpush.bf16.msrb.mxu3 %v9752_v48 }
 0x408   :  { %8406 = vmatmul.msk.bf16.gmra.mxu2 %vm633_vm3, %v3268_v12  ;;  %v2925_v12 = vshrl.u32 %v9680_v17, 16 }
 0x40a   :  { %v2038_v5 = vpop.f32.mrf.mxu3  ;;  %8242 = vmatmul.msk.bf16.gmra.mxu1 %vm633_vm3, %v2556_v14  ;;  %v3271_v14 = vrot.slane %v9693_v2, 2 }
 0x40b   :  { %v11049_v20 = vadd.f32 %v2038_v5, %v1673_v18  ;;  %v2344_v24 = vpop.f32.mrf.mxu2  ;;  %v2928_v18 = vshll.u32 %v9680_v17, 16 }
 0x40c   :  { %v2559_v24 = vrot.slane %v9665_v44, 1 }
 0x40d   :  { %v1682_v25 = vpop.f32.mrf.mxu1  ;;  %v2930_v33 = vrot.slane %v2928_v18, 2 }
 0x40e   :  { %v2560_v37 = vsel %vm967_vm4, %v2557_v40, %v2559_v24 }
 0x411   :  { %8325 = vmatmul.msk.bf16.gmra.mxu3 %vm633_vm3, %v2914_v26  ;;  %v2927_v26 = vrot.slane %v2925_v12, 1 }
 0x412   :  { %v2041_v35 = vpop.f32.mrf.mxu3 }
 0x413   :  { %v11055_v15 = vadd.f32 %v2041_v35, %v1676_v29  ;;  %v2346_v21 = vpop.f32.mrf.mxu2  ;;  %v3272_v29 = vsel %vm458_vm1, %v3269_v55, %v3271_v14  ;;  %v1683_v35 = vadd.f32 %v10843_v10, %v1682_v25  ;;  %v2931_v4 = vor.u32 %v2930_v33, %v2927_v26  ;;  %v9694_v25 = vld [vmem:[#allocation3 + $0x2c] sm:$0xff] }
 0x414   :  { %v3273_v2 = vrot.slane %v9694_v25, 2 }
 0x415   :  { %v1685_v1 = vpop.f32.mrf.mxu1  ;;  %v2932_v47 = vsel %vm2861_vm9, %v2922_v16, %v2931_v4 }
 0x416   :  { %v1686_v40 = vadd.f32 %v10843_v10, %v1685_v1  ;;  %v3274_v12 = vsel %vm458_vm1, %v3271_v14, %v3273_v2  ;;  %v1638_v1 = vadd.f32 %v10843_v10, %v10840_v7 }
 0x418   :  { %8407 = vmatmul.msk.bf16.gmra.mxu2 %vm633_vm3, %v3270_v49  ;;  %v9681_v49 = vld [vmem:[#allocation3 + $0x44] sm:$0xff]  ;;  %v2062_v14 = vadd.f32 %v10860_v58, %v1638_v1 }
 0x41a   :  { %v2043_v6 = vpop.f32.mrf.mxu3  ;;  %8243 = vmatmul.msk.bf16.gmra.mxu1 %vm633_vm3, %v2558_v43  ;;  %v2380_v7 = vadd.f32 %v10979_v8, %v2062_v14 }
 0x41b   :  { %v11061_v39 = vadd.f32 %v2043_v6, %v1678_v50  ;;  %v2349_v59 = vpop.f32.mrf.mxu2  ;;  %v9666_v6 = vld [vmem:[#allocation3 + $0x4c] sm:$0xff] }
 0x41c   :  { %v2934_v59 = vshrl.u32 %v9681_v49, 16 }
 0x41d   :  { %v1687_v60 = vpop.f32.mrf.mxu1 }
 0x41e   :  { %v2936_v27 = vrot.slane %v2934_v59, 1 }
 0x421   :  { %8326 = vmatmul.msk.bf16.gmra.mxu3 %vm633_vm3, %v2923_v19  ;;  %v2937_v19 = vshll.u32 %v9681_v49, 16 }
 0x422   :  { %v2046_v62 = vpop.f32.mrf.mxu3 }
 0x423   :  { %v11070_v56 = vadd.f32 %v2046_v62, %v1681_v63  ;;  %v2351_v5 = vpop.f32.mrf.mxu2  ;;  %v2561_v63 = vrot.slane %v9666_v6, 1  ;;  %v2939_v62 = vrot.slane %v2937_v19, 2 }
 0x424   :  { %v11073_v23 = vadd.f32 %v2351_v5, %v11032_v32  ;;  %v1688_v5 = vadd.f32 %v10843_v10, %v1687_v60 }
 0x425   :  { %v2562_v48 = vsel %vm967_vm4, %v2559_v24, %v2561_v63  ;;  %v9695_v24 = vld [vmem:[#allocation3 + $0x34] sm:$0xff] }
 0x427   :  { %v1690_v34 = vpop.f32.mrf.mxu1 }
 0x428   :  { %8408 = vmatmul.msk.bf16.gmra.mxu2 %vm633_vm3, %v3272_v29 }
 0x42a   :  { %v2048_v36 = vpop.f32.mrf.mxu3  ;;  %8244 = vmatmul.msk.bf16.gmra.mxu1 %vm633_vm3, %v2560_v37 }
 0x42b   :  { %v11082_v32 = vadd.f32 %v2048_v36, %v1683_v35  ;;  %v2354_v21 = vpop.f32.mrf.mxu2  ;;  %v9682_v36 = vld [vmem:[#allocation3 + $0x4c] sm:$0xff] }
 0x42c   :  { %v11086_v46 = vadd.f32 %v2354_v21, %v11041_v9  ;;  %v1691_v21 = vadd.f32 %v10843_v10, %v1690_v34  ;;  %v2946_v58 = vshll.u32 %v9682_v36, 16  ;;  %v1643_v34 = vadd.f32 %v10843_v10, %v10863_v61 }
 0x42e   :  { %v2948_v6 = vrot.slane %v2946_v58, 2  ;;  %v2064_v1 = vadd.f32 %v10884_v53, %v1643_v34  ;;  %v8219_v53 = vld [vmem:[#allocation3 + $0x5c] sm:$0xf] }
 0x42f   :  { %v1692_v55 = vpop.f32.mrf.mxu1 }
 0x430   :  { %v1693_v50 = vadd.f32 %v10843_v10, %v1692_v55  ;;  %v2943_v55 = vshrl.u32 %v9682_v36, 16  ;;  %v2382_v10 = vadd.f32 %v11000_v41, %v2064_v1 }
 0x431   :  { %8327 = vmatmul.msk.bf16.gmra.mxu3 %vm633_vm3, %v2932_v47  ;;  %v9667_v47 = vld [vmem:[#allocation3 + $0x54] sm:$0xff] }
 0x432   :  { %1718 = vst [vmem:[#allocation4 + $0xb8] sm:$0x3] %v1693_v50  ;;  %v3275_v50 = vrot.slane %v9695_v24, 2 }
 0x433   :  { %v2356_v9 = vpop.f32.mrf.mxu2 }
 0x434   :  { %v2051_v43 = vpop.f32.mrf.mxu3  ;;  %v11095_v16 = vadd.f32 %v2356_v9, %v11049_v20  ;;  %v2940_v20 = vor.u32 %v2939_v62, %v2936_v27  ;;  %v3276_v59 = vsel %vm458_vm1, %v3273_v2, %v3275_v50 }
 0x435   :  { %v11092_v17 = vadd.f32 %v2051_v43, %v1686_v40  ;;  %v2945_v40 = vrot.slane %v2943_v55, 1  ;;  %v9751_v55 = vld [vmem:[%s12937_s3 + $0x110] sm:$0xff] }
 0x436   :  { %4389 = vmatpush.bf16.msrb.mxu3 %v9751_v55 }
 0x437   :  { %v2636_v44 = vpop.f32.mrf.mxu1 }
 0x438   :  { %v2696_v18 = vadd.f32 %v2636_v44, %v10974_v54  ;;  %8409 = vmatmul.msk.bf16.gmra.mxu2 %vm633_vm3, %v3274_v12  ;;  %v2941_v54 = vsel %vm2861_vm9, %v2931_v4, %v2940_v20  ;;  %v2563_v4 = vrot.slane %v9667_v47, 1 }
 0x439   :  { %v1742_v27 = vld [vmem:[#allocation4 + $0xb8] sm:$0x3] }
 0x43a   :  { %8245 = vmatmul.msk.bf16.gmra.mxu1 %vm633_vm3, %v2562_v48  ;;  %v2564_v9 = vsel %vm967_vm4, %v2561_v63, %v2563_v4  ;;  %v9696_v48 = vld [vmem:[#allocation3 + $0x3c] sm:$0xff] }
 0x43b   :  { %v2359_v29 = vpop.f32.mrf.mxu2  ;;  %v3277_v36 = vrot.slane %v9696_v48, 2 }
 0x43c   :  { %v2053_v26 = vpop.f32.mrf.mxu3  ;;  %v11109_v35 = vadd.f32 %v2359_v29, %v11055_v15 }
 0x43d   :  { %v11105_v33 = vadd.f32 %v2053_v26, %v1688_v5  ;;  %v9683_v5 = vld [vmem:[#allocation3 + $0x54] sm:$0xff]  ;;  %v9735_v26 = vld [vmem:[%s12937_s3 + $0xf0] sm:$0xff] }
 0x43e   :  { %4071 = vmatpush.bf16.msrb.mxu1 %v9735_v26  ;;  %v2955_v41 = vshll.u32 %v9683_v5, 16 }
 0x43f   :  { %v2638_v60 = vpop.f32.mrf.mxu1 }
 0x440   :  { %v11114_v37 = vadd.f32 %v2638_v60, %v2380_v7  ;;  %v2952_v7 = vshrl.u32 %v9683_v5, 16  ;;  %v9734_v60 = vld [vmem:[%s12937_s3 + $0xe8] sm:$0xff] }
 0x441   :  { %8328 = vmatmul.msk.bf16.gmra.mxu3 %vm633_vm3, %v2941_v54 }
 0x442   :  { %4072 = vmatpush.bf16.msrb.mxu1 %v9734_v60  ;;  %v2954_v47 = vrot.slane %v2952_v7, 1 }
 0x443   :  { %v2361_v15 = vpop.f32.mrf.mxu2 }
 0x444   :  { %v2056_v49 = vpop.f32.mrf.mxu3  ;;  %v11120_v8 = vadd.f32 %v2361_v15, %v11061_v39  ;;  %v2949_v39 = vor.u32 %v2948_v6, %v2945_v40  ;;  %v9733_v15 = vld [vmem:[%s12937_s3 + $0xe0] sm:$0xff]  ;;  %v11158_v40 = vld [vmem:[#allocation11] ss:$0 sm:$0xff] }
 0x445   :  { %v11117_v25 = vadd.f32 %v2056_v49, %v1691_v21  ;;  %v2957_v49 = vrot.slane %v2955_v41, 2 }
 0x446   :  { %v2950_v61 = vsel %vm2861_vm9, %v2940_v20, %v2949_v39  ;;  %4073 = vmatpush.bf16.msrb.mxu1 %v9733_v15 }
 0x447   :  { %v2641_v43 = vpop.f32.mrf.mxu1  ;;  %v2958_v34 = vor.u32 %v2957_v49, %v2954_v47 }
 0x448   :  { %v11126_v19 = vadd.f32 %v2641_v43, %v10989_v28  ;;  %8410 = vmatmul.msk.bf16.gmra.mxu2 %vm633_vm3, %v3276_v59  ;;  %v9668_v28 = vld [vmem:[#allocation3 + $0x5c] sm:$0x30]  ;;  %v11166_v43 = vpop.f32.mrf.mxu0 }
 0x44a   :  { %8246 = vmatmul.msk.bf16.gmra.mxu1 %vm633_vm3, %v2564_v9 }
 0x44b   :  { %v2364_v12 = vpop.f32.mrf.mxu2 }
 0x44c   :  { %v2058_v62 = vpop.f32.mrf.mxu3  ;;  %v11133_v2 = vadd.f32 %v2364_v12, %v11070_v56  ;;  %v8220_v56 = vor.u32 %v9668_v28, %v8219_v53 }
 0x44d   :  { %v2084_v44 = vadd.f32 %v2058_v62, %v1742_v27 }
 0x44e   :  { %v2565_v21 = vrot.slane %v8220_v56, 1  ;;  %v8511_v56 = vld [vmem:[#allocation3 + $0x8] sm:$0xc] }
 0x44f   :  { %2108 = vst [vmem:[#allocation4 + $0xb8] sm:$0x3] %v2084_v44  ;;  %v2643_v63 = vpop.f32.mrf.mxu1  ;;  %v8303_v44 = vld [vmem:[#allocation3 + $0x5c] sm:$0xf] }
 0x450   :  { %v11141_v29 = vadd.f32 %v2643_v63, %v2382_v10  ;;  %v2566_v59 = vsel %vm967_vm4, %v2563_v4, %v2565_v21  ;;  %v2959_v4 = vsel %vm2861_vm9, %v2949_v39, %v2958_v34  ;;  %v11182_v48 = vpop.f32.mrf.mxu0 }
 0x451   :  { %8329 = vmatmul.msk.bf16.gmra.mxu3 %vm633_vm3, %v2950_v61  ;;  %v9697_v61 = vld [vmem:[#allocation3 + $0x44] sm:$0xff] }
 0x452   :  { %v3279_v26 = vrot.slane %v9697_v61, 2 }
 0x453   :  { %v2366_v20 = vpop.f32.mrf.mxu2 }
 0x454   :  { %v3038_v14 = vpop.f32.mrf.mxu3  ;;  %v11149_v24 = vadd.f32 %v2366_v20, %v11082_v32  ;;  %v1648_v32 = vadd.f32 %v11158_v40, %v10889_v38  ;;  %v9684_v38 = vld [vmem:[#allocation3 + $0x5c] sm:$0x70]  ;;  %v3280_v41 = vsel %vm458_vm1, %v3277_v36, %v3279_v26  ;;  %v1653_v20 = vadd.f32 %v11158_v40, %v10911_v13 }
 0x455   :  { %v11143_v54 = vadd.f32 %v3038_v14, %v2696_v18  ;;  %v3278_v18 = vsel %vm458_vm1, %v3275_v50, %v3277_v36  ;;  %v8304_v1 = vor.u32 %v9684_v38, %v8303_v44  ;;  %v9721_v14 = vld [vmem:[#allocation3 + $0x8] sm:$0xf0] }
 0x456   :  { %v8512_v47 = vor.u32 %v9721_v14, %v8511_v56  ;;  %v2132_v61 = vld [vmem:[#allocation4 + $0xb8] sm:$0x3]  ;;  %v1658_v56 = vadd.f32 %v11158_v40, %v10970_v22 }
 0x457   :  { %v2646_v58 = vpop.f32.mrf.mxu1  ;;  %v2961_v5 = vshrl.u32 %v8304_v1, 16  ;;  %v2964_v63 = vshll.u32 %v8304_v1, 16 }
 0x458   :  { %v11163_v6 = vadd.f32 %v2646_v58, %v11012_v30  ;;  %8411 = vmatmul.msk.bf16.gmra.mxu2 %vm633_vm3, %v3278_v18  ;;  %v2066_v30 = vadd.f32 %v10902_v57, %v1648_v32  ;;  %v9749_v18 = vld [vmem:[%s12937_s3 + $0x100] sm:$0xff]  ;;  %v11211_v15 = vpop.f32.mrf.mxu0  ;;  %v3900_v32 = vshrl.u32 %v8512_v47, 16 }
 0x459   :  { %v2963_v39 = vrot.slane %v2961_v5, 1  ;;  %v2966_v53 = vrot.slane %v2964_v63, 2 }
 0x45a   :  { %8247 = vmatmul.msk.bf16.gmra.mxu1 %vm633_vm3, %v2566_v59  ;;  %v2384_v12 = vadd.f32 %v11016_v11, %v2066_v30  ;;  %v3902_v30 = vrot.slane %v3900_v32, 2 }
 0x45b   :  { %v2369_v27 = vpop.f32.mrf.mxu2  ;;  %v2967_v55 = vor.u32 %v2966_v53, %v2963_v39 }
 0x45c   :  { %v3040_v50 = vpop.f32.mrf.mxu3  ;;  %v11175_v62 = vadd.f32 %v2369_v27, %v11092_v17 }
 0x45d   :  { %v11171_v9 = vadd.f32 %v3040_v50, %v11114_v37 }
 0x45f   :  { %v2648_v10 = vpop.f32.mrf.mxu1 }
 0x460   :  { %v11180_v28 = vadd.f32 %v2648_v10, %v2384_v12 }
 0x461   :  { %8330 = vmatmul.msk.bf16.gmra.mxu3 %vm633_vm3, %v2959_v4 }
 0x463   :  { %v2371_v17 = vpop.f32.mrf.mxu2 }
 0x464   :  { %v3043_v37 = vpop.f32.mrf.mxu3  ;;  %v11188_v11 = vadd.f32 %v2371_v17, %v11105_v33  ;;  %v9750_v33 = vld [vmem:[%s12937_s3 + $0x108] sm:$0xff]  ;;  %v11219_v17 = vpop.f32.mrf.mxu0 }
 0x465   :  { %v11185_v57 = vadd.f32 %v3043_v37, %v11126_v19  ;;  %v9722_v19 = vld [vmem:[#allocation3 + $0x10] sm:$0xff]  ;;  %4390 = vmatpush.bf16.msrb.mxu3 %v9750_v33 }
 0x466   :  { %v3908_v59 = vshrl.u32 %v9722_v19, 16  ;;  %v3911_v50 = vshll.u32 %v9722_v19, 16  ;;  %v2070_v19 = vadd.f32 %v11007_v52, %v1658_v56 }
 0x467   :  { %v2651_v7 = vpop.f32.mrf.mxu1 }
 0x468   :  { %v11194_v60 = vadd.f32 %v2651_v7, %v11022_v45  ;;  %8412 = vmatmul.msk.bf16.gmra.mxu2 %vm633_vm3, %v3280_v41  ;;  %v2068_v45 = vadd.f32 %v10920_v31, %v1653_v20  ;;  %v9698_v31 = vld [vmem:[#allocation3 + $0x4c] sm:$0xff]  ;;  %v3910_v12 = vrot.slane %v3908_v59, 2  ;;  %v3913_v4 = vrot.slane %v3911_v50, 3  ;;  %v9723_v7 = vld [vmem:[#allocation3 + $0x18] sm:$0xff]  ;;  %v8595_v59 = vld [vmem:[#allocation3 + $0x8] sm:$0x8] }
 0x469   :  { %4391 = vmatpush.bf16.msrb.mxu3 %v9749_v18  ;;  %v3281_v5 = vrot.slane %v9698_v31, 2  ;;  %v3917_v22 = vshrl.u32 %v9723_v7, 16  ;;  %v3920_v40 = vshll.u32 %v9723_v7, 16  ;;  %v9737_v50 = vld [vmem:[#allocation3 + $0x8] sm:$0xf0] }
 0x46a   :  { %8248 = vmatmul.msk.bf16.gmra.mxu1 %vm633_vm3, %v2565_v21  ;;  %v3903_v21 = vshll.u32 %v8512_v47, 16  ;;  %v2386_v27 = vadd.f32 %v11026_v42, %v2068_v45 }
 0x46b   :  { %v2374_v13 = vpop.f32.mrf.mxu2  ;;  %v3282_v53 = vsel %vm458_vm1, %v3279_v26, %v3281_v5  ;;  %v3919_v18 = vrot.slane %v3917_v22, 2 }
 0x46c   :  { %v3045_v49 = vpop.f32.mrf.mxu3  ;;  %v11206_v58 = vadd.f32 %v2374_v13, %v11117_v25  ;;  %v3905_v44 = vrot.slane %v3903_v21, 3  ;;  %v11237_v45 = vpop.f32.mrf.mxu0 }
 0x46d   :  { %v11202_v36 = vadd.f32 %v3045_v49, %v11141_v29  ;;  %v2968_v29 = vsel %vm2861_vm9, %v2958_v34, %v2967_v55  ;;  %v3914_v34 = vor.u32 %v3913_v4, %v3910_v12  ;;  %v9699_v49 = vld [vmem:[#allocation3 + $0x54] sm:$0xff] }
 0x46e   :  { %v3906_v63 = vor.u32 %v3905_v44, %v3902_v30  ;;  %v9724_v30 = vld [vmem:[#allocation3 + $0x20] sm:$0xff] }
 0x46f   :  { %v2653_v38 = vpop.f32.mrf.mxu1 }
 0x470   :  { %v2703_v25 = vadd.f32 %v2653_v38, %v2386_v27 }
 0x471   :  { %8331 = vmatmul.msk.bf16.gmra.mxu3 %vm633_vm3, %v2968_v29  ;;  %v8596_v29 = vor.u32 %v9737_v50, %v8595_v59 }
 0x473   :  { %v2376_v37 = vpop.f32.mrf.mxu2 }
 0x474   :  { %v3048_v1 = vpop.f32.mrf.mxu3  ;;  %v2402_v42 = vadd.f32 %v2376_v37, %v2132_v61  ;;  %v11248_v4 = vpop.f32.mrf.mxu0 }
 0x475   :  { %v11217_v10 = vadd.f32 %v3048_v1, %v11163_v6  ;;  %v3915_v6 = vsel %vm3898_vm10, %v3906_v63, %v3914_v34  ;;  %v3929_v63 = vshll.u32 %v9724_v30, 16 }
 0x476   :  { %2426 = vst [vmem:[#allocation4 + $0xb8] sm:$0x3] %v2402_v42  ;;  %v9700_v42 = vld [vmem:[#allocation3 + $0x5c] sm:$0x70] }
 0x477   :  { %v2656_v39 = vpop.f32.mrf.mxu1  ;;  %v3931_v7 = vrot.slane %v3929_v63, 3  ;;  %v9726_v63 = vld [vmem:[#allocation3 + $0x30] sm:$0xff] }
 0x478   :  { %v2704_v14 = vadd.f32 %v2656_v39, %v11036_v51  ;;  %8413 = vmatmul.msk.bf16.gmra.mxu2 %vm633_vm3, %v3282_v53  ;;  %v2388_v51 = vadd.f32 %v11043_v3, %v2070_v19  ;;  %v9738_v3 = vld [vmem:[#allocation3 + $0x10] sm:$0xff] }
 0x479   :  { %v4302_v12 = vrot.slane %v9738_v3, 3 }
 0x47a   :  { %8573 = vmatmul.msk.bf16.vlgmr.msrb.gmra.mxu1 %vm633_vm3, %v3915_v6 }
 0x47b   :  { %v3356_v33 = vpop.f32.mrf.mxu2 }
 0x47c   :  { %v3050_v41 = vpop.f32.mrf.mxu3  ;;  %v11233_v26 = vadd.f32 %v3356_v33, %v11143_v54  ;;  %v3283_v54 = vrot.slane %v9699_v49, 2 }
 0x47d   :  { %v11229_v20 = vadd.f32 %v3050_v41, %v11180_v28  ;;  %v3922_v28 = vrot.slane %v3920_v40, 3  ;;  %v9739_v40 = vld [vmem:[#allocation3 + $0x18] sm:$0xff] }
 0x47f   :  { %v2658_v47 = vpop.f32.mrf.mxu1  ;;  %v3923_v27 = vor.u32 %v3922_v28, %v3919_v18  ;;  %v9725_v18 = vld [vmem:[#allocation3 + $0x28] sm:$0xff] }
 0x480   :  { %v2705_v13 = vadd.f32 %v2658_v47, %v2388_v51  ;;  %v3935_v3 = vshrl.u32 %v9725_v18, 16 }
 0x481   :  { %8332 = vmatmul.msk.bf16.gmra.mxu3 %vm633_vm3, %v2967_v55  ;;  %v3284_v55 = vsel %vm458_vm1, %v3281_v5, %v3283_v54  ;;  %v3924_v31 = vsel %vm3898_vm10, %v3914_v34, %v3923_v27  ;;  %v3926_v5 = vshrl.u32 %v9724_v30, 16  ;;  %v8387_v34 = vld [vmem:[#allocation3 + $0x5c] sm:$0xf] }
 0x482   :  { %v8388_v56 = vor.u32 %v9700_v42, %v8387_v34 }
 0x483   :  { %v11242_v52 = vpop.f32.mrf.mxu2  ;;  %v3928_v6 = vrot.slane %v3926_v5, 2 }
 0x484   :  { %v3053_v32 = vpop.f32.mrf.mxu3  ;;  %v3285_v19 = vrot.slane %v8388_v56, 2  ;;  %v3944_v56 = vshrl.u32 %v9726_v63, 16 }
 0x485   :  { %v11240_v21 = vadd.f32 %v3053_v32, %v11194_v60  ;;  %v4301_v60 = vrot.slane %v8596_v29, 3  ;;  %v3932_v22 = vor.u32 %v3931_v7, %v3928_v6  ;;  %v3938_v29 = vshll.u32 %v9725_v18, 16  ;;  %v9741_v18 = vld [vmem:[#allocation3 + $0x28] sm:$0xff] }
 0x486   :  { %v3286_v47 = vsel %vm458_vm1, %v3283_v54, %v3285_v19  ;;  %v3947_v6 = vshll.u32 %v9726_v63, 16 }
 0x487   :  { %v2661_v38 = vpop.f32.mrf.mxu1  ;;  %v4303_v39 = vsel %vm457_vm0, %v4301_v60, %v4302_v12  ;;  %v3933_v49 = vsel %vm3898_vm10, %v3923_v27, %v3932_v22  ;;  %v3940_v30 = vrot.slane %v3938_v29, 3  ;;  %v4308_v29 = vrot.slane %v9741_v18, 3 }
 0x488   :  { %8414 = vmatmul.msk.bf16.gmra.mxu2 %vm633_vm3, %v3284_v55 }
 0x48a   :  { %8574 = vmatmul.msk.bf16.gmra.mxu1 %vm633_vm3, %v3924_v31  ;;  %v3937_v31 = vrot.slane %v3935_v3, 2 }
 0x48b   :  { %v3361_v61 = vpop.f32.mrf.mxu2 }
 0x48c   :  { %v3055_v44 = vpop.f32.mrf.mxu3  ;;  %v11253_v37 = vadd.f32 %v3361_v61, %v11185_v57  ;;  %v11261_v57 = vpop.f32.mrf.mxu0  ;;  %v3941_v60 = vor.u32 %v3940_v30, %v3937_v31  ;;  %v9740_v61 = vld [vmem:[#allocation3 + $0x20] sm:$0xff] }
 0x48d   :  { %v11250_v1 = vadd.f32 %v3055_v44, %v2703_v25 }
 0x48f   :  { %v2663_v53 = vpop.f32.mrf.mxu1 }
 0x491   :  { %8657 = vmatmul.msk.bf16.vlgmr.msrb.gmra.mxu3 %vm633_vm3, %v4303_v39 }
 0x493   :  { %v11259_v25 = vpop.f32.mrf.mxu2 }
 0x494   :  { %v3058_v41 = vpop.f32.mrf.mxu3  ;;  %v11273_v54 = vpop.f32.mrf.mxu0 }
 0x495   :  { %v11257_v33 = vadd.f32 %v3058_v41, %v2704_v14  ;;  %v4304_v14 = vrot.slane %v9739_v40, 3  ;;  %v3949_v40 = vrot.slane %v3947_v6, 3  ;;  %v9742_v6 = vld [vmem:[#allocation3 + $0x30] sm:$0xff] }
 0x497   :  { %v2666_v51 = vpop.f32.mrf.mxu1  ;;  %v4305_v38 = vsel %vm457_vm0, %v4302_v12, %v4304_v14  ;;  %v3942_v12 = vsel %vm3898_vm10, %v3932_v22, %v3941_v60  ;;  %v3946_v22 = vrot.slane %v3944_v56, 2 }
 0x498   :  { %8415 = vmatmul.msk.bf16.gmra.mxu2 %vm633_vm3, %v3286_v47 }
 0x49a   :  { %8575 = vmatmul.msk.bf16.gmra.mxu1 %vm633_vm3, %v3933_v49  ;;  %v3950_v49 = vor.u32 %v3949_v40, %v3946_v22  ;;  %v4310_v40 = vrot.slane %v9742_v6, 3 }
 0x49b   :  { %v3366_v59 = vpop.f32.mrf.mxu2 }
 0x49c   :  { %v3060_v28 = vpop.f32.mrf.mxu3  ;;  %v11270_v50 = vadd.f32 %v3366_v59, %v11217_v10  ;;  %v11279_v10 = vpop.f32.mrf.mxu0  ;;  %v3951_v59 = vsel %vm3898_vm10, %v3941_v60, %v3950_v49 }
 0x49d   :  { %v11267_v32 = vadd.f32 %v3060_v28, %v2705_v13 }
 0x49f   :  { %v2668_v55 = vpop.f32.mrf.mxu1 }
 0x4a0   :  { %v2709_v27 = vadd.f32 %v2668_v55, %v11073_v23  ;;  %v4306_v23 = vrot.slane %v9740_v61, 3 }
 0x4a1   :  { %8658 = vmatmul.msk.bf16.gmra.mxu3 %vm633_vm3, %v4305_v38 }
 0x4a2   :  { %v4307_v7 = vsel %vm457_vm0, %v4304_v14, %v4306_v23  ;;  %v9727_v14 = vld [vmem:[#allocation3 + $0x38] sm:$0xff]  ;;  %v4309_v61 = vsel %vm457_vm0, %v4306_v23, %v4308_v29  ;;  %v9728_v23 = vld [vmem:[#allocation3 + $0x40] sm:$0xff] }
 0x4a3   :  { %v11277_v13 = vpop.f32.mrf.mxu2  ;;  %v3953_v30 = vshrl.u32 %v9727_v14, 16  ;;  %v3962_v18 = vshrl.u32 %v9728_v23, 16 }
 0x4a4   :  { %v3063_v44 = vpop.f32.mrf.mxu3 }
 0x4a5   :  { %v3956_v44 = vshll.u32 %v9727_v14, 16  ;;  %v3955_v60 = vrot.slane %v3953_v30, 2 }
 0x4a7   :  { %v2671_v42 = vpop.f32.mrf.mxu1 }
 0x4a8   :  { %v2710_v5 = vadd.f32 %v2671_v42, %v11086_v46  ;;  %8416 = vmatmul.msk.bf16.gmra.mxu2 %vm633_vm3, %v3285_v19  ;;  %v11291_v19 = vpop.f32.mrf.mxu0 }
 0x4aa   :  { %8576 = vmatmul.msk.bf16.gmra.mxu1 %vm633_vm3, %v3942_v12  ;;  %v3958_v12 = vrot.slane %v3956_v44, 3 }
 0x4ab   :  { %v3371_v34 = vpop.f32.mrf.mxu2 }
 0x4ac   :  { %v3065_v39 = vpop.f32.mrf.mxu3  ;;  %v11286_v53 = vadd.f32 %v3371_v34, %v11240_v21  ;;  %v3959_v56 = vor.u32 %v3958_v12, %v3955_v60  ;;  %v9729_v12 = vld [vmem:[#allocation3 + $0x48] sm:$0xff] }
 0x4af   :  { %v2673_v41 = vpop.f32.mrf.mxu1 }
 0x4b0   :  { %v2711_v46 = vadd.f32 %v2673_v41, %v11095_v16  ;;  %v3698_v16 = vpop.f32.mrf.mxu0  ;;  %v3960_v41 = vsel %vm3898_vm10, %v3950_v49, %v3959_v56 }
 0x4b1   :  { %8659 = vmatmul.msk.bf16.gmra.mxu3 %vm633_vm3, %v4307_v7 }
 0x4b3   :  { %v11293_v47 = vpop.f32.mrf.mxu2 }
 0x4b4   :  { %v3068_v51 = vpop.f32.mrf.mxu3 }
 0x4b7   :  { %v2676_v21 = vpop.f32.mrf.mxu1 }
 0x4b8   :  { %v2712_v28 = vadd.f32 %v2676_v21, %v11109_v35  ;;  %v4311_v21 = vsel %vm457_vm0, %v4308_v29, %v4310_v40 }
 0x4ba   :  { %8577 = vmatmul.msk.bf16.gmra.mxu1 %vm633_vm3, %v3951_v59 }
 0x4bb   :  { %v3376_v55 = vpop.f32.mrf.mxu2 }
 0x4bc   :  { %v3070_v3 = vpop.f32.mrf.mxu3  ;;  %v11301_v31 = vadd.f32 %v3376_v55, %v11257_v33 }
 0x4bd   :  { %v11298_v38 = vadd.f32 %v3070_v3, %v2709_v27  ;;  %v3700_v27 = vpop.f32.mrf.mxu0  ;;  %v3964_v3 = vrot.slane %v3962_v18, 2 }
 0x4bf   :  { %v2678_v42 = vpop.f32.mrf.mxu1 }
 0x4c0   :  { %v2713_v35 = vadd.f32 %v2678_v42, %v11120_v8 }
 0x4c1   :  { %8660 = vmatmul.msk.bf16.gmra.mxu3 %vm633_vm3, %v4309_v61 }
 0x4c3   :  { %v11306_v34 = vpop.f32.mrf.mxu2 }
 0x4c4   :  { %v3073_v63 = vpop.f32.mrf.mxu3 }
 0x4c5   :  { %v3112_v39 = vadd.f32 %v3073_v63, %v2710_v5  ;;  %v3965_v5 = vshll.u32 %v9728_v23, 16  ;;  %v3703_v59 = vpop.f32.mrf.mxu0 }
 0x4c6   :  { %v9744_v59 = vld [vmem:[#allocation3 + $0x40] sm:$0xff] }
 0x4c7   :  { %v2681_v33 = vpop.f32.mrf.mxu1  ;;  %v3967_v49 = vrot.slane %v3965_v5, 3 }
 0x4c8   :  { %v2714_v7 = vadd.f32 %v2681_v33, %v11133_v2  ;;  %v3974_v33 = vshll.u32 %v9729_v12, 16 }
 0x4c9   :  { %v3968_v44 = vor.u32 %v3967_v49, %v3964_v3  ;;  %v9730_v49 = vld [vmem:[#allocation3 + $0x50] sm:$0xff] }
 0x4ca   :  { %8578 = vmatmul.msk.bf16.gmra.mxu1 %vm633_vm3, %v3960_v41 }
 0x4cb   :  { %v3381_v51 = vpop.f32.mrf.mxu2  ;;  %v3969_v29 = vsel %vm3898_vm10, %v3959_v56, %v3968_v44 }
 0x4cc   :  { %v3075_v22 = vpop.f32.mrf.mxu3  ;;  %v3976_v51 = vrot.slane %v3974_v33, 3 }
 0x4cd   :  { %v11311_v8 = vadd.f32 %v3075_v22, %v2711_v46  ;;  %v9743_v46 = vld [vmem:[#allocation3 + $0x38] sm:$0xff]  ;;  %v11319_v60 = vpop.f32.mrf.mxu0 }
 0x4cf   :  { %v2683_v14 = vpop.f32.mrf.mxu1 }
 0x4d0   :  { %v2715_v2 = vadd.f32 %v2683_v14, %v11149_v24  ;;  %v4312_v24 = vrot.slane %v9743_v46, 3 }
 0x4d1   :  { %8661 = vmatmul.msk.bf16.gmra.mxu3 %vm633_vm3, %v4311_v21 }
 0x4d2   :  { %v4313_v41 = vsel %vm457_vm0, %v4310_v40, %v4312_v24 }
 0x4d3   :  { %v3383_v30 = vpop.f32.mrf.mxu2 }
 0x4d4   :  { %v3078_v16 = vpop.f32.mrf.mxu3 }
 0x4d5   :  { %v11316_v55 = vadd.f32 %v3078_v16, %v2712_v28  ;;  %v3971_v28 = vshrl.u32 %v9729_v12, 16  ;;  %v11328_v18 = vpop.f32.mrf.mxu0  ;;  %v3983_v12 = vshll.u32 %v9730_v49, 16 }
 0x4d7   :  { %v2686_v61 = vpop.f32.mrf.mxu1  ;;  %v3973_v22 = vrot.slane %v3971_v28, 2  ;;  %v3985_v33 = vrot.slane %v3983_v12, 3 }
 0x4d8   :  { %v2716_v42 = vadd.f32 %v2686_v61, %v11175_v62 }
 0x4da   :  { %8579 = vmatmul.msk.bf16.gmra.mxu1 %vm633_vm3, %v3969_v29  ;;  %v3980_v29 = vshrl.u32 %v9730_v49, 16 }
 0x4db   :  { %v3386_v6 = vpop.f32.mrf.mxu2 }
 0x4dc   :  { %v3080_v63 = vpop.f32.mrf.mxu3  ;;  %v2450_v6 = vld [vmem:[#allocation4 + $0xb8] sm:$0x3]  ;;  %v3982_v28 = vrot.slane %v3980_v29, 2 }
 0x4dd   :  { %v11323_v27 = vadd.f32 %v3080_v63, %v2713_v35  ;;  %v3977_v35 = vor.u32 %v3976_v51, %v3973_v22  ;;  %v9745_v22 = vld [vmem:[#allocation3 + $0x48] sm:$0xff] }
 0x4df   :  { %v2688_v23 = vpop.f32.mrf.mxu1  ;;  %v3978_v40 = vsel %vm3898_vm10, %v3968_v44, %v3977_v35 }
 0x4e0   :  { %v2717_v62 = vadd.f32 %v2688_v23, %v11188_v11  ;;  %v4314_v11 = vrot.slane %v9744_v59, 3  ;;  %v9731_v59 = vld [vmem:[#allocation3 + $0x58] sm:$0xff] }
 0x4e1   :  { %8662 = vmatmul.msk.bf16.gmra.mxu3 %vm633_vm3, %v4313_v41  ;;  %v3992_v29 = vshll.u32 %v9731_v59, 16 }
 0x4e2   :  { %v4315_v63 = vsel %vm457_vm0, %v4312_v24, %v4314_v11 }
 0x4e3   :  { %v11332_v21 = vpop.f32.mrf.mxu2 }
 0x4e4   :  { %v3083_v56 = vpop.f32.mrf.mxu3 }
 0x4e5   :  { %v11330_v5 = vadd.f32 %v3083_v56, %v2714_v7  ;;  %v11341_v7 = vpop.f32.mrf.mxu0 }
 0x4e7   :  { %v2691_v14 = vpop.f32.mrf.mxu1 }
 0x4e8   :  { %v2718_v3 = vadd.f32 %v2691_v14, %v11206_v58 }
 0x4ea   :  { %8580 = vmatmul.msk.bf16.gmra.mxu1 %vm633_vm3, %v3978_v40  ;;  %v4316_v40 = vrot.slane %v9745_v22, 3 }
 0x4eb   :  { %v3391_v46 = vpop.f32.mrf.mxu2 }
 0x4ec   :  { %v3085_v16 = vpop.f32.mrf.mxu3  ;;  %v11339_v61 = vadd.f32 %v3391_v46, %v3112_v39  ;;  %v3986_v39 = vor.u32 %v3985_v33, %v3982_v28  ;;  %v3989_v46 = vshrl.u32 %v9731_v59, 16  ;;  %v4317_v12 = vsel %vm457_vm0, %v4314_v11, %v4316_v40 }
 0x4ed   :  { %v11337_v30 = vadd.f32 %v3085_v16, %v2715_v2  ;;  %v11349_v51 = vpop.f32.mrf.mxu0 }
 0x4ee   :  { %v3987_v24 = vsel %vm3898_vm10, %v3977_v35, %v3986_v39  ;;  %v3991_v35 = vrot.slane %v3989_v46, 2 }
 0x4ef   :  { %v2693_v58 = vpop.f32.mrf.mxu1 }
 0x4f0   :  { %v2719_v44 = vadd.f32 %v2693_v58, %v2450_v6  ;;  %v3994_v58 = vrot.slane %v3992_v29, 3 }
 0x4f1   :  { %8663 = vmatmul.msk.bf16.gmra.mxu3 %vm633_vm3, %v4315_v63 }
 0x4f2   :  { %2743 = vst [vmem:[#allocation4 + $0xb8] sm:$0x3] %v2719_v44  ;;  %v3995_v33 = vor.u32 %v3994_v58, %v3991_v35 }
 0x4f3   :  { %v11347_v23 = vpop.f32.mrf.mxu2 }
 0x4f4   :  { %v3088_v41 = vpop.f32.mrf.mxu3  ;;  %v3996_v22 = vsel %vm3898_vm10, %v3986_v39, %v3995_v33  ;;  %v3733_v39 = vadd.f32 %v11166_v43, %v11233_v26  ;;  %v9747_v43 = vld [vmem:[#allocation3 + $0x58] sm:$0xff] }
 0x4f5   :  { %v11345_v2 = vadd.f32 %v3088_v41, %v2716_v42  ;;  %v11360_v6 = vpop.f32.mrf.mxu0  ;;  %v9746_v41 = vld [vmem:[#allocation3 + $0x50] sm:$0xff] }
 0x4f7   :  { %v4075_v56 = vpop.f32.mrf.mxu1 }
 0x4f9   :  { %v2767_v59 = vld [vmem:[#allocation4 + $0xb8] sm:$0x3] }
 0x4fa   :  { %8581 = vmatmul.msk.bf16.gmra.mxu1 %vm633_vm3, %v3987_v24  ;;  %v9732_v24 = vld [vmem:[#allocation3 + $0x60] sm:$0xff] }
 0x4fb   :  { %v3396_v16 = vpop.f32.mrf.mxu2  ;;  %v4001_v35 = vshll.u32 %v9732_v24, 16 }
 0x4fc   :  { %v3090_v14 = vpop.f32.mrf.mxu3  ;;  %v11356_v42 = vadd.f32 %v3396_v16, %v11316_v55 }
 0x4fd   :  { %v11353_v49 = vadd.f32 %v3090_v14, %v2717_v62  ;;  %v4318_v14 = vrot.slane %v9746_v41, 3  ;;  %v11368_v16 = vpop.f32.mrf.mxu0  ;;  %v4003_v0 = vrot.slane %v4001_v35, 3 }
 0x4ff   :  { %12950 = vst [vmem:[#allocation22_spill] sm:$0xff] %v11353_v49  ;;  %v4077_v63 = vpop.f32.mrf.mxu1  ;;  %v4319_v58 = vsel %vm457_vm0, %v4316_v40, %v4318_v14 }
 0x501   :  { %8664 = vmatmul.msk.bf16.gmra.mxu3 %vm633_vm3, %v4317_v12  ;;  %v3998_v12 = vshrl.u32 %v9732_v24, 16 }
 0x503   :  { %v11364_v62 = vpop.f32.mrf.mxu2  ;;  %v4000_v41 = vrot.slane %v3998_v12, 2 }
 0x504   :  { %v3093_v44 = vpop.f32.mrf.mxu3 }
 0x505   :  { %v11362_v28 = vadd.f32 %v3093_v44, %v2718_v3  ;;  %v11383_v24 = vpop.f32.mrf.mxu0  ;;  %v4004_v40 = vor.u32 %v4003_v0, %v4000_v41 }
 0x507   :  { %v4080_v55 = vpop.f32.mrf.mxu1 }
 0x50a   :  { %8582 = vmatmul.msk.bf16.gmra.mxu1 %vm633_vm3, %v3996_v22  ;;  %v4135_v22 = vadd.f32 %v4075_v56, %v3733_v39 }
 0x50b   :  { %v3401_v29 = vpop.f32.mrf.mxu2 }
 0x50c   :  { %v3095_v11 = vpop.f32.mrf.mxu3  ;;  %v11371_v3 = vadd.f32 %v3401_v29, %v11330_v5  ;;  %v4005_v29 = vsel %vm3898_vm10, %v3995_v33, %v4004_v40 }
 0x50d   :  { %v3121_v46 = vadd.f32 %v3095_v11, %v2767_v59  ;;  %v3417_v59 = vadd.f32 %v11242_v52, %v11171_v9  ;;  %v4320_v9 = vrot.slane %v9747_v43, 3  ;;  %v11393_v0 = vpop.f32.mrf.mxu0 }
 0x50f   :  { %3145 = vst [vmem:[#allocation4 + $0xb8] sm:$0x3] %v3121_v46  ;;  %v4082_v44 = vpop.f32.mrf.mxu1  ;;  %v3734_v26 = vadd.f32 %v11182_v48, %v3417_v59  ;;  %v3735_v48 = vadd.f32 %v11211_v15, %v11253_v37 }
 0x511   :  { %8665 = vmatmul.msk.bf16.gmra.mxu3 %vm633_vm3, %v4319_v58  ;;  %v4136_v56 = vadd.f32 %v4077_v63, %v3734_v26  ;;  %v4321_v58 = vsel %vm457_vm0, %v4318_v14, %v4320_v9  ;;  %v4137_v33 = vadd.f32 %v4080_v55, %v3735_v48  ;;  %v9748_v14 = vld [vmem:[#allocation3 + $0x60] sm:$0xff] }
 0x512   :  { %v4322_v55 = vrot.slane %v9748_v14, 3 }
 0x513   :  { %v11381_v11 = vpop.f32.mrf.mxu2 }
 0x514   :  { %v4393_v49 = vpop.f32.mrf.mxu3 }
 0x515   :  { %v11379_v5 = vadd.f32 %v4393_v49, %v4135_v22  ;;  %v3419_v22 = vadd.f32 %v11259_v25, %v11202_v36  ;;  %v11406_v26 = vpop.f32.mrf.mxu0 }
 0x517   :  { %4477 = vst [vmem:[#allocation4] sm:$0xff] %v11379_v5  ;;  %v4085_v46 = vpop.f32.mrf.mxu1  ;;  %v3736_v59 = vadd.f32 %v11219_v17, %v3419_v22 }
 0x519   :  { %v4138_v15 = vadd.f32 %v4082_v44, %v3736_v59 }
 0x51a   :  { %8583 = vmatmul.msk.bf16.gmra.mxu1 %vm633_vm3, %v4005_v29  ;;  %v4323_v29 = vsel %vm457_vm0, %v4320_v9, %v4322_v55  ;;  %v3169_v9 = vld [vmem:[#allocation4 + $0xb8] sm:$0x3] }
 0x51b   :  { %v3406_v49 = vpop.f32.mrf.mxu2 }
 0x51c   :  { %v4395_v12 = vpop.f32.mrf.mxu3  ;;  %v11390_v35 = vadd.f32 %v3406_v49, %v11345_v2  ;;  %v3737_v49 = vadd.f32 %v11237_v45, %v11270_v50 }
 0x51d   :  { %v4454_v52 = vadd.f32 %v4395_v12, %v4136_v56  ;;  %v11419_v22 = vpop.f32.mrf.mxu0 }
 0x51e   :  { %12952 = vst [vmem:[#allocation24_spill] sm:$0xff] %v11419_v22 }
 0x51f   :  { %4478 = vst [vmem:[#allocation4 + $0x8] sm:$0xff] %v4454_v52  ;;  %v4087_v63 = vpop.f32.mrf.mxu1 }
 0x521   :  { %8666 = vmatmul.msk.bf16.gmra.mxu3 %vm633_vm3, %v4321_v58  ;;  %v4139_v58 = vadd.f32 %v4085_v46, %v3737_v49 }
 0x523   :  { %v11402_v2 = vpop.f32.mrf.mxu2 }
 0x524   :  { %v4398_v39 = vpop.f32.mrf.mxu3 }
 0x525   :  { %v11400_v41 = vadd.f32 %v4398_v39, %v4137_v33 }
 0x527   :  { %4479 = vst [vmem:[#allocation4 + $0x10] sm:$0xff] %v11400_v41  ;;  %v4090_v43 = vpop.f32.mrf.mxu1 }
 0x52a   :  { %8584 = vmatmul.msk.bf16.gmra.mxu1 %vm633_vm3, %v4004_v40  ;;  %v4510_v40 = vld [vmem:[#allocation4 + $0x1] sm:$0xff] }
 0x52b   :  { %v3411_v36 = vpop.f32.mrf.mxu2 }
 0x52c   :  { %v4400_v37 = vpop.f32.mrf.mxu3  ;;  %v11412_v25 = vadd.f32 %v3411_v36, %v11362_v28  ;;  %v3421_v28 = vadd.f32 %v11277_v13, %v11229_v20 }
 0x52d   :  { %v11409_v56 = vadd.f32 %v4400_v37, %v4138_v15  ;;  %v4519_v15 = vmax.f32 %v11379_v5, %v4510_v40  ;;  %v3730_v5 = vpop.f32.mrf.mxu0 }
 0x52e   :  { %12951 = vst [vmem:[#allocation23_spill] sm:$0xff] %v11412_v25  ;;  %v4528_v12 = vld [vmem:[#allocation4 + $0xa] sm:$0xff] }
 0x52f   :  { %4480 = vst [vmem:[#allocation4 + $0x18] sm:$0xff] %v11409_v56  ;;  %v4537_v17 = vld [vmem:[#allocation4 + $0xb] sm:$0xff]  ;;  %v4092_v44 = vpop.f32.mrf.mxu1 }
 0x530   :  { %v4546_v48 = vmax.f32 %v4528_v12, %v4537_v17  ;;  %v4511_v39 = vld [vmem:[#allocation4 + $0x9] sm:$0xff]  ;;  %v3738_v12 = vadd.f32 %v11248_v4, %v3421_v28 }
 0x531   :  { %8667 = vmatmul.msk.bf16.gmra.mxu3 %vm633_vm3, %v4323_v29  ;;  %v4520_v46 = vmax.f32 %v4454_v52, %v4511_v39 }
 0x532   :  { %v4555_v29 = vmax.f32 %v4519_v15, %v4546_v48  ;;  %v4140_v20 = vadd.f32 %v4087_v63, %v3738_v12  ;;  %v3739_v48 = vadd.f32 %v11261_v57, %v11286_v53 }
 0x533   :  { %v3413_v59 = vpop.f32.mrf.mxu2 }
 0x534   :  { %v4403_v33 = vpop.f32.mrf.mxu3  ;;  %v3439_v45 = vadd.f32 %v3413_v59, %v3169_v9  ;;  %v4564_v13 = vmax.f32 %v4555_v29, 0.0  ;;  %v4141_v63 = vadd.f32 %v4090_v43, %v3739_v48 }
 0x535   :  { %v11423_v14 = vadd.f32 %v4403_v33, %v4139_v58 }
 0x536   :  { %v4529_v50 = vld [vmem:[#allocation4 + $0x12] sm:$0xff]  ;;  %3463 = vst [vmem:[#allocation4 + $0xb8] sm:$0x3] %v3439_v45 }
 0x537   :  { %v4538_v37 = vld [vmem:[#allocation4 + $0x13] sm:$0xff]  ;;  %4481 = vst [vmem:[#allocation4 + $0x20] sm:$0xff] %v11423_v14  ;;  %v4095_v17 = vpop.f32.mrf.mxu1 }
 0x538   :  { %v4547_v36 = vmax.f32 %v4529_v50, %v4538_v37  ;;  %v4512_v4 = vld [vmem:[#allocation4 + $0x11] sm:$0xff]  ;;  %v3423_v50 = vadd.f32 %v11293_v47, %v11250_v1 }
 0x53a   :  { %v4556_v49 = vmax.f32 %v4520_v46, %v4547_v36  ;;  %v4521_v46 = vmax.f32 %v11400_v41, %v4512_v4  ;;  %v3740_v43 = vadd.f32 %v11273_v54, %v3423_v50 }
 0x53c   :  { %v4565_v58 = vmax.f32 %v4556_v49, 0.0  ;;  %v4405_v33 = vpop.f32.mrf.mxu3 }
 0x53d   :  { %v4458_v22 = vadd.f32 %v4405_v33, %v4140_v20  ;;  %v3487_v40 = vld [vmem:[#allocation4 + $0xb8] sm:$0x3]  ;;  %v4142_v20 = vadd.f32 %v4092_v44, %v3740_v43  ;;  %v3425_v44 = vadd.f32 %v11306_v34, %v11267_v32 }
 0x53e   :  { %v11428_v25 = vpack.c.bf16 %v4565_v58, %v4564_v13  ;;  %v3756_v9 = vadd.f32 %v3730_v5, %v3487_v40  ;;  %v4530_v59 = vld [vmem:[#allocation4 + $0x1a] sm:$0xff]  ;;  %v3741_v40 = vadd.f32 %v11279_v10, %v11301_v31 }
 0x53f   :  { %4482 = vst [vmem:[#allocation4 + $0x28] sm:$0xff] %v4458_v22  ;;  %v4539_v52 = vld [vmem:[#allocation4 + $0x1b] sm:$0xff]  ;;  %v4097_v39 = vpop.f32.mrf.mxu1  ;;  %v3742_v10 = vadd.f32 %v11291_v19, %v3425_v44 }
 0x540   :  { %3780 = vst [vmem:[#allocation4 + $0xb8] sm:$0x3] %v3756_v9  ;;  %v4548_v28 = vmax.f32 %v4530_v59, %v4539_v52  ;;  %v4513_v45 = vld [vmem:[#allocation4 + $0x19] sm:$0xff]  ;;  %v4143_v59 = vadd.f32 %v4095_v17, %v3741_v40 }
 0x541   :  { %8668 = vmatmul.msk.bf16.gmra.mxu3 %vm633_vm3, %v4322_v55  ;;  %v4522_v57 = vmax.f32 %v11409_v56, %v4513_v45  ;;  %v4144_v17 = vadd.f32 %v4097_v39, %v3742_v10 }
 0x542   :  { %v4557_v55 = vmax.f32 %v4521_v46, %v4548_v28 }
 0x544   :  { %v4408_v15 = vpop.f32.mrf.mxu3  ;;  %v4566_v13 = vmax.f32 %v4557_v55, 0.0 }
 0x545   :  { %v11435_v37 = vadd.f32 %v4408_v15, %v4141_v63 }
 0x546   :  { %v4531_v36 = vld [vmem:[#allocation4 + $0x22] sm:$0xff] }
 0x547   :  { %v4540_v29 = vld [vmem:[#allocation4 + $0x23] sm:$0xff]  ;;  %4483 = vst [vmem:[#allocation4 + $0x30] sm:$0xff] %v11435_v37  ;;  %v4100_v12 = vpop.f32.mrf.mxu1 }
 0x548   :  { %v4549_v53 = vmax.f32 %v4531_v36, %v4540_v29  ;;  %v4514_v9 = vld [vmem:[#allocation4 + $0x21] sm:$0xff] }
 0x549   :  { %v4523_v63 = vmax.f32 %v11423_v14, %v4514_v9 }
 0x54a   :  { %v4558_v49 = vmax.f32 %v4522_v57, %v4549_v53 }
 0x54c   :  { %v4567_v58 = vmax.f32 %v4558_v49, 0.0  ;;  %v4410_v1 = vpop.f32.mrf.mxu3 }
 0x54d   :  { %v4460_v47 = vadd.f32 %v4410_v1, %v4142_v20 }
 0x54e   :  { %v11441_v33 = vpack.c.bf16 %v4567_v58, %v4566_v13  ;;  %v4532_v41 = vld [vmem:[#allocation4 + $0x2a] sm:$0xff] }
 0x54f   :  { %4484 = vst [vmem:[#allocation4 + $0x38] sm:$0xff] %v4460_v47  ;;  %v4541_v5 = vld [vmem:[#allocation4 + $0x2b] sm:$0xff]  ;;  %v4102_v56 = vpop.f32.mrf.mxu1 }
 0x550   :  { %v4550_v52 = vmax.f32 %v4532_v41, %v4541_v5  ;;  %v4515_v48 = vld [vmem:[#allocation4 + $0x29] sm:$0xff] }
 0x551   :  { %v4524_v45 = vmax.f32 %v4458_v22, %v4515_v48 }
 0x552   :  { %v4559_v46 = vmax.f32 %v4523_v63, %v4550_v52 }
 0x554   :  { %v4413_v54 = vpop.f32.mrf.mxu3  ;;  %v4568_v29 = vmax.f32 %v4559_v46, 0.0 }
 0x555   :  { %v4461_v4 = vadd.f32 %v4413_v54, %v4143_v59  ;;  %v12953_v54 = vmov 65535  }
 0x556   :  { %v4533_v28 = vld [vmem:[#allocation4 + $0x32] sm:$0xff]  ;;  %v4608_v48 = vsel %vm4606_vm11, 4294967295, %v12953_v54 }
 0x557   :  { %v4542_v15 = vld [vmem:[#allocation4 + $0x33] sm:$0xff]  ;;  %4485 = vst [vmem:[#allocation4 + $0x40] sm:$0xff] %v4461_v4  ;;  %v4105_v31 = vpop.f32.mrf.mxu1 }
 0x558   :  { %v4551_v50 = vmax.f32 %v4533_v28, %v4542_v15  ;;  %v4516_v12 = vld [vmem:[#allocation4 + $0x31] sm:$0xff]  ;;  %v11453_v15 = vsel %vm4607_vm12, %v4608_v48, 0 }
 0x559   :  { %v4525_v39 = vmax.f32 %v11435_v37, %v4516_v12  ;;  %v3747_v12 = vadd.f32 %v11328_v18, %v11339_v61  ;;  %v9754_v18 = vld [vmem:[%s12942_s8 + $0x8] sm:$0xff]  ;;  %v3749_v61 = vadd.f32 %v11349_v51, %v11356_v42  ;;  %v4577_v51 = vld [vmem:[%s12942_s8 + $0x10] sm:$0xf] }
 0x55a   :  { %v4560_v36 = vmax.f32 %v4524_v45, %v4551_v50 }
 0x55c   :  { %v4569_v57 = vmax.f32 %v4560_v36, 0.0  ;;  %v4415_v53 = vpop.f32.mrf.mxu3 }
 0x55d   :  { %v4462_v55 = vadd.f32 %v4415_v53, %v4144_v17  ;;  %v3429_v17 = vadd.f32 %v11332_v21, %v11298_v38  ;;  %v3431_v21 = vadd.f32 %v11347_v23, %v11311_v8  ;;  %v3433_v8 = vadd.f32 %v11364_v62, %v11323_v27 }
 0x55e   :  { %v4580_v43 = vpack.c.bf16 %v4569_v57, %v4568_v29  ;;  %v4534_v34 = vld [vmem:[#allocation4 + $0x3a] sm:$0xff] }
 0x55f   :  { %4486 = vst [vmem:[#allocation4 + $0x48] sm:$0xff] %v4462_v55  ;;  %v4107_v32 = vpop.f32.mrf.mxu1  ;;  %v4543_v14 = vld [vmem:[#allocation4 + $0x3b] sm:$0xff]  ;;  %v3746_v29 = vadd.f32 %v11319_v60, %v3429_v17 }
 0x560   :  { %v4509_v20 = vld [vmem:[#allocation4 + $0x40] sm:$0x7]  ;;  %v4552_v13 = vmax.f32 %v4534_v34, %v4543_v14  ;;  %v9753_v14 = vld [vmem:[%s12942_s8] sm:$0xff] }
 0x561   :  { %v4518_v22 = vld [vmem:[#allocation4 + $0x41] sm:$0x7]  ;;  %v4517_v58 = vld [vmem:[#allocation4 + $0x39] sm:$0xff]  ;;  %v4148_v53 = vadd.f32 %v4107_v32, %v3746_v29 }
 0x562   :  { %v4527_v5 = vmax.f32 %v4509_v20, %v4518_v22  ;;  %v4526_v9 = vmax.f32 %v4460_v47, %v4517_v58  ;;  %v4561_v52 = vmax.f32 %v4525_v39, %v4552_v13  ;;  %v3750_v39 = vadd.f32 %v11360_v6, %v3433_v8 }
 0x564   :  { %v4418_v49 = vpop.f32.mrf.mxu3  ;;  %v4570_v37 = vmax.f32 %v4561_v52, 0.0 }
 0x566   :  { %v4536_v19 = vld [vmem:[#allocation4 + $0x4a] sm:$0x7]  ;;  %v4535_v41 = vld [vmem:[#allocation4 + $0x42] sm:$0xff] }
 0x567   :  { %v4545_v1 = vld [vmem:[#allocation4 + $0x4b] sm:$0x7]  ;;  %v4544_v56 = vld [vmem:[#allocation4 + $0x43] sm:$0xff]  ;;  %v4110_v44 = vpop.f32.mrf.mxu1 }
 0x568   :  { %v4554_v40 = vmax.f32 %v4536_v19, %v4545_v1  ;;  %v4553_v59 = vmax.f32 %v4535_v41, %v4544_v56  ;;  %v4149_v38 = vadd.f32 %v4110_v44, %v3747_v12 }
 0x56a   :  { %v4563_v4 = vmax.f32 %v4527_v5, %v4554_v40  ;;  %v4562_v63 = vmax.f32 %v4526_v9, %v4553_v59  ;;  %v4592_v9 = vunpack.c.l.b16 %v4577_v51 }
 0x56c   :  { %v4572_v28 = vmax.f32 %v4563_v4, 0.0  ;;  %v4420_v45 = vpop.f32.mrf.mxu3  ;;  %v4571_v50 = vmax.f32 %v4562_v63, 0.0  ;;  %v4595_v4 = vpack.c.b16 %v4592_v9, %v4592_v9  ;;  %v3751_v63 = vadd.f32 %v11368_v16, %v11371_v3 }
 0x56e   :  { %v4582_v46 = vpack.c.bf16 %v4572_v28, %v4572_v28  ;;  %v4581_v10 = vpack.c.bf16 %v4571_v50, %v4570_v37 }
 0x56f   :  { %v4112_v31 = vpop.f32.mrf.mxu1 }
 0x570   :  { %v4611_v47 = vand.u32 %v11453_v15, %v4582_v46 }
 0x572   :  { %4616 = vmatpush.bf16.msra.mxu2 %v4611_v47  ;;  %v3435_v47 = vadd.f32 %v11381_v11, %v11337_v30 }
 0x574   :  { %v4423_v36 = vpop.f32.mrf.mxu3 }
 0x576   :  { %4617 = vmatpush.bf16.msra.mxu2 %v4581_v10 }
 0x577   :  { %v4115_v57 = vpop.f32.mrf.mxu1 }
 0x578   :  { %v4151_v58 = vadd.f32 %v4115_v57, %v3749_v61  ;;  %v3752_v57 = vadd.f32 %v11383_v24, %v3435_v47  ;;  %v3804_v24 = vld [vmem:[#allocation4 + $0xb8] sm:$0x3] }
 0x57a   :  { %4618 = vmatpush.bf16.msra.mxu2 %v4580_v43  ;;  %v3748_v43 = vadd.f32 %v11341_v7, %v3431_v21 }
 0x57c   :  { %v4425_v55 = vpop.f32.mrf.mxu3  ;;  %v4150_v20 = vadd.f32 %v4112_v31, %v3748_v43 }
 0x57d   :  { %v4466_v34 = vadd.f32 %v4425_v55, %v4148_v53 }
 0x57e   :  { %4619 = vmatpush.bf16.msra.mxu2 %v11441_v33 }
 0x57f   :  { %4490 = vst [vmem:[#allocation4 + $0x68] sm:$0xff] %v4466_v34  ;;  %v4117_v49 = vpop.f32.mrf.mxu1 }
 0x580   :  { %v4152_v40 = vadd.f32 %v4117_v49, %v3750_v39 }
 0x582   :  { %4620 = vmatpush.bf16.msra.mxu2 %v11428_v25 }
 0x584   :  { %v4428_v60 = vpop.f32.mrf.mxu3 }
 0x585   :  { %8677 = vmatmul.msk.bf16.vlgmr.msra.gmra.mxu2 %vm4596_vm13, %v9753_v14  ;;  %v4467_v33 = vadd.f32 %v4428_v60, %v4149_v38 }
 0x587   :  { %4491 = vst [vmem:[#allocation4 + $0x70] sm:$0xff] %v4467_v33  ;;  %v4120_v32 = vpop.f32.mrf.mxu1 }
 0x588   :  { %v4153_v37 = vadd.f32 %v4120_v32, %v3751_v63 }
 0x58c   :  { %v4430_v22 = vpop.f32.mrf.mxu3 }
 0x58d   :  { %v4468_v13 = vadd.f32 %v4430_v22, %v4150_v20 }
 0x58e   :  { %v4655_v5 = vld [vmem:[#allocation4 + $0x69] sm:$0xff] }
 0x58f   :  { %4492 = vst [vmem:[#allocation4 + $0x78] sm:$0xff] %v4468_v13  ;;  %v4122_v25 = vpop.f32.mrf.mxu1  ;;  %v4664_v27 = vmax.f32 %v4466_v34, %v4655_v5 }
 0x590   :  { %v4154_v53 = vadd.f32 %v4122_v25, %v3752_v57 }
 0x594   :  { %v4433_v19 = vpop.f32.mrf.mxu3 }
 0x595   :  { %8678 = vmatmul.msk.bf16.gmra.mxu2 %vm4596_vm13, %v9754_v18  ;;  %v4469_v7 = vadd.f32 %v4433_v19, %v4151_v58 }
 0x596   :  { %v4673_v23 = vld [vmem:[#allocation4 + $0x72] sm:$0xff] }
 0x597   :  { %4493 = vst [vmem:[#allocation4 + $0x80] sm:$0xff] %v4469_v7  ;;  %v4682_v1 = vld [vmem:[#allocation4 + $0x73] sm:$0xff]  ;;  %v4125_v41 = vpop.f32.mrf.mxu1 }
 0x598   :  { %v4691_v42 = vmax.f32 %v4673_v23, %v4682_v1  ;;  %v4656_v59 = vld [vmem:[#allocation4 + $0x71] sm:$0xff] }
 0x599   :  { %v4665_v48 = vmax.f32 %v4467_v33, %v4656_v59  ;;  %v3753_v33 = vadd.f32 %v11393_v0, %v11390_v35 }
 0x59a   :  { %v4700_v44 = vmax.f32 %v4664_v27, %v4691_v42  ;;  %v12955_v27 = vld [vmem:[#allocation23_spill] sm:$0xff] }
 0x59b   :  { %v4155_v22 = vadd.f32 %v4125_v41, %v3753_v33 }
 0x59c   :  { %v4435_v56 = vpop.f32.mrf.mxu3  ;;  %v4709_v50 = vmax.f32 %v4700_v44, 0.0 }
 0x59d   :  { %v11482_v52 = vadd.f32 %v4435_v56, %v4152_v40 }
 0x59e   :  { %v4674_v62 = vld [vmem:[#allocation4 + $0x7a] sm:$0xff] }
 0x59f   :  { %v4683_v54 = vld [vmem:[#allocation4 + $0x7b] sm:$0xff]  ;;  %4494 = vst [vmem:[#allocation4 + $0x88] sm:$0xff] %v11482_v52  ;;  %v4127_v28 = vpop.f32.mrf.mxu1 }
 0x5a0   :  { %v4692_v6 = vmax.f32 %v4674_v62, %v4683_v54  ;;  %v4657_v3 = vld [vmem:[#allocation4 + $0x79] sm:$0xff] }
 0x5a1   :  { %v4666_v49 = vmax.f32 %v4468_v13, %v4657_v3  ;;  %v12954_v13 = vld [vmem:[#allocation22_spill] sm:$0xff]  ;;  %v12956_v62 = vld [vmem:[#allocation24_spill] sm:$0xff] }
 0x5a2   :  { %v4701_v45 = vmax.f32 %v4665_v48, %v4692_v6  ;;  %v3437_v58 = vadd.f32 %v11402_v2, %v12954_v13  ;;  %v3755_v54 = vadd.f32 %v12956_v62, %v12955_v27  ;;  %v8759_v13 = vld [vmem:[%s12939_s5 + $0x68] sm:$0xf0]  ;;  %v9767_v27 = vld [vmem:[%s12939_s5 + $0x34] sm:$0xf]  ;;  %v8735_v62 = vld [vmem:[%s12939_s5 + $0x38] sm:$0xf0] }
 0x5a4   :  { %v4710_v46 = vmax.f32 %v4701_v45, 0.0  ;;  %v4438_v10 = vpop.f32.mrf.mxu3  ;;  %v3754_v1 = vadd.f32 %v11406_v26, %v3437_v58 }
 0x5a5   :  { %8679 = vmatmul.msk.bf16.gmra.mxu2 %vm4596_vm13, %v4595_v4  ;;  %v4471_v31 = vadd.f32 %v4438_v10, %v4153_v37 }
 0x5a6   :  { %v11490_v36 = vpack.c.bf16 %v4710_v46, %v4709_v50  ;;  %v4675_v17 = vld [vmem:[#allocation4 + $0x82] sm:$0xff]  ;;  %v4156_v0 = vadd.f32 %v4127_v28, %v3754_v1 }
 0x5a7   :  { %4495 = vst [vmem:[#allocation4 + $0x90] sm:$0xff] %v4471_v31  ;;  %v4684_v29 = vld [vmem:[#allocation4 + $0x83] sm:$0xff]  ;;  %v4130_v16 = vpop.f32.mrf.mxu1 }
 0x5a8   :  { %v4693_v55 = vmax.f32 %v4675_v17, %v4684_v29  ;;  %v4658_v14 = vld [vmem:[#allocation4 + $0x81] sm:$0xff]  ;;  %v4157_v6 = vadd.f32 %v4130_v16, %v3755_v54 }
 0x5a9   :  { %v4667_v30 = vmax.f32 %v4469_v7, %v4658_v14  ;;  %v9771_v1 = vld [vmem:[%s12939_s5 + $0x54] sm:$0xf]  ;;  %v8733_v54 = vld [vmem:[%s12939_s5 + $0x30] sm:$0xf] }
 0x5aa   :  { %v4702_v21 = vmax.f32 %v4666_v49, %v4693_v55 }
 0x5ac   :  { %v4440_v34 = vpop.f32.mrf.mxu3  ;;  %v4711_v18 = vmax.f32 %v4702_v21, 0.0 }
 0x5ad   :  { %v11493_v12 = vadd.f32 %v4440_v34, %v4154_v53 }
 0x5ae   :  { %v4676_v38 = vld [vmem:[#allocation4 + $0x8a] sm:$0xff] }
 0x5af   :  { %v4685_v60 = vld [vmem:[#allocation4 + $0x8b] sm:$0xff]  ;;  %4496 = vst [vmem:[#allocation4 + $0x98] sm:$0xff] %v11493_v12  ;;  %v4132_v43 = vpop.f32.mrf.mxu1 }
 0x5b0   :  { %v4694_v11 = vmax.f32 %v4676_v38, %v4685_v60  ;;  %v4158_v20 = vadd.f32 %v4132_v43, %v3804_v24  ;;  %v4659_v35 = vld [vmem:[#allocation4 + $0x89] sm:$0xff] }
 0x5b1   :  { %v4668_v51 = vmax.f32 %v11482_v52, %v4659_v35  ;;  %v8751_v35 = vld [vmem:[%s12939_s5 + $0x58] sm:$0xf0] }
 0x5b2   :  { %v4703_v32 = vmax.f32 %v4667_v30, %v4694_v11  ;;  %4182 = vst [vmem:[#allocation4 + $0xb8] sm:$0x3] %v4158_v20 }
 0x5b4   :  { %v4712_v61 = vmax.f32 %v4703_v32, 0.0  ;;  %v4443_v25 = vpop.f32.mrf.mxu3 }
 0x5b5   :  { %v4473_v19 = vadd.f32 %v4443_v25, %v4155_v22  ;;  %v9775_v22 = vld [vmem:[%s12939_s5 + $0x74] sm:$0xf]  ;;  %v9776_v25 = vld [vmem:[%s12939_s5 + $0x74] sm:$0xf0] }
 0x5b6   :  { %v4724_v8 = vpack.c.bf16 %v4712_v61, %v4711_v18  ;;  %v4677_v7 = vld [vmem:[#allocation4 + $0x92] sm:$0xff]  ;;  %v8765_v18 = vld [vmem:[%s12939_s5 + $0x70] sm:$0xf] }
 0x5b7   :  { %4497 = vst [vmem:[#allocation4 + $0xa0] sm:$0xff] %v4473_v19  ;;  %v4686_v23 = vld [vmem:[#allocation4 + $0x93] sm:$0xff]  ;;  %v8766_v58 = vor.u32 %v9776_v25, %v8765_v18 }
 0x5b8   :  { %v4695_v39 = vmax.f32 %v4677_v7, %v4686_v23  ;;  %v4660_v40 = vld [vmem:[#allocation4 + $0x91] sm:$0xff] }
 0x5b9   :  { %v4669_v9 = vmax.f32 %v4471_v31, %v4660_v40  ;;  %v4206_v50 = vld [vmem:[#allocation4 + $0xb8] sm:$0x3]  ;;  %4925 = vmatpush.bf16.msra.mxu0 %v8766_v58  ;;  %v8837_v58 = vld [vmem:[%s12939_s5 + $0xc0] sm:$0xf] }
 0x5ba   :  { %v4704_v59 = vmax.f32 %v4668_v51, %v4695_v39  ;;  %v9772_v39 = vld [vmem:[%s12939_s5 + $0x54] sm:$0xf0]  ;;  %v8743_v51 = vld [vmem:[%s12939_s5 + $0x48] sm:$0xf0] }
 0x5bc   :  { %v4445_v5 = vpop.f32.mrf.mxu3  ;;  %v4713_v26 = vmax.f32 %v4704_v59, 0.0 }
 0x5bd   :  { %v4474_v41 = vadd.f32 %v4445_v5, %v4156_v0  ;;  %v8749_v0 = vld [vmem:[%s12939_s5 + $0x50] sm:$0xf]  ;;  %v8754_v5 = vor.u32 %v9771_v1, %v8751_v35  ;;  %v9788_v35 = vld [vmem:[%s12939_s5 + $0xb4] sm:$0xf0] }
 0x5be   :  { %v4678_v42 = vld [vmem:[#allocation4 + $0x9a] sm:$0xff]  ;;  %v8750_v40 = vor.u32 %v9772_v39, %v8749_v0  ;;  %v9787_v39 = vld [vmem:[%s12939_s5 + $0xb4] sm:$0xf] }
 0x5bf   :  { %v4687_v56 = vld [vmem:[#allocation4 + $0x9b] sm:$0xff]  ;;  %4498 = vst [vmem:[#allocation4 + $0xa8] sm:$0xff] %v4474_v41  ;;  %v9769_v41 = vld [vmem:[%s12939_s5 + $0x44] sm:$0xf] }
 0x5c0   :  { %v4696_v2 = vmax.f32 %v4678_v42, %v4687_v56  ;;  %v4661_v52 = vld [vmem:[#allocation4 + $0x99] sm:$0xff]  ;;  %v8741_v42 = vld [vmem:[%s12939_s5 + $0x40] sm:$0xf] }
 0x5c1   :  { %v4670_v16 = vmax.f32 %v11493_v12, %v4661_v52  ;;  %v9755_v12 = vld [vmem:[%s12942_s8] sm:$0xff]  ;;  %v9770_v56 = vld [vmem:[%s12939_s5 + $0x44] sm:$0xf0]  ;;  %v8829_v1 = vld [vmem:[%s12939_s5 + $0xb0] sm:$0xf] }
 0x5c2   :  { %v4705_v48 = vmax.f32 %v4669_v9, %v4696_v2  ;;  %v8746_v9 = vor.u32 %v9769_v41, %v8743_v51  ;;  %v9756_v2 = vld [vmem:[%s12942_s8 + $0x8] sm:$0xff]  ;;  %v8742_v59 = vor.u32 %v9770_v56, %v8741_v42  ;;  %v9765_v52 = vld [vmem:[%s12939_s5 + $0x24] sm:$0xf]  ;;  %v8821_v42 = vld [vmem:[%s12939_s5 + $0xa0] sm:$0xf] }
 0x5c3   :  { %v9786_v56 = vld [vmem:[%s12939_s5 + $0xa4] sm:$0xf0] }
 0x5c4   :  { %v4714_v44 = vmax.f32 %v4705_v48, 0.0  ;;  %v4448_v4 = vpop.f32.mrf.mxu3  ;;  %v9768_v48 = vld [vmem:[%s12939_s5 + $0x34] sm:$0xf0] }
 0x5c5   :  { %v4475_v63 = vadd.f32 %v4448_v4, %v4157_v6  ;;  %v8861_v6 = vld [vmem:[%s12939_s5 + $0xf0] sm:$0xf]  ;;  %v8863_v4 = vld [vmem:[%s12939_s5 + $0xf8] sm:$0xf0] }
 0x5c6   :  { %v4725_v28 = vpack.c.bf16 %v4714_v44, %v4713_v26  ;;  %v4679_v45 = vld [vmem:[#allocation4 + $0xa2] sm:$0xff] }
 0x5c7   :  { %4499 = vst [vmem:[#allocation4 + $0xb0] sm:$0xff] %v4475_v63  ;;  %v4688_v37 = vld [vmem:[#allocation4 + $0xa3] sm:$0xff]  ;;  %v8738_v63 = vor.u32 %v9767_v27, %v8735_v62  ;;  %v8822_v27 = vor.u32 %v9786_v56, %v8821_v42  ;;  %v9809_v42 = vld [vmem:[%s12939_s5 + $0x144] sm:$0xf]  ;;  %v8935_v56 = vld [vmem:[%s12939_s5 + $0x148] sm:$0xf0] }
 0x5c8   :  { %v4654_v10 = vld [vmem:[#allocation4 + $0xa8] sm:$0x7]  ;;  %v4697_v31 = vmax.f32 %v4679_v45, %v4688_v37  ;;  %v9795_v44 = vld [vmem:[%s12939_s5 + $0xf4] sm:$0xf]  ;;  %v8734_v37 = vor.u32 %v9768_v48, %v8733_v54  ;;  %v8813_v54 = vld [vmem:[%s12939_s5 + $0x90] sm:$0xf] }
 0x5c9   :  { %v4663_v47 = vld [vmem:[#allocation4 + $0xa9] sm:$0x7]  ;;  %v4662_v29 = vld [vmem:[#allocation4 + $0xa1] sm:$0xff]  ;;  %v8866_v45 = vor.u32 %v9795_v44, %v8863_v4 }
 0x5ca   :  { %v4672_v55 = vmax.f32 %v4654_v10, %v4663_v47  ;;  %v4671_v49 = vmax.f32 %v4473_v19, %v4662_v29  ;;  %v4706_v60 = vmax.f32 %v4670_v16, %v4697_v31  ;;  %v8757_v19 = vld [vmem:[%s12939_s5 + $0x60] sm:$0xf]  ;;  %v9796_v26 = vld [vmem:[%s12939_s5 + $0xf4] sm:$0xf0]  ;;  %v9766_v10 = vld [vmem:[%s12939_s5 + $0x24] sm:$0xf0] }
 0x5cb   :  { %v8717_v29 = vld [vmem:[%s12939_s5 + $0x10] sm:$0xf]  ;;  %v8719_v16 = vld [vmem:[%s12939_s5 + $0x18] sm:$0xf0]  ;;  %v9784_v48 = vld [vmem:[%s12939_s5 + $0x94] sm:$0xf0] }
 0x5cc   :  { %v4450_v46 = vpop.f32.mrf.mxu3  ;;  %v4715_v33 = vmax.f32 %v4706_v60, 0.0  ;;  %v9793_v60 = vld [vmem:[%s12939_s5 + $0xe4] sm:$0xf]  ;;  %v8814_v44 = vor.u32 %v9784_v48, %v8813_v54  ;;  %v9807_v54 = vld [vmem:[%s12939_s5 + $0x134] sm:$0xf] }
 0x5cd   :  { %v4476_v17 = vadd.f32 %v4450_v46, %v4206_v50  ;;  %v8727_v50 = vld [vmem:[%s12939_s5 + $0x28] sm:$0xf0]  ;;  %v8725_v46 = vld [vmem:[%s12939_s5 + $0x20] sm:$0xf] }
 0x5ce   :  { %v4681_v57 = vld [vmem:[#allocation4 + $0xb2] sm:$0x7]  ;;  %v4680_v53 = vld [vmem:[#allocation4 + $0xaa] sm:$0xff]  ;;  %v8730_v47 = vor.u32 %v9765_v52, %v8727_v50  ;;  %v8726_v31 = vor.u32 %v9766_v10, %v8725_v46  ;;  %v8807_v46 = vld [vmem:[%s12939_s5 + $0x88] sm:$0xf0] }
 0x5cf   :  { %v4690_v3 = vld [vmem:[#allocation4 + $0xb3] sm:$0x7]  ;;  %4500 = vst [vmem:[#allocation4 + $0xb8] sm:$0x3] %v4476_v17  ;;  %v4689_v14 = vld [vmem:[#allocation4 + $0xab] sm:$0xff] }
 0x5d0   :  { %v4699_v34 = vmax.f32 %v4681_v57, %v4690_v3  ;;  %v4698_v38 = vmax.f32 %v4680_v53, %v4689_v14  ;;  %v4722_v17 = vld [vmem:[%s12942_s8 + $0x10] sm:$0xf]  ;;  %v9764_v57 = vld [vmem:[%s12939_s5 + $0x14] sm:$0xf0]  ;;  %v9763_v3 = vld [vmem:[%s12939_s5 + $0x14] sm:$0xf] }
 0x5d1   :  { %v8853_v53 = vld [vmem:[%s12939_s5 + $0xe0] sm:$0xf]  ;;  %v8718_v14 = vor.u32 %v9764_v57, %v8717_v29  ;;  %v9781_v52 = vld [vmem:[%s12939_s5 + $0x84] sm:$0xf] }
 0x5d2   :  { %v4708_v30 = vmax.f32 %v4672_v55, %v4699_v34  ;;  %v4707_v11 = vmax.f32 %v4671_v49, %v4698_v38  ;;  %v9794_v55 = vld [vmem:[%s12939_s5 + $0xe4] sm:$0xf0]  ;;  %v4737_v34 = vunpack.c.l.b16 %v4722_v17  ;;  %v8722_v49 = vor.u32 %v9763_v3, %v8719_v16 }
 0x5d3   :  { %v8854_v38 = vor.u32 %v9794_v55, %v8853_v53  ;;  %v8810_v10 = vor.u32 %v9781_v52, %v8807_v46  ;;  %v9053_v46 = vld [vmem:[%s12939_s5 + $0x1f0] sm:$0xf] }
 0x5d4   :  { %v4717_v21 = vmax.f32 %v4708_v30, 0.0  ;;  %v4716_v24 = vmax.f32 %v4707_v11, 0.0  ;;  %v8855_v30 = vld [vmem:[%s12939_s5 + $0xe8] sm:$0xf0]  ;;  %v8709_v11 = vld [vmem:[%s12939_s5] sm:$0xf]  ;;  %v4740_v25 = vpack.c.b16 %v4737_v34, %v4737_v34 }
 0x5d6   :  { %v4727_v43 = vpack.c.bf16 %v4717_v21, %v4717_v21  ;;  %v4726_v32 = vpack.c.bf16 %v4716_v24, %v4715_v33  ;;  %v8858_v21 = vor.u32 %v9793_v60, %v8855_v30  ;;  %v9762_v33 = vld [vmem:[%s12939_s5 + $0x4] sm:$0xf0]  ;;  %v9761_v24 = vld [vmem:[%s12939_s5 + $0x4] sm:$0xf] }
 0x5d8   :  { %v4751_v20 = vand.u32 %v4727_v43, %v11453_v15  ;;  %v8767_v15 = vld [vmem:[%s12939_s5 + $0x78] sm:$0xf0]  ;;  %v8711_v43 = vld [vmem:[%s12939_s5 + $0x8] sm:$0xf0] }
 0x5d9   :  { %v8770_v61 = vor.u32 %v9775_v22, %v8767_v15  ;;  %v8714_v15 = vor.u32 %v9761_v24, %v8711_v43  ;;  %v8957_v24 = vld [vmem:[%s12939_s5 + $0x170] sm:$0xf]  ;;  %v9816_v43 = vld [vmem:[%s12939_s5 + $0x174] sm:$0xf0] }
 0x5da   :  { %4756 = vmatpush.bf16.msrb.mxu2 %v4751_v20  ;;  %v9792_v20 = vld [vmem:[%s12939_s5 + $0xd4] sm:$0xf0] }
 0x5db   :  { %4958 = vmatpush.bf16.msra.mxu1 %v8770_v61  ;;  %v8847_v61 = vld [vmem:[%s12939_s5 + $0xd8] sm:$0xf0] }
 0x5de   :  { %4757 = vmatpush.bf16.msrb.mxu2 %v4726_v32  ;;  %v8845_v32 = vld [vmem:[%s12939_s5 + $0xd0] sm:$0xf] }
 0x5df   :  { %v8846_v18 = vor.u32 %v9792_v20, %v8845_v32  ;;  %v9815_v32 = vld [vmem:[%s12939_s5 + $0x174] sm:$0xf] }
 0x5e2   :  { %4758 = vmatpush.bf16.msrb.mxu2 %v4725_v28  ;;  %v8862_v28 = vor.u32 %v9796_v26, %v8861_v6  ;;  %v9783_v6 = vld [vmem:[%s12939_s5 + $0x94] sm:$0xf]  ;;  %v8815_v26 = vld [vmem:[%s12939_s5 + $0x98] sm:$0xf0] }
 0x5e4   :  { %5200 = vmatpush.bf16.msra.mxu3 %v8862_v28 }
 0x5e6   :  { %4759 = vmatpush.bf16.msrb.mxu2 %v4724_v8  ;;  %v9774_v8 = vld [vmem:[%s12939_s5 + $0x64] sm:$0xf0] }
 0x5e7   :  { %v8758_v23 = vor.u32 %v9774_v8, %v8757_v19  ;;  %v9790_v19 = vld [vmem:[%s12939_s5 + $0xc4] sm:$0xf0]  ;;  %v9789_v8 = vld [vmem:[%s12939_s5 + $0xc4] sm:$0xf] }
 0x5e8   :  { %5201 = vmatpush.bf16.msra.mxu3 %v8854_v38 }
 0x5e9   :  { %4926 = vmatpush.bf16.msra.mxu0 %v8758_v23  ;;  %v8839_v23 = vld [vmem:[%s12939_s5 + $0xc8] sm:$0xf0] }
 0x5ea   :  { %4760 = vmatpush.bf16.msrb.mxu2 %v11490_v36  ;;  %v9773_v36 = vld [vmem:[%s12939_s5 + $0x64] sm:$0xf]  ;;  %v8842_v0 = vor.u32 %v9789_v8, %v8839_v23  ;;  %v9812_v8 = vld [vmem:[%s12939_s5 + $0x154] sm:$0xf0]  ;;  %v8943_v23 = vld [vmem:[%s12939_s5 + $0x158] sm:$0xf0] }
 0x5eb   :  { %v8762_v7 = vor.u32 %v9773_v36, %v8759_v13  ;;  %v8710_v36 = vor.u32 %v9762_v33, %v8709_v11 }
 0x5ec   :  { %5202 = vmatpush.bf16.msra.mxu3 %v8846_v18  ;;  %v8949_v18 = vld [vmem:[%s12939_s5 + $0x160] sm:$0xf] }
 0x5ed   :  { %8688 = vmatmul.msk.bf16.vlgmr.msrb.gmra.mxu2 %vm4596_vm13, %v9755_v12  ;;  %4959 = vmatpush.bf16.msra.mxu1 %v8762_v7  ;;  %v9791_v12 = vld [vmem:[%s12939_s5 + $0xd4] sm:$0xf]  ;;  %v8838_v7 = vor.u32 %v9790_v19, %v8837_v58  ;;  %v8941_v58 = vld [vmem:[%s12939_s5 + $0x150] sm:$0xf] }
 0x5ee   :  { %4927 = vmatpush.bf16.msra.mxu0 %v8750_v40  ;;  %5233 = vmatpush.bf16.msra.mxu2 %v8866_v45  ;;  %v8850_v13 = vor.u32 %v9791_v12, %v8847_v61  ;;  %v8830_v40 = vor.u32 %v9788_v35, %v8829_v1  ;;  %v8805_v45 = vld [vmem:[%s12939_s5 + $0x80] sm:$0xf]  ;;  %v8958_v12 = vor.u32 %v9816_v43, %v8957_v24  ;;  %v9814_v61 = vld [vmem:[%s12939_s5 + $0x164] sm:$0xf0] }
 0x5ef   :  { %v8942_v1 = vor.u32 %v9812_v8, %v8941_v58  ;;  %v9039_v58 = vld [vmem:[%s12939_s5 + $0x1d8] sm:$0xf0] }
 0x5f0   :  { %5203 = vmatpush.bf16.msra.mxu3 %v8838_v7  ;;  %v9811_v7 = vld [vmem:[%s12939_s5 + $0x154] sm:$0xf] }
 0x5f1   :  { %4960 = vmatpush.bf16.msra.mxu1 %v8754_v5  ;;  %v8831_v5 = vld [vmem:[%s12939_s5 + $0xb8] sm:$0xf0] }
 0x5f2   :  { %4928 = vmatpush.bf16.msra.mxu0 %v8742_v59  ;;  %5234 = vmatpush.bf16.msra.mxu2 %v8858_v21  ;;  %v8834_v51 = vor.u32 %v9787_v39, %v8831_v5  ;;  %v8823_v59 = vld [vmem:[%s12939_s5 + $0xa8] sm:$0xf0]  ;;  %v9810_v39 = vld [vmem:[%s12939_s5 + $0x144] sm:$0xf0]  ;;  %v8946_v5 = vor.u32 %v9811_v7, %v8943_v23 }
 0x5f4   :  { %5204 = vmatpush.bf16.msra.mxu3 %v8830_v40 }
 0x5f5   :  { %4961 = vmatpush.bf16.msra.mxu1 %v8746_v9 }
 0x5f6   :  { %4929 = vmatpush.bf16.msra.mxu0 %v8734_v37  ;;  %5235 = vmatpush.bf16.msra.mxu2 %v8850_v13  ;;  %v9782_v37 = vld [vmem:[%s12939_s5 + $0x84] sm:$0xf0]  ;;  %v8951_v13 = vld [vmem:[%s12939_s5 + $0x168] sm:$0xf0] }
 0x5f7   :  { %v8806_v50 = vor.u32 %v9782_v37, %v8805_v45  ;;  %v9806_v45 = vld [vmem:[%s12939_s5 + $0x124] sm:$0xf0]  ;;  %v9805_v37 = vld [vmem:[%s12939_s5 + $0x124] sm:$0xf] }
 0x5f8   :  { %5205 = vmatpush.bf16.msra.mxu3 %v8822_v27  ;;  %v8925_v27 = vld [vmem:[%s12939_s5 + $0x130] sm:$0xf] }
 0x5f9   :  { %4962 = vmatpush.bf16.msra.mxu1 %v8738_v63  ;;  %v8818_v63 = vor.u32 %v9783_v6, %v8815_v26 }
 0x5fa   :  { %4930 = vmatpush.bf16.msra.mxu0 %v8726_v31  ;;  %5236 = vmatpush.bf16.msra.mxu2 %v8842_v0  ;;  %v8933_v0 = vld [vmem:[%s12939_s5 + $0x140] sm:$0xf] }
 0x5fc   :  { %5206 = vmatpush.bf16.msra.mxu3 %v8814_v44  ;;  %v8927_v44 = vld [vmem:[%s12939_s5 + $0x138] sm:$0xf0] }
 0x5fd   :  { %8689 = vmatmul.msk.bf16.gmra.mxu2 %vm4596_vm13, %v9756_v2  ;;  %4963 = vmatpush.bf16.msra.mxu1 %v8730_v47  ;;  %v9785_v2 = vld [vmem:[%s12939_s5 + $0xa4] sm:$0xf] }
 0x5fe   :  { %4931 = vmatpush.bf16.msra.mxu0 %v8718_v14  ;;  %5237 = vmatpush.bf16.msra.mxu2 %v8834_v51  ;;  %v8826_v62 = vor.u32 %v9785_v2, %v8823_v59  ;;  %v8934_v51 = vor.u32 %v9810_v39, %v8933_v0  ;;  %v8938_v59 = vor.u32 %v9809_v42, %v8935_v56  ;;  %v9830_v0 = vld [vmem:[%s12939_s5 + $0x1c4] sm:$0xf0] }
 0x600   :  { %5207 = vmatpush.bf16.msra.mxu3 %v8806_v50  ;;  %v8919_v50 = vld [vmem:[%s12939_s5 + $0x128] sm:$0xf0] }
 0x601   :  { %4964 = vmatpush.bf16.msra.mxu1 %v8722_v49 }
 0x602   :  { %4932 = vmatpush.bf16.msra.mxu0 %v8710_v36  ;;  %5238 = vmatpush.bf16.msra.mxu2 %v8826_v62  ;;  %v9813_v36 = vld [vmem:[%s12939_s5 + $0x164] sm:$0xf]  ;;  %v9808_v62 = vld [vmem:[%s12939_s5 + $0x134] sm:$0xf0] }
 0x603   :  { %v8954_v19 = vor.u32 %v9813_v36, %v8951_v13  ;;  %v8926_v26 = vor.u32 %v9808_v62, %v8925_v27  ;;  %v9831_v13 = vld [vmem:[%s12939_s5 + $0x1d4] sm:$0xf]  ;;  %v9023_v27 = vld [vmem:[%s12939_s5 + $0x1b8] sm:$0xf0] }
 0x605   :  { %4965 = vmatpush.bf16.msra.mxu1 %v8714_v15 }
 0x606   :  { %5239 = vmatpush.bf16.msra.mxu2 %v8818_v63  ;;  %5463 = vmatpush.bf16.msrb.mxu0 %v8958_v12  ;;  %v8930_v63 = vor.u32 %v9807_v54, %v8927_v44  ;;  %v9801_v12 = vld [vmem:[%s12939_s5 + $0x104] sm:$0xf] }
 0x607   :  { %v9825_v44 = vld [vmem:[%s12939_s5 + $0x1a4] sm:$0xf] }
 0x608   :  { %v4622_v22 = vpop.f32.mrf.mxu2 }
 0x60a   :  { %5240 = vmatpush.bf16.msra.mxu2 %v8810_v10  ;;  %v9836_v10 = vld [vmem:[%s12939_s5 + $0x1f4] sm:$0xf0] }
 0x60d   :  { %8690 = vmatmul.msk.bf16.gmra.mxu2 %vm4596_vm13, %v4740_v25  ;;  %v8950_v25 = vor.u32 %v9814_v61, %v8949_v18  ;;  %v9037_v18 = vld [vmem:[%s12939_s5 + $0x1d0] sm:$0xf]  ;;  %v9832_v61 = vld [vmem:[%s12939_s5 + $0x1d4] sm:$0xf0] }
 0x60e   :  { %v9038_v23 = vor.u32 %v9832_v61, %v9037_v18 }
 0x60f   :  { %5464 = vmatpush.bf16.msrb.mxu0 %v8950_v25 }
 0x610   :  { %v4624_v41 = vpop.f32.mrf.mxu2 }
 0x611   :  { %v9941_v9 = vpack.c.bf16 %v4624_v41, %v4622_v22  ;;  %v8959_v22 = vld [vmem:[%s12939_s5 + $0x178] sm:$0xf0] }
 0x612   :  { %v8962_v15 = vor.u32 %v9815_v32, %v8959_v22 }
 0x613   :  { %9942 = vst [vmem:[#allocation5] sm:$0xff] %v9941_v9   ;;  %5465 = vmatpush.bf16.msrb.mxu0 %v8942_v1  ;;  %v9042_v1 = vor.u32 %v9831_v13, %v9039_v58 }
 0x614   :  { %5496 = vmatpush.bf16.msrb.mxu1 %v8962_v15  ;;  %v8903_v15 = vld [vmem:[%s12939_s5 + $0x108] sm:$0xf0] }
 0x615   :  { %v8906_v7 = vor.u32 %v9801_v12, %v8903_v15 }
 0x617   :  { %5466 = vmatpush.bf16.msrb.mxu0 %v8934_v51 }
 0x618   :  { %v4627_v4 = vpop.f32.mrf.mxu2  ;;  %5497 = vmatpush.bf16.msrb.mxu1 %v8954_v19 }
 0x61a   :  { %v9757_v28 = vld [vmem:[#allocation5] sm:$0xff] }
 0x61b   :  { %4933 = vmatmul.bf16.vlgmr.msra.gmra.mxu0 %v9757_v28  ;;  %4966 = vmatmul.bf16.vlgmr.msra.gmra.mxu1 %v9757_v28  ;;  %v9777_v31 = vld [vmem:[#allocation5] sm:$0xff] }
 0x61c   :  { %v5079_v29 = vshll.u32 %v9777_v31, 16  ;;  %v5077_v3 = vshrl.u32 %v9777_v31, 16  ;;  %5498 = vmatpush.bf16.msrb.mxu1 %v8946_v5  ;;  %5467 = vmatpush.bf16.msrb.mxu0 %v8926_v26  ;;  %v8917_v28 = vld [vmem:[%s12939_s5 + $0x120] sm:$0xf]  ;;  %v9054_v31 = vor.u32 %v9836_v10, %v9053_v46  ;;  %v9824_v46 = vld [vmem:[%s12939_s5 + $0x194] sm:$0xf0] }
 0x61d   :  { %v8918_v52 = vor.u32 %v9806_v45, %v8917_v28 }
 0x61e   :  { %v5081_v16 = vrot.slane %v5079_v29, 1  ;;  %v9055_v29 = vld [vmem:[%s12939_s5 + $0x1f8] sm:$0xf0]  ;;  %5726 = vmatpush.bf16.msrb.mxu3 %v9054_v31 }
 0x620   :  { %v4629_v47 = vpop.f32.mrf.mxu2  ;;  %v5082_v14 = vor.u32 %v5081_v16, %v5077_v3  ;;  %5499 = vmatpush.bf16.msrb.mxu1 %v8938_v59  ;;  %5468 = vmatpush.bf16.msrb.mxu0 %v8918_v52  ;;  %v9804_v16 = vld [vmem:[%s12939_s5 + $0x114] sm:$0xf0]  ;;  %v9827_v59 = vld [vmem:[%s12939_s5 + $0x1b4] sm:$0xf] }
 0x621   :  { %v9946_v17 = vpack.c.bf16 %v4629_v47, %v4627_v4  ;;  %v8922_v47 = vor.u32 %v9805_v37, %v8919_v50  ;;  %v9026_v54 = vor.u32 %v9827_v59, %v9023_v27  ;;  %v9005_v50 = vld [vmem:[%s12939_s5 + $0x190] sm:$0xf]  ;;  %v9857_v59 = vld [vmem:[%s12939_s5 + $0x274] sm:$0xf0]  ;;  %v9856_v27 = vld [vmem:[%s12939_s5 + $0x274] sm:$0xf] }
 0x623   :  { %9958 = vst [vmem:[#allocation5 + $0x8] sm:$0xff] %v9946_v17   ;;  %v9835_v17 = vld [vmem:[%s12939_s5 + $0x1f4] sm:$0xf] }
 0x624   :  { %5500 = vmatpush.bf16.msrb.mxu1 %v8930_v63  ;;  %v9058_v3 = vor.u32 %v9835_v17, %v9055_v29  ;;  %v9006_v17 = vor.u32 %v9824_v46, %v9005_v50  ;;  %v9823_v29 = vld [vmem:[%s12939_s5 + $0x194] sm:$0xf] }
 0x625   :  { %v9852_v46 = vld [vmem:[%s12939_s5 + $0x254] sm:$0xf] }
 0x626   :  { %5759 = vmatpush.bf16.msrb.mxu2 %v9058_v3 }
 0x628   :  { %v4632_v57 = vpop.f32.mrf.mxu2  ;;  %5501 = vmatpush.bf16.msrb.mxu1 %v8922_v47 }
 0x629   :  { %v4640_v53 = vpack.c.bf16 %v4632_v57, %v4632_v57  ;;  %v8909_v57 = vld [vmem:[%s12939_s5 + $0x110] sm:$0xf] }
 0x62a   :  { %v9758_v55 = vld [vmem:[#allocation5 + $0x8] sm:$0xff] }
 0x62b   :  { %v9778_v34 = vld [vmem:[#allocation5 + $0x8] sm:$0xff]  ;;  %4645 = vst [vmem:[#allocation5 + $0x10] sm:$0xf] %v4640_v53  ;;  %4938 = vmatmul.bf16.gmra.mxu0 %v9758_v55  ;;  %4971 = vmatmul.bf16.gmra.mxu1 %v9758_v55  ;;  %v9803_v53 = vld [vmem:[%s12939_s5 + $0x114] sm:$0xf] }
 0x62c   :  { %v5084_v49 = vshll.u32 %v9778_v34, 16  ;;  %v5088_v11 = vshrl.u32 %v9778_v34, 16  ;;  %v8911_v55 = vld [vmem:[%s12939_s5 + $0x118] sm:$0xf0] }
 0x62d   :  { %v8914_v32 = vor.u32 %v9803_v53, %v8911_v55  ;;  %v8997_v53 = vld [vmem:[%s12939_s5 + $0x180] sm:$0xf]  ;;  %v9822_v55 = vld [vmem:[%s12939_s5 + $0x184] sm:$0xf0] }
 0x62e   :  { %v5086_v38 = vrot.slane %v5084_v49, 1  ;;  %v9045_v49 = vld [vmem:[%s12939_s5 + $0x1e0] sm:$0xf] }
 0x62f   :  { %5502 = vmatpush.bf16.msrb.mxu1 %v8914_v32 }
 0x630   :  { %v4634_v60 = vpop.f32.mrf.mxu2  ;;  %v5087_v30 = vsel %vm1836_vm8, %v5082_v14, %v5086_v38  ;;  %v5090_v21 = vor.u32 %v5088_v11, %v5086_v38  ;;  %v8910_v14 = vor.u32 %v9804_v16, %v8909_v57  ;;  %v9834_v38 = vld [vmem:[%s12939_s5 + $0x1e4] sm:$0xf0]  ;;  %v9047_v11 = vld [vmem:[%s12939_s5 + $0x1e8] sm:$0xf0]  ;;  %v9007_v57 = vld [vmem:[%s12939_s5 + $0x198] sm:$0xf0] }
 0x631   :  { %5208 = vmatmul.bf16.vlgmr.msra.gmra.mxu3 %v5087_v30  ;;  %5241 = vmatmul.bf16.vlgmr.msra.gmra.mxu2 %v5087_v30  ;;  %v9833_v60 = vld [vmem:[%s12939_s5 + $0x1e4] sm:$0xf]  ;;  %v9046_v30 = vor.u32 %v9834_v38, %v9045_v49  ;;  %v9010_v49 = vor.u32 %v9823_v29, %v9007_v57  ;;  %v8998_v38 = vor.u32 %v9822_v55, %v8997_v53  ;;  %v9851_v29 = vld [vmem:[%s12939_s5 + $0x244] sm:$0xf0] }
 0x632   :  { %5469 = vmatpush.bf16.msrb.mxu0 %v8910_v14  ;;  %v9850_v57 = vld [vmem:[%s12939_s5 + $0x244] sm:$0xf] }
 0x633   :  { %5727 = vmatpush.bf16.msrb.mxu3 %v9046_v30  ;;  %5503 = vmatpush.bf16.msrb.mxu1 %v8906_v7  ;;  %v8999_v30 = vld [vmem:[%s12939_s5 + $0x188] sm:$0xf0] }
 0x637   :  { %5728 = vmatpush.bf16.msrb.mxu3 %v9038_v23 }
 0x670   :  { %v4762_v33 = vpop.f32.mrf.mxu2 }
 0x671   :  { %v4776_v20 = vpack.c.bf16 %v4762_v33, %v4762_v33  ;;  %v9802_v33 = vld [vmem:[%s12939_s5 + $0x104] sm:$0xf0] }
 0x673   :  { %4781 = vst [vmem:[#allocation5 + $0x14] sm:$0xf] %v4776_v20  ;;  %v9050_v20 = vor.u32 %v9833_v60, %v9047_v11  ;;  %v9821_v60 = vld [vmem:[%s12939_s5 + $0x184] sm:$0xf] }
 0x675   :  { %5760 = vmatpush.bf16.msrb.mxu2 %v9050_v20 }
 0x678   :  { %v4764_v35 = vpop.f32.mrf.mxu2 }
 0x679   :  { %5761 = vmatpush.bf16.msrb.mxu2 %v9042_v1 }
 0x67a   :  { %v9759_v40 = vld [vmem:[#allocation5 + $0x10] sm:$0xff] }
 0x67b   :  { %v11754_v41 = vld [vmem:[#allocation5 + $0x10] sm:$0xff]  ;;  %4943 = vmatmul.bf16.gmra.mxu0 %v9759_v40  ;;  %4976 = vmatmul.bf16.gmra.mxu1 %v9759_v40  ;;  %v9829_v40 = vld [vmem:[%s12939_s5 + $0x1c4] sm:$0xf] }
 0x67c   :  { %v5092_v9 = vshll.u32 %v11754_v41, 16  ;;  %v5096_v25 = vshrl.u32 %v11754_v41, 16  ;;  %v9031_v41 = vld [vmem:[%s12939_s5 + $0x1c8] sm:$0xf0]  ;;  %v11986_v53 = vld [vmem:[#allocation5 + $0x10] sm:$0xff] }
 0x67d   :  { %v9034_v56 = vor.u32 %v9829_v40, %v9031_v41  ;;  %v9818_v41 = vld [vmem:[#allocation5 + $0x8] sm:$0xff] }
 0x67e   :  { %v11763_v2 = vrot.slane %v5092_v9, 1  ;;  %v9021_v9 = vld [vmem:[%s12939_s5 + $0x1b0] sm:$0xf] }
 0x67f   :  { %5762 = vmatpush.bf16.msrb.mxu2 %v9034_v56 }
 0x680   :  { %v4767_v48 = vpop.f32.mrf.mxu2  ;;  %v5095_v6 = vsel %vm1836_vm8, %v5090_v21, %v11763_v2  ;;  %v8901_v21 = vld [vmem:[%s12939_s5 + $0x100] sm:$0xf]  ;;  %v5098_v19 = vor.u32 %v5096_v25, %v11763_v2  ;;  %v9828_v2 = vld [vmem:[%s12939_s5 + $0x1b4] sm:$0xf0] }
 0x681   :  { %v9951_v4 = vpack.c.bf16 %v4767_v48, %v4764_v35  ;;  %5213 = vmatmul.bf16.gmra.mxu3 %v5095_v6  ;;  %5246 = vmatmul.bf16.gmra.mxu2 %v5095_v6  ;;  %v8902_v22 = vor.u32 %v9802_v33, %v8901_v21  ;;  %v9029_v35 = vld [vmem:[%s12939_s5 + $0x1c0] sm:$0xf]  ;;  %v9022_v62 = vor.u32 %v9828_v2, %v9021_v9  ;;  %v9826_v6 = vld [vmem:[%s12939_s5 + $0x1a4] sm:$0xf0]  ;;  %v9797_v33 = vld [vmem:[#allocation5] sm:$0xf0] }
 0x682   :  { %v9030_v42 = vor.u32 %v9830_v0, %v9029_v35  ;;  %v9013_v48 = vld [vmem:[%s12939_s5 + $0x1a0] sm:$0xf]  ;;  %v9799_v0 = vld [vmem:[#allocation5 + $0x10] sm:$0xff]  ;;  %v5633_v9 = vrot.slane %v9818_v41, 3  ;;  %v9107_v41 = vld [vmem:[%s12939_s5 + $0x218] sm:$0xf0] }
 0x683   :  { %9959 = vst [vmem:[#allocation5 + $0x18] sm:$0xff] %v9951_v4   ;;  %5470 = vmatpush.bf16.msrb.mxu0 %v8902_v22  ;;  %v9015_v4 = vld [vmem:[%s12939_s5 + $0x1a8] sm:$0xf0]  ;;  %v9014_v45 = vor.u32 %v9826_v6, %v9013_v48  ;;  %5763 = vmatpush.bf16.msrb.mxu2 %v9026_v54  ;;  %v8885_v21 = vld [vmem:[#allocation5] sm:$0xe]  ;;  %v5372_v40 = vrot.slane %v9799_v0, 1 }
 0x684   :  { %5729 = vmatpush.bf16.msrb.mxu3 %v9030_v42  ;;  %v9018_v10 = vor.u32 %v9825_v44, %v9015_v4  ;;  %v8886_v32 = vor.u32 %v9797_v33, %v8885_v21  ;;  %v4811_v22 = vld [vmem:[%s12940_s6] sm:$0x3]  ;;  %v9153_v2 = vld [vmem:[%s12939_s5 + $0x270] sm:$0xf]  ;;  %v9155_v54 = vld [vmem:[%s12939_s5 + $0x278] sm:$0xf0] }
 0x685   :  { %v11922_v15 = vperm.slane %v4811_v22, 0  ;;  %v11924_v18 = vperm.slane %v4811_v22, 1  ;;  %v9158_v48 = vor.u32 %v9856_v27, %v9155_v54  ;;  %v9855_v44 = vld [vmem:[%s12939_s5 + $0x264] sm:$0xf0]  ;;  %v9854_v4 = vld [vmem:[%s12939_s5 + $0x264] sm:$0xf] }
 0x686   :  { %v5369_v20 = vrot.slane %v8886_v32, 1  ;;  %v9123_v21 = vld [vmem:[%s12939_s5 + $0x238] sm:$0xf0]  ;;  %v9846_v22 = vld [vmem:[%s12939_s5 + $0x224] sm:$0xf] }
 0x687   :  { %5764 = vmatpush.bf16.msrb.mxu2 %v9018_v10  ;;  %6061 = vmatpush.bf16.msra.mxu1 %v9158_v48  ;;  %v9139_v10 = vld [vmem:[%s12939_s5 + $0x258] sm:$0xf0]  ;;  %v9105_v0 = vld [vmem:[%s12939_s5 + $0x210] sm:$0xf]  ;;  %v9243_v54 = vld [vmem:[%s12939_s5 + $0x2e8] sm:$0xf0] }
 0x688   :  { %v4769_v34 = vpop.f32.mrf.mxu2  ;;  %5730 = vmatpush.bf16.msrb.mxu3 %v9022_v62  ;;  %v9154_v62 = vor.u32 %v9857_v59, %v9153_v2 }
 0x68a   :  { %v9760_v24 = vld [vmem:[#allocation5 + $0x18] sm:$0xff]  ;;  %6028 = vmatpush.bf16.msra.mxu0 %v9154_v62 }
 0x68b   :  { %v11833_v43 = vld [vmem:[#allocation5 + $0x18] sm:$0xff]  ;;  %4948 = vmatmul.bf16.gmra.mxu0 %v9760_v24  ;;  %4981 = vmatmul.bf16.gmra.mxu1 %v9760_v24  ;;  %v9002_v24 = vor.u32 %v9821_v60, %v8999_v30  ;;  %v9121_v60 = vld [vmem:[%s12939_s5 + $0x230] sm:$0xf] }
 0x68c   :  { %v5100_v36 = vshll.u32 %v11833_v43, 16  ;;  %5731 = vmatpush.bf16.msrb.mxu3 %v9014_v45  ;;  %v5104_v3 = vshrl.u32 %v11833_v43, 16  ;;  %5765 = vmatpush.bf16.msrb.mxu2 %v9010_v49  ;;  %v9798_v43 = vld [vmem:[#allocation5 + $0x8] sm:$0xff]  ;;  %v9137_v45 = vld [vmem:[%s12939_s5 + $0x250] sm:$0xf]  ;;  %v5635_v49 = vrot.slane %v11986_v53, 3 }
 0x68d   :  { %v5370_v12 = vrot.slane %v9798_v43, 1  ;;  %v9849_v30 = vld [vmem:[%s12939_s5 + $0x234] sm:$0xf0]  ;;  %v9219_v53 = vld [vmem:[%s12939_s5 + $0x2b8] sm:$0xf0] }
 0x68e   :  { %v5102_v8 = vrot.slane %v5100_v36, 1  ;;  %v5636_v32 = vsel %vm457_vm0, %v5633_v9, %v5635_v49  ;;  %v12054_v2 = vld [vmem:[#allocation5 + $0x18] sm:$0xff] }
 0x68f   :  { %v5371_v61 = vsel %vm967_vm4, %v5369_v20, %v5370_v12  ;;  %v5373_v42 = vsel %vm967_vm4, %v5370_v12, %v5372_v40  ;;  %v9113_v20 = vld [vmem:[%s12939_s5 + $0x220] sm:$0xf]  ;;  %v9847_v12 = vld [vmem:[%s12939_s5 + $0x224] sm:$0xf0] }
 0x690   :  { %v4772_v39 = vpop.f32.mrf.mxu2  ;;  %v5103_v5 = vsel %vm1836_vm8, %v5098_v19, %v5102_v8  ;;  %5732 = vmatpush.bf16.msrb.mxu3 %v9006_v17  ;;  %5766 = vmatpush.bf16.msrb.mxu2 %v9002_v24  ;;  %v9129_v17 = vld [vmem:[%s12939_s5 + $0x240] sm:$0xf]  ;;  %v9122_v24 = vor.u32 %v9849_v30, %v9121_v60  ;;  %v9217_v30 = vld [vmem:[%s12939_s5 + $0x2b0] sm:$0xf] }
 0x691   :  { %v9956_v51 = vpack.c.bf16 %v4772_v39, %v4769_v34  ;;  %5218 = vmatmul.bf16.gmra.mxu3 %v5103_v5  ;;  %5251 = vmatmul.bf16.gmra.mxu2 %v5103_v5  ;;  %v5106_v34 = vor.u32 %v5104_v3, %v5102_v8  ;;  %v8981_v39 = vld [vmem:[#allocation5] sm:$0x8]  ;;  %v9817_v5 = vld [vmem:[#allocation5] sm:$0xf0]  ;;  %v9131_v3 = vld [vmem:[%s12939_s5 + $0x248] sm:$0xf0]  ;;  %v9130_v55 = vor.u32 %v9851_v29, %v9129_v17 }
 0x692   :  { %v5637_v29 = vrot.slane %v12054_v2, 3 }
 0x693   :  { %9960 = vst [vmem:[#allocation5 + $0x20] sm:$0xff] %v9956_v51   ;;  %v8982_v51 = vor.u32 %v9817_v5, %v8981_v39  ;;  %v9845_v5 = vld [vmem:[%s12939_s5 + $0x214] sm:$0xf0] }
 0x694   :  { %5733 = vmatpush.bf16.msrb.mxu3 %v8998_v38  ;;  %v9106_v59 = vor.u32 %v9845_v5, %v9105_v0  ;;  %v9203_v0 = vld [vmem:[%s12939_s5 + $0x298] sm:$0xf0] }
 0x695   :  { %v5632_v56 = vrot.slane %v8982_v51, 3  ;;  %v9241_v51 = vld [vmem:[%s12939_s5 + $0x2e0] sm:$0xf] }
 0x697   :  { %v5634_v6 = vsel %vm457_vm0, %v5632_v56, %v5633_v9  ;;  %v9874_v56 = vld [vmem:[%s12939_s5 + $0x2e4] sm:$0xf] }
 0x698   :  { %v4774_v26 = vpop.f32.mrf.mxu2  ;;  %v4934_v36 = vpop.f32.mrf.mxu0  ;;  %v9246_v48 = vor.u32 %v9874_v56, %v9243_v54  ;;  %v9863_v56 = vld [vmem:[%s12939_s5 + $0x284] sm:$0xf0] }
 0x699   :  { %v4967_v13 = vpop.f32.mrf.mxu1  ;;  %v4935_v58 = vadd.f32 %v4934_v36, %v11922_v15  ;;  %v9145_v26 = vld [vmem:[%s12939_s5 + $0x260] sm:$0xf]  ;;  %v9115_v36 = vld [vmem:[%s12939_s5 + $0x228] sm:$0xf0] }
 0x69a   :  { %v4794_v63 = vld [vmem:[#allocation5 + $0x20] sm:$0x1]  ;;  %v4968_v19 = vadd.f32 %v4967_v13, %v11924_v18  ;;  %v9249_v13 = vld [vmem:[%s12939_s5 + $0x2f0] sm:$0xf] }
 0x69b   :  { %v5035_v28 = vld [vmem:[#allocation5 + $0x20] sm:$0x3]  ;;  %v4834_v37 = vunpack.c.l.b16 %v4794_v63  ;;  %v9146_v63 = vor.u32 %v9855_v44, %v9145_v26  ;;  %v9843_v26 = vld [vmem:[%s12939_s5 + $0x204] sm:$0xf0]  ;;  %v9842_v44 = vld [vmem:[%s12939_s5 + $0x204] sm:$0xf] }
 0x69c   :  { %v5070_v52 = vunpack.c.l.b16 %v5035_v28  ;;  %v9147_v28 = vld [vmem:[%s12939_s5 + $0x268] sm:$0xf0]  ;;  %v5328_v38 = vld [vmem:[#allocation5 + $0x20] sm:$0x3] }
 0x69d   :  { %v4839_v47 = vpack.c.b16 %v4834_v37, %v4834_v37  ;;  %v9853_v37 = vld [vmem:[%s12939_s5 + $0x254] sm:$0xf0]  ;;  %v9150_v50 = vor.u32 %v9854_v4, %v9147_v28  ;;  %6029 = vmatpush.bf16.msra.mxu0 %v9146_v63  ;;  %v5363_v33 = vunpack.c.l.b16 %v5328_v38  ;;  %v9099_v4 = vld [vmem:[%s12939_s5 + $0x208] sm:$0xf0]  ;;  %v9233_v63 = vld [vmem:[%s12939_s5 + $0x2d0] sm:$0xf]  ;;  %v5638_v38 = vsel %vm457_vm0, %v5635_v49, %v5637_v29 }
 0x69e   :  { %v5075_v31 = vpack.c.b16 %v5070_v52, %v5070_v52  ;;  %v11965_v52 = vld [vmem:[#allocation5 + $0x18] sm:$0xff]  ;;  %v5591_v60 = vld [vmem:[#allocation5 + $0x20] sm:$0xf] }
 0x69f   :  { %4953 = vmatmul.bf16.gmra.mxu0 %v4839_v47  ;;  %4986 = vmatmul.bf16.gmra.mxu1 %v4839_v47  ;;  %v9138_v47 = vor.u32 %v9853_v37, %v9137_v45  ;;  %v9873_v28 = vld [vmem:[%s12939_s5 + $0x2d4] sm:$0xf0]  ;;  %v9872_v37 = vld [vmem:[%s12939_s5 + $0x2d4] sm:$0xf]  ;;  %v5626_v49 = vunpack.c.l.b16 %v5591_v60 }
 0x6a0   :  { %v5108_v16 = vshll.u32 %v5075_v31, 16  ;;  %v5112_v25 = vshrl.u32 %v5075_v31, 16  ;;  %6062 = vmatpush.bf16.msra.mxu1 %v9150_v50  ;;  %v9142_v31 = vor.u32 %v9852_v46, %v9139_v10  ;;  %v9234_v45 = vor.u32 %v9873_v28, %v9233_v63  ;;  %v9235_v50 = vld [vmem:[%s12939_s5 + $0x2d8] sm:$0xf0]  ;;  %v12083_v46 = vpop.f32.mrf.mxu0 }
 0x6a1   :  { %6030 = vmatpush.bf16.msra.mxu0 %v9138_v47  ;;  %v12085_v10 = vpop.f32.mrf.mxu1 }
 0x6a2   :  { %v5110_v14 = vrot.slane %v5108_v16, 1  ;;  %v5374_v16 = vrot.slane %v11965_v52, 1  ;;  %v9870_v52 = vld [vmem:[%s12939_s5 + $0x2c4] sm:$0xf] }
 0x6a4   :  { %v5111_v11 = vsel %vm1836_vm8, %v5106_v34, %v5110_v14  ;;  %v5114_v8 = vor.u32 %v5112_v25, %v5110_v14  ;;  %6063 = vmatpush.bf16.msra.mxu1 %v9142_v31  ;;  %v9134_v34 = vor.u32 %v9850_v57, %v9131_v3  ;;  %v5375_v14 = vsel %vm967_vm4, %v5372_v40, %v5374_v16  ;;  %v9844_v40 = vld [vmem:[%s12939_s5 + $0x214] sm:$0xf]  ;;  %v9225_v3 = vld [vmem:[%s12939_s5 + $0x2c0] sm:$0xf] }
 0x6a5   :  { %5223 = vmatmul.bf16.gmra.mxu3 %v5111_v11  ;;  %5256 = vmatmul.bf16.gmra.mxu2 %v5111_v11  ;;  %v9848_v11 = vld [vmem:[%s12939_s5 + $0x234] sm:$0xf]  ;;  %v9114_v25 = vor.u32 %v9847_v12, %v9113_v20  ;;  %v9110_v27 = vor.u32 %v9844_v40, %v9107_v41  ;;  %v9102_v31 = vor.u32 %v9842_v44, %v9099_v4 }
 0x6a6   :  { %6031 = vmatpush.bf16.msra.mxu0 %v9130_v55  ;;  %v9126_v43 = vor.u32 %v9848_v11, %v9123_v21  ;;  %v9238_v57 = vor.u32 %v9872_v37, %v9235_v50  ;;  %v9871_v55 = vld [vmem:[%s12939_s5 + $0x2c4] sm:$0xf0]  ;;  %v9869_v11 = vld [vmem:[%s12939_s5 + $0x2b4] sm:$0xf0]  ;;  %v9868_v21 = vld [vmem:[%s12939_s5 + $0x2b4] sm:$0xf] }
 0x6a8   :  { %6064 = vmatpush.bf16.msra.mxu1 %v9134_v34  ;;  %v9226_v34 = vor.u32 %v9871_v55, %v9225_v3  ;;  %v4939_v20 = vpop.f32.mrf.mxu0 }
 0x6a9   :  { %v4972_v12 = vpop.f32.mrf.mxu1 }
 0x6aa   :  { %6032 = vmatpush.bf16.msra.mxu0 %v9122_v24  ;;  %v9222_v24 = vor.u32 %v9868_v21, %v9219_v53  ;;  %v4973_v60 = vadd.f32 %v4972_v12, %v11924_v18  ;;  %v9840_v12 = vld [vmem:[#allocation5 + $0x18] sm:$0xff] }
 0x6ac   :  { %6065 = vmatpush.bf16.msra.mxu1 %v9126_v43  ;;  %v9209_v43 = vld [vmem:[%s12939_s5 + $0x2a0] sm:$0xf] }
 0x6ae   :  { %6033 = vmatpush.bf16.msra.mxu0 %v9114_v25 }
 0x6af   :  { %5471 = vmatmul.bf16.vlgmr.msrb.gmra.mxu0 %v5371_v61  ;;  %5504 = vmatmul.bf16.vlgmr.msrb.gmra.mxu1 %v5371_v61  ;;  %v5368_v61 = vpack.c.b16 %v5363_v33, %v5363_v33  ;;  %v9218_v33 = vor.u32 %v9869_v11, %v9217_v30 }
 0x6b1   :  { %v12052_v9 = vrot.slane %v5368_v61, 1  ;;  %v9211_v61 = vld [vmem:[%s12939_s5 + $0x2a8] sm:$0xf0]  ;;  %v4974_v54 = vpop.f32.mrf.mxu1 }
 0x6b2   :  { %6034 = vmatpush.bf16.msra.mxu0 %v9106_v59  ;;  %v9862_v59 = vld [vmem:[%s12939_s5 + $0x284] sm:$0xf]  ;;  %v9339_v54 = vld [vmem:[%s12939_s5 + $0x368] sm:$0xf0] }
 0x6b3   :  { %v5377_v17 = vsel %vm967_vm4, %v5374_v16, %v12052_v9  ;;  %v9227_v16 = vld [vmem:[%s12939_s5 + $0x2c8] sm:$0xf0] }
 0x6b4   :  { %v5209_v7 = vpop.f32.mrf.mxu3  ;;  %v5242_v23 = vpop.f32.mrf.mxu2 }
 0x6b5   :  { %5228 = vmatmul.bf16.gmra.mxu3 %v5114_v8  ;;  %5261 = vmatmul.bf16.gmra.mxu2 %v5114_v8  ;;  %v11929_v1 = vadd.f32 %v5209_v7, %v4935_v58  ;;  %v11931_v35 = vadd.f32 %v5242_v23, %v4968_v19  ;;  %v9877_v58 = vld [vmem:[%s12939_s5 + $0x2f4] sm:$0xf0]  ;;  %v9118_v19 = vor.u32 %v9846_v22, %v9115_v36  ;;  %v9876_v7 = vld [vmem:[%s12939_s5 + $0x2f4] sm:$0xf]  ;;  %v9251_v23 = vld [vmem:[%s12939_s5 + $0x2f8] sm:$0xf0] }
 0x6b6   :  { %v9250_v8 = vor.u32 %v9877_v58, %v9249_v13  ;;  %v9254_v39 = vor.u32 %v9876_v7, %v9251_v23  ;;  %v9866_v22 = vld [vmem:[%s12939_s5 + $0x2a4] sm:$0xf]  ;;  %v5631_v36 = vpack.c.b16 %v5626_v49, %v5626_v49  ;;  %v9077_v13 = vld [vmem:[#allocation5] sm:$0x8]  ;;  %v9864_v23 = vld [vmem:[%s12939_s5 + $0x294] sm:$0xf] }
 0x6b7   :  { %6066 = vmatpush.bf16.msra.mxu1 %v9118_v19  ;;  %v9214_v58 = vor.u32 %v9866_v22, %v9211_v61  ;;  %v9201_v19 = vld [vmem:[%s12939_s5 + $0x290] sm:$0xf]  ;;  %v9837_v7 = vld [vmem:[#allocation5] sm:$0xf0] }
 0x6b8   :  { %6282 = vmatpush.bf16.msra.mxu3 %v9250_v8  ;;  %6315 = vmatpush.bf16.msra.mxu2 %v9254_v39  ;;  %v9865_v8 = vld [vmem:[%s12939_s5 + $0x294] sm:$0xf0]  ;;  %v9838_v39 = vld [vmem:[#allocation5 + $0x8] sm:$0xff]  ;;  %v5639_v40 = vrot.slane %v5631_v36, 3  ;;  %v9078_v41 = vor.u32 %v9837_v7, %v9077_v13  ;;  %v9896_v13 = vld [vmem:[%s12939_s5 + $0x374] sm:$0xf] }
 0x6b9   :  { %v9202_v5 = vor.u32 %v9865_v8, %v9201_v19  ;;  %v5911_v44 = vshll.u32 %v9838_v39, 16  ;;  %v9897_v36 = vld [vmem:[%s12939_s5 + $0x374] sm:$0xf0]  ;;  %v9347_v19 = vld [vmem:[%s12939_s5 + $0x378] sm:$0xf0]  ;;  %v9858_v8 = vld [vmem:[#allocation5 + $0x4] sm:$0xff] }
 0x6ba   :  { %v5640_v63 = vsel %vm457_vm0, %v5637_v29, %v5639_v40  ;;  %v9839_v29 = vld [vmem:[#allocation5 + $0x10] sm:$0xff]  ;;  %v5926_v7 = vshrl.u32 %v9840_v12, 16 }
 0x6bb   :  { %6067 = vmatpush.bf16.msra.mxu1 %v9110_v27  ;;  %v9195_v27 = vld [vmem:[%s12939_s5 + $0x288] sm:$0xf0]  ;;  %v5913_v50 = vrot.slane %v5911_v44, 4  ;;  %v9329_v44 = vld [vmem:[%s12939_s5 + $0x350] sm:$0xf] }
 0x6bc   :  { %6316 = vmatpush.bf16.msra.mxu2 %v9246_v48  ;;  %v5908_v48 = vshrl.u32 %v9838_v39, 16  ;;  %v9198_v4 = vor.u32 %v9862_v59, %v9195_v27  ;;  %v12162_v3 = vpop.f32.mrf.mxu3  ;;  %v12164_v55 = vpop.f32.mrf.mxu2  ;;  %v5928_v59 = vrot.slane %v5926_v7, 3 }
 0x6be   :  { %v5910_v37 = vrot.slane %v5908_v48, 3 }
 0x6bf   :  { %5476 = vmatmul.bf16.gmra.mxu0 %v5373_v42  ;;  %5509 = vmatmul.bf16.gmra.mxu1 %v5373_v42  ;;  %v9875_v42 = vld [vmem:[%s12939_s5 + $0x2e4] sm:$0xf0] }
 0x6c0   :  { %v9242_v62 = vor.u32 %v9875_v42, %v9241_v51  ;;  %6068 = vmatpush.bf16.msra.mxu1 %v9102_v31  ;;  %6317 = vmatpush.bf16.msra.mxu2 %v9238_v57  ;;  %v9206_v51 = vor.u32 %v9864_v23, %v9203_v0  ;;  %v9193_v42 = vld [vmem:[%s12939_s5 + $0x280] sm:$0xf]  ;;  %v5914_v57 = vor.u32 %v5913_v50, %v5910_v37  ;;  %v5929_v23 = vshll.u32 %v9840_v12, 16 }
 0x6c1   :  { %v9350_v0 = vor.u32 %v9896_v13, %v9347_v19  ;;  %v9888_v13 = vld [vmem:[%s12939_s5 + $0x334] sm:$0xf] }
 0x6c2   :  { %6283 = vmatpush.bf16.msra.mxu3 %v9242_v62  ;;  %v4941_v62 = vpop.f32.mrf.mxu0  ;;  %v5931_v27 = vrot.slane %v5929_v23, 4 }
 0x6c4   :  { %6578 = vmatpush.bf16.msrb.mxu1 %v9350_v0 }
 0x6c5   :  { %5734 = vmatmul.bf16.vlgmr.msrb.gmra.mxu3 %v5634_v6  ;;  %5767 = vmatmul.bf16.vlgmr.msrb.gmra.mxu2 %v5634_v6  ;;  %v9097_v6 = vld [vmem:[%s12939_s5 + $0x200] sm:$0xf] }
 0x6c6   :  { %v9098_v47 = vor.u32 %v9843_v26, %v9097_v6  ;;  %6284 = vmatpush.bf16.msra.mxu3 %v9234_v45  ;;  %v5900_v6 = vshrl.u32 %v9078_v41, 16  ;;  %v5903_v26 = vshll.u32 %v9078_v41, 16 }
 0x6c8   :  { %6035 = vmatpush.bf16.msra.mxu0 %v9098_v47  ;;  %v5902_v28 = vrot.slane %v5900_v6, 3  ;;  %v5905_v45 = vrot.slane %v5903_v26, 4  ;;  %v9093_v6 = vld [vmem:[#allocation5 + $0x20] sm:$0xf]  ;;  %v9841_v26 = vld [vmem:[#allocation5 + $0x20] sm:$0x10] }
 0x6ca   :  { %6285 = vmatpush.bf16.msra.mxu3 %v9226_v34  ;;  %v5917_v34 = vshrl.u32 %v9839_v29, 16 }
 0x6cc   :  { %v5919_v53 = vrot.slane %v5917_v34, 3  ;;  %v9094_v34 = vor.u32 %v9841_v26, %v9093_v6 }
 0x6ce   :  { %6286 = vmatpush.bf16.msra.mxu3 %v9218_v33 }
 0x6cf   :  { %5481 = vmatmul.bf16.gmra.mxu0 %v5375_v14  ;;  %5514 = vmatmul.bf16.gmra.mxu1 %v5375_v14  ;;  %v9230_v14 = vor.u32 %v9870_v52, %v9227_v16 }
 0x6d1   :  { %6318 = vmatpush.bf16.msra.mxu2 %v9230_v14  ;;  %v5920_v14 = vshll.u32 %v9839_v29, 16 }
 0x6d3   :  { %v5922_v49 = vrot.slane %v5920_v14, 4 }
 0x6d5   :  { %5739 = vmatmul.bf16.gmra.mxu3 %v5636_v32  ;;  %5772 = vmatmul.bf16.gmra.mxu2 %v5636_v32  ;;  %v9867_v32 = vld [vmem:[%s12939_s5 + $0x2a4] sm:$0xf0] }
 0x6d6   :  { %v9210_v25 = vor.u32 %v9867_v32, %v9209_v43  ;;  %6319 = vmatpush.bf16.msra.mxu2 %v9222_v24  ;;  %v5923_v32 = vor.u32 %v5922_v49, %v5919_v53  ;;  %v9890_v53 = vld [vmem:[%s12939_s5 + $0x344] sm:$0xf]  ;;  %v9323_v49 = vld [vmem:[%s12939_s5 + $0x348] sm:$0xf0] }
 0x6d7   :  { %v9326_v12 = vor.u32 %v9890_v53, %v9323_v49 }
 0x6d8   :  { %6287 = vmatpush.bf16.msra.mxu3 %v9210_v25  ;;  %v9345_v25 = vld [vmem:[%s12939_s5 + $0x370] sm:$0xf] }
 0x6da   :  { %6320 = vmatpush.bf16.msra.mxu2 %v9214_v58  ;;  %v9346_v58 = vor.u32 %v9897_v36, %v9345_v25  ;;  %v9859_v25 = vld [vmem:[#allocation5 + $0xc] sm:$0xff] }
 0x6dc   :  { %6288 = vmatpush.bf16.msra.mxu3 %v9202_v5  ;;  %6545 = vmatpush.bf16.msrb.mxu0 %v9346_v58  ;;  %v9315_v58 = vld [vmem:[%s12939_s5 + $0x338] sm:$0xf0] }
 0x6dd   :  { %v9318_v0 = vor.u32 %v9888_v13, %v9315_v58  ;;  %v9912_v58 = vld [vmem:[%s12939_s5 + $0x3d4] sm:$0xf] }
 0x6de   :  { %6321 = vmatpush.bf16.msra.mxu2 %v9206_v51  ;;  %v9337_v51 = vld [vmem:[%s12939_s5 + $0x360] sm:$0xf] }
 0x6df   :  { %5486 = vmatmul.bf16.gmra.mxu0 %v5377_v17  ;;  %5519 = vmatmul.bf16.gmra.mxu1 %v5377_v17  ;;  %v5906_v17 = vor.u32 %v5905_v45, %v5902_v28 }
 0x6e1   :  { %v5915_v2 = vsel %vm5898_vm14, %v5906_v17, %v5914_v57 }
 0x6e2   :  { %6322 = vmatpush.bf16.msra.mxu2 %v9198_v4  ;;  %v9893_v4 = vld [vmem:[%s12939_s5 + $0x354] sm:$0xf0] }
 0x6e5   :  { %5744 = vmatmul.bf16.gmra.mxu3 %v5638_v38  ;;  %5777 = vmatmul.bf16.gmra.mxu2 %v5638_v38  ;;  %v4940_v38 = vadd.f32 %v4939_v20, %v11922_v15  ;;  %v5924_v20 = vsel %vm5898_vm14, %v5914_v57, %v5923_v32 }
 0x6ef   :  { %5491 = vmatmul.bf16.gmra.mxu0 %v12052_v9  ;;  %5524 = vmatmul.bf16.gmra.mxu1 %v12052_v9  ;;  %v9194_v9 = vor.u32 %v9863_v56, %v9193_v42  ;;  %v9895_v42 = vld [vmem:[%s12939_s5 + $0x364] sm:$0xf0]  ;;  %v9894_v56 = vld [vmem:[%s12939_s5 + $0x364] sm:$0xf] }
 0x6f0   :  { %v9338_v62 = vor.u32 %v9895_v42, %v9337_v51  ;;  %v9342_v48 = vor.u32 %v9894_v56, %v9339_v54 }
 0x6f1   :  { %6289 = vmatpush.bf16.msra.mxu3 %v9194_v9  ;;  %v12206_v9 = vor.u32 %v5931_v27, %v5928_v59  ;;  %v9886_v59 = vld [vmem:[%s12939_s5 + $0x324] sm:$0xf]  ;;  %v9307_v27 = vld [vmem:[%s12939_s5 + $0x328] sm:$0xf0] }
 0x6f2   :  { %6546 = vmatpush.bf16.msrb.mxu0 %v9338_v62  ;;  %6579 = vmatpush.bf16.msrb.mxu1 %v9342_v48  ;;  %v9441_v62 = vld [vmem:[%s12939_s5 + $0x3f0] sm:$0xf] }
 0x6f5   :  { %5749 = vmatmul.bf16.gmra.mxu3 %v5640_v63  ;;  %5782 = vmatmul.bf16.gmra.mxu2 %v5640_v63  ;;  %v9892_v63 = vld [vmem:[%s12939_s5 + $0x354] sm:$0xf] }
 0x6f8   :  { %v4944_v47 = vpop.f32.mrf.mxu0  ;;  %v4977_v31 = vpop.f32.mrf.mxu1 }
 0x6f9   :  { %v9330_v47 = vor.u32 %v9893_v4, %v9329_v44  ;;  %v9331_v31 = vld [vmem:[%s12939_s5 + $0x358] sm:$0xf0] }
 0x6fa   :  { %v9334_v14 = vor.u32 %v9892_v63, %v9331_v31  ;;  %v9443_v4 = vld [vmem:[%s12939_s5 + $0x3f8] sm:$0xf0]  ;;  %v9297_v63 = vld [vmem:[%s12939_s5 + $0x310] sm:$0xf] }
 0x6fb   :  { %6547 = vmatpush.bf16.msrb.mxu0 %v9330_v47  ;;  %v9884_v47 = vld [vmem:[%s12939_s5 + $0x314] sm:$0xf]  ;;  %v9299_v31 = vld [vmem:[%s12939_s5 + $0x318] sm:$0xf0] }
 0x6fc   :  { %6580 = vmatpush.bf16.msrb.mxu1 %v9334_v14 }
 0x6ff   :  { %6036 = vmatmul.bf16.vlgmr.msra.gmra.mxu0 %v5915_v2  ;;  %6069 = vmatmul.bf16.vlgmr.msra.gmra.mxu1 %v5915_v2 }
 0x700   :  { %v4946_v52 = vpop.f32.mrf.mxu0  ;;  %v4979_v16 = vpop.f32.mrf.mxu1  ;;  %6581 = vmatpush.bf16.msrb.mxu1 %v9326_v12  ;;  %v9291_v12 = vld [vmem:[%s12939_s5 + $0x308] sm:$0xf0] }
 0x701   :  { %v4947_v28 = vadd.f32 %v4946_v52, %v11922_v15  ;;  %v4980_v45 = vadd.f32 %v4979_v16, %v11924_v18  ;;  %v9321_v52 = vld [vmem:[%s12939_s5 + $0x340] sm:$0xf]  ;;  %v9891_v16 = vld [vmem:[%s12939_s5 + $0x344] sm:$0xf0] }
 0x704   :  { %v5214_v30 = vpop.f32.mrf.mxu3  ;;  %v5247_v11 = vpop.f32.mrf.mxu2  ;;  %6582 = vmatpush.bf16.msrb.mxu1 %v9318_v0  ;;  %v9911_v0 = vld [vmem:[%s12939_s5 + $0x3c4] sm:$0xf0] }
 0x705   :  { %5754 = vmatmul.bf16.gmra.mxu3 %v5639_v40  ;;  %5787 = vmatmul.bf16.gmra.mxu2 %v5639_v40  ;;  %v12169_v21 = vadd.f32 %v5214_v30, %v4940_v38  ;;  %v12171_v33 = vadd.f32 %v5247_v11, %v4973_v60  ;;  %v5933_v30 = vsel %vm5898_vm14, %v5923_v32, %v12206_v9  ;;  %v9889_v32 = vld [vmem:[%s12939_s5 + $0x334] sm:$0xf0] }
 0x706   :  { %v9322_v11 = vor.u32 %v9891_v16, %v9321_v52 }
 0x708   :  { %v12173_v24 = vpop.f32.mrf.mxu0  ;;  %v12175_v43 = vpop.f32.mrf.mxu1  ;;  %6548 = vmatpush.bf16.msrb.mxu0 %v9322_v11 }
 0x709   :  { %v4950_v51 = vadd.f32 %v12173_v24, %v11922_v15  ;;  %v4983_v42 = vadd.f32 %v12175_v43, %v11924_v18  ;;  %v9917_v24 = vld [vmem:[%s12939_s5 + $0x3f4] sm:$0xf0]  ;;  %v9916_v43 = vld [vmem:[%s12939_s5 + $0x3f4] sm:$0xf] }
 0x70a   :  { %v9442_v44 = vor.u32 %v9917_v24, %v9441_v62  ;;  %v9909_v24 = vld [vmem:[%s12939_s5 + $0x3b4] sm:$0xf0] }
 0x70c   :  { %v5216_v22 = vpop.f32.mrf.mxu3  ;;  %v5249_v61 = vpop.f32.mrf.mxu2  ;;  %6843 = vmatpush.bf16.msrb.mxu3 %v9442_v44  ;;  %v9908_v44 = vld [vmem:[%s12939_s5 + $0x3b4] sm:$0xf] }
 0x70d   :  { %v9313_v22 = vld [vmem:[%s12939_s5 + $0x330] sm:$0xf]  ;;  %v5935_v61 = vshrl.u32 %v9094_v34, 16 }
 0x70e   :  { %v9314_v36 = vor.u32 %v9889_v32, %v9313_v22  ;;  %v9302_v22 = vor.u32 %v9884_v47, %v9299_v31  ;;  %v9289_v32 = vld [vmem:[%s12939_s5 + $0x300] sm:$0xf] }
 0x70f   :  { %6041 = vmatmul.bf16.gmra.mxu0 %v5924_v20  ;;  %6074 = vmatmul.bf16.gmra.mxu1 %v5924_v20  ;;  %v5938_v20 = vshll.u32 %v9094_v34, 16  ;;  %v5937_v7 = vrot.slane %v5935_v61, 3  ;;  %v9435_v34 = vld [vmem:[%s12939_s5 + $0x3e8] sm:$0xf0]  ;;  %v9883_v61 = vld [vmem:[%s12939_s5 + $0x304] sm:$0xf0] }
 0x710   :  { %v12190_v39 = vpop.f32.mrf.mxu0  ;;  %v12192_v5 = vpop.f32.mrf.mxu1  ;;  %6549 = vmatpush.bf16.msrb.mxu0 %v9314_v36  ;;  %v9913_v36 = vld [vmem:[%s12939_s5 + $0x3d4] sm:$0xf0] }
 0x711   :  { %v5940_v23 = vrot.slane %v5938_v20, 4  ;;  %v9290_v20 = vor.u32 %v9883_v61, %v9289_v32  ;;  %v9393_v32 = vld [vmem:[%s12939_s5 + $0x390] sm:$0xf]  ;;  %v9905_v61 = vld [vmem:[%s12939_s5 + $0x394] sm:$0xf0] }
 0x714   :  { %v5219_v40 = vpop.f32.mrf.mxu3  ;;  %v5252_v41 = vpop.f32.mrf.mxu2 }
 0x715   :  { %6290 = vmatmul.bf16.vlgmr.msra.gmra.mxu3 %v9858_v8  ;;  %6323 = vmatmul.bf16.vlgmr.msra.gmra.mxu2 %v9858_v8  ;;  %v9305_v40 = vld [vmem:[%s12939_s5 + $0x320] sm:$0xf]  ;;  %v9887_v41 = vld [vmem:[%s12939_s5 + $0x324] sm:$0xf0] }
 0x716   :  { %v9306_v56 = vor.u32 %v9887_v41, %v9305_v40 }
 0x718   :  { %6550 = vmatpush.bf16.msrb.mxu0 %v9306_v56  ;;  %v9910_v56 = vld [vmem:[%s12939_s5 + $0x3c4] sm:$0xf] }
 0x71c   :  { %v4954_v37 = vpop.f32.mrf.mxu0  ;;  %v4987_v50 = vpop.f32.mrf.mxu1 }
 0x71d   :  { %v4955_v17 = vadd.f32 %v4954_v37, %v11922_v15  ;;  %v4988_v57 = vadd.f32 %v4987_v50, %v11924_v18  ;;  %v5221_v2 = vpop.f32.mrf.mxu3  ;;  %v5254_v29 = vpop.f32.mrf.mxu2  ;;  %v9310_v37 = vor.u32 %v9886_v59, %v9307_v27  ;;  %v9446_v50 = vor.u32 %v9916_v43, %v9443_v4  ;;  %v9419_v59 = vld [vmem:[%s12939_s5 + $0x3c8] sm:$0xf0]  ;;  %v9411_v4 = vld [vmem:[%s12939_s5 + $0x3b8] sm:$0xf0] }
 0x71e   :  { %v12230_v38 = vadd.f32 %v5221_v2, %v4947_v28  ;;  %v12232_v60 = vadd.f32 %v5254_v29, %v4980_v45  ;;  %v9885_v28 = vld [vmem:[%s12939_s5 + $0x314] sm:$0xf0]  ;;  %v12292_v45 = vor.u32 %v5940_v23, %v5937_v7  ;;  %v9915_v2 = vld [vmem:[%s12939_s5 + $0x3e4] sm:$0xf0]  ;;  %v9914_v29 = vld [vmem:[%s12939_s5 + $0x3e4] sm:$0xf] }
 0x71f   :  { %5007 = vst [vmem:[#allocation6 + $0x68] sm:$0x3] %v4955_v17  ;;  %6046 = vmatmul.bf16.gmra.mxu0 %v5933_v30  ;;  %6079 = vmatmul.bf16.gmra.mxu1 %v5933_v30  ;;  %v9433_v17 = vld [vmem:[%s12939_s5 + $0x3e0] sm:$0xf]  ;;  %v9438_v30 = vor.u32 %v9914_v29, %v9435_v34  ;;  %v9906_v34 = vld [vmem:[%s12939_s5 + $0x3a4] sm:$0xf] }
 0x720   :  { %5008 = vst [vmem:[#allocation6 + $0x60] sm:$0x3] %v4988_v57  ;;  %v9298_v57 = vor.u32 %v9885_v28, %v9297_v63  ;;  %6876 = vmatpush.bf16.msrb.mxu2 %v9446_v50  ;;  %v9434_v14 = vor.u32 %v9915_v2, %v9433_v17  ;;  %v5942_v49 = vsel %vm5898_vm14, %v12206_v9, %v12292_v45  ;;  %v9417_v23 = vld [vmem:[%s12939_s5 + $0x3c0] sm:$0xf] }
 0x721   :  { %6583 = vmatpush.bf16.msrb.mxu1 %v9310_v37  ;;  %v4985_v9 = vadd.f32 %v12192_v5, %v11924_v18  ;;  %v9401_v17 = vld [vmem:[%s12939_s5 + $0x3a0] sm:$0xf]  ;;  %v9414_v2 = vor.u32 %v9908_v44, %v9411_v4  ;;  %v6156_v44 = vld [vmem:[#allocation5 + $0x24] sm:$0x1] }
 0x722   :  { %6551 = vmatpush.bf16.msrb.mxu0 %v9298_v57  ;;  %6844 = vmatpush.bf16.msrb.mxu3 %v9434_v14  ;;  %v9907_v57 = vld [vmem:[%s12939_s5 + $0x3a4] sm:$0xf0]  ;;  %v9403_v14 = vld [vmem:[%s12939_s5 + $0x3a8] sm:$0xf0] }
 0x723   :  { %v9402_v29 = vor.u32 %v9907_v57, %v9401_v17  ;;  %v9899_v17 = vld [vmem:[#allocation5 + $0xc] sm:$0xff] }
 0x724   :  { %v4956_v19 = vpop.f32.mrf.mxu0  ;;  %v4989_v8 = vpop.f32.mrf.mxu1  ;;  %6877 = vmatpush.bf16.msrb.mxu2 %v9438_v30 }
 0x725   :  { %6295 = vmatmul.bf16.gmra.mxu3 %v9859_v25  ;;  %6328 = vmatmul.bf16.gmra.mxu2 %v9859_v25  ;;  %v9425_v25 = vld [vmem:[%s12939_s5 + $0x3d0] sm:$0xf]  ;;  %v9427_v19 = vld [vmem:[%s12939_s5 + $0x3d8] sm:$0xf0] }
 0x726   :  { %v9426_v5 = vor.u32 %v9913_v36, %v9425_v25  ;;  %6584 = vmatpush.bf16.msrb.mxu1 %v9302_v22  ;;  %v9430_v41 = vor.u32 %v9912_v58, %v9427_v19  ;;  %6552 = vmatpush.bf16.msrb.mxu0 %v9290_v20  ;;  %v5025_v63 = vld [vmem:[#allocation6 + $0x68] sm:$0x3]  ;;  %v9406_v22 = vor.u32 %v9906_v34, %v9403_v14  ;;  %v9385_v20 = vld [vmem:[%s12939_s5 + $0x380] sm:$0xf]  ;;  %v9878_v58 = vld [vmem:[#allocation5 + $0x4] sm:$0xf0] }
 0x727   :  { %v5026_v37 = vld [vmem:[#allocation6 + $0x60] sm:$0x3]  ;;  %v9861_v36 = vld [vmem:[#allocation5 + $0x1c] sm:$0xff]  ;;  %v12450_v34 = vld [vmem:[#allocation5 + $0x14] sm:$0xff] }
 0x728   :  { %v5224_v54 = vpop.f32.mrf.mxu3  ;;  %v5257_v48 = vpop.f32.mrf.mxu2  ;;  %6845 = vmatpush.bf16.msrb.mxu3 %v9426_v5  ;;  %6878 = vmatpush.bf16.msrb.mxu2 %v9430_v41  ;;  %v9273_v5 = vld [vmem:[#allocation5 + $0x4] sm:$0xc] }
 0x729   :  { %v12279_v6 = vadd.f32 %v5224_v54, %v4950_v51  ;;  %v12281_v26 = vadd.f32 %v5257_v48, %v4983_v42  ;;  %v9860_v51 = vld [vmem:[#allocation5 + $0x14] sm:$0xff]  ;;  %v9418_v42 = vor.u32 %v9911_v0, %v9417_v23  ;;  %v9422_v54 = vor.u32 %v9910_v56, %v9419_v59  ;;  %v9409_v48 = vld [vmem:[%s12939_s5 + $0x3b0] sm:$0xf] }
 0x72a   :  { %v9410_v43 = vor.u32 %v9909_v24, %v9409_v48  ;;  %v9274_v41 = vor.u32 %v9878_v58, %v9273_v5  ;;  %v4937_v56 = vadd.f32 %v12083_v46, %v11922_v15  ;;  %v4970_v59 = vadd.f32 %v12085_v10, %v11924_v18  ;;  %v9537_v5 = vld [vmem:[%s12939_s5 + $0x470] sm:$0xf] }
 0x72b   :  { %v6191_v10 = vunpack.c.l.b16 %v6156_v44  ;;  %v12499_v44 = vld [vmem:[#allocation5 + $0x1c] sm:$0xff] }
 0x72c   :  { %v5472_v52 = vpop.f32.mrf.mxu0  ;;  %v5505_v16 = vpop.f32.mrf.mxu1  ;;  %6846 = vmatpush.bf16.msrb.mxu3 %v9418_v42  ;;  %6879 = vmatpush.bf16.msrb.mxu2 %v9422_v54  ;;  %v6451_v24 = vrot.slane %v9274_v41, 2  ;;  %v5268_v4 = vadd.f32 %v12162_v3, %v4937_v56  ;;  %v9369_v3 = vld [vmem:[#allocation5 + $0x4] sm:$0xc] }
 0x72d   :  { %v12313_v11 = vadd.f32 %v5472_v52, %v11929_v1  ;;  %v12316_v53 = vadd.f32 %v5505_v16, %v11931_v35  ;;  %v9882_v1 = vld [vmem:[%s12939_s5 + $0x304] sm:$0xf]  ;;  %v4952_v35 = vadd.f32 %v12190_v39, %v11922_v15 }
 0x72e   :  { %v9294_v40 = vor.u32 %v9882_v1, %v9291_v12  ;;  %v9394_v1 = vor.u32 %v9905_v61, %v9393_v32  ;;  %v9903_v12 = vld [vmem:[%s12939_s5 + $0x384] sm:$0xf0]  ;;  %v6723_v32 = vshrl.u32 %v9899_v17, 16  ;;  %v6726_v61 = vshll.u32 %v9899_v17, 16 }
 0x72f   :  { %6051 = vmatmul.bf16.gmra.mxu0 %v5942_v49  ;;  %6084 = vmatmul.bf16.gmra.mxu1 %v5942_v49 }
 0x730   :  { %v5226_v13 = vpop.f32.mrf.mxu3  ;;  %v5259_v39 = vpop.f32.mrf.mxu2  ;;  %6585 = vmatpush.bf16.msrb.mxu1 %v9294_v40  ;;  %6847 = vmatpush.bf16.msrb.mxu3 %v9410_v43  ;;  %v9879_v40 = vld [vmem:[#allocation5 + $0xc] sm:$0xff] }
 0x731   :  { %v12349_v8 = vadd.f32 %v5226_v13, %v4952_v35  ;;  %v12351_v7 = vadd.f32 %v5259_v39, %v4985_v9  ;;  %6880 = vmatpush.bf16.msrb.mxu2 %v9414_v2  ;;  %v9386_v13 = vor.u32 %v9903_v12, %v9385_v20  ;;  %v9902_v39 = vld [vmem:[%s12939_s5 + $0x384] sm:$0xf]  ;;  %v6452_v43 = vrot.slane %v9879_v40, 2 }
 0x733   :  { %v6453_v46 = vsel %vm458_vm1, %v6451_v24, %v6452_v43  ;;  %v9935_v24 = vld [vmem:[%s12939_s5 + $0x464] sm:$0xf0] }
 0x734   :  { %v12365_v27 = vpop.f32.mrf.mxu0  ;;  %v12367_v62 = vpop.f32.mrf.mxu1  ;;  %6848 = vmatpush.bf16.msrb.mxu3 %v9402_v29 }
 0x735   :  { %6300 = vmatmul.bf16.gmra.mxu3 %v9860_v51  ;;  %6333 = vmatmul.bf16.gmra.mxu2 %v9860_v51  ;;  %v5531_v15 = vadd.f32 %v12365_v27, %v5268_v4 }
 0x736   :  { %6881 = vmatpush.bf16.msrb.mxu2 %v9406_v22 }
 0x738   :  { %v5229_v28 = vpop.f32.mrf.mxu3  ;;  %v5262_v50 = vpop.f32.mrf.mxu2  ;;  %6849 = vmatpush.bf16.msrb.mxu3 %v9394_v1 }
 0x739   :  { %v5282_v47 = vadd.f32 %v5229_v28, %v5025_v63  ;;  %v5283_v31 = vadd.f32 %v5262_v50, %v5026_v37  ;;  %v5269_v63 = vadd.f32 %v12164_v55, %v4970_v59  ;;  %v6196_v55 = vpack.c.b16 %v6191_v10, %v6191_v10  ;;  %v9529_v59 = vld [vmem:[%s12939_s5 + $0x460] sm:$0xf] }
 0x73b   :  { %5300 = vst [vmem:[#allocation6 + $0x68] sm:$0x3] %v5282_v47  ;;  %v5532_v18 = vadd.f32 %v12367_v62, %v5269_v63  ;;  %v9530_v63 = vor.u32 %v9935_v24, %v9529_v59  ;;  %v9499_v24 = vld [vmem:[%s12939_s5 + $0x428] sm:$0xf0] }
 0x73c   :  { %5301 = vst [vmem:[#allocation6 + $0x60] sm:$0x3] %v5283_v31  ;;  %v5477_v52 = vpop.f32.mrf.mxu0  ;;  %v5510_v16 = vpop.f32.mrf.mxu1  ;;  %6850 = vmatpush.bf16.msrb.mxu3 %v9386_v13  ;;  %v9898_v31 = vld [vmem:[#allocation5 + $0x4] sm:$0xf0] }
 0x73d   :  { %v12394_v30 = vadd.f32 %v5477_v52, %v12169_v21  ;;  %v12397_v49 = vadd.f32 %v5510_v16, %v12171_v33  ;;  %v9904_v21 = vld [vmem:[%s12939_s5 + $0x394] sm:$0xf]  ;;  %v9395_v33 = vld [vmem:[%s12939_s5 + $0x398] sm:$0xf0]  ;;  %v9370_v57 = vor.u32 %v9898_v31, %v9369_v3 }
 0x73e   :  { %v9398_v25 = vor.u32 %v9904_v21, %v9395_v33  ;;  %v9932_v3 = vld [vmem:[%s12939_s5 + $0x454] sm:$0xf] }
 0x73f   :  { %6056 = vmatmul.bf16.gmra.mxu0 %v12292_v45  ;;  %6089 = vmatmul.bf16.gmra.mxu1 %v12292_v45  ;;  %v9387_v45 = vld [vmem:[%s12939_s5 + $0x388] sm:$0xf0]  ;;  %v6715_v16 = vshrl.u32 %v9370_v57, 16  ;;  %v6718_v22 = vshll.u32 %v9370_v57, 16 }
 0x740   :  { %v5231_v35 = vpop.f32.mrf.mxu3  ;;  %v5264_v9 = vpop.f32.mrf.mxu2  ;;  %6882 = vmatpush.bf16.msrb.mxu2 %v9398_v25  ;;  %v9390_v0 = vor.u32 %v9902_v39, %v9387_v45 }
 0x741   :  { %v6717_v33 = vrot.slane %v6715_v16, 2  ;;  %v6720_v35 = vrot.slane %v6718_v22, 3  ;;  %v6728_v9 = vrot.slane %v6726_v61, 3  ;;  %v9513_v22 = vld [vmem:[%s12939_s5 + $0x440] sm:$0xf] }
 0x742   :  { %v5318_v31 = vld [vmem:[#allocation6 + $0x68] sm:$0x3] }
 0x743   :  { %v6721_v39 = vor.u32 %v6720_v35, %v6717_v33  ;;  %v5319_v17 = vld [vmem:[#allocation6 + $0x60] sm:$0x3]  ;;  %v6410_v33 = vld [vmem:[#allocation5 + $0x24] sm:$0x7] }
 0x744   :  { %v5479_v19 = vpop.f32.mrf.mxu0  ;;  %v5512_v23 = vpop.f32.mrf.mxu1  ;;  %6883 = vmatpush.bf16.msrb.mxu2 %v9390_v0 }
 0x745   :  { %6305 = vmatmul.bf16.gmra.mxu3 %v9861_v36  ;;  %6338 = vmatmul.bf16.gmra.mxu2 %v9861_v36  ;;  %v9539_v19 = vld [vmem:[%s12939_s5 + $0x478] sm:$0xf0]  ;;  %v9900_v23 = vld [vmem:[#allocation5 + $0x14] sm:$0xff] }
 0x746   :  { %v6735_v4 = vshll.u32 %v9900_v23, 16 }
 0x748   :  { %v5735_v51 = vpop.f32.mrf.mxu3  ;;  %v5768_v42 = vpop.f32.mrf.mxu2  ;;  %v6737_v10 = vrot.slane %v6735_v4, 3 }
 0x749   :  { %v12430_v54 = vadd.f32 %v5735_v51, %v12313_v11  ;;  %v12433_v48 = vadd.f32 %v5768_v42, %v12316_v53 }
 0x74c   :  { %v5482_v28 = vpop.f32.mrf.mxu0  ;;  %v5515_v37 = vpop.f32.mrf.mxu1 }
 0x74f   :  { %6553 = vmatmul.bf16.vlgmr.msrb.gmra.mxu0 %v6453_v46  ;;  %6586 = vmatmul.bf16.vlgmr.msrb.gmra.mxu1 %v6453_v46 }
 0x750   :  { %v5737_v11 = vpop.f32.mrf.mxu3  ;;  %v5770_v53 = vpop.f32.mrf.mxu2 }
 0x751   :  { %v12440_v50 = vadd.f32 %v5737_v11, %v5531_v15  ;;  %v12442_v47 = vadd.f32 %v5770_v53, %v5532_v18  ;;  %v6456_v18 = vrot.slane %v12499_v44, 2  ;;  %v9521_v11 = vld [vmem:[%s12939_s5 + $0x450] sm:$0xf]  ;;  %v9933_v53 = vld [vmem:[%s12939_s5 + $0x454] sm:$0xf0] }
 0x754   :  { %v5484_v2 = vpop.f32.mrf.mxu0  ;;  %v5517_v27 = vpop.f32.mrf.mxu1 }
 0x755   :  { %6310 = vmatmul.bf16.gmra.mxu3 %v6196_v55  ;;  %6343 = vmatmul.bf16.gmra.mxu2 %v6196_v55  ;;  %v12445_v62 = vadd.f32 %v5484_v2, %v12230_v38  ;;  %v12448_v29 = vadd.f32 %v5517_v27, %v12232_v60  ;;  %v6454_v38 = vrot.slane %v12450_v34, 2  ;;  %v6725_v60 = vrot.slane %v6723_v32, 2  ;;  %v9523_v27 = vld [vmem:[%s12939_s5 + $0x458] sm:$0xf0]  ;;  %v9931_v32 = vld [vmem:[%s12939_s5 + $0x444] sm:$0xf0] }
 0x756   :  { %v9522_v2 = vor.u32 %v9933_v53, %v9521_v11  ;;  %v9526_v16 = vor.u32 %v9932_v3, %v9523_v27  ;;  %v9514_v35 = vor.u32 %v9931_v32, %v9513_v22  ;;  %v9505_v34 = vld [vmem:[%s12939_s5 + $0x430] sm:$0xf]  ;;  %v9491_v11 = vld [vmem:[%s12939_s5 + $0x418] sm:$0xf0] }
 0x757   :  { %v12468_v45 = vor.u32 %v6728_v9, %v6725_v60  ;;  %v6457_v61 = vsel %vm458_vm1, %v6454_v38, %v6456_v18  ;;  %v9930_v60 = vld [vmem:[%s12939_s5 + $0x444] sm:$0xf]  ;;  %v9515_v9 = vld [vmem:[%s12939_s5 + $0x448] sm:$0xf0] }
 0x758   :  { %v5740_v14 = vpop.f32.mrf.mxu3  ;;  %v5773_v52 = vpop.f32.mrf.mxu2 }
 0x759   :  { %v12453_v1 = vadd.f32 %v5740_v14, %v12394_v30  ;;  %v12456_v21 = vadd.f32 %v5773_v52, %v12397_v49  ;;  %v6455_v30 = vsel %vm458_vm1, %v6452_v43, %v6454_v38  ;;  %v6730_v40 = vsel %vm3898_vm10, %v6721_v39, %v12468_v45  ;;  %v9934_v43 = vld [vmem:[%s12939_s5 + $0x464] sm:$0xf]  ;;  %v9929_v38 = vld [vmem:[%s12939_s5 + $0x434] sm:$0xf0] }
 0x75a   :  { %v9518_v39 = vor.u32 %v9930_v60, %v9515_v9 }
 0x75c   :  { %v5487_v20 = vpop.f32.mrf.mxu0  ;;  %v5520_v12 = vpop.f32.mrf.mxu1 }
 0x75d   :  { %v12460_v25 = vadd.f32 %v5487_v20, %v12279_v6  ;;  %v12463_v36 = vadd.f32 %v5520_v12, %v12281_v26  ;;  %v9937_v6 = vld [vmem:[%s12939_s5 + $0x474] sm:$0xf0]  ;;  %v9936_v26 = vld [vmem:[%s12939_s5 + $0x474] sm:$0xf] }
 0x75e   :  { %v9538_v58 = vor.u32 %v9937_v6, %v9537_v5  ;;  %v9542_v0 = vor.u32 %v9936_v26, %v9539_v19  ;;  %v6445_v5 = vunpack.c.l.b16 %v6410_v33  ;;  %v9506_v6 = vor.u32 %v9929_v38, %v9505_v34  ;;  %v9928_v26 = vld [vmem:[%s12939_s5 + $0x434] sm:$0xf]  ;;  %v9901_v19 = vld [vmem:[#allocation5 + $0x1c] sm:$0xff] }
 0x75f   :  { %6558 = vmatmul.bf16.gmra.mxu0 %v6455_v30  ;;  %6591 = vmatmul.bf16.gmra.mxu1 %v6455_v30  ;;  %v6741_v4 = vshrl.u32 %v9901_v19, 16 }
 0x760   :  { %v5742_v49 = vpop.f32.mrf.mxu3  ;;  %v5775_v13 = vpop.f32.mrf.mxu2  ;;  %7106 = vmatpush.bf16.msra.mxu0 %v9538_v58  ;;  %7139 = vmatpush.bf16.msra.mxu1 %v9542_v0  ;;  %v9507_v58 = vld [vmem:[%s12939_s5 + $0x438] sm:$0xf0] }
 0x761   :  { %v9510_v0 = vor.u32 %v9928_v26, %v9507_v58  ;;  %v6743_v53 = vrot.slane %v6741_v4, 2 }
 0x764   :  { %v5489_v41 = vpop.f32.mrf.mxu0  ;;  %v5522_v51 = vpop.f32.mrf.mxu1  ;;  %7107 = vmatpush.bf16.msra.mxu0 %v9530_v63  ;;  %v6744_v63 = vshll.u32 %v9901_v19, 16 }
 0x765   :  { %6851 = vmatmul.bf16.vlgmr.msrb.gmra.mxu3 %v6730_v40  ;;  %6884 = vmatmul.bf16.vlgmr.msrb.gmra.mxu2 %v6730_v40  ;;  %v12485_v42 = vadd.f32 %v5489_v41, %v12349_v8  ;;  %v12488_v56 = vadd.f32 %v5522_v51, %v12351_v7  ;;  %v6732_v8 = vshrl.u32 %v9900_v23, 16  ;;  %v9531_v7 = vld [vmem:[%s12939_s5 + $0x468] sm:$0xf0]  ;;  %v9497_v40 = vld [vmem:[%s12939_s5 + $0x420] sm:$0xf]  ;;  %v6450_v51 = vpack.c.b16 %v6445_v5, %v6445_v5 }
 0x766   :  { %v9534_v15 = vor.u32 %v9934_v43, %v9531_v7  ;;  %v9927_v41 = vld [vmem:[%s12939_s5 + $0x424] sm:$0xf0]  ;;  %v9489_v7 = vld [vmem:[%s12939_s5 + $0x410] sm:$0xf]  ;;  %v6746_v3 = vrot.slane %v6744_v63, 3 }
 0x767   :  { %v6734_v46 = vrot.slane %v6732_v8, 2  ;;  %v9498_v59 = vor.u32 %v9927_v41, %v9497_v40 }
 0x768   :  { %v5745_v28 = vpop.f32.mrf.mxu3  ;;  %v5778_v37 = vpop.f32.mrf.mxu2  ;;  %7140 = vmatpush.bf16.msra.mxu1 %v9534_v15  ;;  %7108 = vmatpush.bf16.msra.mxu0 %v9522_v2  ;;  %v6458_v15 = vrot.slane %v6450_v51, 2  ;;  %v6747_v33 = vor.u32 %v6746_v3, %v6743_v53 }
 0x769   :  { %v12534_v30 = vor.u32 %v6737_v10, %v6734_v46  ;;  %v9925_v28 = vld [vmem:[%s12939_s5 + $0x414] sm:$0xf0]  ;;  %v9924_v10 = vld [vmem:[%s12939_s5 + $0x414] sm:$0xf] }
 0x76a   :  { %v9490_v46 = vor.u32 %v9925_v28, %v9489_v7  ;;  %v9494_v27 = vor.u32 %v9924_v10, %v9491_v11  ;;  %v9919_v7 = vld [vmem:[#allocation5 + $0xc] sm:$0xff] }
 0x76b   :  { %v7013_v11 = vrot.slane %v9919_v7, 3 }
 0x76c   :  { %v5492_v55 = vpop.f32.mrf.mxu0  ;;  %v5525_v57 = vpop.f32.mrf.mxu1  ;;  %7141 = vmatpush.bf16.msra.mxu1 %v9526_v16  ;;  %7109 = vmatpush.bf16.msra.mxu0 %v9514_v35  ;;  %v6459_v16 = vsel %vm458_vm1, %v6456_v18, %v6458_v15  ;;  %v6748_v35 = vsel %vm3898_vm10, %v12534_v30, %v6747_v33  ;;  %vm7622_vm1 = vcmask 9216  }
 0x76d   :  { %v5545_v14 = vadd.f32 %v5492_v55, %v5318_v31  ;;  %v5546_v52 = vadd.f32 %v5525_v57, %v5319_v17  ;;  %v6673_v17 = vld [vmem:[#allocation5 + $0x24] sm:$0xf] }
 0x76e   :  { %v6708_v44 = vunpack.c.l.b16 %v6673_v17 }
 0x76f   :  { %5563 = vst [vmem:[#allocation6 + $0x68] sm:$0x3] %v5545_v14  ;;  %6563 = vmatmul.bf16.gmra.mxu0 %v6457_v61  ;;  %6596 = vmatmul.bf16.gmra.mxu1 %v6457_v61  ;;  %v9481_v14 = vld [vmem:[%s12939_s5 + $0x400] sm:$0xf] }
 0x770   :  { %v5747_v20 = vpop.f32.mrf.mxu3  ;;  %v5780_v12 = vpop.f32.mrf.mxu2  ;;  %5564 = vst [vmem:[#allocation6 + $0x60] sm:$0x3] %v5546_v52  ;;  %7142 = vmatpush.bf16.msra.mxu1 %v9518_v39  ;;  %7110 = vmatpush.bf16.msra.mxu0 %v9506_v6  ;;  %v9923_v52 = vld [vmem:[%s12939_s5 + $0x404] sm:$0xf0]  ;;  %v6713_v60 = vpack.c.b16 %v6708_v44, %v6708_v44 }
 0x771   :  { %v12543_v49 = vadd.f32 %v5747_v20, %v12445_v62  ;;  %v12546_v13 = vadd.f32 %v5780_v12, %v12448_v29  ;;  %v6739_v62 = vsel %vm3898_vm10, %v12468_v45, %v12534_v30  ;;  %v9926_v45 = vld [vmem:[%s12939_s5 + $0x424] sm:$0xf]  ;;  %v9482_v22 = vor.u32 %v9923_v52, %v9481_v14 }
 0x772   :  { %v9502_v37 = vor.u32 %v9926_v45, %v9499_v24  ;;  %v6750_v26 = vshrl.u32 %v6713_v60, 16  ;;  %v6753_v58 = vshll.u32 %v6713_v60, 16  ;;  %v9465_v45 = vld [vmem:[#allocation5 + $0x4] sm:$0x8]  ;;  %v9918_v24 = vld [vmem:[#allocation5 + $0x4] sm:$0xf0] }
 0x773   :  { %v9466_v28 = vor.u32 %v9918_v24, %v9465_v45 }
 0x774   :  { %v5494_v29 = vpop.f32.mrf.mxu0  ;;  %v5527_v23 = vpop.f32.mrf.mxu1  ;;  %7143 = vmatpush.bf16.msra.mxu1 %v9510_v0  ;;  %7111 = vmatpush.bf16.msra.mxu0 %v9498_v59  ;;  %v6752_v30 = vrot.slane %v6750_v26, 2 }
 0x775   :  { %6856 = vmatmul.bf16.gmra.mxu3 %v6739_v62  ;;  %6889 = vmatmul.bf16.gmra.mxu2 %v6739_v62  ;;  %v6755_v29 = vrot.slane %v6753_v58, 3  ;;  %v7012_v10 = vrot.slane %v9466_v28, 3 }
 0x776   :  { %v5581_v38 = vld [vmem:[#allocation6 + $0x68] sm:$0x3] }
 0x777   :  { %v5582_v5 = vld [vmem:[#allocation6 + $0x60] sm:$0x3]  ;;  %v6756_v51 = vor.u32 %v6755_v29, %v6752_v30  ;;  %v7014_v3 = vsel %vm457_vm0, %v7012_v10, %v7013_v11 }
 0x778   :  { %v12569_v43 = vpop.f32.mrf.mxu3  ;;  %v12571_v8 = vpop.f32.mrf.mxu2  ;;  %7144 = vmatpush.bf16.msra.mxu1 %v9502_v37  ;;  %7112 = vmatpush.bf16.msra.mxu0 %v9490_v46 }
 0x779   :  { %v6757_v59 = vsel %vm3898_vm10, %v6747_v33, %v6756_v51 }
 0x77c   :  { %v6037_v31 = vpop.f32.mrf.mxu0  ;;  %v6070_v55 = vpop.f32.mrf.mxu1  ;;  %7145 = vmatpush.bf16.msra.mxu1 %v9494_v27  ;;  %7113 = vmatpush.bf16.msra.mxu0 %v9482_v22 }
 0x77d   :  { %v6094_v57 = vadd.f32 %v6037_v31, %v12430_v54  ;;  %v6095_v2 = vadd.f32 %v6070_v55, %v12433_v48  ;;  %v9922_v54 = vld [vmem:[%s12939_s5 + $0x404] sm:$0xf]  ;;  %v9483_v48 = vld [vmem:[%s12939_s5 + $0x408] sm:$0xf0] }
 0x77e   :  { %v9486_v18 = vor.u32 %v9922_v54, %v9483_v48 }
 0x77f   :  { %6568 = vmatmul.bf16.gmra.mxu0 %v6459_v16  ;;  %6601 = vmatmul.bf16.gmra.mxu1 %v6459_v16  ;;  %v9920_v16 = vld [vmem:[#allocation5 + $0x14] sm:$0xff] }
 0x780   :  { %v12602_v32 = vpop.f32.mrf.mxu3  ;;  %v12604_v61 = vpop.f32.mrf.mxu2  ;;  %7146 = vmatpush.bf16.msra.mxu1 %v9486_v18  ;;  %v7015_v44 = vrot.slane %v9920_v16, 3  ;;  %v5805_v18 = vadd.f32 %v12571_v8, %v12463_v36  ;;  %v9921_v36 = vld [vmem:[#allocation5 + $0x1c] sm:$0xff] }
 0x781   :  { %v7017_v58 = vrot.slane %v9921_v36, 3 }
 0x784   :  { %v6039_v9 = vpop.f32.mrf.mxu0  ;;  %v6072_v20 = vpop.f32.mrf.mxu1 }
 0x785   :  { %6861 = vmatmul.bf16.gmra.mxu3 %v6748_v35  ;;  %6894 = vmatmul.bf16.gmra.mxu2 %v6748_v35  ;;  %v6096_v12 = vadd.f32 %v6039_v9, %v12440_v50  ;;  %v6097_v34 = vadd.f32 %v6072_v20, %v12442_v47  ;;  %v7016_v20 = vsel %vm457_vm0, %v7013_v11, %v7015_v44 }
 0x788   :  { %v5755_v39 = vpop.f32.mrf.mxu3  ;;  %v5788_v6 = vpop.f32.mrf.mxu2 }
 0x789   :  { %v5808_v62 = vadd.f32 %v5755_v39, %v5581_v38  ;;  %v5809_v19 = vadd.f32 %v5788_v6, %v5582_v5 }
 0x78b   :  { %5826 = vst [vmem:[#allocation6 + $0x68] sm:$0x3] %v5808_v62 }
 0x78c   :  { %5827 = vst [vmem:[#allocation6 + $0x60] sm:$0x3] %v5809_v19  ;;  %v6042_v23 = vpop.f32.mrf.mxu0  ;;  %v6075_v0 = vpop.f32.mrf.mxu1 }
 0x78d   :  { %v6098_v40 = vadd.f32 %v6042_v23, %v12453_v1  ;;  %v6099_v50 = vadd.f32 %v6075_v0, %v12456_v21 }
 0x78f   :  { %6573 = vmatmul.bf16.gmra.mxu0 %v6458_v15  ;;  %6606 = vmatmul.bf16.gmra.mxu1 %v6458_v15 }
 0x790   :  { %v5757_v47 = vpop.f32.mrf.mxu3  ;;  %v5790_v41 = vpop.f32.mrf.mxu2 }
 0x791   :  { %v5804_v41 = vadd.f32 %v12569_v43, %v12460_v25 }
 0x792   :  { %v5844_v62 = vld [vmem:[#allocation6 + $0x68] sm:$0x3] }
 0x793   :  { %v5845_v30 = vld [vmem:[#allocation6 + $0x60] sm:$0x3] }
 0x794   :  { %v6044_v4 = vpop.f32.mrf.mxu0  ;;  %v6077_v63 = vpop.f32.mrf.mxu1 }
 0x795   :  { %6866 = vmatmul.bf16.gmra.mxu3 %v6757_v59  ;;  %6899 = vmatmul.bf16.gmra.mxu2 %v6757_v59 }
 0x798   :  { %v6291_v37 = vpop.f32.mrf.mxu3  ;;  %v6324_v46 = vpop.f32.mrf.mxu2 }
 0x799   :  { %v12613_v1 = vadd.f32 %v6291_v37, %v6094_v57  ;;  %v12615_v21 = vadd.f32 %v6324_v46, %v6095_v2 }
 0x79c   :  { %v6047_v15 = vpop.f32.mrf.mxu0  ;;  %v6080_v53 = vpop.f32.mrf.mxu1 }
 0x79f   :  { %7114 = vmatmul.bf16.vlgmr.msra.gmra.mxu0 %v7014_v3  ;;  %7147 = vmatmul.bf16.vlgmr.msra.gmra.mxu1 %v7014_v3 }
 0x7a0   :  { %v6293_v31 = vpop.f32.mrf.mxu3  ;;  %v6326_v55 = vpop.f32.mrf.mxu2 }
 0x7a1   :  { %v12618_v17 = vadd.f32 %v6293_v31, %v6096_v12  ;;  %v12620_v27 = vadd.f32 %v6326_v55, %v6097_v34  ;;  %v5807_v34 = vadd.f32 %v12604_v61, %v12488_v56  ;;  %v6971_v56 = vld [vmem:[#allocation5 + $0x24] sm:$0xf] }
 0x7a2   :  { %v7006_v47 = vunpack.c.l.b16 %v6971_v56 }
 0x7a4   :  { %v6049_v14 = vpop.f32.mrf.mxu0  ;;  %v6082_v52 = vpop.f32.mrf.mxu1  ;;  %v7011_v24 = vpack.c.b16 %v7006_v47, %v7006_v47 }
 0x7a5   :  { %6871 = vmatmul.bf16.gmra.mxu3 %v6756_v51  ;;  %6904 = vmatmul.bf16.gmra.mxu2 %v6756_v51  ;;  %v6104_v57 = vadd.f32 %v6049_v14, %v12543_v49  ;;  %v6105_v2 = vadd.f32 %v6082_v52, %v12546_v13  ;;  %v5806_v13 = vadd.f32 %v12602_v32, %v12485_v42 }
 0x7a6   :  { %v7019_v37 = vrot.slane %v7011_v24, 3 }
 0x7a8   :  { %v6296_v22 = vpop.f32.mrf.mxu3  ;;  %v6329_v54 = vpop.f32.mrf.mxu2  ;;  %v7020_v53 = vsel %vm457_vm0, %v7017_v58, %v7019_v37 }
 0x7a9   :  { %v12624_v48 = vadd.f32 %v6296_v22, %v6098_v40  ;;  %v12626_v33 = vadd.f32 %v6329_v54, %v6099_v50  ;;  %v7018_v40 = vsel %vm457_vm0, %v7015_v44, %v7017_v58 }
 0x7ac   :  { %v6052_v35 = vpop.f32.mrf.mxu0  ;;  %v6085_v60 = vpop.f32.mrf.mxu1 }
 0x7ad   :  { %v6107_v9 = vadd.f32 %v6085_v60, %v5805_v18  ;;  %v6106_v45 = vadd.f32 %v6052_v35, %v5804_v41 }
 0x7af   :  { %7119 = vmatmul.bf16.gmra.mxu0 %v7016_v20  ;;  %7152 = vmatmul.bf16.gmra.mxu1 %v7016_v20 }
 0x7b0   :  { %v6298_v12 = vpop.f32.mrf.mxu3  ;;  %v6331_v49 = vpop.f32.mrf.mxu2 }
 0x7b4   :  { %v6054_v38 = vpop.f32.mrf.mxu0  ;;  %v6087_v39 = vpop.f32.mrf.mxu1 }
 0x7b5   :  { %v6108_v5 = vadd.f32 %v6054_v38, %v5806_v13  ;;  %v6109_v6 = vadd.f32 %v6087_v39, %v5807_v34 }
 0x7b8   :  { %v6301_v8 = vpop.f32.mrf.mxu3  ;;  %v6334_v26 = vpop.f32.mrf.mxu2 }
 0x7bc   :  { %v6057_v19 = vpop.f32.mrf.mxu0  ;;  %v6090_v29 = vpop.f32.mrf.mxu1 }
 0x7bd   :  { %v6110_v23 = vadd.f32 %v6057_v19, %v5844_v62  ;;  %v6111_v0 = vadd.f32 %v6090_v29, %v5845_v30 }
 0x7bf   :  { %6128 = vst [vmem:[#allocation6 + $0x68] sm:$0x3] %v6110_v23  ;;  %7124 = vmatmul.bf16.gmra.mxu0 %v7018_v40  ;;  %7157 = vmatmul.bf16.gmra.mxu1 %v7018_v40 }
 0x7c0   :  { %v6303_v42 = vpop.f32.mrf.mxu3  ;;  %v6336_v32 = vpop.f32.mrf.mxu2  ;;  %6129 = vst [vmem:[#allocation6 + $0x60] sm:$0x3] %v6111_v0 }
 0x7c1   :  { %v6358_v61 = vadd.f32 %v6303_v42, %v6104_v57  ;;  %v6359_v50 = vadd.f32 %v6336_v32, %v6105_v2 }
 0x7c4   :  { %v6059_v51 = vpop.f32.mrf.mxu0  ;;  %v6092_v59 = vpop.f32.mrf.mxu1 }
 0x7c8   :  { %v6306_v4 = vpop.f32.mrf.mxu3  ;;  %v6339_v63 = vpop.f32.mrf.mxu2 }
 0x7c9   :  { %v6360_v7 = vadd.f32 %v6306_v4, %v6106_v45  ;;  %v6361_v28 = vadd.f32 %v6339_v63, %v6107_v9 }
 0x7cc   :  { %v6554_v46 = vpop.f32.mrf.mxu0  ;;  %v6587_v10 = vpop.f32.mrf.mxu1 }
 0x7cd   :  { %v12639_v11 = vadd.f32 %v6554_v46, %v12613_v1  ;;  %v12642_v15 = vadd.f32 %v6587_v10, %v12615_v21  ;;  %v6146_v1 = vld [vmem:[#allocation6 + $0x68] sm:$0x3]  ;;  %v6147_v21 = vld [vmem:[#allocation6 + $0x60] sm:$0x3] }
 0x7cf   :  { %7129 = vmatmul.bf16.gmra.mxu0 %v7020_v53  ;;  %7162 = vmatmul.bf16.gmra.mxu1 %v7020_v53 }
 0x7d0   :  { %v6308_v25 = vpop.f32.mrf.mxu3  ;;  %v6341_v43 = vpop.f32.mrf.mxu2 }
 0x7d1   :  { %v6362_v3 = vadd.f32 %v6308_v25, %v6108_v5  ;;  %v6363_v31 = vadd.f32 %v6341_v43, %v6109_v6 }
 0x7d4   :  { %v6556_v55 = vpop.f32.mrf.mxu0  ;;  %v6589_v14 = vpop.f32.mrf.mxu1 }
 0x7d5   :  { %v12646_v52 = vadd.f32 %v6556_v55, %v12618_v17  ;;  %v12649_v57 = vadd.f32 %v6589_v14, %v12620_v27 }
 0x7d8   :  { %v6311_v2 = vpop.f32.mrf.mxu3  ;;  %v6344_v16 = vpop.f32.mrf.mxu2 }
 0x7d9   :  { %v6364_v22 = vadd.f32 %v6311_v2, %v6146_v1  ;;  %v6365_v54 = vadd.f32 %v6344_v16, %v6147_v21 }
 0x7db   :  { %6382 = vst [vmem:[#allocation6 + $0x68] sm:$0x3] %v6364_v22 }
 0x7dc   :  { %6383 = vst [vmem:[#allocation6 + $0x60] sm:$0x3] %v6365_v54  ;;  %v6559_v44 = vpop.f32.mrf.mxu0  ;;  %v6592_v18 = vpop.f32.mrf.mxu1 }
 0x7dd   :  { %v12652_v35 = vadd.f32 %v6559_v44, %v12624_v48  ;;  %v12655_v60 = vadd.f32 %v6592_v18, %v12626_v33 }
 0x7df   :  { %7134 = vmatmul.bf16.gmra.mxu0 %v7019_v37  ;;  %7167 = vmatmul.bf16.gmra.mxu1 %v7019_v37 }
 0x7e0   :  { %v6313_v17 = vpop.f32.mrf.mxu3  ;;  %v6346_v9 = vpop.f32.mrf.mxu2 }
 0x7e3   :  { %v6401_v47 = vld [vmem:[#allocation6 + $0x60] sm:$0x3] }
 0x7e4   :  { %v6561_v27 = vpop.f32.mrf.mxu0  ;;  %v6594_v20 = vpop.f32.mrf.mxu1 }
 0x7e8   :  { %v6852_v12 = vpop.f32.mrf.mxu3  ;;  %v6885_v49 = vpop.f32.mrf.mxu2 }
 0x7e9   :  { %v6909_v37 = vadd.f32 %v6852_v12, %v12639_v11  ;;  %v6910_v46 = vadd.f32 %v6885_v49, %v12642_v15 }
 0x7ec   :  { %v6564_v13 = vpop.f32.mrf.mxu0  ;;  %v6597_v34 = vpop.f32.mrf.mxu1 }
 0x7f0   :  { %v6854_v38 = vpop.f32.mrf.mxu3  ;;  %v6887_v39 = vpop.f32.mrf.mxu2 }
 0x7f1   :  { %v6911_v55 = vadd.f32 %v6854_v38, %v12646_v52  ;;  %v6912_v11 = vadd.f32 %v6887_v39, %v12649_v57 }
 0x7f4   :  { %v6566_v5 = vpop.f32.mrf.mxu0  ;;  %v6599_v6 = vpop.f32.mrf.mxu1 }
 0x7f5   :  { %v12657_v36 = vadd.f32 %v6566_v5, %v6358_v61  ;;  %v12659_v48 = vadd.f32 %v6599_v6, %v6359_v50  ;;  %v6400_v61 = vld [vmem:[#allocation6 + $0x68] sm:$0x3] }
 0x7f8   :  { %v6857_v33 = vpop.f32.mrf.mxu3  ;;  %v6890_v8 = vpop.f32.mrf.mxu2 }
 0x7f9   :  { %v6913_v13 = vadd.f32 %v6857_v33, %v12652_v35  ;;  %v6914_v34 = vadd.f32 %v6890_v8, %v12655_v60 }
 0x7fc   :  { %v6569_v26 = vpop.f32.mrf.mxu0  ;;  %v6602_v58 = vpop.f32.mrf.mxu1 }
 0x7fd   :  { %v12661_v62 = vadd.f32 %v6569_v26, %v6360_v7  ;;  %v12663_v19 = vadd.f32 %v6602_v58, %v6361_v28 }
 0x800   :  { %v6859_v30 = vpop.f32.mrf.mxu3  ;;  %v6892_v29 = vpop.f32.mrf.mxu2 }
 0x804   :  { %v6571_v23 = vpop.f32.mrf.mxu0  ;;  %v6604_v0 = vpop.f32.mrf.mxu1 }
 0x805   :  { %v12665_v40 = vadd.f32 %v6571_v23, %v6362_v3  ;;  %v12667_v42 = vadd.f32 %v6604_v0, %v6363_v31 }
 0x808   :  { %v6862_v32 = vpop.f32.mrf.mxu3  ;;  %v6895_v56 = vpop.f32.mrf.mxu2 }
 0x80c   :  { %v6574_v50 = vpop.f32.mrf.mxu0  ;;  %v6607_v41 = vpop.f32.mrf.mxu1 }
 0x80d   :  { %v6627_v51 = vadd.f32 %v6574_v50, %v6400_v61  ;;  %v6628_v59 = vadd.f32 %v6607_v41, %v6401_v47 }
 0x80f   :  { %6645 = vst [vmem:[#allocation6 + $0x68] sm:$0x3] %v6627_v51 }
 0x810   :  { %v12669_v45 = vpop.f32.mrf.mxu3  ;;  %v12671_v24 = vpop.f32.mrf.mxu2  ;;  %6646 = vst [vmem:[#allocation6 + $0x60] sm:$0x3] %v6628_v59 }
 0x814   :  { %v6576_v4 = vpop.f32.mrf.mxu0  ;;  %v6609_v63 = vpop.f32.mrf.mxu1 }
 0x816   :  { %v6663_v21 = vld [vmem:[#allocation6 + $0x68] sm:$0x3] }
 0x817   :  { %v6664_v54 = vld [vmem:[#allocation6 + $0x60] sm:$0x3] }
 0x818   :  { %v12673_v7 = vpop.f32.mrf.mxu3  ;;  %v12675_v28 = vpop.f32.mrf.mxu2 }
 0x81c   :  { %v7115_v10 = vpop.f32.mrf.mxu0  ;;  %v7148_v53 = vpop.f32.mrf.mxu1 }
 0x81d   :  { %v12679_v25 = vadd.f32 %v7115_v10, %v6909_v37  ;;  %v12681_v43 = vadd.f32 %v7148_v53, %v6910_v46 }
 0x81f   :  { %7190 = vst [vmem:[#allocation6] sm:$0xff] %v12679_v25 }
 0x820   :  { %v12684_v3 = vpop.f32.mrf.mxu3  ;;  %v12686_v31 = vpop.f32.mrf.mxu2  ;;  %7191 = vst [vmem:[#allocation6 + $0x38] sm:$0xff] %v12681_v43 }
 0x824   :  { %v7117_v14 = vpop.f32.mrf.mxu0  ;;  %v7150_v15 = vpop.f32.mrf.mxu1 }
 0x825   :  { %v7174_v1 = vadd.f32 %v7117_v14, %v6911_v55  ;;  %v12691_v2 = vadd.f32 %v7150_v15, %v6912_v11 }
 0x826   :  { %v7212_v16 = vld [vmem:[#allocation6] sm:$0xfe] }
 0x827   :  { %7192 = vst [vmem:[#allocation6 + $0x78] sm:$0xff] %v7174_v1  ;;  %v12693_v18 = vrot.slane %v7174_v1, 1  ;;  %v7220_v17 = vrot.slane %v7212_v16, 1  ;;  %v12696_v9 = vrot.slane %v12691_v2, 1  ;;  %v7213_v27 = vld [vmem:[#allocation6 + $0x38] sm:$0xfe] }
 0x828   :  { %v6872_v22 = vpop.f32.mrf.mxu3  ;;  %v6905_v44 = vpop.f32.mrf.mxu2  ;;  %7193 = vst [vmem:[#allocation6 + $0x58] sm:$0xff] %v12691_v2  ;;  %v7223_v12 = vrot.slane %v7213_v27, 1  ;;  %v7238_v30 = vld [vmem:[#allocation6] sm:$0x80]  ;;  %v7239_v0 = vld [vmem:[#allocation6 + $0x38] sm:$0x80] }
 0x829   :  { %v6925_v52 = vadd.f32 %v6872_v22, %v6663_v21  ;;  %v6926_v57 = vadd.f32 %v6905_v44, %v6664_v54  ;;  %v7222_v20 = vsel %vm967_vm4, %v7220_v17, %v12693_v18  ;;  %v7246_v32 = vrot.slane %v7238_v30, 1  ;;  %v7234_v47 = vld [vmem:[#allocation6] sm:$0xc0]  ;;  %v7235_v63 = vld [vmem:[#allocation6 + $0x38] sm:$0xc0] }
 0x82a   :  { %v7230_v49 = vmax.f32 %v12679_v25, %v7222_v20  ;;  %v7225_v38 = vsel %vm967_vm4, %v7223_v12, %v12696_v9  ;;  %v7248_v35 = vrot.slane %v7239_v0, 1 }
 0x82b   :  { %6943 = vst [vmem:[#allocation6 + $0x68] sm:$0x3] %v6925_v52  ;;  %v7231_v6 = vmax.f32 %v12681_v43, %v7225_v38  ;;  %v7247_v8 = vsel %vm967_vm4, %v7246_v32, %v12693_v18 }
 0x82c   :  { %6944 = vst [vmem:[#allocation6 + $0x60] sm:$0x3] %v6926_v57  ;;  %v7120_v39 = vpop.f32.mrf.mxu0  ;;  %v7153_v5 = vpop.f32.mrf.mxu1  ;;  %v7249_v61 = vsel %vm967_vm4, %v7248_v35, %v12696_v9  ;;  %v7260_v59 = vmax.f32 %v7234_v47, %v7247_v8  ;;  %v6924_v47 = vadd.f32 %v12686_v31, %v12667_v42 }
 0x82d   :  { %v7176_v26 = vadd.f32 %v7120_v39, %v6913_v13  ;;  %v7177_v58 = vadd.f32 %v7153_v5, %v6914_v34  ;;  %v7261_v25 = vmax.f32 %v7235_v63, %v7249_v61 }
 0x82e   :  { %v7210_v37 = vld [vmem:[#allocation6 + $0x78] sm:$0x7f]  ;;  %v7272_v17 = vrot.slane %v7260_v59, 6 }
 0x82f   :  { %7194 = vst [vmem:[#allocation6 + $0x20] sm:$0xff] %v7176_v26  ;;  %v7211_v15 = vld [vmem:[#allocation6 + $0x58] sm:$0x7f]  ;;  %v7232_v54 = vmax.f32 %v7210_v37, %v12693_v18  ;;  %v7275_v27 = vrot.slane %v7261_v25, 6  ;;  %v6919_v26 = vadd.f32 %v12669_v45, %v12657_v36  ;;  %v6921_v36 = vadd.f32 %v12673_v7, %v12661_v62 }
 0x830   :  { %v6874_v29 = vpop.f32.mrf.mxu3  ;;  %v6907_v23 = vpop.f32.mrf.mxu2  ;;  %7195 = vst [vmem:[#allocation6 + $0x8] sm:$0xff] %v7177_v58  ;;  %v7233_v12 = vmax.f32 %v7211_v15, %v12696_v9  ;;  %v6920_v58 = vadd.f32 %v12671_v24, %v12659_v48  ;;  %v6922_v48 = vadd.f32 %v12675_v28, %v12663_v19 }
 0x834   :  { %v7122_v33 = vpop.f32.mrf.mxu0  ;;  %v7155_v60 = vpop.f32.mrf.mxu1 }
 0x836   :  { %v7240_v56 = vld [vmem:[#allocation6 + $0x20] sm:$0x3f] }
 0x837   :  { %v7250_v50 = vrot.slane %v7240_v56, 1  ;;  %v7241_v41 = vld [vmem:[#allocation6 + $0x8] sm:$0x3f]  ;;  %v7236_v51 = vld [vmem:[#allocation6 + $0x20] sm:$0x1f] }
 0x838   :  { %v7252_v4 = vrot.slane %v7241_v41, 1  ;;  %v7237_v53 = vld [vmem:[#allocation6 + $0x8] sm:$0x1f] }
 0x839   :  { %v7251_v46 = vsel %vm967_vm4, %v12693_v18, %v7250_v50  ;;  %v7264_v10 = vmax.f32 %v7236_v51, %v7250_v50  ;;  %v6923_v50 = vadd.f32 %v12684_v3, %v12665_v40  ;;  %v6962_v3 = vld [vmem:[#allocation6 + $0x60] sm:$0x3] }
 0x83a   :  { %v7262_v43 = vmax.f32 %v7174_v1, %v7251_v46  ;;  %v7253_v55 = vsel %vm967_vm4, %v12696_v9, %v7252_v4  ;;  %v7265_v11 = vmax.f32 %v7237_v53, %v7252_v4 }
 0x83b   :  { %v7278_v14 = vrot.slane %v7264_v10, 6  ;;  %v7263_v21 = vmax.f32 %v12691_v2, %v7253_v55 }
 0x83c   :  { %v7125_v16 = vpop.f32.mrf.mxu0  ;;  %v7158_v22 = vpop.f32.mrf.mxu1  ;;  %v7273_v44 = vrot.slane %v7262_v43, 6  ;;  %v7280_v52 = vrot.slane %v7265_v11, 6  ;;  %v6961_v43 = vld [vmem:[#allocation6 + $0x68] sm:$0x3] }
 0x83d   :  { %v7276_v57 = vrot.slane %v7263_v21, 6 }
 0x83e   :  { %v7279_v20 = vsel %vm4607_vm12, %v7273_v44, %v7278_v14  ;;  %v7274_v1 = vsel %vm4607_vm12, %v7272_v17, %v7273_v44 }
 0x83f   :  { %v7288_v13 = vmax.f32 %v7232_v54, %v7279_v20  ;;  %v7286_v34 = vmax.f32 %v7230_v49, %v7274_v1  ;;  %v7281_v38 = vsel %vm4607_vm12, %v7276_v57, %v7280_v52  ;;  %v7277_v2 = vsel %vm4607_vm12, %v7275_v27, %v7276_v57  ;;  %v7294_v49 = vld [vmem:[#allocation13] sm:$0x1] }
 0x840   :  { %v7289_v39 = vmax.f32 %v7233_v12, %v7281_v38  ;;  %v7287_v5 = vmax.f32 %v7231_v6, %v7277_v2 }
 0x841   :  { %v7292_v18 = vmax.f32 %v7288_v13, 0.0  ;;  %v7290_v30 = vmax.f32 %v7286_v34, 0.0 }
 0x842   :  { %v7293_v23 = vmax.f32 %v7289_v39, 0.0  ;;  %v7291_v6 = vmax.f32 %v7287_v5, 0.0 }
 0x843   :  { %9543 = vmatpush.msk.msra.mxu3 %vm967_vm4, %v7292_v18 }
 0x844   :  { %v7127_v29 = vpop.f32.mrf.mxu0  ;;  %v7160_v9 = vpop.f32.mrf.mxu1 }
 0x845   :  { %v12727_v0 = vadd.f32 %v7127_v29, %v6919_v26  ;;  %v12729_v32 = vadd.f32 %v7160_v9, %v6920_v58  ;;  %7320 = vmatpush.msra.mxu3 %v7290_v30 }
 0x846   :  { %9544 = vmatmul.msk.f32.vlgmr.msra.gmra.mxu3 %vm7295_vm15, %v7294_v49 }
 0x847   :  { %9545 = vmatpush.msk.msrb.mxu3 %vm967_vm4, %v7293_v23  ;;  %7200 = vst [vmem:[#allocation6 + $0x50] sm:$0xff] %v12727_v0 }
 0x848   :  { %7201 = vst [vmem:[#allocation6 + $0x28] sm:$0xff] %v12729_v32 }
 0x849   :  { %7340 = vmatpush.msrb.mxu3 %v7291_v6 }
 0x84c   :  { %v7130_v45 = vpop.f32.mrf.mxu0  ;;  %v7163_v24 = vpop.f32.mrf.mxu1 }
 0x84d   :  { %v7184_v35 = vadd.f32 %v7130_v45, %v6921_v36  ;;  %v12739_v33 = vadd.f32 %v7163_v24, %v6922_v48 }
 0x84e   :  { %v7359_v60 = vld [vmem:[#allocation6 + $0x50] sm:$0xfe]  ;;  %9546 = vmatmul.msk.f32.vlgmr.msrb.gmra.mxu3 %vm7295_vm15, %v7294_v49 }
 0x84f   :  { %7202 = vst [vmem:[#allocation6 + $0x10] sm:$0xff] %v7184_v35  ;;  %v12741_v8 = vrot.slane %v7184_v35, 1  ;;  %v12744_v56 = vrot.slane %v12739_v33, 1  ;;  %v7367_v61 = vrot.slane %v7359_v60, 1  ;;  %v7360_v62 = vld [vmem:[#allocation6 + $0x28] sm:$0xfe] }
 0x850   :  { %7203 = vst [vmem:[#allocation6 + $0x48] sm:$0xff] %v12739_v33  ;;  %v7370_v7 = vrot.slane %v7360_v62, 1  ;;  %v7385_v46 = vld [vmem:[#allocation6 + $0x50] sm:$0x80]  ;;  %v7386_v10 = vld [vmem:[#allocation6 + $0x28] sm:$0x80] }
 0x851   :  { %v7369_v19 = vsel %vm967_vm4, %v7367_v61, %v12741_v8  ;;  %v7393_v53 = vrot.slane %v7385_v46, 1  ;;  %v7395_v25 = vrot.slane %v7386_v10, 1  ;;  %v7381_v21 = vld [vmem:[#allocation6 + $0x50] sm:$0xc0]  ;;  %v7382_v27 = vld [vmem:[#allocation6 + $0x28] sm:$0xc0]  ;;  %v7350_v10 = vlaneseq }
 0x852   :  { %v7377_v28 = vmax.f32 %v12727_v0, %v7369_v19  ;;  %v7372_v41 = vsel %vm967_vm4, %v7370_v7, %v12744_v56  ;;  %v7441_v19 = vld [vmem:[#allocation13] sm:$0x1] }
 0x853   :  { %v7378_v4 = vmax.f32 %v12729_v32, %v7372_v41  ;;  %v7394_v11 = vsel %vm967_vm4, %v7393_v53, %v12741_v8  ;;  %v7396_v16 = vsel %vm967_vm4, %v7395_v25, %v12744_v56  ;;  %v7513_v7 = vld [vmem:[%s12944_s10 + $0x70] sm:$0xff]  ;;  %v7511_v41 = vld [vmem:[%s12944_s10 + $0x60] sm:$0xff]  ;;  %vm12810_vm0 = vcmp.lt.s32.totalorder %v7350_v10, 256 }
 0x854   :  { %v7132_v51 = vpop.f32.mrf.mxu0  ;;  %v7165_v59 = vpop.f32.mrf.mxu1  ;;  %v7407_v44 = vmax.f32 %v7381_v21, %v7394_v11  ;;  %v7408_v13 = vmax.f32 %v7382_v27, %v7396_v16  ;;  %v7506_v11 = vld [vmem:[%s12944_s10 + $0x38] sm:$0xff]  ;;  %v7505_v21 = vld [vmem:[%s12944_s10 + $0x30] sm:$0xff] }
 0x855   :  { %v7186_v63 = vadd.f32 %v7132_v51, %v6923_v50  ;;  %v7187_v37 = vadd.f32 %v7165_v59, %v6924_v47  ;;  %v7512_v50 = vld [vmem:[%s12944_s10 + $0x68] sm:$0xff]  ;;  %v7529_v47 = vld [vmem:[%s12944_s10 + $0xf0] sm:$0xff]  ;;  %v7510_v59 = vld [vmem:[%s12944_s10 + $0x58] sm:$0xff] }
 0x856   :  { %v7357_v20 = vld [vmem:[#allocation6 + $0x10] sm:$0x7f]  ;;  %v7419_v30 = vrot.slane %v7407_v44, 6  ;;  %v7422_v32 = vrot.slane %v7408_v13, 6  ;;  %v7528_v51 = vld [vmem:[%s12944_s10 + $0xe8] sm:$0xff]  ;;  %v7521_v16 = vld [vmem:[%s12944_s10 + $0xb0] sm:$0xff] }
 0x857   :  { %7204 = vst [vmem:[#allocation6 + $0x30] sm:$0xff] %v7186_v63  ;;  %v7358_v26 = vld [vmem:[#allocation6 + $0x48] sm:$0x7f]  ;;  %v7379_v29 = vmax.f32 %v7357_v20, %v12741_v8  ;;  %v7503_v44 = vld [vmem:[%s12944_s10 + $0x20] sm:$0xff]  ;;  %v7518_v20 = vld [vmem:[%s12944_s10 + $0x98] sm:$0xff] }
 0x858   :  { %7205 = vst [vmem:[#allocation6 + $0x18] sm:$0xff] %v7187_v37  ;;  %v7380_v36 = vmax.f32 %v7358_v26, %v12744_v56  ;;  %v7509_v63 = vld [vmem:[%s12944_s10 + $0x50] sm:$0xff]  ;;  %v7526_v37 = vld [vmem:[%s12944_s10 + $0xd8] sm:$0xff] }
 0x859   :  { %v7596_v27 = vld [vmem:[%s12946_s12 + $0x70] sm:$0xff] }
 0x85a   :  { %v7517_v13 = vld [vmem:[%s12944_s10 + $0x90] sm:$0xff] }
 0x85b   :  { %v7592_v26 = vld [vmem:[%s12946_s12 + $0x50] sm:$0xff] }
 0x85c   :  { %v7135_v40 = vpop.f32.mrf.mxu0  ;;  %v7168_v55 = vpop.f32.mrf.mxu1 }
 0x85d   :  { %v7188_v42 = vadd.f32 %v7135_v40, %v6961_v43  ;;  %v7189_v31 = vadd.f32 %v7168_v55, %v6962_v3  ;;  %v7508_v40 = vld [vmem:[%s12944_s10 + $0x48] sm:$0xff]  ;;  %v7525_v3 = vld [vmem:[%s12944_s10 + $0xd0] sm:$0xff] }
 0x85e   :  { %v7387_v14 = vld [vmem:[#allocation6 + $0x30] sm:$0x3f] }
 0x85f   :  { %7206 = vst [vmem:[#allocation6 + $0x68] sm:$0x3] %v7188_v42  ;;  %v7397_v15 = vrot.slane %v7387_v14, 1  ;;  %v7383_v22 = vld [vmem:[#allocation6 + $0x30] sm:$0x1f]  ;;  %v7524_v42 = vld [vmem:[%s12944_s10 + $0xc8] sm:$0xff] }
 0x860   :  { %7207 = vst [vmem:[#allocation6 + $0x60] sm:$0x3] %v7189_v31  ;;  %v7388_v54 = vld [vmem:[#allocation6 + $0x18] sm:$0x3f] }
 0x861   :  { %v7398_v17 = vsel %vm967_vm4, %v12741_v8, %v7397_v15  ;;  %v7411_v52 = vmax.f32 %v7383_v22, %v7397_v15  ;;  %v7399_v57 = vrot.slane %v7388_v54, 1  ;;  %v7384_v12 = vld [vmem:[#allocation6 + $0x18] sm:$0x1f]  ;;  %v7522_v15 = vld [vmem:[%s12944_s10 + $0xb8] sm:$0xff]  ;;  %v7504_v22 = vld [vmem:[%s12944_s10 + $0x28] sm:$0xff] }
 0x862   :  { %v7409_v1 = vmax.f32 %v7184_v35, %v7398_v17  ;;  %v7507_v31 = vld [vmem:[%s12944_s10 + $0x40] sm:$0xff]  ;;  %v7520_v54 = vld [vmem:[%s12944_s10 + $0xa8] sm:$0xff] }
 0x863   :  { %v7425_v34 = vrot.slane %v7411_v52, 6  ;;  %v7400_v38 = vsel %vm967_vm4, %v12744_v56, %v7399_v57  ;;  %v7412_v2 = vmax.f32 %v7384_v12, %v7399_v57  ;;  %v7514_v56 = vld [vmem:[%s12944_s10 + $0x78] sm:$0xff]  ;;  %v7523_v14 = vld [vmem:[%s12944_s10 + $0xc0] sm:$0xff]  ;;  %v7595_v12 = vld [vmem:[%s12946_s12 + $0x68] sm:$0xff] }
 0x864   :  { %v7137_v39 = vpop.f32.mrf.mxu0  ;;  %v7170_v5 = vpop.f32.mrf.mxu1  ;;  %v7420_v18 = vrot.slane %v7409_v1, 6  ;;  %v7410_v58 = vmax.f32 %v12739_v33, %v7400_v38  ;;  %v7519_v17 = vld [vmem:[%s12944_s10 + $0xa0] sm:$0xff]  ;;  %v7502_v52 = vld [vmem:[%s12944_s10 + $0x18] sm:$0xff]  ;;  %v7501_v1 = vld [vmem:[%s12944_s10 + $0x10] sm:$0xff] }
 0x865   :  { %v7427_v9 = vrot.slane %v7412_v2, 6  ;;  %v7597_v57 = vld [vmem:[%s12946_s12 + $0x78] sm:$0xff]  ;;  %v7594_v38 = vld [vmem:[%s12946_s12 + $0x60] sm:$0xff]  ;;  %v7516_v2 = vld [vmem:[%s12944_s10 + $0x88] sm:$0xff] }
 0x866   :  { %v7426_v23 = vsel %vm4607_vm12, %v7420_v18, %v7425_v34  ;;  %v7423_v49 = vrot.slane %v7410_v58, 6  ;;  %v7421_v0 = vsel %vm4607_vm12, %v7419_v30, %v7420_v18  ;;  %7602 = vmatpush.msrb.mxu0 %v7597_v57  ;;  %v7500_v34 = vld [vmem:[%s12944_s10 + $0x8] sm:$0xff]  ;;  %v7499_v39 = vld [vmem:[%s12944_s10] sm:$0xff]  ;;  %v7593_v5 = vld [vmem:[%s12946_s12 + $0x58] sm:$0xff] }
 0x867   :  { %v7435_v6 = vmax.f32 %v7379_v29, %v7426_v23  ;;  %v7433_v48 = vmax.f32 %v7377_v28, %v7421_v0  ;;  %v7530_v28 = vld [vmem:[%s12944_s10 + $0xf8] sm:$0xff]  ;;  %v7515_v18 = vld [vmem:[%s12944_s10 + $0x80] sm:$0xff]  ;;  %v7591_v58 = vld [vmem:[%s12946_s12 + $0x48] sm:$0xff] }
 0x868   :  { %v7428_v45 = vsel %vm4607_vm12, %v7423_v49, %v7427_v9  ;;  %v7424_v24 = vsel %vm4607_vm12, %v7422_v32, %v7423_v49  ;;  %7603 = vmatpush.msrb.mxu0 %v7596_v27  ;;  %v7590_v9 = vld [vmem:[%s12946_s12 + $0x40] sm:$0xff]  ;;  %v7589_v49 = vld [vmem:[%s12946_s12 + $0x38] sm:$0xff]  ;;  %v7588_v32 = vld [vmem:[%s12946_s12 + $0x30] sm:$0xff] }
 0x869   :  { %v7439_v35 = vmax.f32 %v7435_v6, 0.0  ;;  %v7436_v33 = vmax.f32 %v7380_v36, %v7428_v45  ;;  %v7434_v60 = vmax.f32 %v7378_v4, %v7424_v24  ;;  %v7437_v61 = vmax.f32 %v7433_v48, 0.0  ;;  %v7527_v4 = vld [vmem:[%s12944_s10 + $0xe0] sm:$0xff]  ;;  %v7587_v6 = vld [vmem:[%s12946_s12 + $0x28] sm:$0xff] }
 0x86a   :  { %7604 = vmatpush.msrb.mxu0 %v7595_v12  ;;  %v7586_v36 = vld [vmem:[%s12946_s12 + $0x20] sm:$0xff] }
 0x86b   :  { %9547 = vmatpush.msk.msra.mxu2 %vm967_vm4, %v7439_v35  ;;  %v7440_v8 = vmax.f32 %v7436_v33, 0.0  ;;  %v7438_v62 = vmax.f32 %v7434_v60, 0.0  ;;  %v7585_v35 = vld [vmem:[%s12946_s12 + $0x18] sm:$0xff]  ;;  %v7584_v33 = vld [vmem:[%s12946_s12 + $0x10] sm:$0xff]  ;;  %v7583_v60 = vld [vmem:[%s12946_s12 + $0x8] sm:$0xff] }
 0x86c   :  { %7605 = vmatpush.msrb.mxu0 %v7594_v38 }
 0x86d   :  { %9549 = vmatpush.msk.msra.mxu3 %vm967_vm4, %v7440_v8  ;;  %7466 = vmatpush.msra.mxu2 %v7437_v61  ;;  %v7582_v8 = vld [vmem:[%s12946_s12] sm:$0xff]  ;;  %v9970_v61 = vld [vmem:[#allocation14] ss:$0 sm:$0xff] }
 0x86e   :  { %9548 = vmatmul.msk.f32.vlgmr.msra.gmra.mxu2 %vm7295_vm15, %v7441_v19  ;;  %7606 = vmatpush.msrb.mxu0 %v7593_v5 }
 0x86f   :  { %7486 = vmatpush.msra.mxu3 %v7438_v62  ;;  %7541 = vmatpush.msrb.mxu2 %v7514_v56 }
 0x870   :  { %9550 = vmatmul.msk.f32.vlgmr.msra.gmra.mxu3 %vm7295_vm15, %v7441_v19  ;;  %7607 = vmatpush.msrb.mxu0 %v7592_v26 }
 0x871   :  { %7561 = vmatpush.msrb.mxu3 %v7530_v28  ;;  %7542 = vmatpush.msrb.mxu2 %v7513_v7 }
 0x872   :  { %7608 = vmatpush.msrb.mxu0 %v7591_v58 }
 0x873   :  { %7543 = vmatpush.msrb.mxu2 %v7512_v50  ;;  %7562 = vmatpush.msrb.mxu3 %v7529_v47  ;;  %v9971_v50 = vld [vmem:[#allocation16] ss:$0 sm:$0xff] }
 0x874   :  { %7609 = vmatpush.msrb.mxu0 %v7590_v9 }
 0x875   :  { %7544 = vmatpush.msrb.mxu2 %v7511_v41  ;;  %7563 = vmatpush.msrb.mxu3 %v7528_v51 }
 0x876   :  { %7610 = vmatpush.msrb.mxu0 %v7589_v49 }
 0x877   :  { %7545 = vmatpush.msrb.mxu2 %v7510_v59  ;;  %7564 = vmatpush.msrb.mxu3 %v7527_v4 }
 0x878   :  { %7611 = vmatpush.msrb.mxu0 %v7588_v32 }
 0x879   :  { %7546 = vmatpush.msrb.mxu2 %v7509_v63  ;;  %7565 = vmatpush.msrb.mxu3 %v7526_v37 }
 0x87a   :  { %7612 = vmatpush.msrb.mxu0 %v7587_v6 }
 0x87b   :  { %7547 = vmatpush.msrb.mxu2 %v7508_v40  ;;  %7566 = vmatpush.msrb.mxu3 %v7525_v3 }
 0x87c   :  { %7613 = vmatpush.msrb.mxu0 %v7586_v36 }
 0x87d   :  { %7567 = vmatpush.msrb.mxu3 %v7524_v42  ;;  %7548 = vmatpush.msrb.mxu2 %v7507_v31 }
 0x87e   :  { %7614 = vmatpush.msrb.mxu0 %v7585_v35 }
 0x87f   :  { %7568 = vmatpush.msrb.mxu3 %v7523_v14  ;;  %7549 = vmatpush.msrb.mxu2 %v7506_v11 }
 0x880   :  { %7615 = vmatpush.msrb.mxu0 %v7584_v33 }
 0x881   :  { %7569 = vmatpush.msrb.mxu3 %v7522_v15  ;;  %7550 = vmatpush.msrb.mxu2 %v7505_v21 }
 0x882   :  { %7616 = vmatpush.msrb.mxu0 %v7583_v60 }
 0x883   :  { %7570 = vmatpush.msrb.mxu3 %v7521_v16  ;;  %7551 = vmatpush.msrb.mxu2 %v7504_v22 }
 0x884   :  { %7617 = vmatpush.msrb.mxu0 %v7582_v8 }
 0x885   :  { %7571 = vmatpush.msrb.mxu3 %v7520_v54  ;;  %7552 = vmatpush.msrb.mxu2 %v7503_v44 }
 0x887   :  { %7572 = vmatpush.msrb.mxu3 %v7519_v17  ;;  %7553 = vmatpush.msrb.mxu2 %v7502_v52 }
 0x889   :  { %7573 = vmatpush.msrb.mxu3 %v7518_v20  ;;  %7554 = vmatpush.msrb.mxu2 %v7501_v1 }
 0x88b   :  { %7574 = vmatpush.msrb.mxu3 %v7517_v13  ;;  %7555 = vmatpush.msrb.mxu2 %v7500_v34 }
 0x88d   :  { %7575 = vmatpush.msrb.mxu3 %v7516_v2  ;;  %7556 = vmatpush.msrb.mxu2 %v7499_v39 }
 0x88f   :  { %7576 = vmatpush.msrb.mxu3 %v7515_v18 }
 0x8c9   :  { %v7322_v46 = vpop.f32.mrf.mxu3 }
 0x8d1   :  { %v7342_v53 = vpop.f32.mrf.mxu3 }
 0x8d2   :  { %v7347_v25 = vrot.slane %v7342_v53, 7 }
 0x8d4   :  { %v7348_v55 = vsel %vm4606_vm11, %v7322_v46, %v7347_v25 }
 0x8d5   :  { %7354 = vst.msk [vmem:[#allocation7] ss:$2 sm:$0x3] %vm12810_vm0, %v7348_v55 }
 0x8f1   :  { %v7468_v29 = vpop.f32.mrf.mxu2 }
 0x8f3   :  { %v7488_v30 = vpop.f32.mrf.mxu3 }
 0x8f4   :  { %v7493_v23 = vrot.slane %v7488_v30, 7 }
 0x8f6   :  { %v7494_v0 = vsel %vm4606_vm11, %v7468_v29, %v7493_v23 }
 0x8f7   :  { %7497 = vst.msk [vmem:[#allocation7 + $0x1] ss:$2 sm:$0x3] %vm12810_vm0, %v7494_v0 }
 0x8fe   :  { %v7498_v48 = vld [vmem:[#allocation7] sm:$0xf] }
 0x8ff   :  { %7536 = vst [vmem:[#allocation1] ss:$4 sm:$0xff] %v7498_v48 }
 0x906   :  { %v7537_v45 = vld.sshfl [vmem:[#allocation1] sm:$0xff pattern:$0x73625140]  ;;  %v7538_v24 = vld.sshfl [vmem:[#allocation1 + $0x8] sm:$0xff pattern:$0x73625140] }
 0x907   :  { %7557 = vmatmul.f32.vlgmr.msrb.gmra.mxu2 %v7537_v45  ;;  %7577 = vmatmul.f32.vlgmr.msrb.gmra.mxu3 %v7538_v24 }
 0x98a   :  { %v7558_v62 = vpop.f32.mrf.mxu2  ;;  %v7578_v56 = vpop.f32.mrf.mxu3 }
 0x98b   :  { %v7559_v19 = vadd.f32 %v9970_v61, %v7558_v62 }
 0x98d   :  { %v7579_v7 = vadd.f32 %v7578_v56, %v7559_v19 }
 0x98f   :  { %v7581_v28 = vmax.f32 %v7579_v7, 0.0 }
 0x991   :  { %7618 = vmatmul.f32.vlgmr.msrb.gmra.mxu0 %v7581_v28 }
 0xa0e   :  { %v7619_v47 = vpop.f32.mrf.mxu0 }
 0xa0f   :  { %v7620_v41 = vadd.f32 %v9971_v50, %v7619_v47 }
 0xa11   :  { %7623 = vst.msk [vmem:[#allocation17] sm:$0x3] %vm7622_vm1, %v7620_v41 }
 0xa12   :  { %7634 = dma.vmem_to_hbm [thread:$0]  %s7630_s21, 32, %s7632_s24, [#allocation10]  }
 0xa13   :  { %10124 = dma.done.wait [#allocation10], 32  }
 0xa14   :  { %10125 = vsyncadd [#allocation10], 4294967264 }
 0xa15   :  { %7639 = vsyncpa [#allocation9], 1 }
 0xa16   :  { %7640 = vsyncpa [#allocation12], 1 }
 0xa17   :  { %7641 = vsyncpa [#allocation15], 1 }
 0xa18   :  { %7642 = vsyncpa [#allocation10], 1 }

</bundles_post_ra>
